<compile_context>
chip_gen: v5e
topology: v5e:2x2
jax: 0.10.0
libtpu: 0.0.40
codegen_flags: <defaults>
</compile_context>

<pallas_src>
import functools

import jax
import jax.numpy as jnp
from jax.experimental import pallas as pl
from jax.experimental.pallas import tpu as pltpu


def _silu(z):
    return z * jax.nn.sigmoid(z)


def mffb_kernel(x_ref, ss_ref, mask_ref, bias_ref, wf_ref, w2_ref, wo_ref,
                out_ref, *, H, W):
    HW = H * W
    Co = out_ref.shape[1]
    Ch = Co // 2

    x = x_ref[0].astype(jnp.float32)            # (C, HW) — lane-dense, f32
    masks = mask_ref[...]                       # (9, HW) f32, host-precomputed
    ss = ss_ref[0].astype(jnp.float32)          # (2*Co, 1): [scale + 1 ; shift]
    scale_p1 = ss[:Co, :]
    shift = ss[Co:, :]

    def conv3x3(z, w_tap, cout):
        """3x3 / pad=1 conv as 9 per-tap bf16 MXU matmuls accumulated in f32.

        z: (cin, HW) f32 resident activation; w_tap(t) -> (cout, cin) bf16.
        No im2col slab is materialised (VMEM-light; no concatenate).
        """
        acc = jnp.zeros((cout, HW), jnp.float32)
        t = 0
        for dy in range(3):
            for dx in range(3):
                s = (dy - 1) * W + (dx - 1)         # flat-index tap offset
                if s == 0:
                    tap = z.astype(jnp.bfloat16)    # centre tap: no shift/mask
                else:
                    shifted = pltpu.roll(z, (-s) % HW, 1)      # XLU lane rotate
                    tap = (shifted * masks[t:t + 1, :]).astype(jnp.bfloat16)
                acc = acc + jnp.dot(w_tap(t), tap,
                                    preferred_element_type=jnp.float32)
                t += 1
        return acc

    def mffm(h, m):
        """MFFM with in_ch == out_ch (skip_connect == Identity)."""
        base = m * (2 * Co + Ch)                    # static bias-slab offsets
        bf = bias_ref[pl.ds(base, Co), :]           # fused conv_1|conv_2[0] bias
        b2 = bias_ref[pl.ds(base + Co, Ch), :]      # conv_2[1] bias
        bo = bias_ref[pl.ds(base + Co + Ch, Co), :]  # out_conv bias

        # Fused first layer: [conv_1 | conv_2[0]] as one block-diagonal conv.
        f = _silu(conv3x3(h, lambda t: wf_ref[m, t], Co) + bf)   # (Co, HW) f32
        c1 = f[:Ch, :]                                            # conv_1 out
        c2a = f[Ch:, :]                                           # conv_2[0] out
        c2 = conv3x3(c2a, lambda t: w2_ref[m, t], Ch) + b2        # conv_2[1]

        # out_conv (1x1), concat-free: wo1 @ c1 + wo2 @ c2.
        o = (jnp.dot(wo_ref[m, 0], c1.astype(jnp.bfloat16),
                     preferred_element_type=jnp.float32)
             + jnp.dot(wo_ref[m, 1], c2.astype(jnp.bfloat16),
                       preferred_element_type=jnp.float32)
             + bo)
        return o + h

    h = mffm(x, 0)
    h = h * scale_p1 + shift          # emb scale/shift (Linear hoisted to XLA)
    # nn.Dropout: identity (inference / eval semantics).
    h = mffm(h, 1)
    # MFFB skip_connect: Identity (channels == out_channels).
    # TODO(synk): add the 1x1-conv skip path for channels != out_channels.
    h = h + x
    out_ref[0] = h.astype(out_ref.dtype)


def make_border_masks(H, W):
    """(9, H*W) f32 validity masks for the 3x3 taps of a pad=1 conv."""
    pos = jnp.arange(H * W, dtype=jnp.int32)
    row, col = pos // W, pos % W
    ms = []
    for dy in range(3):
        for dx in range(3):
            ry, cx = row + (dy - 1), col + (dx - 1)
            valid = (ry >= 0) & (ry < H) & (cx >= 0) & (cx < W)
            ms.append(valid.astype(jnp.float32))
    return jnp.stack(ms, axis=0)


def pack_params(params):
    """Host-side repack into bf16 per-tap weight stacks + one f32 bias slab."""

    def tapize(w_hwio):
        # (3, 3, cin, cout) -> (9, cout, cin); tap index t = dy*3 + dx.
        kh, kw, cin, cout = w_hwio.shape
        return jnp.transpose(w_hwio, (0, 1, 3, 2)).reshape(kh * kw, cout, cin)

    def fused_first(c1w, c2aw):
        # Block-diagonal fusion of conv_1 and conv_2[0]: acts on the full input
        # channel dim and produces [c1_pre ; c2a_pre] stacked on out channels.
        z = jnp.zeros_like(c1w)
        top = jnp.concatenate([c1w, z], axis=2)        # reads first half only
        bot = jnp.concatenate([z, c2aw], axis=2)       # reads second half only
        return tapize(jnp.concatenate([top, bot], axis=3))   # (9, Co, Cin)

    def colvec(b):
        return b.reshape(-1, 1)

    WF, W2, WO, BIAS = [], [], [], []
    for pre in ('e1_', 'e2_'):
        Ch = params[pre + 'c2bw'].shape[-1]
        WF.append(fused_first(params[pre + 'c1w'], params[pre + 'c2aw']))
        W2.append(tapize(params[pre + 'c2bw']))
        wo_t = params[pre + 'ow'].T                     # (cout, cin)
        WO.append(jnp.stack([wo_t[:, :Ch], wo_t[:, Ch:]], axis=0))  # (2, Co, Ch)
        BIAS += [jnp.concatenate([colvec(params[pre + 'c1b']),
                                  colvec(params[pre + 'c2ab'])], axis=0),
                 colvec(params[pre + 'c2bb']),
                 colvec(params[pre + 'ob'])]
    wf = jnp.stack(WF, 0).astype(jnp.bfloat16)     # (2, 9, Co, Cin)
    w2 = jnp.stack(W2, 0).astype(jnp.bfloat16)     # (2, 9, Ch, Ch)
    wo = jnp.stack(WO, 0).astype(jnp.bfloat16)     # (2, 2, Co, Ch)
    bias = jnp.concatenate(BIAS, axis=0).astype(jnp.float32)  # (2*(2Co+Ch), 1)
    return wf, w2, wo, bias


def mffb_forward(x_nchw, emb, params):
    B, C, H, W = x_nchw.shape
    Co = params['e1_ow'].shape[-1]
    assert C == Co, "kernel implements the channels == out_channels case"
    HW = H * W

    # NCHW -> (B, C, H*W): pure reshape, spatial axis stays lane-dense.
    x_flat = x_nchw.reshape(B, C, HW)

    # Hoisted emb path: SiLU -> Linear -> scale/shift (computed once in XLA).
    eo = _silu(emb.astype(jnp.float32)) @ params['lin_w'] + params['lin_b']
    scale, shift = eo[:, :Co], eo[:, Co:]
    ss = jnp.concatenate([scale + 1.0, shift], axis=1).reshape(B, 2 * Co, 1)
    ss = ss.astype(jnp.float32)

    masks = make_border_masks(H, W)            # (9, HW) f32
    wf, w2, wo, bias = pack_params(params)     # bf16 weights, f32 bias slab

    # Explicit VMEM budget: I/O blocks + consts (x2 margin) + generous temps,
    # clamped to [32 MiB, 56 MiB] (inside v7x's 64 MiB physical VMEM).
    wbytes = (wf.size + w2.size + wo.size) * 2                  # bf16
    cbytes = (masks.size + bias.size * 128) * 4                 # lane-padded
    abytes = (C + Co) * HW * 4                                  # x + out block
    est = 2 * abytes + 2 * (wbytes + cbytes) + 12 * Co * HW * 4
    vmem_limit = int(min(max(est, 32 << 20), 56 << 20))

    def build(single_buffer_consts):
        def const_spec(shape):
            nd = len(shape)
            if single_buffer_consts:
                # Constant block index over grid=(B,): one buffer is enough.
                return pl.BlockSpec(shape, lambda b, nd=nd: (0,) * nd,
                                    pipeline_mode=pl.Buffered(1))
            return pl.BlockSpec(shape, lambda b, nd=nd: (0,) * nd)

        in_specs = [pl.BlockSpec((1, C, HW), lambda b: (b, 0, 0)),
                    pl.BlockSpec((1, 2 * Co, 1), lambda b: (b, 0, 0)),
                    const_spec(masks.shape), const_spec(bias.shape),
                    const_spec(wf.shape), const_spec(w2.shape),
                    const_spec(wo.shape)]
        return pl.pallas_call(
            functools.partial(mffb_kernel, H=H, W=W),
            out_shape=jax.ShapeDtypeStruct((B, Co, HW), x_nchw.dtype),
            grid_spec=pltpu.PrefetchScalarGridSpec(
                num_scalar_prefetch=0,
                grid=(B,),
                in_specs=in_specs,
                out_specs=pl.BlockSpec((1, Co, HW), lambda b: (b, 0, 0))),
            compiler_params=pltpu.CompilerParams(
                dimension_semantics=("parallel",),
                vmem_limit_bytes=vmem_limit))

    args = (x_flat, ss, masks, bias, wf, w2, wo)
    try:
        out = build(True)(*args)
    except Exception:
        # pipeline_mode=pl.Buffered(1) not supported on this jax build:
        # fall back to default buffering for the constant-index inputs.
        out = build(False)(*args)

    # (B, Co, H*W) -> NCHW: pure reshape.
    return out.reshape(B, Co, H, W)


def init_params(key, channels, emb_channels, out_channels):
    Ci2, Co2 = channels // 2, out_channels // 2
    shapes = {
        'lin_w': (emb_channels, 2 * out_channels),
        'lin_b': (1, 2 * out_channels),
        'e1_c1w': (3, 3, Ci2, Co2), 'e1_c1b': (1, Co2),
        'e1_c2aw': (3, 3, Ci2, Co2), 'e1_c2ab': (1, Co2),
        'e1_c2bw': (3, 3, Co2, Co2), 'e1_c2bb': (1, Co2),
        'e1_ow': (out_channels, out_channels), 'e1_ob': (1, out_channels),
        'e2_c1w': (3, 3, Co2, Co2), 'e2_c1b': (1, Co2),
        'e2_c2aw': (3, 3, Co2, Co2), 'e2_c2ab': (1, Co2),
        'e2_c2bw': (3, 3, Co2, Co2), 'e2_c2bb': (1, Co2),
        'e2_ow': (out_channels, out_channels), 'e2_ob': (1, out_channels),
    }
    params = {}
    keys = jax.random.split(key, len(shapes))
    for k, (name, shp) in zip(keys, shapes.items()):
        params[name] = jax.random.normal(k, shp, jnp.float32) * 0.05
    return params


def mffb_reference(x_nchw, emb, params):
    """Pure-JAX f32 reference with identical semantics (for validation)."""
    B, C, H, W = x_nchw.shape
    Co = params['e1_ow'].shape[-1]
    x = jnp.transpose(x_nchw, (0, 2, 3, 1)).astype(jnp.float32)   # NHWC

    def conv3x3(z, w, b):
        zp = jnp.pad(z, ((0, 0), (1, 1), (1, 1), (0, 0)))
        acc = jnp.zeros(z.shape[:3] + (w.shape[-1],), jnp.float32)
        for dy in range(3):
            for dx in range(3):
                acc = acc + jnp.einsum('bhwc,cd->bhwd',
                                       zp[:, dy:dy + H, dx:dx + W, :], w[dy, dx])
        return acc + b.reshape(1, 1, 1, -1)

    def mffm(h, p):
        c = h.shape[-1]
        h1, h2 = h[..., :c // 2], h[..., c // 2:]
        c1 = _silu(conv3x3(h1, p['c1w'], p['c1b']))
        c2 = conv3x3(_silu(conv3x3(h2, p['c2aw'], p['c2ab'])), p['c2bw'], p['c2bb'])
        cc = jnp.concatenate([c1, c2], axis=-1)
        o = jnp.einsum('bhwc,cd->bhwd', cc, p['ow']) + p['ob'].reshape(1, 1, 1, -1)
        return o + h

    def pick(prefix):
        return {k[len(prefix):]: v for k, v in params.items() if k.startswith(prefix)}

    eo = _silu(emb.astype(jnp.float32)) @ params['lin_w'] + params['lin_b']
    scale, shift = eo[:, :Co], eo[:, Co:]
    h = mffm(x, pick('e1_'))
    h = h * (scale[:, None, None, :] + 1.0) + shift[:, None, None, :]
    h = mffm(h, pick('e2_'))
    h = h + x
    return jnp.transpose(h, (0, 3, 1, 2))


if __name__ == "__main__":
    # Ch = Co//2 = 16: aligned with both f32 (8) and bf16 (16) sublane packs.
    B, C, H, W = 2, 32, 16, 16
    E = 32
    Co = 32

    key = jax.random.PRNGKey(0)
    kx, ke, kp = jax.random.split(key, 3)
    x = jax.random.normal(kx, (B, C, H, W), jnp.float32)
    emb = jax.random.normal(ke, (B, E), jnp.float32)
    params = init_params(kp, C, E, Co)

    out = jax.block_until_ready(mffb_forward(x, emb, params))
    assert out.shape == (B, Co, H, W)
    assert bool(jnp.all(jnp.isfinite(out)))

    ref = mffb_reference(x, emb, params)
    max_err = float(jnp.max(jnp.abs(out - ref)))
    mean_err = float(jnp.mean(jnp.abs(out - ref)))
    # Tolerances loosened vs the all-f32 revision because matmul operands are
    # now bf16 (accumulation stays f32); still far below any structural-bug
    # error magnitude.
    assert max_err < 5e-2, f"max abs err vs reference: {max_err}"
    assert mean_err < 5e-3, f"mean abs err vs reference: {mean_err}"

    print("KERNEL_OK")
</pallas_src>

<mosaic_0001>
module attributes {stable_mosaic.version = 11 : i64} {
  func.func @mffb_kernel(%arg0: i32, %arg1: memref<1x32x256xf32, #tpu.memory_space<vmem>>, %arg2: memref<1x64x1xf32, #tpu.memory_space<vmem>>, %arg3: memref<9x256xf32, #tpu.memory_space<vmem>>, %arg4: memref<160x1xf32, #tpu.memory_space<vmem>>, %arg5: memref<2x9x32x32xbf16, #tpu.memory_space<vmem>>, %arg6: memref<2x9x16x16xbf16, #tpu.memory_space<vmem>>, %arg7: memref<2x2x32x16xbf16, #tpu.memory_space<vmem>>, %arg8: memref<1x32x256xf32, #tpu.memory_space<vmem>>) attributes {dimension_semantics = [#tpu.dimension_semantics<parallel>], iteration_bounds = array<i64: 2>, scalar_prefetch = 0 : i64, scratch_operands = 0 : i64, tpu.core_type = #tpu.core_type<tc>, window_params = [{transform_indices = @transform_0, window_bounds = array<i64: 1, 32, 256>}, {transform_indices = @transform_1, window_bounds = array<i64: 1, 64, 1>}, {pipeline_mode = #tpu.pipeline_mode<synchronous>, transform_indices = @transform_2, window_bounds = array<i64: 9, 256>}, {pipeline_mode = #tpu.pipeline_mode<synchronous>, transform_indices = @transform_3, window_bounds = array<i64: 160, 1>}, {pipeline_mode = #tpu.pipeline_mode<synchronous>, transform_indices = @transform_4, window_bounds = array<i64: 2, 9, 32, 32>}, {pipeline_mode = #tpu.pipeline_mode<synchronous>, transform_indices = @transform_5, window_bounds = array<i64: 2, 9, 16, 16>}, {pipeline_mode = #tpu.pipeline_mode<synchronous>, transform_indices = @transform_6, window_bounds = array<i64: 2, 2, 32, 16>}, {transform_indices = @transform_7, window_bounds = array<i64: 1, 32, 256>}]} {
    %c0 = arith.constant 0 : index
    %c0_0 = arith.constant 0 : index
    %c0_1 = arith.constant 0 : index
    %0 = vector.load %arg1[%c0, %c0_0, %c0_1] : memref<1x32x256xf32, #tpu.memory_space<vmem>>, vector<1x32x256xf32>
    %1 = vector.shape_cast %0 : vector<1x32x256xf32> to vector<32x256xf32>
    %c0_2 = arith.constant 0 : index
    %c0_3 = arith.constant 0 : index
    %2 = vector.load %arg3[%c0_2, %c0_3] : memref<9x256xf32, #tpu.memory_space<vmem>>, vector<9x256xf32>
    %c0_4 = arith.constant 0 : index
    %c0_5 = arith.constant 0 : index
    %c0_6 = arith.constant 0 : index
    %3 = vector.load %arg2[%c0_4, %c0_5, %c0_6] : memref<1x64x1xf32, #tpu.memory_space<vmem>>, vector<1x64x1xf32>
    %4 = vector.shape_cast %3 : vector<1x64x1xf32> to vector<64x1xf32>
    %5 = vector.extract_strided_slice %4 {offsets = [0, 0], sizes = [32, 1], strides = [1, 1]} : vector<64x1xf32> to vector<32x1xf32>
    %6 = vector.extract_strided_slice %4 {offsets = [32, 0], sizes = [32, 1], strides = [1, 1]} : vector<64x1xf32> to vector<32x1xf32>
    %c0_7 = arith.constant 0 : index
    %c0_8 = arith.constant 0 : index
    %7 = vector.load %arg4[%c0_7, %c0_8] : memref<160x1xf32, #tpu.memory_space<vmem>>, vector<32x1xf32>
    %c32 = arith.constant 32 : index
    %c0_9 = arith.constant 0 : index
    %8 = vector.load %arg4[%c32, %c0_9] : memref<160x1xf32, #tpu.memory_space<vmem>>, vector<16x1xf32>
    %c48 = arith.constant 48 : index
    %c0_10 = arith.constant 0 : index
    %9 = vector.load %arg4[%c48, %c0_10] : memref<160x1xf32, #tpu.memory_space<vmem>>, vector<32x1xf32>
    %cst = arith.constant 0.000000e+00 : f32
    %10 = vector.broadcast %cst : f32 to vector<32x256xf32>
    %c17_i32 = arith.constant 17 : i32
    %11 = tpu.dynamic_rotate %1 by %c17_i32 dim 1 : vector<32x256xf32>, i32 -> vector<32x256xf32>
    %12 = vector.extract_strided_slice %2 {offsets = [0, 0], sizes = [1, 256], strides = [1, 1]} : vector<9x256xf32> to vector<1x256xf32>
    %13 = vector.broadcast %12 : vector<1x256xf32> to vector<32x256xf32>
    %14 = arith.mulf %11, %13 : vector<32x256xf32>
    %15 = arith.truncf %14 : vector<32x256xf32> to vector<32x256xbf16>
    %c0_11 = arith.constant 0 : index
    %c0_12 = arith.constant 0 : index
    %c0_13 = arith.constant 0 : index
    %c0_14 = arith.constant 0 : index
    %16 = vector.load %arg5[%c0_11, %c0_12, %c0_13, %c0_14] : memref<2x9x32x32xbf16, #tpu.memory_space<vmem>>, vector<1x1x32x32xbf16>
    %17 = vector.shape_cast %16 : vector<1x1x32x32xbf16> to vector<32x32xbf16>
    %cst_15 = arith.constant dense<0.000000e+00> : vector<32x256xf32>
    %18 = tpu.matmul %17, %15, %cst_15 {dimension_numbers = #tpu.dot_dimension_numbers<[1], [0], [0], [1], [0, 0, 1, 1], [], []>} : vector<32x32xbf16>, vector<32x256xbf16>, vector<32x256xf32> -> vector<32x256xf32>
    %19 = arith.addf %10, %18 : vector<32x256xf32>
    %c16_i32 = arith.constant 16 : i32
    %20 = tpu.dynamic_rotate %1 by %c16_i32 dim 1 : vector<32x256xf32>, i32 -> vector<32x256xf32>
    %21 = vector.extract_strided_slice %2 {offsets = [1, 0], sizes = [1, 256], strides = [1, 1]} : vector<9x256xf32> to vector<1x256xf32>
    %22 = vector.broadcast %21 : vector<1x256xf32> to vector<32x256xf32>
    %23 = arith.mulf %20, %22 : vector<32x256xf32>
    %24 = arith.truncf %23 : vector<32x256xf32> to vector<32x256xbf16>
    %c0_16 = arith.constant 0 : index
    %c1 = arith.constant 1 : index
    %c0_17 = arith.constant 0 : index
    %c0_18 = arith.constant 0 : index
    %25 = vector.load %arg5[%c0_16, %c1, %c0_17, %c0_18] : memref<2x9x32x32xbf16, #tpu.memory_space<vmem>>, vector<1x1x32x32xbf16>
    %26 = vector.shape_cast %25 : vector<1x1x32x32xbf16> to vector<32x32xbf16>
    %cst_19 = arith.constant dense<0.000000e+00> : vector<32x256xf32>
    %27 = tpu.matmul %26, %24, %cst_19 {dimension_numbers = #tpu.dot_dimension_numbers<[1], [0], [0], [1], [0, 0, 1, 1], [], []>} : vector<32x32xbf16>, vector<32x256xbf16>, vector<32x256xf32> -> vector<32x256xf32>
    %28 = arith.addf %19, %27 : vector<32x256xf32>
    %c15_i32 = arith.constant 15 : i32
    %29 = tpu.dynamic_rotate %1 by %c15_i32 dim 1 : vector<32x256xf32>, i32 -> vector<32x256xf32>
    %30 = vector.extract_strided_slice %2 {offsets = [2, 0], sizes = [1, 256], strides = [1, 1]} : vector<9x256xf32> to vector<1x256xf32>
    %31 = vector.broadcast %30 : vector<1x256xf32> to vector<32x256xf32>
    %32 = arith.mulf %29, %31 : vector<32x256xf32>
    %33 = arith.truncf %32 : vector<32x256xf32> to vector<32x256xbf16>
    %c0_20 = arith.constant 0 : index
    %c2 = arith.constant 2 : index
    %c0_21 = arith.constant 0 : index
    %c0_22 = arith.constant 0 : index
    %34 = vector.load %arg5[%c0_20, %c2, %c0_21, %c0_22] : memref<2x9x32x32xbf16, #tpu.memory_space<vmem>>, vector<1x1x32x32xbf16>
    %35 = vector.shape_cast %34 : vector<1x1x32x32xbf16> to vector<32x32xbf16>
    %cst_23 = arith.constant dense<0.000000e+00> : vector<32x256xf32>
    %36 = tpu.matmul %35, %33, %cst_23 {dimension_numbers = #tpu.dot_dimension_numbers<[1], [0], [0], [1], [0, 0, 1, 1], [], []>} : vector<32x32xbf16>, vector<32x256xbf16>, vector<32x256xf32> -> vector<32x256xf32>
    %37 = arith.addf %28, %36 : vector<32x256xf32>
    %c1_i32 = arith.constant 1 : i32
    %38 = tpu.dynamic_rotate %1 by %c1_i32 dim 1 : vector<32x256xf32>, i32 -> vector<32x256xf32>
    %39 = vector.extract_strided_slice %2 {offsets = [3, 0], sizes = [1, 256], strides = [1, 1]} : vector<9x256xf32> to vector<1x256xf32>
    %40 = vector.broadcast %39 : vector<1x256xf32> to vector<32x256xf32>
    %41 = arith.mulf %38, %40 : vector<32x256xf32>
    %42 = arith.truncf %41 : vector<32x256xf32> to vector<32x256xbf16>
    %c0_24 = arith.constant 0 : index
    %c3 = arith.constant 3 : index
    %c0_25 = arith.constant 0 : index
    %c0_26 = arith.constant 0 : index
    %43 = vector.load %arg5[%c0_24, %c3, %c0_25, %c0_26] : memref<2x9x32x32xbf16, #tpu.memory_space<vmem>>, vector<1x1x32x32xbf16>
    %44 = vector.shape_cast %43 : vector<1x1x32x32xbf16> to vector<32x32xbf16>
    %cst_27 = arith.constant dense<0.000000e+00> : vector<32x256xf32>
    %45 = tpu.matmul %44, %42, %cst_27 {dimension_numbers = #tpu.dot_dimension_numbers<[1], [0], [0], [1], [0, 0, 1, 1], [], []>} : vector<32x32xbf16>, vector<32x256xbf16>, vector<32x256xf32> -> vector<32x256xf32>
    %46 = arith.addf %37, %45 : vector<32x256xf32>
    %47 = arith.truncf %1 : vector<32x256xf32> to vector<32x256xbf16>
    %c0_28 = arith.constant 0 : index
    %c4 = arith.constant 4 : index
    %c0_29 = arith.constant 0 : index
    %c0_30 = arith.constant 0 : index
    %48 = vector.load %arg5[%c0_28, %c4, %c0_29, %c0_30] : memref<2x9x32x32xbf16, #tpu.memory_space<vmem>>, vector<1x1x32x32xbf16>
    %49 = vector.shape_cast %48 : vector<1x1x32x32xbf16> to vector<32x32xbf16>
    %cst_31 = arith.constant dense<0.000000e+00> : vector<32x256xf32>
    %50 = tpu.matmul %49, %47, %cst_31 {dimension_numbers = #tpu.dot_dimension_numbers<[1], [0], [0], [1], [0, 0, 1, 1], [], []>} : vector<32x32xbf16>, vector<32x256xbf16>, vector<32x256xf32> -> vector<32x256xf32>
    %51 = arith.addf %46, %50 : vector<32x256xf32>
    %c255_i32 = arith.constant 255 : i32
    %52 = tpu.dynamic_rotate %1 by %c255_i32 dim 1 : vector<32x256xf32>, i32 -> vector<32x256xf32>
    %53 = vector.extract_strided_slice %2 {offsets = [5, 0], sizes = [1, 256], strides = [1, 1]} : vector<9x256xf32> to vector<1x256xf32>
    %54 = vector.broadcast %53 : vector<1x256xf32> to vector<32x256xf32>
    %55 = arith.mulf %52, %54 : vector<32x256xf32>
    %56 = arith.truncf %55 : vector<32x256xf32> to vector<32x256xbf16>
    %c0_32 = arith.constant 0 : index
    %c5 = arith.constant 5 : index
    %c0_33 = arith.constant 0 : index
    %c0_34 = arith.constant 0 : index
    %57 = vector.load %arg5[%c0_32, %c5, %c0_33, %c0_34] : memref<2x9x32x32xbf16, #tpu.memory_space<vmem>>, vector<1x1x32x32xbf16>
    %58 = vector.shape_cast %57 : vector<1x1x32x32xbf16> to vector<32x32xbf16>
    %cst_35 = arith.constant dense<0.000000e+00> : vector<32x256xf32>
    %59 = tpu.matmul %58, %56, %cst_35 {dimension_numbers = #tpu.dot_dimension_numbers<[1], [0], [0], [1], [0, 0, 1, 1], [], []>} : vector<32x32xbf16>, vector<32x256xbf16>, vector<32x256xf32> -> vector<32x256xf32>
    %60 = arith.addf %51, %59 : vector<32x256xf32>
    %c241_i32 = arith.constant 241 : i32
    %61 = tpu.dynamic_rotate %1 by %c241_i32 dim 1 : vector<32x256xf32>, i32 -> vector<32x256xf32>
    %62 = vector.extract_strided_slice %2 {offsets = [6, 0], sizes = [1, 256], strides = [1, 1]} : vector<9x256xf32> to vector<1x256xf32>
    %63 = vector.broadcast %62 : vector<1x256xf32> to vector<32x256xf32>
    %64 = arith.mulf %61, %63 : vector<32x256xf32>
    %65 = arith.truncf %64 : vector<32x256xf32> to vector<32x256xbf16>
    %c0_36 = arith.constant 0 : index
    %c6 = arith.constant 6 : index
    %c0_37 = arith.constant 0 : index
    %c0_38 = arith.constant 0 : index
    %66 = vector.load %arg5[%c0_36, %c6, %c0_37, %c0_38] : memref<2x9x32x32xbf16, #tpu.memory_space<vmem>>, vector<1x1x32x32xbf16>
    %67 = vector.shape_cast %66 : vector<1x1x32x32xbf16> to vector<32x32xbf16>
    %cst_39 = arith.constant dense<0.000000e+00> : vector<32x256xf32>
    %68 = tpu.matmul %67, %65, %cst_39 {dimension_numbers = #tpu.dot_dimension_numbers<[1], [0], [0], [1], [0, 0, 1, 1], [], []>} : vector<32x32xbf16>, vector<32x256xbf16>, vector<32x256xf32> -> vector<32x256xf32>
    %69 = arith.addf %60, %68 : vector<32x256xf32>
    %c240_i32 = arith.constant 240 : i32
    %70 = tpu.dynamic_rotate %1 by %c240_i32 dim 1 : vector<32x256xf32>, i32 -> vector<32x256xf32>
    %71 = vector.extract_strided_slice %2 {offsets = [7, 0], sizes = [1, 256], strides = [1, 1]} : vector<9x256xf32> to vector<1x256xf32>
    %72 = vector.broadcast %71 : vector<1x256xf32> to vector<32x256xf32>
    %73 = arith.mulf %70, %72 : vector<32x256xf32>
    %74 = arith.truncf %73 : vector<32x256xf32> to vector<32x256xbf16>
    %c0_40 = arith.constant 0 : index
    %c7 = arith.constant 7 : index
    %c0_41 = arith.constant 0 : index
    %c0_42 = arith.constant 0 : index
    %75 = vector.load %arg5[%c0_40, %c7, %c0_41, %c0_42] : memref<2x9x32x32xbf16, #tpu.memory_space<vmem>>, vector<1x1x32x32xbf16>
    %76 = vector.shape_cast %75 : vector<1x1x32x32xbf16> to vector<32x32xbf16>
    %cst_43 = arith.constant dense<0.000000e+00> : vector<32x256xf32>
    %77 = tpu.matmul %76, %74, %cst_43 {dimension_numbers = #tpu.dot_dimension_numbers<[1], [0], [0], [1], [0, 0, 1, 1], [], []>} : vector<32x32xbf16>, vector<32x256xbf16>, vector<32x256xf32> -> vector<32x256xf32>
    %78 = arith.addf %69, %77 : vector<32x256xf32>
    %c239_i32 = arith.constant 239 : i32
    %79 = tpu.dynamic_rotate %1 by %c239_i32 dim 1 : vector<32x256xf32>, i32 -> vector<32x256xf32>
    %80 = vector.extract_strided_slice %2 {offsets = [8, 0], sizes = [1, 256], strides = [1, 1]} : vector<9x256xf32> to vector<1x256xf32>
    %81 = vector.broadcast %80 : vector<1x256xf32> to vector<32x256xf32>
    %82 = arith.mulf %79, %81 : vector<32x256xf32>
    %83 = arith.truncf %82 : vector<32x256xf32> to vector<32x256xbf16>
    %c0_44 = arith.constant 0 : index
    %c8 = arith.constant 8 : index
    %c0_45 = arith.constant 0 : index
    %c0_46 = arith.constant 0 : index
    %84 = vector.load %arg5[%c0_44, %c8, %c0_45, %c0_46] : memref<2x9x32x32xbf16, #tpu.memory_space<vmem>>, vector<1x1x32x32xbf16>
    %85 = vector.shape_cast %84 : vector<1x1x32x32xbf16> to vector<32x32xbf16>
    %cst_47 = arith.constant dense<0.000000e+00> : vector<32x256xf32>
    %86 = tpu.matmul %85, %83, %cst_47 {dimension_numbers = #tpu.dot_dimension_numbers<[1], [0], [0], [1], [0, 0, 1, 1], [], []>} : vector<32x32xbf16>, vector<32x256xbf16>, vector<32x256xf32> -> vector<32x256xf32>
    %87 = arith.addf %78, %86 : vector<32x256xf32>
    %88 = vector.broadcast %7 : vector<32x1xf32> to vector<32x256xf32>
    %89 = arith.addf %87, %88 : vector<32x256xf32>
    %90 = arith.negf %89 : vector<32x256xf32>
    %91 = math.exp %90 : vector<32x256xf32>
    %cst_48 = arith.constant 1.000000e+00 : f32
    %92 = vector.broadcast %cst_48 : f32 to vector<32x256xf32>
    %93 = arith.addf %92, %91 : vector<32x256xf32>
    %94 = arith.divf %92, %93 : vector<32x256xf32>
    %95 = arith.mulf %89, %94 : vector<32x256xf32>
    %96 = vector.extract_strided_slice %95 {offsets = [0, 0], sizes = [16, 256], strides = [1, 1]} : vector<32x256xf32> to vector<16x256xf32>
    %97 = vector.extract_strided_slice %95 {offsets = [16, 0], sizes = [16, 256], strides = [1, 1]} : vector<32x256xf32> to vector<16x256xf32>
    %cst_49 = arith.constant 0.000000e+00 : f32
    %98 = vector.broadcast %cst_49 : f32 to vector<16x256xf32>
    %c17_i32_50 = arith.constant 17 : i32
    %99 = tpu.dynamic_rotate %97 by %c17_i32_50 dim 1 : vector<16x256xf32>, i32 -> vector<16x256xf32>
    %100 = vector.extract_strided_slice %2 {offsets = [0, 0], sizes = [1, 256], strides = [1, 1]} : vector<9x256xf32> to vector<1x256xf32>
    %101 = vector.broadcast %100 : vector<1x256xf32> to vector<16x256xf32>
    %102 = arith.mulf %99, %101 : vector<16x256xf32>
    %103 = arith.truncf %102 : vector<16x256xf32> to vector<16x256xbf16>
    %c0_51 = arith.constant 0 : index
    %c0_52 = arith.constant 0 : index
    %c0_53 = arith.constant 0 : index
    %c0_54 = arith.constant 0 : index
    %104 = vector.load %arg6[%c0_51, %c0_52, %c0_53, %c0_54] : memref<2x9x16x16xbf16, #tpu.memory_space<vmem>>, vector<1x1x16x16xbf16>
    %105 = vector.shape_cast %104 : vector<1x1x16x16xbf16> to vector<16x16xbf16>
    %cst_55 = arith.constant dense<0.000000e+00> : vector<16x256xf32>
    %106 = tpu.matmul %105, %103, %cst_55 {dimension_numbers = #tpu.dot_dimension_numbers<[1], [0], [0], [1], [0, 0, 1, 1], [], []>} : vector<16x16xbf16>, vector<16x256xbf16>, vector<16x256xf32> -> vector<16x256xf32>
    %107 = arith.addf %98, %106 : vector<16x256xf32>
    %c16_i32_56 = arith.constant 16 : i32
    %108 = tpu.dynamic_rotate %97 by %c16_i32_56 dim 1 : vector<16x256xf32>, i32 -> vector<16x256xf32>
    %109 = vector.extract_strided_slice %2 {offsets = [1, 0], sizes = [1, 256], strides = [1, 1]} : vector<9x256xf32> to vector<1x256xf32>
    %110 = vector.broadcast %109 : vector<1x256xf32> to vector<16x256xf32>
    %111 = arith.mulf %108, %110 : vector<16x256xf32>
    %112 = arith.truncf %111 : vector<16x256xf32> to vector<16x256xbf16>
    %c0_57 = arith.constant 0 : index
    %c1_58 = arith.constant 1 : index
    %c0_59 = arith.constant 0 : index
    %c0_60 = arith.constant 0 : index
    %113 = vector.load %arg6[%c0_57, %c1_58, %c0_59, %c0_60] : memref<2x9x16x16xbf16, #tpu.memory_space<vmem>>, vector<1x1x16x16xbf16>
    %114 = vector.shape_cast %113 : vector<1x1x16x16xbf16> to vector<16x16xbf16>
    %cst_61 = arith.constant dense<0.000000e+00> : vector<16x256xf32>
    %115 = tpu.matmul %114, %112, %cst_61 {dimension_numbers = #tpu.dot_dimension_numbers<[1], [0], [0], [1], [0, 0, 1, 1], [], []>} : vector<16x16xbf16>, vector<16x256xbf16>, vector<16x256xf32> -> vector<16x256xf32>
    %116 = arith.addf %107, %115 : vector<16x256xf32>
    %c15_i32_62 = arith.constant 15 : i32
    %117 = tpu.dynamic_rotate %97 by %c15_i32_62 dim 1 : vector<16x256xf32>, i32 -> vector<16x256xf32>
    %118 = vector.extract_strided_slice %2 {offsets = [2, 0], sizes = [1, 256], strides = [1, 1]} : vector<9x256xf32> to vector<1x256xf32>
    %119 = vector.broadcast %118 : vector<1x256xf32> to vector<16x256xf32>
    %120 = arith.mulf %117, %119 : vector<16x256xf32>
    %121 = arith.truncf %120 : vector<16x256xf32> to vector<16x256xbf16>
    %c0_63 = arith.constant 0 : index
    %c2_64 = arith.constant 2 : index
    %c0_65 = arith.constant 0 : index
    %c0_66 = arith.constant 0 : index
    %122 = vector.load %arg6[%c0_63, %c2_64, %c0_65, %c0_66] : memref<2x9x16x16xbf16, #tpu.memory_space<vmem>>, vector<1x1x16x16xbf16>
    %123 = vector.shape_cast %122 : vector<1x1x16x16xbf16> to vector<16x16xbf16>
    %cst_67 = arith.constant dense<0.000000e+00> : vector<16x256xf32>
    %124 = tpu.matmul %123, %121, %cst_67 {dimension_numbers = #tpu.dot_dimension_numbers<[1], [0], [0], [1], [0, 0, 1, 1], [], []>} : vector<16x16xbf16>, vector<16x256xbf16>, vector<16x256xf32> -> vector<16x256xf32>
    %125 = arith.addf %116, %124 : vector<16x256xf32>
    %c1_i32_68 = arith.constant 1 : i32
    %126 = tpu.dynamic_rotate %97 by %c1_i32_68 dim 1 : vector<16x256xf32>, i32 -> vector<16x256xf32>
    %127 = vector.extract_strided_slice %2 {offsets = [3, 0], sizes = [1, 256], strides = [1, 1]} : vector<9x256xf32> to vector<1x256xf32>
    %128 = vector.broadcast %127 : vector<1x256xf32> to vector<16x256xf32>
    %129 = arith.mulf %126, %128 : vector<16x256xf32>
    %130 = arith.truncf %129 : vector<16x256xf32> to vector<16x256xbf16>
    %c0_69 = arith.constant 0 : index
    %c3_70 = arith.constant 3 : index
    %c0_71 = arith.constant 0 : index
    %c0_72 = arith.constant 0 : index
    %131 = vector.load %arg6[%c0_69, %c3_70, %c0_71, %c0_72] : memref<2x9x16x16xbf16, #tpu.memory_space<vmem>>, vector<1x1x16x16xbf16>
    %132 = vector.shape_cast %131 : vector<1x1x16x16xbf16> to vector<16x16xbf16>
    %cst_73 = arith.constant dense<0.000000e+00> : vector<16x256xf32>
    %133 = tpu.matmul %132, %130, %cst_73 {dimension_numbers = #tpu.dot_dimension_numbers<[1], [0], [0], [1], [0, 0, 1, 1], [], []>} : vector<16x16xbf16>, vector<16x256xbf16>, vector<16x256xf32> -> vector<16x256xf32>
    %134 = arith.addf %125, %133 : vector<16x256xf32>
    %135 = arith.truncf %97 : vector<16x256xf32> to vector<16x256xbf16>
    %c0_74 = arith.constant 0 : index
    %c4_75 = arith.constant 4 : index
    %c0_76 = arith.constant 0 : index
    %c0_77 = arith.constant 0 : index
    %136 = vector.load %arg6[%c0_74, %c4_75, %c0_76, %c0_77] : memref<2x9x16x16xbf16, #tpu.memory_space<vmem>>, vector<1x1x16x16xbf16>
    %137 = vector.shape_cast %136 : vector<1x1x16x16xbf16> to vector<16x16xbf16>
    %cst_78 = arith.constant dense<0.000000e+00> : vector<16x256xf32>
    %138 = tpu.matmul %137, %135, %cst_78 {dimension_numbers = #tpu.dot_dimension_numbers<[1], [0], [0], [1], [0, 0, 1, 1], [], []>} : vector<16x16xbf16>, vector<16x256xbf16>, vector<16x256xf32> -> vector<16x256xf32>
    %139 = arith.addf %134, %138 : vector<16x256xf32>
    %c255_i32_79 = arith.constant 255 : i32
    %140 = tpu.dynamic_rotate %97 by %c255_i32_79 dim 1 : vector<16x256xf32>, i32 -> vector<16x256xf32>
    %141 = vector.extract_strided_slice %2 {offsets = [5, 0], sizes = [1, 256], strides = [1, 1]} : vector<9x256xf32> to vector<1x256xf32>
    %142 = vector.broadcast %141 : vector<1x256xf32> to vector<16x256xf32>
    %143 = arith.mulf %140, %142 : vector<16x256xf32>
    %144 = arith.truncf %143 : vector<16x256xf32> to vector<16x256xbf16>
    %c0_80 = arith.constant 0 : index
    %c5_81 = arith.constant 5 : index
    %c0_82 = arith.constant 0 : index
    %c0_83 = arith.constant 0 : index
    %145 = vector.load %arg6[%c0_80, %c5_81, %c0_82, %c0_83] : memref<2x9x16x16xbf16, #tpu.memory_space<vmem>>, vector<1x1x16x16xbf16>
    %146 = vector.shape_cast %145 : vector<1x1x16x16xbf16> to vector<16x16xbf16>
    %cst_84 = arith.constant dense<0.000000e+00> : vector<16x256xf32>
    %147 = tpu.matmul %146, %144, %cst_84 {dimension_numbers = #tpu.dot_dimension_numbers<[1], [0], [0], [1], [0, 0, 1, 1], [], []>} : vector<16x16xbf16>, vector<16x256xbf16>, vector<16x256xf32> -> vector<16x256xf32>
    %148 = arith.addf %139, %147 : vector<16x256xf32>
    %c241_i32_85 = arith.constant 241 : i32
    %149 = tpu.dynamic_rotate %97 by %c241_i32_85 dim 1 : vector<16x256xf32>, i32 -> vector<16x256xf32>
    %150 = vector.extract_strided_slice %2 {offsets = [6, 0], sizes = [1, 256], strides = [1, 1]} : vector<9x256xf32> to vector<1x256xf32>
    %151 = vector.broadcast %150 : vector<1x256xf32> to vector<16x256xf32>
    %152 = arith.mulf %149, %151 : vector<16x256xf32>
    %153 = arith.truncf %152 : vector<16x256xf32> to vector<16x256xbf16>
    %c0_86 = arith.constant 0 : index
    %c6_87 = arith.constant 6 : index
    %c0_88 = arith.constant 0 : index
    %c0_89 = arith.constant 0 : index
    %154 = vector.load %arg6[%c0_86, %c6_87, %c0_88, %c0_89] : memref<2x9x16x16xbf16, #tpu.memory_space<vmem>>, vector<1x1x16x16xbf16>
    %155 = vector.shape_cast %154 : vector<1x1x16x16xbf16> to vector<16x16xbf16>
    %cst_90 = arith.constant dense<0.000000e+00> : vector<16x256xf32>
    %156 = tpu.matmul %155, %153, %cst_90 {dimension_numbers = #tpu.dot_dimension_numbers<[1], [0], [0], [1], [0, 0, 1, 1], [], []>} : vector<16x16xbf16>, vector<16x256xbf16>, vector<16x256xf32> -> vector<16x256xf32>
    %157 = arith.addf %148, %156 : vector<16x256xf32>
    %c240_i32_91 = arith.constant 240 : i32
    %158 = tpu.dynamic_rotate %97 by %c240_i32_91 dim 1 : vector<16x256xf32>, i32 -> vector<16x256xf32>
    %159 = vector.extract_strided_slice %2 {offsets = [7, 0], sizes = [1, 256], strides = [1, 1]} : vector<9x256xf32> to vector<1x256xf32>
    %160 = vector.broadcast %159 : vector<1x256xf32> to vector<16x256xf32>
    %161 = arith.mulf %158, %160 : vector<16x256xf32>
    %162 = arith.truncf %161 : vector<16x256xf32> to vector<16x256xbf16>
    %c0_92 = arith.constant 0 : index
    %c7_93 = arith.constant 7 : index
    %c0_94 = arith.constant 0 : index
    %c0_95 = arith.constant 0 : index
    %163 = vector.load %arg6[%c0_92, %c7_93, %c0_94, %c0_95] : memref<2x9x16x16xbf16, #tpu.memory_space<vmem>>, vector<1x1x16x16xbf16>
    %164 = vector.shape_cast %163 : vector<1x1x16x16xbf16> to vector<16x16xbf16>
    %cst_96 = arith.constant dense<0.000000e+00> : vector<16x256xf32>
    %165 = tpu.matmul %164, %162, %cst_96 {dimension_numbers = #tpu.dot_dimension_numbers<[1], [0], [0], [1], [0, 0, 1, 1], [], []>} : vector<16x16xbf16>, vector<16x256xbf16>, vector<16x256xf32> -> vector<16x256xf32>
    %166 = arith.addf %157, %165 : vector<16x256xf32>
    %c239_i32_97 = arith.constant 239 : i32
    %167 = tpu.dynamic_rotate %97 by %c239_i32_97 dim 1 : vector<16x256xf32>, i32 -> vector<16x256xf32>
    %168 = vector.extract_strided_slice %2 {offsets = [8, 0], sizes = [1, 256], strides = [1, 1]} : vector<9x256xf32> to vector<1x256xf32>
    %169 = vector.broadcast %168 : vector<1x256xf32> to vector<16x256xf32>
    %170 = arith.mulf %167, %169 : vector<16x256xf32>
    %171 = arith.truncf %170 : vector<16x256xf32> to vector<16x256xbf16>
    %c0_98 = arith.constant 0 : index
    %c8_99 = arith.constant 8 : index
    %c0_100 = arith.constant 0 : index
    %c0_101 = arith.constant 0 : index
    %172 = vector.load %arg6[%c0_98, %c8_99, %c0_100, %c0_101] : memref<2x9x16x16xbf16, #tpu.memory_space<vmem>>, vector<1x1x16x16xbf16>
    %173 = vector.shape_cast %172 : vector<1x1x16x16xbf16> to vector<16x16xbf16>
    %cst_102 = arith.constant dense<0.000000e+00> : vector<16x256xf32>
    %174 = tpu.matmul %173, %171, %cst_102 {dimension_numbers = #tpu.dot_dimension_numbers<[1], [0], [0], [1], [0, 0, 1, 1], [], []>} : vector<16x16xbf16>, vector<16x256xbf16>, vector<16x256xf32> -> vector<16x256xf32>
    %175 = arith.addf %166, %174 : vector<16x256xf32>
    %176 = vector.broadcast %8 : vector<16x1xf32> to vector<16x256xf32>
    %177 = arith.addf %175, %176 : vector<16x256xf32>
    %c0_103 = arith.constant 0 : index
    %c0_104 = arith.constant 0 : index
    %c0_105 = arith.constant 0 : index
    %c0_106 = arith.constant 0 : index
    %178 = vector.load %arg7[%c0_103, %c0_104, %c0_105, %c0_106] : memref<2x2x32x16xbf16, #tpu.memory_space<vmem>>, vector<1x1x32x16xbf16>
    %179 = vector.shape_cast %178 : vector<1x1x32x16xbf16> to vector<32x16xbf16>
    %180 = arith.truncf %96 : vector<16x256xf32> to vector<16x256xbf16>
    %cst_107 = arith.constant dense<0.000000e+00> : vector<32x256xf32>
    %181 = tpu.matmul %179, %180, %cst_107 {dimension_numbers = #tpu.dot_dimension_numbers<[1], [0], [0], [1], [0, 0, 1, 1], [], []>} : vector<32x16xbf16>, vector<16x256xbf16>, vector<32x256xf32> -> vector<32x256xf32>
    %c0_108 = arith.constant 0 : index
    %c1_109 = arith.constant 1 : index
    %c0_110 = arith.constant 0 : index
    %c0_111 = arith.constant 0 : index
    %182 = vector.load %arg7[%c0_108, %c1_109, %c0_110, %c0_111] : memref<2x2x32x16xbf16, #tpu.memory_space<vmem>>, vector<1x1x32x16xbf16>
    %183 = vector.shape_cast %182 : vector<1x1x32x16xbf16> to vector<32x16xbf16>
    %184 = arith.truncf %177 : vector<16x256xf32> to vector<16x256xbf16>
    %cst_112 = arith.constant dense<0.000000e+00> : vector<32x256xf32>
    %185 = tpu.matmul %183, %184, %cst_112 {dimension_numbers = #tpu.dot_dimension_numbers<[1], [0], [0], [1], [0, 0, 1, 1], [], []>} : vector<32x16xbf16>, vector<16x256xbf16>, vector<32x256xf32> -> vector<32x256xf32>
    %186 = arith.addf %181, %185 : vector<32x256xf32>
    %187 = vector.broadcast %9 : vector<32x1xf32> to vector<32x256xf32>
    %188 = arith.addf %186, %187 : vector<32x256xf32>
    %189 = arith.addf %188, %1 : vector<32x256xf32>
    %190 = vector.broadcast %5 : vector<32x1xf32> to vector<32x256xf32>
    %191 = arith.mulf %189, %190 : vector<32x256xf32>
    %192 = vector.broadcast %6 : vector<32x1xf32> to vector<32x256xf32>
    %193 = arith.addf %191, %192 : vector<32x256xf32>
    %c80 = arith.constant 80 : index
    %c0_113 = arith.constant 0 : index
    %194 = vector.load %arg4[%c80, %c0_113] : memref<160x1xf32, #tpu.memory_space<vmem>>, vector<32x1xf32>
    %c112 = arith.constant 112 : index
    %c0_114 = arith.constant 0 : index
    %195 = vector.load %arg4[%c112, %c0_114] : memref<160x1xf32, #tpu.memory_space<vmem>>, vector<16x1xf32>
    %c128 = arith.constant 128 : index
    %c0_115 = arith.constant 0 : index
    %196 = vector.load %arg4[%c128, %c0_115] : memref<160x1xf32, #tpu.memory_space<vmem>>, vector<32x1xf32>
    %cst_116 = arith.constant 0.000000e+00 : f32
    %197 = vector.broadcast %cst_116 : f32 to vector<32x256xf32>
    %c17_i32_117 = arith.constant 17 : i32
    %198 = tpu.dynamic_rotate %193 by %c17_i32_117 dim 1 : vector<32x256xf32>, i32 -> vector<32x256xf32>
    %199 = vector.extract_strided_slice %2 {offsets = [0, 0], sizes = [1, 256], strides = [1, 1]} : vector<9x256xf32> to vector<1x256xf32>
    %200 = vector.broadcast %199 : vector<1x256xf32> to vector<32x256xf32>
    %201 = arith.mulf %198, %200 : vector<32x256xf32>
    %202 = arith.truncf %201 : vector<32x256xf32> to vector<32x256xbf16>
    %c1_118 = arith.constant 1 : index
    %c0_119 = arith.constant 0 : index
    %c0_120 = arith.constant 0 : index
    %c0_121 = arith.constant 0 : index
    %203 = vector.load %arg5[%c1_118, %c0_119, %c0_120, %c0_121] : memref<2x9x32x32xbf16, #tpu.memory_space<vmem>>, vector<1x1x32x32xbf16>
    %204 = vector.shape_cast %203 : vector<1x1x32x32xbf16> to vector<32x32xbf16>
    %cst_122 = arith.constant dense<0.000000e+00> : vector<32x256xf32>
    %205 = tpu.matmul %204, %202, %cst_122 {dimension_numbers = #tpu.dot_dimension_numbers<[1], [0], [0], [1], [0, 0, 1, 1], [], []>} : vector<32x32xbf16>, vector<32x256xbf16>, vector<32x256xf32> -> vector<32x256xf32>
    %206 = arith.addf %197, %205 : vector<32x256xf32>
    %c16_i32_123 = arith.constant 16 : i32
    %207 = tpu.dynamic_rotate %193 by %c16_i32_123 dim 1 : vector<32x256xf32>, i32 -> vector<32x256xf32>
    %208 = vector.extract_strided_slice %2 {offsets = [1, 0], sizes = [1, 256], strides = [1, 1]} : vector<9x256xf32> to vector<1x256xf32>
    %209 = vector.broadcast %208 : vector<1x256xf32> to vector<32x256xf32>
    %210 = arith.mulf %207, %209 : vector<32x256xf32>
    %211 = arith.truncf %210 : vector<32x256xf32> to vector<32x256xbf16>
    %c1_124 = arith.constant 1 : index
    %c1_125 = arith.constant 1 : index
    %c0_126 = arith.constant 0 : index
    %c0_127 = arith.constant 0 : index
    %212 = vector.load %arg5[%c1_124, %c1_125, %c0_126, %c0_127] : memref<2x9x32x32xbf16, #tpu.memory_space<vmem>>, vector<1x1x32x32xbf16>
    %213 = vector.shape_cast %212 : vector<1x1x32x32xbf16> to vector<32x32xbf16>
    %cst_128 = arith.constant dense<0.000000e+00> : vector<32x256xf32>
    %214 = tpu.matmul %213, %211, %cst_128 {dimension_numbers = #tpu.dot_dimension_numbers<[1], [0], [0], [1], [0, 0, 1, 1], [], []>} : vector<32x32xbf16>, vector<32x256xbf16>, vector<32x256xf32> -> vector<32x256xf32>
    %215 = arith.addf %206, %214 : vector<32x256xf32>
    %c15_i32_129 = arith.constant 15 : i32
    %216 = tpu.dynamic_rotate %193 by %c15_i32_129 dim 1 : vector<32x256xf32>, i32 -> vector<32x256xf32>
    %217 = vector.extract_strided_slice %2 {offsets = [2, 0], sizes = [1, 256], strides = [1, 1]} : vector<9x256xf32> to vector<1x256xf32>
    %218 = vector.broadcast %217 : vector<1x256xf32> to vector<32x256xf32>
    %219 = arith.mulf %216, %218 : vector<32x256xf32>
    %220 = arith.truncf %219 : vector<32x256xf32> to vector<32x256xbf16>
    %c1_130 = arith.constant 1 : index
    %c2_131 = arith.constant 2 : index
    %c0_132 = arith.constant 0 : index
    %c0_133 = arith.constant 0 : index
    %221 = vector.load %arg5[%c1_130, %c2_131, %c0_132, %c0_133] : memref<2x9x32x32xbf16, #tpu.memory_space<vmem>>, vector<1x1x32x32xbf16>
    %222 = vector.shape_cast %221 : vector<1x1x32x32xbf16> to vector<32x32xbf16>
    %cst_134 = arith.constant dense<0.000000e+00> : vector<32x256xf32>
    %223 = tpu.matmul %222, %220, %cst_134 {dimension_numbers = #tpu.dot_dimension_numbers<[1], [0], [0], [1], [0, 0, 1, 1], [], []>} : vector<32x32xbf16>, vector<32x256xbf16>, vector<32x256xf32> -> vector<32x256xf32>
    %224 = arith.addf %215, %223 : vector<32x256xf32>
    %c1_i32_135 = arith.constant 1 : i32
    %225 = tpu.dynamic_rotate %193 by %c1_i32_135 dim 1 : vector<32x256xf32>, i32 -> vector<32x256xf32>
    %226 = vector.extract_strided_slice %2 {offsets = [3, 0], sizes = [1, 256], strides = [1, 1]} : vector<9x256xf32> to vector<1x256xf32>
    %227 = vector.broadcast %226 : vector<1x256xf32> to vector<32x256xf32>
    %228 = arith.mulf %225, %227 : vector<32x256xf32>
    %229 = arith.truncf %228 : vector<32x256xf32> to vector<32x256xbf16>
    %c1_136 = arith.constant 1 : index
    %c3_137 = arith.constant 3 : index
    %c0_138 = arith.constant 0 : index
    %c0_139 = arith.constant 0 : index
    %230 = vector.load %arg5[%c1_136, %c3_137, %c0_138, %c0_139] : memref<2x9x32x32xbf16, #tpu.memory_space<vmem>>, vector<1x1x32x32xbf16>
    %231 = vector.shape_cast %230 : vector<1x1x32x32xbf16> to vector<32x32xbf16>
    %cst_140 = arith.constant dense<0.000000e+00> : vector<32x256xf32>
    %232 = tpu.matmul %231, %229, %cst_140 {dimension_numbers = #tpu.dot_dimension_numbers<[1], [0], [0], [1], [0, 0, 1, 1], [], []>} : vector<32x32xbf16>, vector<32x256xbf16>, vector<32x256xf32> -> vector<32x256xf32>
    %233 = arith.addf %224, %232 : vector<32x256xf32>
    %234 = arith.truncf %193 : vector<32x256xf32> to vector<32x256xbf16>
    %c1_141 = arith.constant 1 : index
    %c4_142 = arith.constant 4 : index
    %c0_143 = arith.constant 0 : index
    %c0_144 = arith.constant 0 : index
    %235 = vector.load %arg5[%c1_141, %c4_142, %c0_143, %c0_144] : memref<2x9x32x32xbf16, #tpu.memory_space<vmem>>, vector<1x1x32x32xbf16>
    %236 = vector.shape_cast %235 : vector<1x1x32x32xbf16> to vector<32x32xbf16>
    %cst_145 = arith.constant dense<0.000000e+00> : vector<32x256xf32>
    %237 = tpu.matmul %236, %234, %cst_145 {dimension_numbers = #tpu.dot_dimension_numbers<[1], [0], [0], [1], [0, 0, 1, 1], [], []>} : vector<32x32xbf16>, vector<32x256xbf16>, vector<32x256xf32> -> vector<32x256xf32>
    %238 = arith.addf %233, %237 : vector<32x256xf32>
    %c255_i32_146 = arith.constant 255 : i32
    %239 = tpu.dynamic_rotate %193 by %c255_i32_146 dim 1 : vector<32x256xf32>, i32 -> vector<32x256xf32>
    %240 = vector.extract_strided_slice %2 {offsets = [5, 0], sizes = [1, 256], strides = [1, 1]} : vector<9x256xf32> to vector<1x256xf32>
    %241 = vector.broadcast %240 : vector<1x256xf32> to vector<32x256xf32>
    %242 = arith.mulf %239, %241 : vector<32x256xf32>
    %243 = arith.truncf %242 : vector<32x256xf32> to vector<32x256xbf16>
    %c1_147 = arith.constant 1 : index
    %c5_148 = arith.constant 5 : index
    %c0_149 = arith.constant 0 : index
    %c0_150 = arith.constant 0 : index
    %244 = vector.load %arg5[%c1_147, %c5_148, %c0_149, %c0_150] : memref<2x9x32x32xbf16, #tpu.memory_space<vmem>>, vector<1x1x32x32xbf16>
    %245 = vector.shape_cast %244 : vector<1x1x32x32xbf16> to vector<32x32xbf16>
    %cst_151 = arith.constant dense<0.000000e+00> : vector<32x256xf32>
    %246 = tpu.matmul %245, %243, %cst_151 {dimension_numbers = #tpu.dot_dimension_numbers<[1], [0], [0], [1], [0, 0, 1, 1], [], []>} : vector<32x32xbf16>, vector<32x256xbf16>, vector<32x256xf32> -> vector<32x256xf32>
    %247 = arith.addf %238, %246 : vector<32x256xf32>
    %c241_i32_152 = arith.constant 241 : i32
    %248 = tpu.dynamic_rotate %193 by %c241_i32_152 dim 1 : vector<32x256xf32>, i32 -> vector<32x256xf32>
    %249 = vector.extract_strided_slice %2 {offsets = [6, 0], sizes = [1, 256], strides = [1, 1]} : vector<9x256xf32> to vector<1x256xf32>
    %250 = vector.broadcast %249 : vector<1x256xf32> to vector<32x256xf32>
    %251 = arith.mulf %248, %250 : vector<32x256xf32>
    %252 = arith.truncf %251 : vector<32x256xf32> to vector<32x256xbf16>
    %c1_153 = arith.constant 1 : index
    %c6_154 = arith.constant 6 : index
    %c0_155 = arith.constant 0 : index
    %c0_156 = arith.constant 0 : index
    %253 = vector.load %arg5[%c1_153, %c6_154, %c0_155, %c0_156] : memref<2x9x32x32xbf16, #tpu.memory_space<vmem>>, vector<1x1x32x32xbf16>
    %254 = vector.shape_cast %253 : vector<1x1x32x32xbf16> to vector<32x32xbf16>
    %cst_157 = arith.constant dense<0.000000e+00> : vector<32x256xf32>
    %255 = tpu.matmul %254, %252, %cst_157 {dimension_numbers = #tpu.dot_dimension_numbers<[1], [0], [0], [1], [0, 0, 1, 1], [], []>} : vector<32x32xbf16>, vector<32x256xbf16>, vector<32x256xf32> -> vector<32x256xf32>
    %256 = arith.addf %247, %255 : vector<32x256xf32>
    %c240_i32_158 = arith.constant 240 : i32
    %257 = tpu.dynamic_rotate %193 by %c240_i32_158 dim 1 : vector<32x256xf32>, i32 -> vector<32x256xf32>
    %258 = vector.extract_strided_slice %2 {offsets = [7, 0], sizes = [1, 256], strides = [1, 1]} : vector<9x256xf32> to vector<1x256xf32>
    %259 = vector.broadcast %258 : vector<1x256xf32> to vector<32x256xf32>
    %260 = arith.mulf %257, %259 : vector<32x256xf32>
    %261 = arith.truncf %260 : vector<32x256xf32> to vector<32x256xbf16>
    %c1_159 = arith.constant 1 : index
    %c7_160 = arith.constant 7 : index
    %c0_161 = arith.constant 0 : index
    %c0_162 = arith.constant 0 : index
    %262 = vector.load %arg5[%c1_159, %c7_160, %c0_161, %c0_162] : memref<2x9x32x32xbf16, #tpu.memory_space<vmem>>, vector<1x1x32x32xbf16>
    %263 = vector.shape_cast %262 : vector<1x1x32x32xbf16> to vector<32x32xbf16>
    %cst_163 = arith.constant dense<0.000000e+00> : vector<32x256xf32>
    %264 = tpu.matmul %263, %261, %cst_163 {dimension_numbers = #tpu.dot_dimension_numbers<[1], [0], [0], [1], [0, 0, 1, 1], [], []>} : vector<32x32xbf16>, vector<32x256xbf16>, vector<32x256xf32> -> vector<32x256xf32>
    %265 = arith.addf %256, %264 : vector<32x256xf32>
    %c239_i32_164 = arith.constant 239 : i32
    %266 = tpu.dynamic_rotate %193 by %c239_i32_164 dim 1 : vector<32x256xf32>, i32 -> vector<32x256xf32>
    %267 = vector.extract_strided_slice %2 {offsets = [8, 0], sizes = [1, 256], strides = [1, 1]} : vector<9x256xf32> to vector<1x256xf32>
    %268 = vector.broadcast %267 : vector<1x256xf32> to vector<32x256xf32>
    %269 = arith.mulf %266, %268 : vector<32x256xf32>
    %270 = arith.truncf %269 : vector<32x256xf32> to vector<32x256xbf16>
    %c1_165 = arith.constant 1 : index
    %c8_166 = arith.constant 8 : index
    %c0_167 = arith.constant 0 : index
    %c0_168 = arith.constant 0 : index
    %271 = vector.load %arg5[%c1_165, %c8_166, %c0_167, %c0_168] : memref<2x9x32x32xbf16, #tpu.memory_space<vmem>>, vector<1x1x32x32xbf16>
    %272 = vector.shape_cast %271 : vector<1x1x32x32xbf16> to vector<32x32xbf16>
    %cst_169 = arith.constant dense<0.000000e+00> : vector<32x256xf32>
    %273 = tpu.matmul %272, %270, %cst_169 {dimension_numbers = #tpu.dot_dimension_numbers<[1], [0], [0], [1], [0, 0, 1, 1], [], []>} : vector<32x32xbf16>, vector<32x256xbf16>, vector<32x256xf32> -> vector<32x256xf32>
    %274 = arith.addf %265, %273 : vector<32x256xf32>
    %275 = vector.broadcast %194 : vector<32x1xf32> to vector<32x256xf32>
    %276 = arith.addf %274, %275 : vector<32x256xf32>
    %277 = arith.negf %276 : vector<32x256xf32>
    %278 = math.exp %277 : vector<32x256xf32>
    %cst_170 = arith.constant 1.000000e+00 : f32
    %279 = vector.broadcast %cst_170 : f32 to vector<32x256xf32>
    %280 = arith.addf %279, %278 : vector<32x256xf32>
    %281 = arith.divf %279, %280 : vector<32x256xf32>
    %282 = arith.mulf %276, %281 : vector<32x256xf32>
    %283 = vector.extract_strided_slice %282 {offsets = [0, 0], sizes = [16, 256], strides = [1, 1]} : vector<32x256xf32> to vector<16x256xf32>
    %284 = vector.extract_strided_slice %282 {offsets = [16, 0], sizes = [16, 256], strides = [1, 1]} : vector<32x256xf32> to vector<16x256xf32>
    %cst_171 = arith.constant 0.000000e+00 : f32
    %285 = vector.broadcast %cst_171 : f32 to vector<16x256xf32>
    %c17_i32_172 = arith.constant 17 : i32
    %286 = tpu.dynamic_rotate %284 by %c17_i32_172 dim 1 : vector<16x256xf32>, i32 -> vector<16x256xf32>
    %287 = vector.extract_strided_slice %2 {offsets = [0, 0], sizes = [1, 256], strides = [1, 1]} : vector<9x256xf32> to vector<1x256xf32>
    %288 = vector.broadcast %287 : vector<1x256xf32> to vector<16x256xf32>
    %289 = arith.mulf %286, %288 : vector<16x256xf32>
    %290 = arith.truncf %289 : vector<16x256xf32> to vector<16x256xbf16>
    %c1_173 = arith.constant 1 : index
    %c0_174 = arith.constant 0 : index
    %c0_175 = arith.constant 0 : index
    %c0_176 = arith.constant 0 : index
    %291 = vector.load %arg6[%c1_173, %c0_174, %c0_175, %c0_176] : memref<2x9x16x16xbf16, #tpu.memory_space<vmem>>, vector<1x1x16x16xbf16>
    %292 = vector.shape_cast %291 : vector<1x1x16x16xbf16> to vector<16x16xbf16>
    %cst_177 = arith.constant dense<0.000000e+00> : vector<16x256xf32>
    %293 = tpu.matmul %292, %290, %cst_177 {dimension_numbers = #tpu.dot_dimension_numbers<[1], [0], [0], [1], [0, 0, 1, 1], [], []>} : vector<16x16xbf16>, vector<16x256xbf16>, vector<16x256xf32> -> vector<16x256xf32>
    %294 = arith.addf %285, %293 : vector<16x256xf32>
    %c16_i32_178 = arith.constant 16 : i32
    %295 = tpu.dynamic_rotate %284 by %c16_i32_178 dim 1 : vector<16x256xf32>, i32 -> vector<16x256xf32>
    %296 = vector.extract_strided_slice %2 {offsets = [1, 0], sizes = [1, 256], strides = [1, 1]} : vector<9x256xf32> to vector<1x256xf32>
    %297 = vector.broadcast %296 : vector<1x256xf32> to vector<16x256xf32>
    %298 = arith.mulf %295, %297 : vector<16x256xf32>
    %299 = arith.truncf %298 : vector<16x256xf32> to vector<16x256xbf16>
    %c1_179 = arith.constant 1 : index
    %c1_180 = arith.constant 1 : index
    %c0_181 = arith.constant 0 : index
    %c0_182 = arith.constant 0 : index
    %300 = vector.load %arg6[%c1_179, %c1_180, %c0_181, %c0_182] : memref<2x9x16x16xbf16, #tpu.memory_space<vmem>>, vector<1x1x16x16xbf16>
    %301 = vector.shape_cast %300 : vector<1x1x16x16xbf16> to vector<16x16xbf16>
    %cst_183 = arith.constant dense<0.000000e+00> : vector<16x256xf32>
    %302 = tpu.matmul %301, %299, %cst_183 {dimension_numbers = #tpu.dot_dimension_numbers<[1], [0], [0], [1], [0, 0, 1, 1], [], []>} : vector<16x16xbf16>, vector<16x256xbf16>, vector<16x256xf32> -> vector<16x256xf32>
    %303 = arith.addf %294, %302 : vector<16x256xf32>
    %c15_i32_184 = arith.constant 15 : i32
    %304 = tpu.dynamic_rotate %284 by %c15_i32_184 dim 1 : vector<16x256xf32>, i32 -> vector<16x256xf32>
    %305 = vector.extract_strided_slice %2 {offsets = [2, 0], sizes = [1, 256], strides = [1, 1]} : vector<9x256xf32> to vector<1x256xf32>
    %306 = vector.broadcast %305 : vector<1x256xf32> to vector<16x256xf32>
    %307 = arith.mulf %304, %306 : vector<16x256xf32>
    %308 = arith.truncf %307 : vector<16x256xf32> to vector<16x256xbf16>
    %c1_185 = arith.constant 1 : index
    %c2_186 = arith.constant 2 : index
    %c0_187 = arith.constant 0 : index
    %c0_188 = arith.constant 0 : index
    %309 = vector.load %arg6[%c1_185, %c2_186, %c0_187, %c0_188] : memref<2x9x16x16xbf16, #tpu.memory_space<vmem>>, vector<1x1x16x16xbf16>
    %310 = vector.shape_cast %309 : vector<1x1x16x16xbf16> to vector<16x16xbf16>
    %cst_189 = arith.constant dense<0.000000e+00> : vector<16x256xf32>
    %311 = tpu.matmul %310, %308, %cst_189 {dimension_numbers = #tpu.dot_dimension_numbers<[1], [0], [0], [1], [0, 0, 1, 1], [], []>} : vector<16x16xbf16>, vector<16x256xbf16>, vector<16x256xf32> -> vector<16x256xf32>
    %312 = arith.addf %303, %311 : vector<16x256xf32>
    %c1_i32_190 = arith.constant 1 : i32
    %313 = tpu.dynamic_rotate %284 by %c1_i32_190 dim 1 : vector<16x256xf32>, i32 -> vector<16x256xf32>
    %314 = vector.extract_strided_slice %2 {offsets = [3, 0], sizes = [1, 256], strides = [1, 1]} : vector<9x256xf32> to vector<1x256xf32>
    %315 = vector.broadcast %314 : vector<1x256xf32> to vector<16x256xf32>
    %316 = arith.mulf %313, %315 : vector<16x256xf32>
    %317 = arith.truncf %316 : vector<16x256xf32> to vector<16x256xbf16>
    %c1_191 = arith.constant 1 : index
    %c3_192 = arith.constant 3 : index
    %c0_193 = arith.constant 0 : index
    %c0_194 = arith.constant 0 : index
    %318 = vector.load %arg6[%c1_191, %c3_192, %c0_193, %c0_194] : memref<2x9x16x16xbf16, #tpu.memory_space<vmem>>, vector<1x1x16x16xbf16>
    %319 = vector.shape_cast %318 : vector<1x1x16x16xbf16> to vector<16x16xbf16>
    %cst_195 = arith.constant dense<0.000000e+00> : vector<16x256xf32>
    %320 = tpu.matmul %319, %317, %cst_195 {dimension_numbers = #tpu.dot_dimension_numbers<[1], [0], [0], [1], [0, 0, 1, 1], [], []>} : vector<16x16xbf16>, vector<16x256xbf16>, vector<16x256xf32> -> vector<16x256xf32>
    %321 = arith.addf %312, %320 : vector<16x256xf32>
    %322 = arith.truncf %284 : vector<16x256xf32> to vector<16x256xbf16>
    %c1_196 = arith.constant 1 : index
    %c4_197 = arith.constant 4 : index
    %c0_198 = arith.constant 0 : index
    %c0_199 = arith.constant 0 : index
    %323 = vector.load %arg6[%c1_196, %c4_197, %c0_198, %c0_199] : memref<2x9x16x16xbf16, #tpu.memory_space<vmem>>, vector<1x1x16x16xbf16>
    %324 = vector.shape_cast %323 : vector<1x1x16x16xbf16> to vector<16x16xbf16>
    %cst_200 = arith.constant dense<0.000000e+00> : vector<16x256xf32>
    %325 = tpu.matmul %324, %322, %cst_200 {dimension_numbers = #tpu.dot_dimension_numbers<[1], [0], [0], [1], [0, 0, 1, 1], [], []>} : vector<16x16xbf16>, vector<16x256xbf16>, vector<16x256xf32> -> vector<16x256xf32>
    %326 = arith.addf %321, %325 : vector<16x256xf32>
    %c255_i32_201 = arith.constant 255 : i32
    %327 = tpu.dynamic_rotate %284 by %c255_i32_201 dim 1 : vector<16x256xf32>, i32 -> vector<16x256xf32>
    %328 = vector.extract_strided_slice %2 {offsets = [5, 0], sizes = [1, 256], strides = [1, 1]} : vector<9x256xf32> to vector<1x256xf32>
    %329 = vector.broadcast %328 : vector<1x256xf32> to vector<16x256xf32>
    %330 = arith.mulf %327, %329 : vector<16x256xf32>
    %331 = arith.truncf %330 : vector<16x256xf32> to vector<16x256xbf16>
    %c1_202 = arith.constant 1 : index
    %c5_203 = arith.constant 5 : index
    %c0_204 = arith.constant 0 : index
    %c0_205 = arith.constant 0 : index
    %332 = vector.load %arg6[%c1_202, %c5_203, %c0_204, %c0_205] : memref<2x9x16x16xbf16, #tpu.memory_space<vmem>>, vector<1x1x16x16xbf16>
    %333 = vector.shape_cast %332 : vector<1x1x16x16xbf16> to vector<16x16xbf16>
    %cst_206 = arith.constant dense<0.000000e+00> : vector<16x256xf32>
    %334 = tpu.matmul %333, %331, %cst_206 {dimension_numbers = #tpu.dot_dimension_numbers<[1], [0], [0], [1], [0, 0, 1, 1], [], []>} : vector<16x16xbf16>, vector<16x256xbf16>, vector<16x256xf32> -> vector<16x256xf32>
    %335 = arith.addf %326, %334 : vector<16x256xf32>
    %c241_i32_207 = arith.constant 241 : i32
    %336 = tpu.dynamic_rotate %284 by %c241_i32_207 dim 1 : vector<16x256xf32>, i32 -> vector<16x256xf32>
    %337 = vector.extract_strided_slice %2 {offsets = [6, 0], sizes = [1, 256], strides = [1, 1]} : vector<9x256xf32> to vector<1x256xf32>
    %338 = vector.broadcast %337 : vector<1x256xf32> to vector<16x256xf32>
    %339 = arith.mulf %336, %338 : vector<16x256xf32>
    %340 = arith.truncf %339 : vector<16x256xf32> to vector<16x256xbf16>
    %c1_208 = arith.constant 1 : index
    %c6_209 = arith.constant 6 : index
    %c0_210 = arith.constant 0 : index
    %c0_211 = arith.constant 0 : index
    %341 = vector.load %arg6[%c1_208, %c6_209, %c0_210, %c0_211] : memref<2x9x16x16xbf16, #tpu.memory_space<vmem>>, vector<1x1x16x16xbf16>
    %342 = vector.shape_cast %341 : vector<1x1x16x16xbf16> to vector<16x16xbf16>
    %cst_212 = arith.constant dense<0.000000e+00> : vector<16x256xf32>
    %343 = tpu.matmul %342, %340, %cst_212 {dimension_numbers = #tpu.dot_dimension_numbers<[1], [0], [0], [1], [0, 0, 1, 1], [], []>} : vector<16x16xbf16>, vector<16x256xbf16>, vector<16x256xf32> -> vector<16x256xf32>
    %344 = arith.addf %335, %343 : vector<16x256xf32>
    %c240_i32_213 = arith.constant 240 : i32
    %345 = tpu.dynamic_rotate %284 by %c240_i32_213 dim 1 : vector<16x256xf32>, i32 -> vector<16x256xf32>
    %346 = vector.extract_strided_slice %2 {offsets = [7, 0], sizes = [1, 256], strides = [1, 1]} : vector<9x256xf32> to vector<1x256xf32>
    %347 = vector.broadcast %346 : vector<1x256xf32> to vector<16x256xf32>
    %348 = arith.mulf %345, %347 : vector<16x256xf32>
    %349 = arith.truncf %348 : vector<16x256xf32> to vector<16x256xbf16>
    %c1_214 = arith.constant 1 : index
    %c7_215 = arith.constant 7 : index
    %c0_216 = arith.constant 0 : index
    %c0_217 = arith.constant 0 : index
    %350 = vector.load %arg6[%c1_214, %c7_215, %c0_216, %c0_217] : memref<2x9x16x16xbf16, #tpu.memory_space<vmem>>, vector<1x1x16x16xbf16>
    %351 = vector.shape_cast %350 : vector<1x1x16x16xbf16> to vector<16x16xbf16>
    %cst_218 = arith.constant dense<0.000000e+00> : vector<16x256xf32>
    %352 = tpu.matmul %351, %349, %cst_218 {dimension_numbers = #tpu.dot_dimension_numbers<[1], [0], [0], [1], [0, 0, 1, 1], [], []>} : vector<16x16xbf16>, vector<16x256xbf16>, vector<16x256xf32> -> vector<16x256xf32>
    %353 = arith.addf %344, %352 : vector<16x256xf32>
    %c239_i32_219 = arith.constant 239 : i32
    %354 = tpu.dynamic_rotate %284 by %c239_i32_219 dim 1 : vector<16x256xf32>, i32 -> vector<16x256xf32>
    %355 = vector.extract_strided_slice %2 {offsets = [8, 0], sizes = [1, 256], strides = [1, 1]} : vector<9x256xf32> to vector<1x256xf32>
    %356 = vector.broadcast %355 : vector<1x256xf32> to vector<16x256xf32>
    %357 = arith.mulf %354, %356 : vector<16x256xf32>
    %358 = arith.truncf %357 : vector<16x256xf32> to vector<16x256xbf16>
    %c1_220 = arith.constant 1 : index
    %c8_221 = arith.constant 8 : index
    %c0_222 = arith.constant 0 : index
    %c0_223 = arith.constant 0 : index
    %359 = vector.load %arg6[%c1_220, %c8_221, %c0_222, %c0_223] : memref<2x9x16x16xbf16, #tpu.memory_space<vmem>>, vector<1x1x16x16xbf16>
    %360 = vector.shape_cast %359 : vector<1x1x16x16xbf16> to vector<16x16xbf16>
    %cst_224 = arith.constant dense<0.000000e+00> : vector<16x256xf32>
    %361 = tpu.matmul %360, %358, %cst_224 {dimension_numbers = #tpu.dot_dimension_numbers<[1], [0], [0], [1], [0, 0, 1, 1], [], []>} : vector<16x16xbf16>, vector<16x256xbf16>, vector<16x256xf32> -> vector<16x256xf32>
    %362 = arith.addf %353, %361 : vector<16x256xf32>
    %363 = vector.broadcast %195 : vector<16x1xf32> to vector<16x256xf32>
    %364 = arith.addf %362, %363 : vector<16x256xf32>
    %c1_225 = arith.constant 1 : index
    %c0_226 = arith.constant 0 : index
    %c0_227 = arith.constant 0 : index
    %c0_228 = arith.constant 0 : index
    %365 = vector.load %arg7[%c1_225, %c0_226, %c0_227, %c0_228] : memref<2x2x32x16xbf16, #tpu.memory_space<vmem>>, vector<1x1x32x16xbf16>
    %366 = vector.shape_cast %365 : vector<1x1x32x16xbf16> to vector<32x16xbf16>
    %367 = arith.truncf %283 : vector<16x256xf32> to vector<16x256xbf16>
    %cst_229 = arith.constant dense<0.000000e+00> : vector<32x256xf32>
    %368 = tpu.matmul %366, %367, %cst_229 {dimension_numbers = #tpu.dot_dimension_numbers<[1], [0], [0], [1], [0, 0, 1, 1], [], []>} : vector<32x16xbf16>, vector<16x256xbf16>, vector<32x256xf32> -> vector<32x256xf32>
    %c1_230 = arith.constant 1 : index
    %c1_231 = arith.constant 1 : index
    %c0_232 = arith.constant 0 : index
    %c0_233 = arith.constant 0 : index
    %369 = vector.load %arg7[%c1_230, %c1_231, %c0_232, %c0_233] : memref<2x2x32x16xbf16, #tpu.memory_space<vmem>>, vector<1x1x32x16xbf16>
    %370 = vector.shape_cast %369 : vector<1x1x32x16xbf16> to vector<32x16xbf16>
    %371 = arith.truncf %364 : vector<16x256xf32> to vector<16x256xbf16>
    %cst_234 = arith.constant dense<0.000000e+00> : vector<32x256xf32>
    %372 = tpu.matmul %370, %371, %cst_234 {dimension_numbers = #tpu.dot_dimension_numbers<[1], [0], [0], [1], [0, 0, 1, 1], [], []>} : vector<32x16xbf16>, vector<16x256xbf16>, vector<32x256xf32> -> vector<32x256xf32>
    %373 = arith.addf %368, %372 : vector<32x256xf32>
    %374 = vector.broadcast %196 : vector<32x1xf32> to vector<32x256xf32>
    %375 = arith.addf %373, %374 : vector<32x256xf32>
    %376 = arith.addf %375, %193 : vector<32x256xf32>
    %377 = arith.addf %376, %1 : vector<32x256xf32>
    %c0_235 = arith.constant 0 : index
    %c0_236 = arith.constant 0 : index
    %c0_237 = arith.constant 0 : index
    %378 = vector.load %arg8[%c0_235, %c0_236, %c0_237] : memref<1x32x256xf32, #tpu.memory_space<vmem>>, vector<1x32x256xf32>
    %379 = vector.shape_cast %378 : vector<1x32x256xf32> to vector<32x256xf32>
    %380 = vector.shape_cast %377 : vector<32x256xf32> to vector<1x32x256xf32>
    tpu.vector_store %arg8[%c0_235, %c0_236, %c0_237], %380 {strides = array<i32>} : memref<1x32x256xf32, #tpu.memory_space<vmem>>, vector<1x32x256xf32>,
    return
  }
  func.func @transform_0(%arg0: i32) -> (i32, i32, i32) {
    %c0_i32 = arith.constant 0 : i32
    %c0_i32_0 = arith.constant 0 : i32
    %c0_i32_1 = arith.constant 0 : i32
    return %arg0, %c0_i32, %c0_i32_0 : i32, i32, i32
  }
  func.func @transform_1(%arg0: i32) -> (i32, i32, i32) {
    %c0_i32 = arith.constant 0 : i32
    %c0_i32_0 = arith.constant 0 : i32
    %c0_i32_1 = arith.constant 0 : i32
    return %arg0, %c0_i32, %c0_i32_0 : i32, i32, i32
  }
  func.func @transform_2(%arg0: i32) -> (i32, i32) {
    %c0_i32 = arith.constant 0 : i32
    %c0_i32_0 = arith.constant 0 : i32
    %c0_i32_1 = arith.constant 0 : i32
    return %c0_i32, %c0_i32_0 : i32, i32
  }
  func.func @transform_3(%arg0: i32) -> (i32, i32) {
    %c0_i32 = arith.constant 0 : i32
    %c0_i32_0 = arith.constant 0 : i32
    %c0_i32_1 = arith.constant 0 : i32
    return %c0_i32, %c0_i32_0 : i32, i32
  }
  func.func @transform_4(%arg0: i32) -> (i32, i32, i32, i32) {
    %c0_i32 = arith.constant 0 : i32
    %c0_i32_0 = arith.constant 0 : i32
    %c0_i32_1 = arith.constant 0 : i32
    %c0_i32_2 = arith.constant 0 : i32
    %c0_i32_3 = arith.constant 0 : i32
    return %c0_i32, %c0_i32_0, %c0_i32_1, %c0_i32_2 : i32, i32, i32, i32
  }
  func.func @transform_5(%arg0: i32) -> (i32, i32, i32, i32) {
    %c0_i32 = arith.constant 0 : i32
    %c0_i32_0 = arith.constant 0 : i32
    %c0_i32_1 = arith.constant 0 : i32
    %c0_i32_2 = arith.constant 0 : i32
    %c0_i32_3 = arith.constant 0 : i32
    return %c0_i32, %c0_i32_0, %c0_i32_1, %c0_i32_2 : i32, i32, i32, i32
  }
  func.func @transform_6(%arg0: i32) -> (i32, i32, i32, i32) {
    %c0_i32 = arith.constant 0 : i32
    %c0_i32_0 = arith.constant 0 : i32
    %c0_i32_1 = arith.constant 0 : i32
    %c0_i32_2 = arith.constant 0 : i32
    %c0_i32_3 = arith.constant 0 : i32
    return %c0_i32, %c0_i32_0, %c0_i32_1, %c0_i32_2 : i32, i32, i32, i32
  }
  func.func @transform_7(%arg0: i32) -> (i32, i32, i32) {
    %c0_i32 = arith.constant 0 : i32
    %c0_i32_0 = arith.constant 0 : i32
    %c0_i32_1 = arith.constant 0 : i32
    return %arg0, %c0_i32, %c0_i32_0 : i32, i32, i32
  }
}

module attributes {stable_mosaic.version = 11 : i64} {
  func.func @mffb_kernel(%arg0: i32, %arg1: memref<1x32x256xf32, #tpu.memory_space<vmem>>, %arg2: memref<1x64x1xf32, #tpu.memory_space<vmem>>, %arg3: memref<9x256xf32, #tpu.memory_space<vmem>>, %arg4: memref<160x1xf32, #tpu.memory_space<vmem>>, %arg5: memref<2x9x32x32xbf16, #tpu.memory_space<vmem>>, %arg6: memref<2x9x16x16xbf16, #tpu.memory_space<vmem>>, %arg7: memref<2x2x32x16xbf16, #tpu.memory_space<vmem>>, %arg8: memref<1x32x256xf32, #tpu.memory_space<vmem>>) attributes {dimension_semantics = [#tpu.dimension_semantics<parallel>], iteration_bounds = array<i64: 2>, scalar_prefetch = 0 : i64, scratch_operands = 0 : i64, tpu.core_type = #tpu.core_type<tc>, window_params = [{transform_indices = @transform_0, window_bounds = array<i64: 1, 32, 256>}, {transform_indices = @transform_1, window_bounds = array<i64: 1, 64, 1>}, {pipeline_mode = #tpu.pipeline_mode<synchronous>, transform_indices = @transform_2, window_bounds = array<i64: 9, 256>}, {pipeline_mode = #tpu.pipeline_mode<synchronous>, transform_indices = @transform_3, window_bounds = array<i64: 160, 1>}, {pipeline_mode = #tpu.pipeline_mode<synchronous>, transform_indices = @transform_4, window_bounds = array<i64: 2, 9, 32, 32>}, {pipeline_mode = #tpu.pipeline_mode<synchronous>, transform_indices = @transform_5, window_bounds = array<i64: 2, 9, 16, 16>}, {pipeline_mode = #tpu.pipeline_mode<synchronous>, transform_indices = @transform_6, window_bounds = array<i64: 2, 2, 32, 16>}, {transform_indices = @transform_7, window_bounds = array<i64: 1, 32, 256>}]} {
    %c0 = arith.constant 0 : index
    %c0_0 = arith.constant 0 : index
    %c0_1 = arith.constant 0 : index
    %0 = vector.load %arg1[%c0, %c0_0, %c0_1] : memref<1x32x256xf32, #tpu.memory_space<vmem>>, vector<1x32x256xf32>
    %1 = vector.shape_cast %0 : vector<1x32x256xf32> to vector<32x256xf32>
    %c0_2 = arith.constant 0 : index
    %c0_3 = arith.constant 0 : index
    %2 = vector.load %arg3[%c0_2, %c0_3] : memref<9x256xf32, #tpu.memory_space<vmem>>, vector<9x256xf32>
    %c0_4 = arith.constant 0 : index
    %c0_5 = arith.constant 0 : index
    %c0_6 = arith.constant 0 : index
    %3 = vector.load %arg2[%c0_4, %c0_5, %c0_6] : memref<1x64x1xf32, #tpu.memory_space<vmem>>, vector<1x64x1xf32>
    %4 = vector.shape_cast %3 : vector<1x64x1xf32> to vector<64x1xf32>
    %5 = vector.extract_strided_slice %4 {offsets = [0, 0], sizes = [32, 1], strides = [1, 1]} : vector<64x1xf32> to vector<32x1xf32>
    %6 = vector.extract_strided_slice %4 {offsets = [32, 0], sizes = [32, 1], strides = [1, 1]} : vector<64x1xf32> to vector<32x1xf32>
    %c0_7 = arith.constant 0 : index
    %c0_8 = arith.constant 0 : index
    %7 = vector.load %arg4[%c0_7, %c0_8] : memref<160x1xf32, #tpu.memory_space<vmem>>, vector<32x1xf32>
    %c32 = arith.constant 32 : index
    %c0_9 = arith.constant 0 : index
    %8 = vector.load %arg4[%c32, %c0_9] : memref<160x1xf32, #tpu.memory_space<vmem>>, vector<16x1xf32>
    %c48 = arith.constant 48 : index
    %c0_10 = arith.constant 0 : index
    %9 = vector.load %arg4[%c48, %c0_10] : memref<160x1xf32, #tpu.memory_space<vmem>>, vector<32x1xf32>
    %cst = arith.constant 0.000000e+00 : f32
    %10 = vector.broadcast %cst : f32 to vector<32x256xf32>
    %c17_i32 = arith.constant 17 : i32
    %11 = tpu.dynamic_rotate %1 by %c17_i32 dim 1 : vector<32x256xf32>, i32 -> vector<32x256xf32>
    %12 = vector.extract_strided_slice %2 {offsets = [0, 0], sizes = [1, 256], strides = [1, 1]} : vector<9x256xf32> to vector<1x256xf32>
    %13 = vector.broadcast %12 : vector<1x256xf32> to vector<32x256xf32>
    %14 = arith.mulf %11, %13 : vector<32x256xf32>
    %15 = arith.truncf %14 : vector<32x256xf32> to vector<32x256xbf16>
    %c0_11 = arith.constant 0 : index
    %c0_12 = arith.constant 0 : index
    %c0_13 = arith.constant 0 : index
    %c0_14 = arith.constant 0 : index
    %16 = vector.load %arg5[%c0_11, %c0_12, %c0_13, %c0_14] : memref<2x9x32x32xbf16, #tpu.memory_space<vmem>>, vector<1x1x32x32xbf16>
    %17 = vector.shape_cast %16 : vector<1x1x32x32xbf16> to vector<32x32xbf16>
    %cst_15 = arith.constant dense<0.000000e+00> : vector<32x256xf32>
    %18 = tpu.matmul %17, %15, %cst_15 {dimension_numbers = #tpu.dot_dimension_numbers<[1], [0], [0], [1], [0, 0, 1, 1], [], []>} : vector<32x32xbf16>, vector<32x256xbf16>, vector<32x256xf32> -> vector<32x256xf32>
    %19 = arith.addf %10, %18 : vector<32x256xf32>
    %c16_i32 = arith.constant 16 : i32
    %20 = tpu.dynamic_rotate %1 by %c16_i32 dim 1 : vector<32x256xf32>, i32 -> vector<32x256xf32>
    %21 = vector.extract_strided_slice %2 {offsets = [1, 0], sizes = [1, 256], strides = [1, 1]} : vector<9x256xf32> to vector<1x256xf32>
    %22 = vector.broadcast %21 : vector<1x256xf32> to vector<32x256xf32>
    %23 = arith.mulf %20, %22 : vector<32x256xf32>
    %24 = arith.truncf %23 : vector<32x256xf32> to vector<32x256xbf16>
    %c0_16 = arith.constant 0 : index
    %c1 = arith.constant 1 : index
    %c0_17 = arith.constant 0 : index
    %c0_18 = arith.constant 0 : index
    %25 = vector.load %arg5[%c0_16, %c1, %c0_17, %c0_18] : memref<2x9x32x32xbf16, #tpu.memory_space<vmem>>, vector<1x1x32x32xbf16>
    %26 = vector.shape_cast %25 : vector<1x1x32x32xbf16> to vector<32x32xbf16>
    %cst_19 = arith.constant dense<0.000000e+00> : vector<32x256xf32>
    %27 = tpu.matmul %26, %24, %cst_19 {dimension_numbers = #tpu.dot_dimension_numbers<[1], [0], [0], [1], [0, 0, 1, 1], [], []>} : vector<32x32xbf16>, vector<32x256xbf16>, vector<32x256xf32> -> vector<32x256xf32>
    %28 = arith.addf %19, %27 : vector<32x256xf32>
    %c15_i32 = arith.constant 15 : i32
    %29 = tpu.dynamic_rotate %1 by %c15_i32 dim 1 : vector<32x256xf32>, i32 -> vector<32x256xf32>
    %30 = vector.extract_strided_slice %2 {offsets = [2, 0], sizes = [1, 256], strides = [1, 1]} : vector<9x256xf32> to vector<1x256xf32>
    %31 = vector.broadcast %30 : vector<1x256xf32> to vector<32x256xf32>
    %32 = arith.mulf %29, %31 : vector<32x256xf32>
    %33 = arith.truncf %32 : vector<32x256xf32> to vector<32x256xbf16>
    %c0_20 = arith.constant 0 : index
    %c2 = arith.constant 2 : index
    %c0_21 = arith.constant 0 : index
    %c0_22 = arith.constant 0 : index
    %34 = vector.load %arg5[%c0_20, %c2, %c0_21, %c0_22] : memref<2x9x32x32xbf16, #tpu.memory_space<vmem>>, vector<1x1x32x32xbf16>
    %35 = vector.shape_cast %34 : vector<1x1x32x32xbf16> to vector<32x32xbf16>
    %cst_23 = arith.constant dense<0.000000e+00> : vector<32x256xf32>
    %36 = tpu.matmul %35, %33, %cst_23 {dimension_numbers = #tpu.dot_dimension_numbers<[1], [0], [0], [1], [0, 0, 1, 1], [], []>} : vector<32x32xbf16>, vector<32x256xbf16>, vector<32x256xf32> -> vector<32x256xf32>
    %37 = arith.addf %28, %36 : vector<32x256xf32>
    %c1_i32 = arith.constant 1 : i32
    %38 = tpu.dynamic_rotate %1 by %c1_i32 dim 1 : vector<32x256xf32>, i32 -> vector<32x256xf32>
    %39 = vector.extract_strided_slice %2 {offsets = [3, 0], sizes = [1, 256], strides = [1, 1]} : vector<9x256xf32> to vector<1x256xf32>
    %40 = vector.broadcast %39 : vector<1x256xf32> to vector<32x256xf32>
    %41 = arith.mulf %38, %40 : vector<32x256xf32>
    %42 = arith.truncf %41 : vector<32x256xf32> to vector<32x256xbf16>
    %c0_24 = arith.constant 0 : index
    %c3 = arith.constant 3 : index
    %c0_25 = arith.constant 0 : index
    %c0_26 = arith.constant 0 : index
    %43 = vector.load %arg5[%c0_24, %c3, %c0_25, %c0_26] : memref<2x9x32x32xbf16, #tpu.memory_space<vmem>>, vector<1x1x32x32xbf16>
    %44 = vector.shape_cast %43 : vector<1x1x32x32xbf16> to vector<32x32xbf16>
    %cst_27 = arith.constant dense<0.000000e+00> : vector<32x256xf32>
    %45 = tpu.matmul %44, %42, %cst_27 {dimension_numbers = #tpu.dot_dimension_numbers<[1], [0], [0], [1], [0, 0, 1, 1], [], []>} : vector<32x32xbf16>, vector<32x256xbf16>, vector<32x256xf32> -> vector<32x256xf32>
    %46 = arith.addf %37, %45 : vector<32x256xf32>
    %47 = arith.truncf %1 : vector<32x256xf32> to vector<32x256xbf16>
    %c0_28 = arith.constant 0 : index
    %c4 = arith.constant 4 : index
    %c0_29 = arith.constant 0 : index
    %c0_30 = arith.constant 0 : index
    %48 = vector.load %arg5[%c0_28, %c4, %c0_29, %c0_30] : memref<2x9x32x32xbf16, #tpu.memory_space<vmem>>, vector<1x1x32x32xbf16>
    %49 = vector.shape_cast %48 : vector<1x1x32x32xbf16> to vector<32x32xbf16>
    %cst_31 = arith.constant dense<0.000000e+00> : vector<32x256xf32>
    %50 = tpu.matmul %49, %47, %cst_31 {dimension_numbers = #tpu.dot_dimension_numbers<[1], [0], [0], [1], [0, 0, 1, 1], [], []>} : vector<32x32xbf16>, vector<32x256xbf16>, vector<32x256xf32> -> vector<32x256xf32>
    %51 = arith.addf %46, %50 : vector<32x256xf32>
    %c255_i32 = arith.constant 255 : i32
    %52 = tpu.dynamic_rotate %1 by %c255_i32 dim 1 : vector<32x256xf32>, i32 -> vector<32x256xf32>
    %53 = vector.extract_strided_slice %2 {offsets = [5, 0], sizes = [1, 256], strides = [1, 1]} : vector<9x256xf32> to vector<1x256xf32>
    %54 = vector.broadcast %53 : vector<1x256xf32> to vector<32x256xf32>
    %55 = arith.mulf %52, %54 : vector<32x256xf32>
    %56 = arith.truncf %55 : vector<32x256xf32> to vector<32x256xbf16>
    %c0_32 = arith.constant 0 : index
    %c5 = arith.constant 5 : index
    %c0_33 = arith.constant 0 : index
    %c0_34 = arith.constant 0 : index
    %57 = vector.load %arg5[%c0_32, %c5, %c0_33, %c0_34] : memref<2x9x32x32xbf16, #tpu.memory_space<vmem>>, vector<1x1x32x32xbf16>
    %58 = vector.shape_cast %57 : vector<1x1x32x32xbf16> to vector<32x32xbf16>
    %cst_35 = arith.constant dense<0.000000e+00> : vector<32x256xf32>
    %59 = tpu.matmul %58, %56, %cst_35 {dimension_numbers = #tpu.dot_dimension_numbers<[1], [0], [0], [1], [0, 0, 1, 1], [], []>} : vector<32x32xbf16>, vector<32x256xbf16>, vector<32x256xf32> -> vector<32x256xf32>
    %60 = arith.addf %51, %59 : vector<32x256xf32>
    %c241_i32 = arith.constant 241 : i32
    %61 = tpu.dynamic_rotate %1 by %c241_i32 dim 1 : vector<32x256xf32>, i32 -> vector<32x256xf32>
    %62 = vector.extract_strided_slice %2 {offsets = [6, 0], sizes = [1, 256], strides = [1, 1]} : vector<9x256xf32> to vector<1x256xf32>
    %63 = vector.broadcast %62 : vector<1x256xf32> to vector<32x256xf32>
    %64 = arith.mulf %61, %63 : vector<32x256xf32>
    %65 = arith.truncf %64 : vector<32x256xf32> to vector<32x256xbf16>
    %c0_36 = arith.constant 0 : index
    %c6 = arith.constant 6 : index
    %c0_37 = arith.constant 0 : index
    %c0_38 = arith.constant 0 : index
    %66 = vector.load %arg5[%c0_36, %c6, %c0_37, %c0_38] : memref<2x9x32x32xbf16, #tpu.memory_space<vmem>>, vector<1x1x32x32xbf16>
    %67 = vector.shape_cast %66 : vector<1x1x32x32xbf16> to vector<32x32xbf16>
    %cst_39 = arith.constant dense<0.000000e+00> : vector<32x256xf32>
    %68 = tpu.matmul %67, %65, %cst_39 {dimension_numbers = #tpu.dot_dimension_numbers<[1], [0], [0], [1], [0, 0, 1, 1], [], []>} : vector<32x32xbf16>, vector<32x256xbf16>, vector<32x256xf32> -> vector<32x256xf32>
    %69 = arith.addf %60, %68 : vector<32x256xf32>
    %c240_i32 = arith.constant 240 : i32
    %70 = tpu.dynamic_rotate %1 by %c240_i32 dim 1 : vector<32x256xf32>, i32 -> vector<32x256xf32>
    %71 = vector.extract_strided_slice %2 {offsets = [7, 0], sizes = [1, 256], strides = [1, 1]} : vector<9x256xf32> to vector<1x256xf32>
    %72 = vector.broadcast %71 : vector<1x256xf32> to vector<32x256xf32>
    %73 = arith.mulf %70, %72 : vector<32x256xf32>
    %74 = arith.truncf %73 : vector<32x256xf32> to vector<32x256xbf16>
    %c0_40 = arith.constant 0 : index
    %c7 = arith.constant 7 : index
    %c0_41 = arith.constant 0 : index
    %c0_42 = arith.constant 0 : index
    %75 = vector.load %arg5[%c0_40, %c7, %c0_41, %c0_42] : memref<2x9x32x32xbf16, #tpu.memory_space<vmem>>, vector<1x1x32x32xbf16>
    %76 = vector.shape_cast %75 : vector<1x1x32x32xbf16> to vector<32x32xbf16>
    %cst_43 = arith.constant dense<0.000000e+00> : vector<32x256xf32>
    %77 = tpu.matmul %76, %74, %cst_43 {dimension_numbers = #tpu.dot_dimension_numbers<[1], [0], [0], [1], [0, 0, 1, 1], [], []>} : vector<32x32xbf16>, vector<32x256xbf16>, vector<32x256xf32> -> vector<32x256xf32>
    %78 = arith.addf %69, %77 : vector<32x256xf32>
    %c239_i32 = arith.constant 239 : i32
    %79 = tpu.dynamic_rotate %1 by %c239_i32 dim 1 : vector<32x256xf32>, i32 -> vector<32x256xf32>
    %80 = vector.extract_strided_slice %2 {offsets = [8, 0], sizes = [1, 256], strides = [1, 1]} : vector<9x256xf32> to vector<1x256xf32>
    %81 = vector.broadcast %80 : vector<1x256xf32> to vector<32x256xf32>
    %82 = arith.mulf %79, %81 : vector<32x256xf32>
    %83 = arith.truncf %82 : vector<32x256xf32> to vector<32x256xbf16>
    %c0_44 = arith.constant 0 : index
    %c8 = arith.constant 8 : index
    %c0_45 = arith.constant 0 : index
    %c0_46 = arith.constant 0 : index
    %84 = vector.load %arg5[%c0_44, %c8, %c0_45, %c0_46] : memref<2x9x32x32xbf16, #tpu.memory_space<vmem>>, vector<1x1x32x32xbf16>
    %85 = vector.shape_cast %84 : vector<1x1x32x32xbf16> to vector<32x32xbf16>
    %cst_47 = arith.constant dense<0.000000e+00> : vector<32x256xf32>
    %86 = tpu.matmul %85, %83, %cst_47 {dimension_numbers = #tpu.dot_dimension_numbers<[1], [0], [0], [1], [0, 0, 1, 1], [], []>} : vector<32x32xbf16>, vector<32x256xbf16>, vector<32x256xf32> -> vector<32x256xf32>
    %87 = arith.addf %78, %86 : vector<32x256xf32>
    %88 = vector.broadcast %7 : vector<32x1xf32> to vector<32x256xf32>
    %89 = arith.addf %87, %88 : vector<32x256xf32>
    %90 = arith.negf %89 : vector<32x256xf32>
    %91 = math.exp %90 : vector<32x256xf32>
    %cst_48 = arith.constant 1.000000e+00 : f32
    %92 = vector.broadcast %cst_48 : f32 to vector<32x256xf32>
    %93 = arith.addf %92, %91 : vector<32x256xf32>
    %94 = arith.divf %92, %93 : vector<32x256xf32>
    %95 = arith.mulf %89, %94 : vector<32x256xf32>
    %96 = vector.extract_strided_slice %95 {offsets = [0, 0], sizes = [16, 256], strides = [1, 1]} : vector<32x256xf32> to vector<16x256xf32>
    %97 = vector.extract_strided_slice %95 {offsets = [16, 0], sizes = [16, 256], strides = [1, 1]} : vector<32x256xf32> to vector<16x256xf32>
    %cst_49 = arith.constant 0.000000e+00 : f32
    %98 = vector.broadcast %cst_49 : f32 to vector<16x256xf32>
    %c17_i32_50 = arith.constant 17 : i32
    %99 = tpu.dynamic_rotate %97 by %c17_i32_50 dim 1 : vector<16x256xf32>, i32 -> vector<16x256xf32>
    %100 = vector.extract_strided_slice %2 {offsets = [0, 0], sizes = [1, 256], strides = [1, 1]} : vector<9x256xf32> to vector<1x256xf32>
    %101 = vector.broadcast %100 : vector<1x256xf32> to vector<16x256xf32>
    %102 = arith.mulf %99, %101 : vector<16x256xf32>
    %103 = arith.truncf %102 : vector<16x256xf32> to vector<16x256xbf16>
    %c0_51 = arith.constant 0 : index
    %c0_52 = arith.constant 0 : index
    %c0_53 = arith.constant 0 : index
    %c0_54 = arith.constant 0 : index
    %104 = vector.load %arg6[%c0_51, %c0_52, %c0_53, %c0_54] : memref<2x9x16x16xbf16, #tpu.memory_space<vmem>>, vector<1x1x16x16xbf16>
    %105 = vector.shape_cast %104 : vector<1x1x16x16xbf16> to vector<16x16xbf16>
    %cst_55 = arith.constant dense<0.000000e+00> : vector<16x256xf32>
    %106 = tpu.matmul %105, %103, %cst_55 {dimension_numbers = #tpu.dot_dimension_numbers<[1], [0], [0], [1], [0, 0, 1, 1], [], []>} : vector<16x16xbf16>, vector<16x256xbf16>, vector<16x256xf32> -> vector<16x256xf32>
    %107 = arith.addf %98, %106 : vector<16x256xf32>
    %c16_i32_56 = arith.constant 16 : i32
    %108 = tpu.dynamic_rotate %97 by %c16_i32_56 dim 1 : vector<16x256xf32>, i32 -> vector<16x256xf32>
    %109 = vector.extract_strided_slice %2 {offsets = [1, 0], sizes = [1, 256], strides = [1, 1]} : vector<9x256xf32> to vector<1x256xf32>
    %110 = vector.broadcast %109 : vector<1x256xf32> to vector<16x256xf32>
    %111 = arith.mulf %108, %110 : vector<16x256xf32>
    %112 = arith.truncf %111 : vector<16x256xf32> to vector<16x256xbf16>
    %c0_57 = arith.constant 0 : index
    %c1_58 = arith.constant 1 : index
    %c0_59 = arith.constant 0 : index
    %c0_60 = arith.constant 0 : index
    %113 = vector.load %arg6[%c0_57, %c1_58, %c0_59, %c0_60] : memref<2x9x16x16xbf16, #tpu.memory_space<vmem>>, vector<1x1x16x16xbf16>
    %114 = vector.shape_cast %113 : vector<1x1x16x16xbf16> to vector<16x16xbf16>
    %cst_61 = arith.constant dense<0.000000e+00> : vector<16x256xf32>
    %115 = tpu.matmul %114, %112, %cst_61 {dimension_numbers = #tpu.dot_dimension_numbers<[1], [0], [0], [1], [0, 0, 1, 1], [], []>} : vector<16x16xbf16>, vector<16x256xbf16>, vector<16x256xf32> -> vector<16x256xf32>
    %116 = arith.addf %107, %115 : vector<16x256xf32>
    %c15_i32_62 = arith.constant 15 : i32
    %117 = tpu.dynamic_rotate %97 by %c15_i32_62 dim 1 : vector<16x256xf32>, i32 -> vector<16x256xf32>
    %118 = vector.extract_strided_slice %2 {offsets = [2, 0], sizes = [1, 256], strides = [1, 1]} : vector<9x256xf32> to vector<1x256xf32>
    %119 = vector.broadcast %118 : vector<1x256xf32> to vector<16x256xf32>
    %120 = arith.mulf %117, %119 : vector<16x256xf32>
    %121 = arith.truncf %120 : vector<16x256xf32> to vector<16x256xbf16>
    %c0_63 = arith.constant 0 : index
    %c2_64 = arith.constant 2 : index
    %c0_65 = arith.constant 0 : index
    %c0_66 = arith.constant 0 : index
    %122 = vector.load %arg6[%c0_63, %c2_64, %c0_65, %c0_66] : memref<2x9x16x16xbf16, #tpu.memory_space<vmem>>, vector<1x1x16x16xbf16>
    %123 = vector.shape_cast %122 : vector<1x1x16x16xbf16> to vector<16x16xbf16>
    %cst_67 = arith.constant dense<0.000000e+00> : vector<16x256xf32>
    %124 = tpu.matmul %123, %121, %cst_67 {dimension_numbers = #tpu.dot_dimension_numbers<[1], [0], [0], [1], [0, 0, 1, 1], [], []>} : vector<16x16xbf16>, vector<16x256xbf16>, vector<16x256xf32> -> vector<16x256xf32>
    %125 = arith.addf %116, %124 : vector<16x256xf32>
    %c1_i32_68 = arith.constant 1 : i32
    %126 = tpu.dynamic_rotate %97 by %c1_i32_68 dim 1 : vector<16x256xf32>, i32 -> vector<16x256xf32>
    %127 = vector.extract_strided_slice %2 {offsets = [3, 0], sizes = [1, 256], strides = [1, 1]} : vector<9x256xf32> to vector<1x256xf32>
    %128 = vector.broadcast %127 : vector<1x256xf32> to vector<16x256xf32>
    %129 = arith.mulf %126, %128 : vector<16x256xf32>
    %130 = arith.truncf %129 : vector<16x256xf32> to vector<16x256xbf16>
    %c0_69 = arith.constant 0 : index
    %c3_70 = arith.constant 3 : index
    %c0_71 = arith.constant 0 : index
    %c0_72 = arith.constant 0 : index
    %131 = vector.load %arg6[%c0_69, %c3_70, %c0_71, %c0_72] : memref<2x9x16x16xbf16, #tpu.memory_space<vmem>>, vector<1x1x16x16xbf16>
    %132 = vector.shape_cast %131 : vector<1x1x16x16xbf16> to vector<16x16xbf16>
    %cst_73 = arith.constant dense<0.000000e+00> : vector<16x256xf32>
    %133 = tpu.matmul %132, %130, %cst_73 {dimension_numbers = #tpu.dot_dimension_numbers<[1], [0], [0], [1], [0, 0, 1, 1], [], []>} : vector<16x16xbf16>, vector<16x256xbf16>, vector<16x256xf32> -> vector<16x256xf32>
    %134 = arith.addf %125, %133 : vector<16x256xf32>
    %135 = arith.truncf %97 : vector<16x256xf32> to vector<16x256xbf16>
    %c0_74 = arith.constant 0 : index
    %c4_75 = arith.constant 4 : index
    %c0_76 = arith.constant 0 : index
    %c0_77 = arith.constant 0 : index
    %136 = vector.load %arg6[%c0_74, %c4_75, %c0_76, %c0_77] : memref<2x9x16x16xbf16, #tpu.memory_space<vmem>>, vector<1x1x16x16xbf16>
    %137 = vector.shape_cast %136 : vector<1x1x16x16xbf16> to vector<16x16xbf16>
    %cst_78 = arith.constant dense<0.000000e+00> : vector<16x256xf32>
    %138 = tpu.matmul %137, %135, %cst_78 {dimension_numbers = #tpu.dot_dimension_numbers<[1], [0], [0], [1], [0, 0, 1, 1], [], []>} : vector<16x16xbf16>, vector<16x256xbf16>, vector<16x256xf32> -> vector<16x256xf32>
    %139 = arith.addf %134, %138 : vector<16x256xf32>
    %c255_i32_79 = arith.constant 255 : i32
    %140 = tpu.dynamic_rotate %97 by %c255_i32_79 dim 1 : vector<16x256xf32>, i32 -> vector<16x256xf32>
    %141 = vector.extract_strided_slice %2 {offsets = [5, 0], sizes = [1, 256], strides = [1, 1]} : vector<9x256xf32> to vector<1x256xf32>
    %142 = vector.broadcast %141 : vector<1x256xf32> to vector<16x256xf32>
    %143 = arith.mulf %140, %142 : vector<16x256xf32>
    %144 = arith.truncf %143 : vector<16x256xf32> to vector<16x256xbf16>
    %c0_80 = arith.constant 0 : index
    %c5_81 = arith.constant 5 : index
    %c0_82 = arith.constant 0 : index
    %c0_83 = arith.constant 0 : index
    %145 = vector.load %arg6[%c0_80, %c5_81, %c0_82, %c0_83] : memref<2x9x16x16xbf16, #tpu.memory_space<vmem>>, vector<1x1x16x16xbf16>
    %146 = vector.shape_cast %145 : vector<1x1x16x16xbf16> to vector<16x16xbf16>
    %cst_84 = arith.constant dense<0.000000e+00> : vector<16x256xf32>
    %147 = tpu.matmul %146, %144, %cst_84 {dimension_numbers = #tpu.dot_dimension_numbers<[1], [0], [0], [1], [0, 0, 1, 1], [], []>} : vector<16x16xbf16>, vector<16x256xbf16>, vector<16x256xf32> -> vector<16x256xf32>
    %148 = arith.addf %139, %147 : vector<16x256xf32>
    %c241_i32_85 = arith.constant 241 : i32
    %149 = tpu.dynamic_rotate %97 by %c241_i32_85 dim 1 : vector<16x256xf32>, i32 -> vector<16x256xf32>
    %150 = vector.extract_strided_slice %2 {offsets = [6, 0], sizes = [1, 256], strides = [1, 1]} : vector<9x256xf32> to vector<1x256xf32>
    %151 = vector.broadcast %150 : vector<1x256xf32> to vector<16x256xf32>
    %152 = arith.mulf %149, %151 : vector<16x256xf32>
    %153 = arith.truncf %152 : vector<16x256xf32> to vector<16x256xbf16>
    %c0_86 = arith.constant 0 : index
    %c6_87 = arith.constant 6 : index
    %c0_88 = arith.constant 0 : index
    %c0_89 = arith.constant 0 : index
    %154 = vector.load %arg6[%c0_86, %c6_87, %c0_88, %c0_89] : memref<2x9x16x16xbf16, #tpu.memory_space<vmem>>, vector<1x1x16x16xbf16>
    %155 = vector.shape_cast %154 : vector<1x1x16x16xbf16> to vector<16x16xbf16>
    %cst_90 = arith.constant dense<0.000000e+00> : vector<16x256xf32>
    %156 = tpu.matmul %155, %153, %cst_90 {dimension_numbers = #tpu.dot_dimension_numbers<[1], [0], [0], [1], [0, 0, 1, 1], [], []>} : vector<16x16xbf16>, vector<16x256xbf16>, vector<16x256xf32> -> vector<16x256xf32>
    %157 = arith.addf %148, %156 : vector<16x256xf32>
    %c240_i32_91 = arith.constant 240 : i32
    %158 = tpu.dynamic_rotate %97 by %c240_i32_91 dim 1 : vector<16x256xf32>, i32 -> vector<16x256xf32>
    %159 = vector.extract_strided_slice %2 {offsets = [7, 0], sizes = [1, 256], strides = [1, 1]} : vector<9x256xf32> to vector<1x256xf32>
    %160 = vector.broadcast %159 : vector<1x256xf32> to vector<16x256xf32>
    %161 = arith.mulf %158, %160 : vector<16x256xf32>
    %162 = arith.truncf %161 : vector<16x256xf32> to vector<16x256xbf16>
    %c0_92 = arith.constant 0 : index
    %c7_93 = arith.constant 7 : index
    %c0_94 = arith.constant 0 : index
    %c0_95 = arith.constant 0 : index
    %163 = vector.load %arg6[%c0_92, %c7_93, %c0_94, %c0_95] : memref<2x9x16x16xbf16, #tpu.memory_space<vmem>>, vector<1x1x16x16xbf16>
    %164 = vector.shape_cast %163 : vector<1x1x16x16xbf16> to vector<16x16xbf16>
    %cst_96 = arith.constant dense<0.000000e+00> : vector<16x256xf32>
    %165 = tpu.matmul %164, %162, %cst_96 {dimension_numbers = #tpu.dot_dimension_numbers<[1], [0], [0], [1], [0, 0, 1, 1], [], []>} : vector<16x16xbf16>, vector<16x256xbf16>, vector<16x256xf32> -> vector<16x256xf32>
    %166 = arith.addf %157, %165 : vector<16x256xf32>
    %c239_i32_97 = arith.constant 239 : i32
    %167 = tpu.dynamic_rotate %97 by %c239_i32_97 dim 1 : vector<16x256xf32>, i32 -> vector<16x256xf32>
    %168 = vector.extract_strided_slice %2 {offsets = [8, 0], sizes = [1, 256], strides = [1, 1]} : vector<9x256xf32> to vector<1x256xf32>
    %169 = vector.broadcast %168 : vector<1x256xf32> to vector<16x256xf32>
    %170 = arith.mulf %167, %169 : vector<16x256xf32>
    %171 = arith.truncf %170 : vector<16x256xf32> to vector<16x256xbf16>
    %c0_98 = arith.constant 0 : index
    %c8_99 = arith.constant 8 : index
    %c0_100 = arith.constant 0 : index
    %c0_101 = arith.constant 0 : index
    %172 = vector.load %arg6[%c0_98, %c8_99, %c0_100, %c0_101] : memref<2x9x16x16xbf16, #tpu.memory_space<vmem>>, vector<1x1x16x16xbf16>
    %173 = vector.shape_cast %172 : vector<1x1x16x16xbf16> to vector<16x16xbf16>
    %cst_102 = arith.constant dense<0.000000e+00> : vector<16x256xf32>
    %174 = tpu.matmul %173, %171, %cst_102 {dimension_numbers = #tpu.dot_dimension_numbers<[1], [0], [0], [1], [0, 0, 1, 1], [], []>} : vector<16x16xbf16>, vector<16x256xbf16>, vector<16x256xf32> -> vector<16x256xf32>
    %175 = arith.addf %166, %174 : vector<16x256xf32>
    %176 = vector.broadcast %8 : vector<16x1xf32> to vector<16x256xf32>
    %177 = arith.addf %175, %176 : vector<16x256xf32>
    %c0_103 = arith.constant 0 : index
    %c0_104 = arith.constant 0 : index
    %c0_105 = arith.constant 0 : index
    %c0_106 = arith.constant 0 : index
    %178 = vector.load %arg7[%c0_103, %c0_104, %c0_105, %c0_106] : memref<2x2x32x16xbf16, #tpu.memory_space<vmem>>, vector<1x1x32x16xbf16>
    %179 = vector.shape_cast %178 : vector<1x1x32x16xbf16> to vector<32x16xbf16>
    %180 = arith.truncf %96 : vector<16x256xf32> to vector<16x256xbf16>
    %cst_107 = arith.constant dense<0.000000e+00> : vector<32x256xf32>
    %181 = tpu.matmul %179, %180, %cst_107 {dimension_numbers = #tpu.dot_dimension_numbers<[1], [0], [0], [1], [0, 0, 1, 1], [], []>} : vector<32x16xbf16>, vector<16x256xbf16>, vector<32x256xf32> -> vector<32x256xf32>
    %c0_108 = arith.constant 0 : index
    %c1_109 = arith.constant 1 : index
    %c0_110 = arith.constant 0 : index
    %c0_111 = arith.constant 0 : index
    %182 = vector.load %arg7[%c0_108, %c1_109, %c0_110, %c0_111] : memref<2x2x32x16xbf16, #tpu.memory_space<vmem>>, vector<1x1x32x16xbf16>
    %183 = vector.shape_cast %182 : vector<1x1x32x16xbf16> to vector<32x16xbf16>
    %184 = arith.truncf %177 : vector<16x256xf32> to vector<16x256xbf16>
    %cst_112 = arith.constant dense<0.000000e+00> : vector<32x256xf32>
    %185 = tpu.matmul %183, %184, %cst_112 {dimension_numbers = #tpu.dot_dimension_numbers<[1], [0], [0], [1], [0, 0, 1, 1], [], []>} : vector<32x16xbf16>, vector<16x256xbf16>, vector<32x256xf32> -> vector<32x256xf32>
    %186 = arith.addf %181, %185 : vector<32x256xf32>
    %187 = vector.broadcast %9 : vector<32x1xf32> to vector<32x256xf32>
    %188 = arith.addf %186, %187 : vector<32x256xf32>
    %189 = arith.addf %188, %1 : vector<32x256xf32>
    %190 = vector.broadcast %5 : vector<32x1xf32> to vector<32x256xf32>
    %191 = arith.mulf %189, %190 : vector<32x256xf32>
    %192 = vector.broadcast %6 : vector<32x1xf32> to vector<32x256xf32>
    %193 = arith.addf %191, %192 : vector<32x256xf32>
    %c80 = arith.constant 80 : index
    %c0_113 = arith.constant 0 : index
    %194 = vector.load %arg4[%c80, %c0_113] : memref<160x1xf32, #tpu.memory_space<vmem>>, vector<32x1xf32>
    %c112 = arith.constant 112 : index
    %c0_114 = arith.constant 0 : index
    %195 = vector.load %arg4[%c112, %c0_114] : memref<160x1xf32, #tpu.memory_space<vmem>>, vector<16x1xf32>
    %c128 = arith.constant 128 : index
    %c0_115 = arith.constant 0 : index
    %196 = vector.load %arg4[%c128, %c0_115] : memref<160x1xf32, #tpu.memory_space<vmem>>, vector<32x1xf32>
    %cst_116 = arith.constant 0.000000e+00 : f32
    %197 = vector.broadcast %cst_116 : f32 to vector<32x256xf32>
    %c17_i32_117 = arith.constant 17 : i32
    %198 = tpu.dynamic_rotate %193 by %c17_i32_117 dim 1 : vector<32x256xf32>, i32 -> vector<32x256xf32>
    %199 = vector.extract_strided_slice %2 {offsets = [0, 0], sizes = [1, 256], strides = [1, 1]} : vector<9x256xf32> to vector<1x256xf32>
    %200 = vector.broadcast %199 : vector<1x256xf32> to vector<32x256xf32>
    %201 = arith.mulf %198, %200 : vector<32x256xf32>
    %202 = arith.truncf %201 : vector<32x256xf32> to vector<32x256xbf16>
    %c1_118 = arith.constant 1 : index
    %c0_119 = arith.constant 0 : index
    %c0_120 = arith.constant 0 : index
    %c0_121 = arith.constant 0 : index
    %203 = vector.load %arg5[%c1_118, %c0_119, %c0_120, %c0_121] : memref<2x9x32x32xbf16, #tpu.memory_space<vmem>>, vector<1x1x32x32xbf16>
    %204 = vector.shape_cast %203 : vector<1x1x32x32xbf16> to vector<32x32xbf16>
    %cst_122 = arith.constant dense<0.000000e+00> : vector<32x256xf32>
    %205 = tpu.matmul %204, %202, %cst_122 {dimension_numbers = #tpu.dot_dimension_numbers<[1], [0], [0], [1], [0, 0, 1, 1], [], []>} : vector<32x32xbf16>, vector<32x256xbf16>, vector<32x256xf32> -> vector<32x256xf32>
    %206 = arith.addf %197, %205 : vector<32x256xf32>
    %c16_i32_123 = arith.constant 16 : i32
    %207 = tpu.dynamic_rotate %193 by %c16_i32_123 dim 1 : vector<32x256xf32>, i32 -> vector<32x256xf32>
    %208 = vector.extract_strided_slice %2 {offsets = [1, 0], sizes = [1, 256], strides = [1, 1]} : vector<9x256xf32> to vector<1x256xf32>
    %209 = vector.broadcast %208 : vector<1x256xf32> to vector<32x256xf32>
    %210 = arith.mulf %207, %209 : vector<32x256xf32>
    %211 = arith.truncf %210 : vector<32x256xf32> to vector<32x256xbf16>
    %c1_124 = arith.constant 1 : index
    %c1_125 = arith.constant 1 : index
    %c0_126 = arith.constant 0 : index
    %c0_127 = arith.constant 0 : index
    %212 = vector.load %arg5[%c1_124, %c1_125, %c0_126, %c0_127] : memref<2x9x32x32xbf16, #tpu.memory_space<vmem>>, vector<1x1x32x32xbf16>
    %213 = vector.shape_cast %212 : vector<1x1x32x32xbf16> to vector<32x32xbf16>
    %cst_128 = arith.constant dense<0.000000e+00> : vector<32x256xf32>
    %214 = tpu.matmul %213, %211, %cst_128 {dimension_numbers = #tpu.dot_dimension_numbers<[1], [0], [0], [1], [0, 0, 1, 1], [], []>} : vector<32x32xbf16>, vector<32x256xbf16>, vector<32x256xf32> -> vector<32x256xf32>
    %215 = arith.addf %206, %214 : vector<32x256xf32>
    %c15_i32_129 = arith.constant 15 : i32
    %216 = tpu.dynamic_rotate %193 by %c15_i32_129 dim 1 : vector<32x256xf32>, i32 -> vector<32x256xf32>
    %217 = vector.extract_strided_slice %2 {offsets = [2, 0], sizes = [1, 256], strides = [1, 1]} : vector<9x256xf32> to vector<1x256xf32>
    %218 = vector.broadcast %217 : vector<1x256xf32> to vector<32x256xf32>
    %219 = arith.mulf %216, %218 : vector<32x256xf32>
    %220 = arith.truncf %219 : vector<32x256xf32> to vector<32x256xbf16>
    %c1_130 = arith.constant 1 : index
    %c2_131 = arith.constant 2 : index
    %c0_132 = arith.constant 0 : index
    %c0_133 = arith.constant 0 : index
    %221 = vector.load %arg5[%c1_130, %c2_131, %c0_132, %c0_133] : memref<2x9x32x32xbf16, #tpu.memory_space<vmem>>, vector<1x1x32x32xbf16>
    %222 = vector.shape_cast %221 : vector<1x1x32x32xbf16> to vector<32x32xbf16>
    %cst_134 = arith.constant dense<0.000000e+00> : vector<32x256xf32>
    %223 = tpu.matmul %222, %220, %cst_134 {dimension_numbers = #tpu.dot_dimension_numbers<[1], [0], [0], [1], [0, 0, 1, 1], [], []>} : vector<32x32xbf16>, vector<32x256xbf16>, vector<32x256xf32> -> vector<32x256xf32>
    %224 = arith.addf %215, %223 : vector<32x256xf32>
    %c1_i32_135 = arith.constant 1 : i32
    %225 = tpu.dynamic_rotate %193 by %c1_i32_135 dim 1 : vector<32x256xf32>, i32 -> vector<32x256xf32>
    %226 = vector.extract_strided_slice %2 {offsets = [3, 0], sizes = [1, 256], strides = [1, 1]} : vector<9x256xf32> to vector<1x256xf32>
    %227 = vector.broadcast %226 : vector<1x256xf32> to vector<32x256xf32>
    %228 = arith.mulf %225, %227 : vector<32x256xf32>
    %229 = arith.truncf %228 : vector<32x256xf32> to vector<32x256xbf16>
    %c1_136 = arith.constant 1 : index
    %c3_137 = arith.constant 3 : index
    %c0_138 = arith.constant 0 : index
    %c0_139 = arith.constant 0 : index
    %230 = vector.load %arg5[%c1_136, %c3_137, %c0_138, %c0_139] : memref<2x9x32x32xbf16, #tpu.memory_space<vmem>>, vector<1x1x32x32xbf16>
    %231 = vector.shape_cast %230 : vector<1x1x32x32xbf16> to vector<32x32xbf16>
    %cst_140 = arith.constant dense<0.000000e+00> : vector<32x256xf32>
    %232 = tpu.matmul %231, %229, %cst_140 {dimension_numbers = #tpu.dot_dimension_numbers<[1], [0], [0], [1], [0, 0, 1, 1], [], []>} : vector<32x32xbf16>, vector<32x256xbf16>, vector<32x256xf32> -> vector<32x256xf32>
    %233 = arith.addf %224, %232 : vector<32x256xf32>
    %234 = arith.truncf %193 : vector<32x256xf32> to vector<32x256xbf16>
    %c1_141 = arith.constant 1 : index
    %c4_142 = arith.constant 4 : index
    %c0_143 = arith.constant 0 : index
    %c0_144 = arith.constant 0 : index
    %235 = vector.load %arg5[%c1_141, %c4_142, %c0_143, %c0_144] : memref<2x9x32x32xbf16, #tpu.memory_space<vmem>>, vector<1x1x32x32xbf16>
    %236 = vector.shape_cast %235 : vector<1x1x32x32xbf16> to vector<32x32xbf16>
    %cst_145 = arith.constant dense<0.000000e+00> : vector<32x256xf32>
    %237 = tpu.matmul %236, %234, %cst_145 {dimension_numbers = #tpu.dot_dimension_numbers<[1], [0], [0], [1], [0, 0, 1, 1], [], []>} : vector<32x32xbf16>, vector<32x256xbf16>, vector<32x256xf32> -> vector<32x256xf32>
    %238 = arith.addf %233, %237 : vector<32x256xf32>
    %c255_i32_146 = arith.constant 255 : i32
    %239 = tpu.dynamic_rotate %193 by %c255_i32_146 dim 1 : vector<32x256xf32>, i32 -> vector<32x256xf32>
    %240 = vector.extract_strided_slice %2 {offsets = [5, 0], sizes = [1, 256], strides = [1, 1]} : vector<9x256xf32> to vector<1x256xf32>
    %241 = vector.broadcast %240 : vector<1x256xf32> to vector<32x256xf32>
    %242 = arith.mulf %239, %241 : vector<32x256xf32>
    %243 = arith.truncf %242 : vector<32x256xf32> to vector<32x256xbf16>
    %c1_147 = arith.constant 1 : index
    %c5_148 = arith.constant 5 : index
    %c0_149 = arith.constant 0 : index
    %c0_150 = arith.constant 0 : index
    %244 = vector.load %arg5[%c1_147, %c5_148, %c0_149, %c0_150] : memref<2x9x32x32xbf16, #tpu.memory_space<vmem>>, vector<1x1x32x32xbf16>
    %245 = vector.shape_cast %244 : vector<1x1x32x32xbf16> to vector<32x32xbf16>
    %cst_151 = arith.constant dense<0.000000e+00> : vector<32x256xf32>
    %246 = tpu.matmul %245, %243, %cst_151 {dimension_numbers = #tpu.dot_dimension_numbers<[1], [0], [0], [1], [0, 0, 1, 1], [], []>} : vector<32x32xbf16>, vector<32x256xbf16>, vector<32x256xf32> -> vector<32x256xf32>
    %247 = arith.addf %238, %246 : vector<32x256xf32>
    %c241_i32_152 = arith.constant 241 : i32
    %248 = tpu.dynamic_rotate %193 by %c241_i32_152 dim 1 : vector<32x256xf32>, i32 -> vector<32x256xf32>
    %249 = vector.extract_strided_slice %2 {offsets = [6, 0], sizes = [1, 256], strides = [1, 1]} : vector<9x256xf32> to vector<1x256xf32>
    %250 = vector.broadcast %249 : vector<1x256xf32> to vector<32x256xf32>
    %251 = arith.mulf %248, %250 : vector<32x256xf32>
    %252 = arith.truncf %251 : vector<32x256xf32> to vector<32x256xbf16>
    %c1_153 = arith.constant 1 : index
    %c6_154 = arith.constant 6 : index
    %c0_155 = arith.constant 0 : index
    %c0_156 = arith.constant 0 : index
    %253 = vector.load %arg5[%c1_153, %c6_154, %c0_155, %c0_156] : memref<2x9x32x32xbf16, #tpu.memory_space<vmem>>, vector<1x1x32x32xbf16>
    %254 = vector.shape_cast %253 : vector<1x1x32x32xbf16> to vector<32x32xbf16>
    %cst_157 = arith.constant dense<0.000000e+00> : vector<32x256xf32>
    %255 = tpu.matmul %254, %252, %cst_157 {dimension_numbers = #tpu.dot_dimension_numbers<[1], [0], [0], [1], [0, 0, 1, 1], [], []>} : vector<32x32xbf16>, vector<32x256xbf16>, vector<32x256xf32> -> vector<32x256xf32>
    %256 = arith.addf %247, %255 : vector<32x256xf32>
    %c240_i32_158 = arith.constant 240 : i32
    %257 = tpu.dynamic_rotate %193 by %c240_i32_158 dim 1 : vector<32x256xf32>, i32 -> vector<32x256xf32>
    %258 = vector.extract_strided_slice %2 {offsets = [7, 0], sizes = [1, 256], strides = [1, 1]} : vector<9x256xf32> to vector<1x256xf32>
    %259 = vector.broadcast %258 : vector<1x256xf32> to vector<32x256xf32>
    %260 = arith.mulf %257, %259 : vector<32x256xf32>
    %261 = arith.truncf %260 : vector<32x256xf32> to vector<32x256xbf16>
    %c1_159 = arith.constant 1 : index
    %c7_160 = arith.constant 7 : index
    %c0_161 = arith.constant 0 : index
    %c0_162 = arith.constant 0 : index
    %262 = vector.load %arg5[%c1_159, %c7_160, %c0_161, %c0_162] : memref<2x9x32x32xbf16, #tpu.memory_space<vmem>>, vector<1x1x32x32xbf16>
    %263 = vector.shape_cast %262 : vector<1x1x32x32xbf16> to vector<32x32xbf16>
    %cst_163 = arith.constant dense<0.000000e+00> : vector<32x256xf32>
    %264 = tpu.matmul %263, %261, %cst_163 {dimension_numbers = #tpu.dot_dimension_numbers<[1], [0], [0], [1], [0, 0, 1, 1], [], []>} : vector<32x32xbf16>, vector<32x256xbf16>, vector<32x256xf32> -> vector<32x256xf32>
    %265 = arith.addf %256, %264 : vector<32x256xf32>
    %c239_i32_164 = arith.constant 239 : i32
    %266 = tpu.dynamic_rotate %193 by %c239_i32_164 dim 1 : vector<32x256xf32>, i32 -> vector<32x256xf32>
    %267 = vector.extract_strided_slice %2 {offsets = [8, 0], sizes = [1, 256], strides = [1, 1]} : vector<9x256xf32> to vector<1x256xf32>
    %268 = vector.broadcast %267 : vector<1x256xf32> to vector<32x256xf32>
    %269 = arith.mulf %266, %268 : vector<32x256xf32>
    %270 = arith.truncf %269 : vector<32x256xf32> to vector<32x256xbf16>
    %c1_165 = arith.constant 1 : index
    %c8_166 = arith.constant 8 : index
    %c0_167 = arith.constant 0 : index
    %c0_168 = arith.constant 0 : index
    %271 = vector.load %arg5[%c1_165, %c8_166, %c0_167, %c0_168] : memref<2x9x32x32xbf16, #tpu.memory_space<vmem>>, vector<1x1x32x32xbf16>
    %272 = vector.shape_cast %271 : vector<1x1x32x32xbf16> to vector<32x32xbf16>
    %cst_169 = arith.constant dense<0.000000e+00> : vector<32x256xf32>
    %273 = tpu.matmul %272, %270, %cst_169 {dimension_numbers = #tpu.dot_dimension_numbers<[1], [0], [0], [1], [0, 0, 1, 1], [], []>} : vector<32x32xbf16>, vector<32x256xbf16>, vector<32x256xf32> -> vector<32x256xf32>
    %274 = arith.addf %265, %273 : vector<32x256xf32>
    %275 = vector.broadcast %194 : vector<32x1xf32> to vector<32x256xf32>
    %276 = arith.addf %274, %275 : vector<32x256xf32>
    %277 = arith.negf %276 : vector<32x256xf32>
    %278 = math.exp %277 : vector<32x256xf32>
    %cst_170 = arith.constant 1.000000e+00 : f32
    %279 = vector.broadcast %cst_170 : f32 to vector<32x256xf32>
    %280 = arith.addf %279, %278 : vector<32x256xf32>
    %281 = arith.divf %279, %280 : vector<32x256xf32>
    %282 = arith.mulf %276, %281 : vector<32x256xf32>
    %283 = vector.extract_strided_slice %282 {offsets = [0, 0], sizes = [16, 256], strides = [1, 1]} : vector<32x256xf32> to vector<16x256xf32>
    %284 = vector.extract_strided_slice %282 {offsets = [16, 0], sizes = [16, 256], strides = [1, 1]} : vector<32x256xf32> to vector<16x256xf32>
    %cst_171 = arith.constant 0.000000e+00 : f32
    %285 = vector.broadcast %cst_171 : f32 to vector<16x256xf32>
    %c17_i32_172 = arith.constant 17 : i32
    %286 = tpu.dynamic_rotate %284 by %c17_i32_172 dim 1 : vector<16x256xf32>, i32 -> vector<16x256xf32>
    %287 = vector.extract_strided_slice %2 {offsets = [0, 0], sizes = [1, 256], strides = [1, 1]} : vector<9x256xf32> to vector<1x256xf32>
    %288 = vector.broadcast %287 : vector<1x256xf32> to vector<16x256xf32>
    %289 = arith.mulf %286, %288 : vector<16x256xf32>
    %290 = arith.truncf %289 : vector<16x256xf32> to vector<16x256xbf16>
    %c1_173 = arith.constant 1 : index
    %c0_174 = arith.constant 0 : index
    %c0_175 = arith.constant 0 : index
    %c0_176 = arith.constant 0 : index
    %291 = vector.load %arg6[%c1_173, %c0_174, %c0_175, %c0_176] : memref<2x9x16x16xbf16, #tpu.memory_space<vmem>>, vector<1x1x16x16xbf16>
    %292 = vector.shape_cast %291 : vector<1x1x16x16xbf16> to vector<16x16xbf16>
    %cst_177 = arith.constant dense<0.000000e+00> : vector<16x256xf32>
    %293 = tpu.matmul %292, %290, %cst_177 {dimension_numbers = #tpu.dot_dimension_numbers<[1], [0], [0], [1], [0, 0, 1, 1], [], []>} : vector<16x16xbf16>, vector<16x256xbf16>, vector<16x256xf32> -> vector<16x256xf32>
    %294 = arith.addf %285, %293 : vector<16x256xf32>
    %c16_i32_178 = arith.constant 16 : i32
    %295 = tpu.dynamic_rotate %284 by %c16_i32_178 dim 1 : vector<16x256xf32>, i32 -> vector<16x256xf32>
    %296 = vector.extract_strided_slice %2 {offsets = [1, 0], sizes = [1, 256], strides = [1, 1]} : vector<9x256xf32> to vector<1x256xf32>
    %297 = vector.broadcast %296 : vector<1x256xf32> to vector<16x256xf32>
    %298 = arith.mulf %295, %297 : vector<16x256xf32>
    %299 = arith.truncf %298 : vector<16x256xf32> to vector<16x256xbf16>
    %c1_179 = arith.constant 1 : index
    %c1_180 = arith.constant 1 : index
    %c0_181 = arith.constant 0 : index
    %c0_182 = arith.constant 0 : index
    %300 = vector.load %arg6[%c1_179, %c1_180, %c0_181, %c0_182] : memref<2x9x16x16xbf16, #tpu.memory_space<vmem>>, vector<1x1x16x16xbf16>
    %301 = vector.shape_cast %300 : vector<1x1x16x16xbf16> to vector<16x16xbf16>
    %cst_183 = arith.constant dense<0.000000e+00> : vector<16x256xf32>
    %302 = tpu.matmul %301, %299, %cst_183 {dimension_numbers = #tpu.dot_dimension_numbers<[1], [0], [0], [1], [0, 0, 1, 1], [], []>} : vector<16x16xbf16>, vector<16x256xbf16>, vector<16x256xf32> -> vector<16x256xf32>
    %303 = arith.addf %294, %302 : vector<16x256xf32>
    %c15_i32_184 = arith.constant 15 : i32
    %304 = tpu.dynamic_rotate %284 by %c15_i32_184 dim 1 : vector<16x256xf32>, i32 -> vector<16x256xf32>
    %305 = vector.extract_strided_slice %2 {offsets = [2, 0], sizes = [1, 256], strides = [1, 1]} : vector<9x256xf32> to vector<1x256xf32>
    %306 = vector.broadcast %305 : vector<1x256xf32> to vector<16x256xf32>
    %307 = arith.mulf %304, %306 : vector<16x256xf32>
    %308 = arith.truncf %307 : vector<16x256xf32> to vector<16x256xbf16>
    %c1_185 = arith.constant 1 : index
    %c2_186 = arith.constant 2 : index
    %c0_187 = arith.constant 0 : index
    %c0_188 = arith.constant 0 : index
    %309 = vector.load %arg6[%c1_185, %c2_186, %c0_187, %c0_188] : memref<2x9x16x16xbf16, #tpu.memory_space<vmem>>, vector<1x1x16x16xbf16>
    %310 = vector.shape_cast %309 : vector<1x1x16x16xbf16> to vector<16x16xbf16>
    %cst_189 = arith.constant dense<0.000000e+00> : vector<16x256xf32>
    %311 = tpu.matmul %310, %308, %cst_189 {dimension_numbers = #tpu.dot_dimension_numbers<[1], [0], [0], [1], [0, 0, 1, 1], [], []>} : vector<16x16xbf16>, vector<16x256xbf16>, vector<16x256xf32> -> vector<16x256xf32>
    %312 = arith.addf %303, %311 : vector<16x256xf32>
    %c1_i32_190 = arith.constant 1 : i32
    %313 = tpu.dynamic_rotate %284 by %c1_i32_190 dim 1 : vector<16x256xf32>, i32 -> vector<16x256xf32>
    %314 = vector.extract_strided_slice %2 {offsets = [3, 0], sizes = [1, 256], strides = [1, 1]} : vector<9x256xf32> to vector<1x256xf32>
    %315 = vector.broadcast %314 : vector<1x256xf32> to vector<16x256xf32>
    %316 = arith.mulf %313, %315 : vector<16x256xf32>
    %317 = arith.truncf %316 : vector<16x256xf32> to vector<16x256xbf16>
    %c1_191 = arith.constant 1 : index
    %c3_192 = arith.constant 3 : index
    %c0_193 = arith.constant 0 : index
    %c0_194 = arith.constant 0 : index
    %318 = vector.load %arg6[%c1_191, %c3_192, %c0_193, %c0_194] : memref<2x9x16x16xbf16, #tpu.memory_space<vmem>>, vector<1x1x16x16xbf16>
    %319 = vector.shape_cast %318 : vector<1x1x16x16xbf16> to vector<16x16xbf16>
    %cst_195 = arith.constant dense<0.000000e+00> : vector<16x256xf32>
    %320 = tpu.matmul %319, %317, %cst_195 {dimension_numbers = #tpu.dot_dimension_numbers<[1], [0], [0], [1], [0, 0, 1, 1], [], []>} : vector<16x16xbf16>, vector<16x256xbf16>, vector<16x256xf32> -> vector<16x256xf32>
    %321 = arith.addf %312, %320 : vector<16x256xf32>
    %322 = arith.truncf %284 : vector<16x256xf32> to vector<16x256xbf16>
    %c1_196 = arith.constant 1 : index
    %c4_197 = arith.constant 4 : index
    %c0_198 = arith.constant 0 : index
    %c0_199 = arith.constant 0 : index
    %323 = vector.load %arg6[%c1_196, %c4_197, %c0_198, %c0_199] : memref<2x9x16x16xbf16, #tpu.memory_space<vmem>>, vector<1x1x16x16xbf16>
    %324 = vector.shape_cast %323 : vector<1x1x16x16xbf16> to vector<16x16xbf16>
    %cst_200 = arith.constant dense<0.000000e+00> : vector<16x256xf32>
    %325 = tpu.matmul %324, %322, %cst_200 {dimension_numbers = #tpu.dot_dimension_numbers<[1], [0], [0], [1], [0, 0, 1, 1], [], []>} : vector<16x16xbf16>, vector<16x256xbf16>, vector<16x256xf32> -> vector<16x256xf32>
    %326 = arith.addf %321, %325 : vector<16x256xf32>
    %c255_i32_201 = arith.constant 255 : i32
    %327 = tpu.dynamic_rotate %284 by %c255_i32_201 dim 1 : vector<16x256xf32>, i32 -> vector<16x256xf32>
    %328 = vector.extract_strided_slice %2 {offsets = [5, 0], sizes = [1, 256], strides = [1, 1]} : vector<9x256xf32> to vector<1x256xf32>
    %329 = vector.broadcast %328 : vector<1x256xf32> to vector<16x256xf32>
    %330 = arith.mulf %327, %329 : vector<16x256xf32>
    %331 = arith.truncf %330 : vector<16x256xf32> to vector<16x256xbf16>
    %c1_202 = arith.constant 1 : index
    %c5_203 = arith.constant 5 : index
    %c0_204 = arith.constant 0 : index
    %c0_205 = arith.constant 0 : index
    %332 = vector.load %arg6[%c1_202, %c5_203, %c0_204, %c0_205] : memref<2x9x16x16xbf16, #tpu.memory_space<vmem>>, vector<1x1x16x16xbf16>
    %333 = vector.shape_cast %332 : vector<1x1x16x16xbf16> to vector<16x16xbf16>
    %cst_206 = arith.constant dense<0.000000e+00> : vector<16x256xf32>
    %334 = tpu.matmul %333, %331, %cst_206 {dimension_numbers = #tpu.dot_dimension_numbers<[1], [0], [0], [1], [0, 0, 1, 1], [], []>} : vector<16x16xbf16>, vector<16x256xbf16>, vector<16x256xf32> -> vector<16x256xf32>
    %335 = arith.addf %326, %334 : vector<16x256xf32>
    %c241_i32_207 = arith.constant 241 : i32
    %336 = tpu.dynamic_rotate %284 by %c241_i32_207 dim 1 : vector<16x256xf32>, i32 -> vector<16x256xf32>
    %337 = vector.extract_strided_slice %2 {offsets = [6, 0], sizes = [1, 256], strides = [1, 1]} : vector<9x256xf32> to vector<1x256xf32>
    %338 = vector.broadcast %337 : vector<1x256xf32> to vector<16x256xf32>
    %339 = arith.mulf %336, %338 : vector<16x256xf32>
    %340 = arith.truncf %339 : vector<16x256xf32> to vector<16x256xbf16>
    %c1_208 = arith.constant 1 : index
    %c6_209 = arith.constant 6 : index
    %c0_210 = arith.constant 0 : index
    %c0_211 = arith.constant 0 : index
    %341 = vector.load %arg6[%c1_208, %c6_209, %c0_210, %c0_211] : memref<2x9x16x16xbf16, #tpu.memory_space<vmem>>, vector<1x1x16x16xbf16>
    %342 = vector.shape_cast %341 : vector<1x1x16x16xbf16> to vector<16x16xbf16>
    %cst_212 = arith.constant dense<0.000000e+00> : vector<16x256xf32>
    %343 = tpu.matmul %342, %340, %cst_212 {dimension_numbers = #tpu.dot_dimension_numbers<[1], [0], [0], [1], [0, 0, 1, 1], [], []>} : vector<16x16xbf16>, vector<16x256xbf16>, vector<16x256xf32> -> vector<16x256xf32>
    %344 = arith.addf %335, %343 : vector<16x256xf32>
    %c240_i32_213 = arith.constant 240 : i32
    %345 = tpu.dynamic_rotate %284 by %c240_i32_213 dim 1 : vector<16x256xf32>, i32 -> vector<16x256xf32>
    %346 = vector.extract_strided_slice %2 {offsets = [7, 0], sizes = [1, 256], strides = [1, 1]} : vector<9x256xf32> to vector<1x256xf32>
    %347 = vector.broadcast %346 : vector<1x256xf32> to vector<16x256xf32>
    %348 = arith.mulf %345, %347 : vector<16x256xf32>
    %349 = arith.truncf %348 : vector<16x256xf32> to vector<16x256xbf16>
    %c1_214 = arith.constant 1 : index
    %c7_215 = arith.constant 7 : index
    %c0_216 = arith.constant 0 : index
    %c0_217 = arith.constant 0 : index
    %350 = vector.load %arg6[%c1_214, %c7_215, %c0_216, %c0_217] : memref<2x9x16x16xbf16, #tpu.memory_space<vmem>>, vector<1x1x16x16xbf16>
    %351 = vector.shape_cast %350 : vector<1x1x16x16xbf16> to vector<16x16xbf16>
    %cst_218 = arith.constant dense<0.000000e+00> : vector<16x256xf32>
    %352 = tpu.matmul %351, %349, %cst_218 {dimension_numbers = #tpu.dot_dimension_numbers<[1], [0], [0], [1], [0, 0, 1, 1], [], []>} : vector<16x16xbf16>, vector<16x256xbf16>, vector<16x256xf32> -> vector<16x256xf32>
    %353 = arith.addf %344, %352 : vector<16x256xf32>
    %c239_i32_219 = arith.constant 239 : i32
    %354 = tpu.dynamic_rotate %284 by %c239_i32_219 dim 1 : vector<16x256xf32>, i32 -> vector<16x256xf32>
    %355 = vector.extract_strided_slice %2 {offsets = [8, 0], sizes = [1, 256], strides = [1, 1]} : vector<9x256xf32> to vector<1x256xf32>
    %356 = vector.broadcast %355 : vector<1x256xf32> to vector<16x256xf32>
    %357 = arith.mulf %354, %356 : vector<16x256xf32>
    %358 = arith.truncf %357 : vector<16x256xf32> to vector<16x256xbf16>
    %c1_220 = arith.constant 1 : index
    %c8_221 = arith.constant 8 : index
    %c0_222 = arith.constant 0 : index
    %c0_223 = arith.constant 0 : index
    %359 = vector.load %arg6[%c1_220, %c8_221, %c0_222, %c0_223] : memref<2x9x16x16xbf16, #tpu.memory_space<vmem>>, vector<1x1x16x16xbf16>
    %360 = vector.shape_cast %359 : vector<1x1x16x16xbf16> to vector<16x16xbf16>
    %cst_224 = arith.constant dense<0.000000e+00> : vector<16x256xf32>
    %361 = tpu.matmul %360, %358, %cst_224 {dimension_numbers = #tpu.dot_dimension_numbers<[1], [0], [0], [1], [0, 0, 1, 1], [], []>} : vector<16x16xbf16>, vector<16x256xbf16>, vector<16x256xf32> -> vector<16x256xf32>
    %362 = arith.addf %353, %361 : vector<16x256xf32>
    %363 = vector.broadcast %195 : vector<16x1xf32> to vector<16x256xf32>
    %364 = arith.addf %362, %363 : vector<16x256xf32>
    %c1_225 = arith.constant 1 : index
    %c0_226 = arith.constant 0 : index
    %c0_227 = arith.constant 0 : index
    %c0_228 = arith.constant 0 : index
    %365 = vector.load %arg7[%c1_225, %c0_226, %c0_227, %c0_228] : memref<2x2x32x16xbf16, #tpu.memory_space<vmem>>, vector<1x1x32x16xbf16>
    %366 = vector.shape_cast %365 : vector<1x1x32x16xbf16> to vector<32x16xbf16>
    %367 = arith.truncf %283 : vector<16x256xf32> to vector<16x256xbf16>
    %cst_229 = arith.constant dense<0.000000e+00> : vector<32x256xf32>
    %368 = tpu.matmul %366, %367, %cst_229 {dimension_numbers = #tpu.dot_dimension_numbers<[1], [0], [0], [1], [0, 0, 1, 1], [], []>} : vector<32x16xbf16>, vector<16x256xbf16>, vector<32x256xf32> -> vector<32x256xf32>
    %c1_230 = arith.constant 1 : index
    %c1_231 = arith.constant 1 : index
    %c0_232 = arith.constant 0 : index
    %c0_233 = arith.constant 0 : index
    %369 = vector.load %arg7[%c1_230, %c1_231, %c0_232, %c0_233] : memref<2x2x32x16xbf16, #tpu.memory_space<vmem>>, vector<1x1x32x16xbf16>
    %370 = vector.shape_cast %369 : vector<1x1x32x16xbf16> to vector<32x16xbf16>
    %371 = arith.truncf %364 : vector<16x256xf32> to vector<16x256xbf16>
    %cst_234 = arith.constant dense<0.000000e+00> : vector<32x256xf32>
    %372 = tpu.matmul %370, %371, %cst_234 {dimension_numbers = #tpu.dot_dimension_numbers<[1], [0], [0], [1], [0, 0, 1, 1], [], []>} : vector<32x16xbf16>, vector<16x256xbf16>, vector<32x256xf32> -> vector<32x256xf32>
    %373 = arith.addf %368, %372 : vector<32x256xf32>
    %374 = vector.broadcast %196 : vector<32x1xf32> to vector<32x256xf32>
    %375 = arith.addf %373, %374 : vector<32x256xf32>
    %376 = arith.addf %375, %193 : vector<32x256xf32>
    %377 = arith.addf %376, %1 : vector<32x256xf32>
    %c0_235 = arith.constant 0 : index
    %c0_236 = arith.constant 0 : index
    %c0_237 = arith.constant 0 : index
    %378 = vector.load %arg8[%c0_235, %c0_236, %c0_237] : memref<1x32x256xf32, #tpu.memory_space<vmem>>, vector<1x32x256xf32>
    %379 = vector.shape_cast %378 : vector<1x32x256xf32> to vector<32x256xf32>
    %380 = vector.shape_cast %377 : vector<32x256xf32> to vector<1x32x256xf32>
    tpu.vector_store %arg8[%c0_235, %c0_236, %c0_237], %380 {strides = array<i32>} : memref<1x32x256xf32, #tpu.memory_space<vmem>>, vector<1x32x256xf32>,
    return
  }
  func.func @transform_0(%arg0: i32) -> (i32, i32, i32) {
    %c0_i32 = arith.constant 0 : i32
    %c0_i32_0 = arith.constant 0 : i32
    %c0_i32_1 = arith.constant 0 : i32
    return %arg0, %c0_i32, %c0_i32_0 : i32, i32, i32
  }
  func.func @transform_1(%arg0: i32) -> (i32, i32, i32) {
    %c0_i32 = arith.constant 0 : i32
    %c0_i32_0 = arith.constant 0 : i32
    %c0_i32_1 = arith.constant 0 : i32
    return %arg0, %c0_i32, %c0_i32_0 : i32, i32, i32
  }
  func.func @transform_2(%arg0: i32) -> (i32, i32) {
    %c0_i32 = arith.constant 0 : i32
    %c0_i32_0 = arith.constant 0 : i32
    %c0_i32_1 = arith.constant 0 : i32
    return %c0_i32, %c0_i32_0 : i32, i32
  }
  func.func @transform_3(%arg0: i32) -> (i32, i32) {
    %c0_i32 = arith.constant 0 : i32
    %c0_i32_0 = arith.constant 0 : i32
    %c0_i32_1 = arith.constant 0 : i32
    return %c0_i32, %c0_i32_0 : i32, i32
  }
  func.func @transform_4(%arg0: i32) -> (i32, i32, i32, i32) {
    %c0_i32 = arith.constant 0 : i32
    %c0_i32_0 = arith.constant 0 : i32
    %c0_i32_1 = arith.constant 0 : i32
    %c0_i32_2 = arith.constant 0 : i32
    %c0_i32_3 = arith.constant 0 : i32
    return %c0_i32, %c0_i32_0, %c0_i32_1, %c0_i32_2 : i32, i32, i32, i32
  }
  func.func @transform_5(%arg0: i32) -> (i32, i32, i32, i32) {
    %c0_i32 = arith.constant 0 : i32
    %c0_i32_0 = arith.constant 0 : i32
    %c0_i32_1 = arith.constant 0 : i32
    %c0_i32_2 = arith.constant 0 : i32
    %c0_i32_3 = arith.constant 0 : i32
    return %c0_i32, %c0_i32_0, %c0_i32_1, %c0_i32_2 : i32, i32, i32, i32
  }
  func.func @transform_6(%arg0: i32) -> (i32, i32, i32, i32) {
    %c0_i32 = arith.constant 0 : i32
    %c0_i32_0 = arith.constant 0 : i32
    %c0_i32_1 = arith.constant 0 : i32
    %c0_i32_2 = arith.constant 0 : i32
    %c0_i32_3 = arith.constant 0 : i32
    return %c0_i32, %c0_i32_0, %c0_i32_1, %c0_i32_2 : i32, i32, i32, i32
  }
  func.func @transform_7(%arg0: i32) -> (i32, i32, i32) {
    %c0_i32 = arith.constant 0 : i32
    %c0_i32_0 = arith.constant 0 : i32
    %c0_i32_1 = arith.constant 0 : i32
    return %arg0, %c0_i32, %c0_i32_0 : i32, i32, i32
  }
}

</mosaic_0001>

<bundles_post_ra>
// kernel: tpu_custom_call.1
= control target key start
LH: loop header
LB: loop body
LE: loop exit
PB: predicated region body
PF: predicated region fallthrough
CT: control target
= control target key end

     0   :  { %s6982_s0 = inlined_call_operand.hbm [shape: f32[2,32,256], index: 0, kind: input, shape index: {}]   ;;  %s6983_s1 = inlined_call_operand.vmem [shape: f32[2,64,1], index: 1, kind: input, shape index: {}]   ;;  %s6984_s2 = inlined_call_operand.vmem [shape: f32[9,256], index: 2, kind: input, shape index: {}]   ;;  %s6985_s3 = inlined_call_operand.vmem [shape: f32[160,1], index: 3, kind: input, shape index: {}]   ;;  %s6986_s4 = inlined_call_operand.vmem [shape: bf16[2,9,32,32], index: 4, kind: input, shape index: {}]   ;;  %s6987_s5 = inlined_call_operand.hbm [shape: bf16[2,9,16,16], index: 5, kind: input, shape index: {}]   ;;  %s6988_s6 = inlined_call_operand.vmem [shape: bf16[2,2,32,16], index: 6, kind: input, shape index: {}]   ;;  %s6989_s7 = inlined_call_operand.hbm [shape: f32[2,32,256], index: 7, kind: output, shape index: {}]  }
   0x1   :  { %7022 = sst [smem:[#allocation22_spill]] %s6987_s5 }
   0x2   :  { %12 = vsyncpa [#allocation3], 0 }
   0x3   :  { %14 = vsyncpa [#allocation3 + $0x1], 0 }
   0x4   :  { %15 = vsyncpa [#allocation6], 0 }
   0x5   :  { %16 = vsyncpa [#allocation4], 0 }
   0x6   :  { %18 = vsyncpa [#allocation4 + $0x1], 0  ;;  %s5009_s24 = smov 0   ;;  %s5011_s25 = smov 0  }
   0x7   :  { %s5013_s26 = smov 0   ;;  %s5015_s27 = smov 0  }
   0x8 LB: > { %s5030_s28 = sadd.s32 4294967295, %s4952_s27   ;;  %s4113_s29 = sadd.s32 4294967294, %s4952_s27   ;;  %s4952_s27 = sphi %s5015_s27, %s7159_s27   ;;  %s4948_s26 = sphi %s5013_s26, %s7158_s26   ;;  %s4944_s25 = sphi %s5011_s25, %s7157_s25   ;;  %s4940_s24 = sphi %s5009_s24, %s7156_s24  }
   0x9   : > { %p44_p0 = scmp.ne.s32.totalorder %s4944_s25, %s4940_s24  ;;  %p45_p1 = scmp.eq.s32.totalorder %s5030_s28, 0 }
   0xa   : > { %p199_p2 = scmp.eq.s32.totalorder %s5030_s28, 1  ;;  %p205_p3 = scmp.eq.s32.totalorder %s4113_s29, 1 }
   0xb   : > { %p5039_p4 = por %p45_p1, %p44_p0  ;;  %p4114_p5 = scmp.ge.s32.totalorder %s4952_s27, 1 }
   0xc   : > { %p5044_p6 = por %p205_p3, %p44_p0  ;;  %p212_p7 = scmp.lt.s32.totalorder %s4952_s27, 3 }
   0xd   : > { %s7025_s5 = sld [smem:[#allocation22_spill]]  ;;  %s4954_s13 = smov [#allocation5]  }
   0xe   : > { %p5052_p8 = pnand %p4114_p5, %p212_p7  ;;  %s234_s14 = sshll.u32 %s4954_s13, 4  ;;  %s235_s14 = int_to_ptr.vmem [resolvable:$true] %s234_s14 }
   0xf   : > { %s5062_s15 = sadd.s32 1, %s4952_s27   ;;  %s4955_s16 = smov 64  }
  0x10   : > { %p4672_p9 = pneg %p5052_p8  ;;  %s4956_s17 = smov 4  }
  0x11   : > { %s28_s18 = ssub.s32 %s4952_s27, %s5062_s15  ;;  %s31_s19 = sadd.s32 1, %s4948_s26 }
  0x12   : > { %p4673_p10 = pnand %p4672_p9, %p45_p1  ;;  %p29_p12 = scmp.eq.s32.totalorder %s28_s18, 0 }
  0x13   : > { %s232_s11 = sshll.u32 %s7025_s5, 4  ;;  %p38_p13 = scmp.ne.s32.totalorder %s4948_s26, %s4944_s25  ;;  %s233_s11 = int_to_ptr.hbm [resolvable:$true] %s232_s11 }
  0x14   : > { %4675 = dma.hbm_to_vmem [thread:$0]  (!%p4673_p10), %s233_s11, 2304, %s235_s14, [#allocation6], %s4955_s16, %s4955_s16, %s4956_s17  }
  0x15   : > { %p39_p0 = scmp.eq.s32.totalorder %s4952_s27, 0  ;;  %p4685_p3 = scmp.lt.s32.totalorder %s4952_s27, 2 }
  0x16   : > { %s5072_s20 = scalar_select %p29_p12, %s4948_s26, %s31_s19  }
  0x17   : > { %p40_p5 = por %p39_p0, %p38_p13  ;;  %p5076_p7 = por %p199_p2, %p38_p13 }
  0x18   : > { %s251_s22 = sand.u32 1, %s4948_s26   ;;  %s4599_s23 = sshll.u32 %s4952_s27, 6 }
  0x19   : > { %s4117_s29 = sshll.u32 %s251_s22, 6  ;;  %s260_s11 = scalar_lea.hbm %s6982_s0, %s4599_s23 }
  0x1a   : > { %s261_s13 = sshll.u32 %s260_s11, 4  ;;  %s255_s14 = scalar_lea.vmem [#allocation2], %s4117_s29  ;;  %s262_s13 = int_to_ptr.hbm [resolvable:$true] %s261_s13 }
  0x1b   : > { %s263_s16 = sshll.u32 %s255_s14, 4  ;;  %p5087_p9 = pnand %p4685_p3, %p40_p5  ;;  %s264_s16 = int_to_ptr.vmem [resolvable:$true] %s263_s16 }
  0x1c   : > { %s252_s18 = scalar_lea.sflag [#allocation3], %s251_s22  ;;  %s4852_s19 = sshra.s32 %s262_s13, 4  ;;  %s4853_s19 = int_to_ptr.hbm [resolvable:$true] %s4852_s19 }
  0x1d   : > { %s4854_s5 = scalar_lea.hbm %s4853_s19, 64  ;;  %p4856_p10 = pneg %p5087_p9 }
  0x1e   : > { %p4855_p2 = scmp.ne.s32.totalorder %s4853_s19, %s4854_s5  ;;  %s4859_s9 = scalar_lea.hbm %s6982_s0, 128 }
  0x1f   : > { %p4860_p0 = scmp.lt.s32.totalorder %s4853_s19, %s6982_s0  ;;  %p4861_p3 = scmp.lt.s32.totalorder %s4859_s9, %s4854_s5 }
  0x20   : > { %p4857_p12 = pnand %p4856_p10, %p4855_p2 }
  0x21   : > { %p4862_p5 = por %p4861_p3, %p4860_p0 }
  0x22   : > { %p4858_p13 = pneg %p4857_p12 }
  0x24   : > { %p4863_p11 = pnand %p4862_p5, %p4858_p13 }
  0x26   : > { %4866 = shalt.err (!%p4863_p11)
}
  0x27   : > { %s4957_s22 = smov 256   ;;  %s4958_s14 = smov 16  }
  0x28   : > { %4679 = dma.hbm_to_vmem [thread:$0]  (!%p5087_p9), %s262_s13, 1024, %s264_s16, %s252_s18, %s4957_s22, %s4957_s22, %s4958_s14  }
  0x29   : > { %283 = sbr.rel (%p5052_p8) target bundleno = 2001 (0x7d1), region = 48 }
  0x2e   : > { %s5104_s23 = sand.u32 1, %s4944_s25  }
  0x2f   : > { %s6990_s19 = sshll.u32 %s5104_s23, 6  ;;  %s286_s5 = scalar_lea.sflag [#allocation3], %s5104_s23 }
  0x30   : > { %s5110_s29 = scalar_lea.vmem [#allocation2], %s6990_s19 }
  0x31   : > { %4927 = dma.done.wait (%p5039_p4), %s286_s5, 1024  }
  0x32   : > { %4929 = vsyncadd (%p5039_p4), %s286_s5, 4294966272 }
  0x33   : > { %4931 = dma.done.wait (%p45_p1), [#allocation6], 2304  }
  0x34   : > { %4933 = vsyncadd (%p45_p1), [#allocation6], 4294964992  ;;  %v5121_v0 = vld [vmem:[%s5110_s29 + $0x28] sm:$0xff]  ;;  %v5124_v1 = vld [vmem:[%s5110_s29 + $0x20] sm:$0xff]  ;;  %s4959_s30 = smov 16   ;;  %s7008_s12 = smov 17   ;;  %v383_v11 = vlaneseq }
  0x35   : > { %424 = vrot.lane.b32.xlu1 %v5121_v0, %s4959_s30  ;;  %416 = vrot.lane.b32.xlu0 %v5124_v1, %s4959_s30  ;;  %v5131_v2 = vld [vmem:[%s5110_s29] sm:$0xff]  ;;  %v5136_v3 = vld [vmem:[%s5110_s29 + $0x38] sm:$0xff]  ;;  %s7010_s13 = smov 15   ;;  %s7006_s16 = smov 1   ;;  %vm6999_vm2 = vcmask 261120  }
  0x36   : > { %412 = vrot.lane.b32.xlu2 %v5131_v2, %s4959_s30  ;;  %v5139_v4 = vld [vmem:[%s5110_s29 + $0x30] sm:$0xff]  ;;  %v5151_v6 = vld [vmem:[%s5110_s29 + $0x18] sm:$0xff]  ;;  %v5154_v7 = vld [vmem:[%s5110_s29 + $0x8] sm:$0xff]  ;;  %s7000_s17 = smov 127   ;;  %s7004_s18 = smov 113   ;;  %v5234_v14 = vand.u32 127, %v383_v11 }
  0x37   : > { %v5142_v5 = vld [vmem:[%s5110_s29 + $0x10] sm:$0xff]  ;;  %v5241_v16 = vld [vmem:[%s6984_s2] sm:$0xff]  ;;  %v5246_v17 = vld [vmem:[%s6984_s2 + $0x8] sm:$0xff]  ;;  %s7002_s14 = smov 112   ;;  %s6991_s10 = smov 111  }
  0x38   : > { %vm428_vm0 = vcmp.lt.s32.totalorder %v5234_v14, 16  ;;  %v5254_v18 = vperm.slane %v5241_v16, 1  ;;  %v5257_v19 = vperm.slane %v5246_v17, 1  ;;  %v4603_v46 = vld [vmem:[%s6986_s4 + $0x10] sm:$0xff]  ;;  %vm385_vm1 = vcmp.lt.s32.totalorder %v5234_v14, 17  ;;  %s7040_s11 = smov 111  }
  0x39   : > { %v5298_v47 = vperm.slane %v5241_v16, 0  ;;  %v5301_v48 = vperm.slane %v5246_v17, 0  ;;  %vm581_vm3 = vcmp.lt.s32.totalorder %v5234_v14, 15  ;;  %vm687_vm4 = vcmp.lt.s32.totalorder %v5234_v14, 1  ;;  %p331_p1 = scmp.lt.s32.totalorder %s5030_s28, 1  ;;  %s7070_s19 = smov 112  }
  0x3a   : > { %vm7014_vm5 = vcmp.lt.s32.totalorder %v5234_v14, 127  ;;  %vm970_vm6 = vcmp.lt.s32.totalorder %v5234_v14, 113  ;;  %vm7013_vm7 = vcmp.lt.s32.totalorder %v5234_v14, 112  ;;  %vm7012_vm8 = vcmp.lt.s32.totalorder %v5234_v14, 111 }
  0x3b   : > { %s332_s22 = scalar_select %p331_p1, %s5030_s28, 1 }
  0x3d   : > { %426 = vrot.lane.b32.xlu1 %v5136_v3, %s4959_s30  ;;  %418 = vrot.lane.b32.xlu0 %v5139_v4, %s4959_s30 }
  0x3e   : > { %414 = vrot.lane.b32.xlu2 %v5142_v5, %s4959_s30 }
  0x45   : > { %422 = vrot.lane.b32.xlu1 %v5151_v6, %s4959_s30  ;;  %420 = vrot.lane.b32.xlu0 %v5154_v7, %s4959_s30 }
  0x46   : > { %371 = vrot.lane.b32.xlu2 %v5124_v1, %s7008_s12 }
  0x4d   : > { %379 = vrot.lane.b32.xlu1 %v5121_v0, %s7008_s12  ;;  %373 = vrot.lane.b32.xlu0 %v5139_v4, %s7008_s12 }
  0x4e   : > { %381 = vrot.lane.b32.xlu2 %v5136_v3, %s7008_s12 }
  0x55   : > { %369 = vrot.lane.b32.xlu1 %v5142_v5, %s7008_s12  ;;  %367 = vrot.lane.b32.xlu0 %v5131_v2, %s7008_s12 }
  0x56   : > { %375 = vrot.lane.b32.xlu2 %v5154_v7, %s7008_s12 }
  0x5d   : > { %569 = vrot.lane.b32.xlu1 %v5124_v1, %s7010_s13  ;;  %377 = vrot.lane.b32.xlu0 %v5151_v6, %s7008_s12 }
  0x5e   : > { %571 = vrot.lane.b32.xlu2 %v5139_v4, %s7010_s13 }
  0x65   : > { %579 = vrot.lane.b32.xlu1 %v5136_v3, %s7010_s13  ;;  %577 = vrot.lane.b32.xlu0 %v5121_v0, %s7010_s13 }
  0x66   : > { %565 = vrot.lane.b32.xlu2 %v5131_v2, %s7010_s13 }
  0x6d   : > { %573 = vrot.lane.b32.xlu1 %v5154_v7, %s7010_s13  ;;  %567 = vrot.lane.b32.xlu0 %v5142_v5, %s7010_s13 }
  0x6e   : > { %575 = vrot.lane.b32.xlu2 %v5151_v6, %s7010_s13 }
  0x75   : > { %677 = vrot.lane.b32.xlu1 %v5139_v4, %s7006_s16  ;;  %675 = vrot.lane.b32.xlu0 %v5124_v1, %s7006_s16 }
  0x76   : > { %683 = vrot.lane.b32.xlu2 %v5121_v0, %s7006_s16 }
  0x7d   : > { %671 = vrot.lane.b32.xlu1 %v5131_v2, %s7006_s16  ;;  %685 = vrot.lane.b32.xlu0 %v5136_v3, %s7006_s16 }
  0x7e   : > { %673 = vrot.lane.b32.xlu2 %v5142_v5, %s7006_s16 }
  0x85   : > { %681 = vrot.lane.b32.xlu1 %v5151_v6, %s7006_s16  ;;  %679 = vrot.lane.b32.xlu0 %v5154_v7, %s7006_s16 }
  0x86   : > { %852 = vrot.lane.b32.xlu2 %v5124_v1, %s7000_s17 }
  0x8d   : > { %860 = vrot.lane.b32.xlu1 %v5121_v0, %s7000_s17  ;;  %854 = vrot.lane.b32.xlu0 %v5139_v4, %s7000_s17 }
  0x8e   : > { %862 = vrot.lane.b32.xlu2 %v5136_v3, %s7000_s17 }
  0x90   : > { %v413_v8 = vpop.permute.xlu2 %412 }
  0x95   : > { %850 = vrot.lane.b32.xlu1 %v5142_v5, %s7000_s17  ;;  %848 = vrot.lane.b32.xlu0 %v5131_v2, %s7000_s17 }
  0x96   : > { %856 = vrot.lane.b32.xlu2 %v5154_v7, %s7000_s17 }
  0x98   : > { %v415_v9 = vpop.permute.xlu2 %414 }
  0x9d   : > { %958 = vrot.lane.b32.xlu1 %v5124_v1, %s7004_s18  ;;  %858 = vrot.lane.b32.xlu0 %v5151_v6, %s7000_s17 }
  0x9e   : > { %960 = vrot.lane.b32.xlu2 %v5139_v4, %s7004_s18 }
  0xa0   : > { %v5228_v10 = vpop.permute.xlu2 %371 }
  0xa5   : > { %968 = vrot.lane.b32.xlu1 %v5136_v3, %s7004_s18  ;;  %966 = vrot.lane.b32.xlu0 %v5121_v0, %s7004_s18 }
  0xa6   : > { %954 = vrot.lane.b32.xlu2 %v5131_v2, %s7004_s18 }
  0xa7   : > { %v425_v12 = vpop.permute.xlu1 %424  ;;  %v417_v13 = vpop.permute.xlu0 %416 }
  0xa8   : > { %v382_v15 = vpop.permute.xlu2 %381  ;;  %v435_v20 = vsel %vm428_vm0, %v425_v12, %v417_v13  ;;  %v431_v21 = vsel %vm428_vm0, %v417_v13, %v425_v12 }
  0xa9   : > { %v443_v26 = vmul.f32 %v5254_v18, %v435_v20  ;;  %v444_v28 = vmul.f32 %v5257_v19, %v431_v21 }
  0xad   : > { %962 = vrot.lane.b32.xlu1 %v5154_v7, %s7004_s18  ;;  %956 = vrot.lane.b32.xlu0 %v5142_v5, %s7004_s18 }
  0xae   : > { %964 = vrot.lane.b32.xlu2 %v5151_v6, %s7004_s18 }
  0xaf   : > { %v427_v22 = vpop.permute.xlu1 %426  ;;  %v419_v23 = vpop.permute.xlu0 %418 }
  0xb0   : > { %v436_v24 = vsel %vm428_vm0, %v427_v22, %v419_v23  ;;  %v432_v25 = vsel %vm428_vm0, %v419_v23, %v427_v22  ;;  %v376_v30 = vpop.permute.xlu2 %375 }
  0xb1   : > { %v445_v27 = vmul.f32 %v5254_v18, %v436_v24  ;;  %v446_v29 = vmul.f32 %v5257_v19, %v432_v25 }
  0xb3   : > { %v449_v31 = vpack.c.bf16 %v445_v27, %v443_v26  ;;  %v450_v32 = vpack.c.bf16 %v446_v29, %v444_v28  ;;  %v4601_v28 = vld [vmem:[%s6986_s4] sm:$0xff]  ;;  %v5361_v29 = vperm.slane %v5241_v16, 2 }
  0xb5   : > { %479 = vmatpush.bf16.msra.mxu0 %v449_v31  ;;  %498 = vmatpush.bf16.msra.mxu1 %v450_v32 }
  0xb6   : > { %1066 = vrot.lane.b32.xlu1 %v5139_v4, %s7002_s14  ;;  %1064 = vrot.lane.b32.xlu0 %v5124_v1, %s7002_s14 }
  0xb7   : > { %v423_v33 = vpop.permute.xlu1 %422  ;;  %v421_v34 = vpop.permute.xlu0 %420  ;;  %1072 = vrot.lane.b32.xlu2 %v5121_v0, %s7002_s14 }
  0xb8   : > { %v430_v35 = vsel %vm428_vm0, %v415_v9, %v423_v33  ;;  %v434_v36 = vsel %vm428_vm0, %v423_v33, %v415_v9  ;;  %v429_v37 = vsel %vm428_vm0, %v413_v8, %v421_v34  ;;  %v433_v38 = vsel %vm428_vm0, %v421_v34, %v413_v8  ;;  %v5291_v43 = vpop.permute.xlu2 %571  ;;  %v4604_v9 = vld [vmem:[%s6986_s4 + $0x18] sm:$0xff] }
  0xb9   : > { %v439_v39 = vmul.f32 %v5254_v18, %v433_v38  ;;  %v441_v40 = vmul.f32 %v5254_v18, %v434_v36  ;;  %v440_v41 = vmul.f32 %v5257_v19, %v429_v37  ;;  %v442_v42 = vmul.f32 %v5257_v19, %v430_v35 }
  0xbb   : > { %v447_v44 = vpack.c.bf16 %v441_v40, %v439_v39  ;;  %v448_v45 = vpack.c.bf16 %v442_v42, %v440_v41 }
  0xbd   : > { %480 = vmatpush.bf16.msra.mxu0 %v447_v44  ;;  %499 = vmatpush.bf16.msra.mxu1 %v448_v45 }
  0xbe   : > { %1060 = vrot.lane.b32.xlu1 %v5131_v2, %s7002_s14  ;;  %1074 = vrot.lane.b32.xlu0 %v5136_v3, %s7002_s14 }
  0xbf   : > { %v380_v49 = vpop.permute.xlu1 %379  ;;  %v374_v50 = vpop.permute.xlu0 %373  ;;  %1062 = vrot.lane.b32.xlu2 %v5142_v5, %s7002_s14 }
  0xc0   : > { %v392_v51 = vsel %vm385_vm1, %v380_v49, %v5228_v10  ;;  %v393_v52 = vsel %vm385_vm1, %v382_v15, %v374_v50  ;;  %v388_v53 = vsel %vm385_vm1, %v5228_v10, %v380_v49  ;;  %v389_v54 = vsel %vm385_vm1, %v374_v50, %v382_v15  ;;  %4138 = vmatmul.msk.bf16.vlgmr.msra.gmra.mxu0 %vm6999_vm2, %v4603_v46  ;;  %v566_v59 = vpop.permute.xlu2 %565 }
  0xc1   : > { %v400_v55 = vmul.f32 %v5298_v47, %v392_v51  ;;  %v402_v56 = vmul.f32 %v5298_v47, %v393_v52  ;;  %v401_v57 = vmul.f32 %v5301_v48, %v388_v53  ;;  %v403_v58 = vmul.f32 %v5301_v48, %v389_v54  ;;  %4140 = vmatmul.msk.bf16.vlgmr.msra.gmra.mxu1 %vm6999_vm2, %v4603_v46 }
  0xc3   : > { %v406_v60 = vpack.c.bf16 %v402_v56, %v400_v55  ;;  %v407_v61 = vpack.c.bf16 %v403_v58, %v401_v57  ;;  %v779_v56 = vpack.c.bf16 %v5139_v4, %v5124_v1  ;;  %v780_v57 = vpack.c.bf16 %v5136_v3, %v5121_v0 }
  0xc5   : > { %533 = vmatpush.bf16.msra.mxu2 %v406_v60  ;;  %552 = vmatpush.bf16.msra.mxu3 %v407_v61  ;;  %v4602_v60 = vld [vmem:[%s6986_s4 + $0x8] sm:$0xff]  ;;  %v4605_v61 = vld [vmem:[%s6986_s4 + $0x20] sm:$0xff] }
  0xc6   : > { %1070 = vrot.lane.b32.xlu1 %v5151_v6, %s7002_s14  ;;  %1068 = vrot.lane.b32.xlu0 %v5154_v7, %s7002_s14 }
  0xc7   : > { %v370_v62 = vpop.permute.xlu1 %369  ;;  %v368_v63 = vpop.permute.xlu0 %367  ;;  %1170 = vrot.lane.b32.xlu2 %v5124_v1, %s6991_s10  ;;  %v777_v1 = vpack.c.bf16 %v5142_v5, %v5131_v2 }
  0xc8   : > { %v576_v8 = vpop.permute.xlu2 %575  ;;  %v386_v10 = vsel %vm385_vm1, %v368_v63, %v376_v30  ;;  %v390_v11 = vsel %vm385_vm1, %v376_v30, %v368_v63  ;;  %v5364_v30 = vperm.slane %v5246_v17, 2  ;;  %v5422_v63 = vperm.slane %v5241_v16, 3 }
  0xc9   : > { %v396_v21 = vmul.f32 %v5298_v47, %v390_v11  ;;  %v397_v23 = vmul.f32 %v5301_v48, %v386_v10 }
  0xce   : > { %1178 = vrot.lane.b32.xlu1 %v5121_v0, %s6991_s10  ;;  %1172 = vrot.lane.b32.xlu0 %v5139_v4, %s6991_s10  ;;  %v778_v0 = vpack.c.bf16 %v5151_v6, %v5154_v7 }
  0xcf   : > { %v570_v12 = vpop.permute.xlu1 %569  ;;  %v378_v13 = vpop.permute.xlu0 %377  ;;  %1180 = vrot.lane.b32.xlu2 %v5136_v3, %s6991_s10 }
  0xd0   : > { %v387_v15 = vsel %vm385_vm1, %v370_v62, %v378_v13  ;;  %v391_v20 = vsel %vm385_vm1, %v378_v13, %v370_v62  ;;  %4139 = vmatmul.msk.bf16.gmra.mxu0 %vm6999_vm2, %v4604_v9  ;;  %v5354_v25 = vpop.permute.xlu2 %683 }
  0xd1   : > { %v398_v22 = vmul.f32 %v5298_v47, %v391_v20  ;;  %v399_v24 = vmul.f32 %v5301_v48, %v387_v15  ;;  %4141 = vmatmul.msk.bf16.gmra.mxu1 %vm6999_vm2, %v4604_v9 }
  0xd3   : > { %v404_v26 = vpack.c.bf16 %v398_v22, %v396_v21  ;;  %v405_v27 = vpack.c.bf16 %v399_v24, %v397_v23  ;;  %v4606_v23 = vld [vmem:[%s6986_s4 + $0x28] sm:$0xff] }
  0xd5   : > { %534 = vmatpush.bf16.msra.mxu2 %v404_v26  ;;  %553 = vmatpush.bf16.msra.mxu3 %v405_v27 }
  0xd6   : > { %1166 = vrot.lane.b32.xlu0 %v5131_v2, %s6991_s10  ;;  %1168 = vrot.lane.b32.xlu1 %v5142_v5, %s6991_s10  ;;  %v5425_v2 = vperm.slane %v5246_v17, 3 }
  0xd7   : > { %v580_v31 = vpop.permute.xlu1 %579  ;;  %v578_v32 = vpop.permute.xlu0 %577  ;;  %1174 = vrot.lane.b32.xlu2 %v5154_v7, %s6991_s10 }
  0xd8   : > { %v585_v33 = vsel %vm581_vm3, %v5291_v43, %v580_v31  ;;  %v589_v34 = vsel %vm581_vm3, %v580_v31, %v5291_v43  ;;  %v584_v35 = vsel %vm581_vm3, %v570_v12, %v578_v32  ;;  %v588_v36 = vsel %vm581_vm3, %v578_v32, %v570_v12  ;;  %4150 = vmatmul.msk.bf16.vlgmr.msra.gmra.mxu2 %vm6999_vm2, %v4601_v28  ;;  %v674_v41 = vpop.permute.xlu2 %673 }
  0xd9   : > { %4152 = vmatmul.msk.bf16.vlgmr.msra.gmra.mxu3 %vm6999_vm2, %v4601_v28  ;;  %v596_v37 = vmul.f32 %v5361_v29, %v588_v36  ;;  %v598_v38 = vmul.f32 %v5361_v29, %v589_v34  ;;  %v597_v39 = vmul.f32 %v5364_v30, %v584_v35  ;;  %v599_v40 = vmul.f32 %v5364_v30, %v585_v33 }
  0xdb   : > { %v602_v42 = vpack.c.bf16 %v598_v38, %v596_v37  ;;  %v603_v43 = vpack.c.bf16 %v599_v40, %v597_v39  ;;  %v4607_v39 = vld [vmem:[%s6986_s4 + $0x30] sm:$0xff]  ;;  %v5463_v40 = vperm.slane %v5241_v16, 5 }
  0xdd   : > { %631 = vmatpush.bf16.msrb.mxu0 %v602_v42  ;;  %650 = vmatpush.bf16.msrb.mxu1 %v603_v43 }
  0xde   : > { %1176 = vrot.lane.b32.xlu0 %v5151_v6, %s6991_s10  ;;  %s4003_s10 = scalar_lea.sflag [#allocation4], %s5104_s23 }
  0xdf   : > { %v574_v44 = vpop.permute.xlu1 %573  ;;  %v568_v45 = vpop.permute.xlu0 %567 }
  0xe0   : > { %v582_v46 = vsel %vm581_vm3, %v566_v59, %v574_v44  ;;  %v586_v49 = vsel %vm581_vm3, %v574_v44, %v566_v59  ;;  %v583_v50 = vsel %vm581_vm3, %v568_v45, %v576_v8  ;;  %v587_v51 = vsel %vm581_vm3, %v576_v8, %v568_v45  ;;  %v853_v62 = vpop.permute.xlu2 %852 }
  0xe1   : > { %v592_v52 = vmul.f32 %v5361_v29, %v586_v49  ;;  %v594_v53 = vmul.f32 %v5361_v29, %v587_v51  ;;  %v593_v54 = vmul.f32 %v5364_v30, %v582_v46  ;;  %v595_v55 = vmul.f32 %v5364_v30, %v583_v50 }
  0xe3   : > { %v600_v58 = vpack.c.bf16 %v594_v53, %v592_v52  ;;  %v601_v59 = vpack.c.bf16 %v595_v55, %v593_v54 }
  0xe5   : > { %632 = vmatpush.bf16.msrb.mxu0 %v600_v58  ;;  %651 = vmatpush.bf16.msrb.mxu1 %v601_v59 }
  0xe7   : > { %v678_v3 = vpop.permute.xlu1 %677  ;;  %v676_v4 = vpop.permute.xlu0 %675 }
  0xe8   : > { %4151 = vmatmul.msk.bf16.gmra.mxu2 %vm6999_vm2, %v4602_v60  ;;  %4166 = vmatmul.msk.bf16.vlgmr.msrb.gmra.mxu0 %vm6999_vm2, %v4605_v61  ;;  %v690_v5 = vsel %vm687_vm4, %v676_v4, %v5354_v25  ;;  %v694_v6 = vsel %vm687_vm4, %v5354_v25, %v676_v4  ;;  %v863_v7 = vpop.permute.xlu2 %862 }
  0xe9   : > { %808 = vmatpush.bf16.msra.mxu0 %v779_v56  ;;  %827 = vmatpush.bf16.msra.mxu1 %v780_v57  ;;  %v702_v12 = vmul.f32 %v5422_v63, %v694_v6  ;;  %v703_v15 = vmul.f32 %v5425_v2, %v690_v5  ;;  %v4609_v57 = vld [vmem:[%s6986_s4 + $0x40] sm:$0xff] }
  0xea   : > { %4153 = vmatmul.msk.bf16.gmra.mxu3 %vm6999_vm2, %v4602_v60  ;;  %4168 = vmatmul.msk.bf16.vlgmr.msrb.gmra.mxu1 %vm6999_vm2, %v4605_v61  ;;  %v4608_v60 = vld [vmem:[%s6986_s4 + $0x38] sm:$0xff] }
  0xed   : > { %809 = vmatpush.bf16.msra.mxu0 %v777_v1  ;;  %828 = vmatpush.bf16.msra.mxu1 %v778_v0 }
  0xef   : > { %v672_v8 = vpop.permute.xlu1 %671  ;;  %v686_v9 = vpop.permute.xlu0 %685 }
  0xf0   : > { %v691_v10 = vsel %vm687_vm4, %v678_v3, %v686_v9  ;;  %v695_v11 = vsel %vm687_vm4, %v686_v9, %v678_v3  ;;  %v857_v32 = vpop.permute.xlu2 %856 }
  0xf1   : > { %v704_v13 = vmul.f32 %v5422_v63, %v695_v11  ;;  %v705_v20 = vmul.f32 %v5425_v2, %v691_v10 }
  0xf3   : > { %v708_v21 = vpack.c.bf16 %v704_v13, %v702_v12  ;;  %v709_v22 = vpack.c.bf16 %v705_v20, %v703_v15  ;;  %v4610_v12 = vld [vmem:[%s6986_s4 + $0x48] sm:$0xff]  ;;  %v5509_v13 = vperm.slane %v5241_v16, 6  ;;  %v5512_v15 = vperm.slane %v5246_v17, 6 }
  0xf5   : > { %737 = vmatpush.bf16.msrb.mxu2 %v708_v21  ;;  %756 = vmatpush.bf16.msrb.mxu3 %v709_v22 }
  0xf7   : > { %v682_v24 = vpop.permute.xlu1 %681  ;;  %v680_v25 = vpop.permute.xlu0 %679 }
  0xf8   : > { %v689_v26 = vsel %vm687_vm4, %v674_v41, %v682_v24  ;;  %v693_v27 = vsel %vm687_vm4, %v682_v24, %v674_v41  ;;  %v688_v28 = vsel %vm687_vm4, %v672_v8, %v680_v25  ;;  %v692_v31 = vsel %vm687_vm4, %v680_v25, %v672_v8  ;;  %4167 = vmatmul.msk.bf16.gmra.mxu0 %vm6999_vm2, %v4606_v23  ;;  %v961_v54 = vpop.permute.xlu2 %960 }
  0xf9   : > { %v698_v33 = vmul.f32 %v5422_v63, %v692_v31  ;;  %v700_v34 = vmul.f32 %v5422_v63, %v693_v27  ;;  %v699_v35 = vmul.f32 %v5425_v2, %v688_v28  ;;  %v701_v36 = vmul.f32 %v5425_v2, %v689_v26 }
  0xfa   : > { %4169 = vmatmul.msk.bf16.gmra.mxu1 %vm6999_vm2, %v4606_v23  ;;  %v5466_v41 = vperm.slane %v5246_v17, 5 }
  0xfb   : > { %v706_v37 = vpack.c.bf16 %v700_v34, %v698_v33  ;;  %v707_v38 = vpack.c.bf16 %v701_v36, %v699_v35  ;;  %v4611_v35 = vld [vmem:[%s6986_s4 + $0x50] sm:$0xff] }
  0xfd   : > { %738 = vmatpush.bf16.msrb.mxu2 %v706_v37  ;;  %757 = vmatpush.bf16.msrb.mxu3 %v707_v38 }
  0xff   : > { %v861_v42 = vpop.permute.xlu1 %860  ;;  %v855_v43 = vpop.permute.xlu0 %854 }
 0x100   : > { %v867_v44 = vsel %vm7014_vm5, %v853_v62, %v861_v42  ;;  %v871_v45 = vsel %vm7014_vm5, %v861_v42, %v853_v62  ;;  %v868_v46 = vsel %vm7014_vm5, %v855_v43, %v863_v7  ;;  %v872_v49 = vsel %vm7014_vm5, %v863_v7, %v855_v43  ;;  %4182 = vmatmul.msk.bf16.vlgmr.msrb.gmra.mxu2 %vm6999_vm2, %v4607_v39  ;;  %v955_v61 = vpop.permute.xlu2 %954 }
 0x101   : > { %v879_v50 = vmul.f32 %v5463_v40, %v867_v44  ;;  %v880_v51 = vmul.f32 %v5466_v41, %v871_v45  ;;  %v881_v52 = vmul.f32 %v5463_v40, %v868_v46  ;;  %v882_v53 = vmul.f32 %v5466_v41, %v872_v49  ;;  %4184 = vmatmul.msk.bf16.vlgmr.msrb.gmra.mxu3 %vm6999_vm2, %v4607_v39 }
 0x103   : > { %v885_v55 = vpack.c.bf16 %v881_v52, %v879_v50  ;;  %v886_v56 = vpack.c.bf16 %v882_v53, %v880_v51  ;;  %v4613_v53 = vld [vmem:[%s6986_s4 + $0x60] sm:$0xff] }
 0x105   : > { %914 = vmatpush.bf16.msra.mxu2 %v885_v55  ;;  %933 = vmatpush.bf16.msra.mxu3 %v886_v56 }
 0x107   : > { %v851_v58 = vpop.permute.xlu1 %850  ;;  %v849_v59 = vpop.permute.xlu0 %848 }
 0x108   : > { %4198 = vmatmul.msk.bf16.vlgmr.msra.gmra.mxu0 %vm6999_vm2, %v4609_v57  ;;  %v865_v62 = vsel %vm7014_vm5, %v849_v59, %v857_v32  ;;  %v869_v1 = vsel %vm7014_vm5, %v857_v32, %v849_v59  ;;  %v965_v20 = vpop.permute.xlu2 %964  ;;  %v5558_v59 = vperm.slane %v5246_v17, 7 }
 0x109   : > { %v875_v6 = vmul.f32 %v5463_v40, %v865_v62  ;;  %v876_v7 = vmul.f32 %v5466_v41, %v869_v1 }
 0x10a   : > { %4200 = vmatmul.msk.bf16.vlgmr.msra.gmra.mxu1 %vm6999_vm2, %v4609_v57  ;;  %v4612_v57 = vld [vmem:[%s6986_s4 + $0x58] sm:$0xff]  ;;  %7029 = vst [vmem:[#allocation11_spill] sm:$0xff] %v5558_v59 }
 0x10f   : > { %v959_v0 = vpop.permute.xlu1 %958  ;;  %v859_v3 = vpop.permute.xlu0 %858 }
 0x110   : > { %v866_v4 = vsel %vm7014_vm5, %v851_v58, %v859_v3  ;;  %v870_v5 = vsel %vm7014_vm5, %v859_v3, %v851_v58  ;;  %4183 = vmatmul.msk.bf16.gmra.mxu2 %vm6999_vm2, %v4608_v60  ;;  %v5555_v58 = vperm.slane %v5241_v16, 7 }
 0x111   : > { %v877_v8 = vmul.f32 %v5463_v40, %v866_v4  ;;  %v878_v9 = vmul.f32 %v5466_v41, %v870_v5  ;;  %4185 = vmatmul.msk.bf16.gmra.mxu3 %vm6999_vm2, %v4608_v60  ;;  %v1073_v44 = vpop.permute.xlu2 %1072 }
 0x113   : > { %v883_v10 = vpack.c.bf16 %v877_v8, %v875_v6  ;;  %v884_v11 = vpack.c.bf16 %v878_v9, %v876_v7  ;;  %v4614_v9 = vld [vmem:[%s6986_s4 + $0x68] sm:$0xff] }
 0x115   : > { %915 = vmatpush.bf16.msra.mxu2 %v883_v10  ;;  %934 = vmatpush.bf16.msra.mxu3 %v884_v11 }
 0x117   : > { %v969_v21 = vpop.permute.xlu1 %968  ;;  %v967_v22 = vpop.permute.xlu0 %966 }
 0x118   : > { %v974_v23 = vsel %vm970_vm6, %v961_v54, %v969_v21  ;;  %v978_v24 = vsel %vm970_vm6, %v969_v21, %v961_v54  ;;  %v973_v25 = vsel %vm970_vm6, %v959_v0, %v967_v22  ;;  %v977_v26 = vsel %vm970_vm6, %v967_v22, %v959_v0  ;;  %4199 = vmatmul.msk.bf16.gmra.mxu0 %vm6999_vm2, %v4610_v12 }
 0x119   : > { %v987_v27 = vmul.f32 %v5509_v13, %v974_v23  ;;  %v988_v28 = vmul.f32 %v5512_v15, %v978_v24  ;;  %v985_v31 = vmul.f32 %v5509_v13, %v973_v25  ;;  %v986_v32 = vmul.f32 %v5512_v15, %v977_v26  ;;  %v1063_v56 = vpop.permute.xlu2 %1062 }
 0x11a   : > { %4201 = vmatmul.msk.bf16.gmra.mxu1 %vm6999_vm2, %v4610_v12 }
 0x11b   : > { %v991_v33 = vpack.c.bf16 %v987_v27, %v985_v31  ;;  %v992_v34 = vpack.c.bf16 %v988_v28, %v986_v32  ;;  %v4615_v31 = vld [vmem:[%s6986_s4 + $0x70] sm:$0xff] }
 0x11d   : > { %1020 = vmatpush.bf16.msrb.mxu0 %v991_v33  ;;  %1039 = vmatpush.bf16.msrb.mxu1 %v992_v34  ;;  %v5598_v33 = vld [vmem:[%s6984_s2 + $0x10] ss:$0 sm:$0xff]  ;;  %v5603_v34 = vld [vmem:[%s6984_s2 + $0x18] ss:$0 sm:$0xff] }
 0x11e   : > { %7030 = vst [vmem:[#allocation12_spill] sm:$0xff] %v5598_v33 }
 0x11f   : > { %v963_v36 = vpop.permute.xlu1 %962  ;;  %v957_v37 = vpop.permute.xlu0 %956  ;;  %7031 = vst [vmem:[#allocation13_spill] sm:$0xff] %v5603_v34 }
 0x120   : > { %v971_v38 = vsel %vm970_vm6, %v955_v61, %v963_v36  ;;  %v975_v39 = vsel %vm970_vm6, %v963_v36, %v955_v61  ;;  %v972_v42 = vsel %vm970_vm6, %v957_v37, %v965_v20  ;;  %v976_v43 = vsel %vm970_vm6, %v965_v20, %v957_v37  ;;  %4214 = vmatmul.msk.bf16.vlgmr.msra.gmra.mxu2 %vm6999_vm2, %v4611_v35 }
 0x121   : > { %v981_v45 = vmul.f32 %v5509_v13, %v971_v38  ;;  %v982_v46 = vmul.f32 %v5512_v15, %v975_v39  ;;  %v983_v49 = vmul.f32 %v5509_v13, %v972_v42  ;;  %v984_v50 = vmul.f32 %v5512_v15, %v976_v43  ;;  %4216 = vmatmul.msk.bf16.vlgmr.msra.gmra.mxu3 %vm6999_vm2, %v4611_v35  ;;  %v1171_v8 = vpop.permute.xlu2 %1170 }
 0x123   : > { %v989_v51 = vpack.c.bf16 %v983_v49, %v981_v45  ;;  %v990_v52 = vpack.c.bf16 %v984_v50, %v982_v46 }
 0x125   : > { %1021 = vmatpush.bf16.msrb.mxu0 %v989_v51  ;;  %1040 = vmatpush.bf16.msrb.mxu1 %v990_v52 }
 0x128   : > { %v1067_v54 = vpop.permute.xlu1 %1066  ;;  %v1065_v55 = vpop.permute.xlu0 %1064  ;;  %4230 = vmatmul.msk.bf16.vlgmr.msrb.gmra.mxu0 %vm6999_vm2, %v4613_v53 }
 0x129   : > { %v1079_v60 = vsel %vm7013_vm7, %v1065_v55, %v1073_v44  ;;  %v1083_v61 = vsel %vm7013_vm7, %v1073_v44, %v1065_v55  ;;  %v1181_v35 = vpop.permute.xlu2 %1180 }
 0x12a   : > { %4232 = vmatmul.msk.bf16.vlgmr.msrb.gmra.mxu1 %vm6999_vm2, %v4613_v53  ;;  %v1091_v17 = vmul.f32 %v5555_v58, %v1079_v60  ;;  %v1092_v3 = vmul.f32 %v5558_v59, %v1083_v61 }
 0x130   : > { %v1061_v62 = vpop.permute.xlu1 %1060  ;;  %v1075_v1 = vpop.permute.xlu0 %1074  ;;  %4215 = vmatmul.msk.bf16.gmra.mxu2 %vm6999_vm2, %v4612_v57 }
 0x131   : > { %v1080_v0 = vsel %vm7013_vm7, %v1067_v54, %v1075_v1  ;;  %v1084_v16 = vsel %vm7013_vm7, %v1075_v1, %v1067_v54  ;;  %4217 = vmatmul.msk.bf16.gmra.mxu3 %vm6999_vm2, %v4612_v57  ;;  %v4616_v57 = vld [vmem:[%s6986_s4 + $0x78] sm:$0xff] }
 0x132   : > { %v1093_v4 = vmul.f32 %v5555_v58, %v1080_v0  ;;  %v1094_v5 = vmul.f32 %v5558_v59, %v1084_v16 }
 0x134   : > { %v1097_v6 = vpack.c.bf16 %v1093_v4, %v1091_v17  ;;  %v1098_v7 = vpack.c.bf16 %v1094_v5, %v1092_v3 }
 0x136   : > { %1126 = vmatpush.bf16.msrb.mxu2 %v1097_v6  ;;  %1145 = vmatpush.bf16.msrb.mxu3 %v1098_v7 }
 0x138   : > { %v1071_v10 = vpop.permute.xlu1 %1070  ;;  %v1069_v11 = vpop.permute.xlu0 %1068  ;;  %4231 = vmatmul.msk.bf16.gmra.mxu0 %vm6999_vm2, %v4614_v9 }
 0x139   : > { %v1078_v12 = vsel %vm7013_vm7, %v1063_v56, %v1071_v10  ;;  %v1082_v20 = vsel %vm7013_vm7, %v1071_v10, %v1063_v56  ;;  %v1077_v21 = vsel %vm7013_vm7, %v1061_v62, %v1069_v11  ;;  %v1081_v22 = vsel %vm7013_vm7, %v1069_v11, %v1061_v62  ;;  %v1175_v56 = vpop.permute.xlu2 %1174  ;;  %v4617_v10 = vld [vmem:[%s6986_s4 + $0x80] sm:$0xff]  ;;  %v359_v11 = vld [vmem:[%s6985_s3 + $0x10] sm:$0xff] }
 0x13a   : > { %4233 = vmatmul.msk.bf16.gmra.mxu1 %vm6999_vm2, %v4614_v9  ;;  %v1089_v23 = vmul.f32 %v5555_v58, %v1078_v12  ;;  %v1090_v24 = vmul.f32 %v5558_v59, %v1082_v20  ;;  %v1087_v25 = vmul.f32 %v5555_v58, %v1077_v21  ;;  %v1088_v26 = vmul.f32 %v5558_v59, %v1081_v22 }
 0x13b   : > { %v4967_v12 = vmov 0  }
 0x13c   : > { %v1095_v27 = vpack.c.bf16 %v1089_v23, %v1087_v25  ;;  %v1096_v28 = vpack.c.bf16 %v1090_v24, %v1088_v26  ;;  %4735 = vset.pattern.permute.xlu1 %v4967_v12  ;;  %4736 = vset.pattern.permute.xlu2 %v4967_v12 }
 0x13d   : > { %v482_v32 = vpop.f32.mrf.mxu0  ;;  %1284 = vperm.xlu1 %4735, %v359_v11   ;;  %4737 = vset.pattern.permute.xlu0 %v4967_v12 }
 0x13e   : > { %1127 = vmatpush.bf16.msrb.mxu2 %v1095_v27  ;;  %1146 = vmatpush.bf16.msrb.mxu3 %v1096_v28  ;;  %v501_v36 = vpop.f32.mrf.mxu1 }
 0x140   : > { %v1179_v37 = vpop.permute.xlu1 %1178  ;;  %v1173_v38 = vpop.permute.xlu0 %1172 }
 0x141   : > { %v1185_v39 = vsel %vm7012_vm8, %v1171_v8, %v1179_v37  ;;  %v1189_v42 = vsel %vm7012_vm8, %v1179_v37, %v1171_v8  ;;  %v1186_v43 = vsel %vm7012_vm8, %v1173_v38, %v1181_v35  ;;  %v1190_v44 = vsel %vm7012_vm8, %v1181_v35, %v1173_v38  ;;  %4246 = vmatmul.msk.bf16.vlgmr.msrb.gmra.mxu2 %vm6999_vm2, %v4615_v31 }
 0x142   : > { %v1197_v45 = vmul.f32 %v5598_v33, %v1185_v39  ;;  %v1198_v46 = vmul.f32 %v5603_v34, %v1189_v42  ;;  %v1199_v49 = vmul.f32 %v5598_v33, %v1186_v43  ;;  %v1200_v50 = vmul.f32 %v5603_v34, %v1190_v44  ;;  %4248 = vmatmul.msk.bf16.vlgmr.msrb.gmra.mxu3 %vm6999_vm2, %v4615_v31  ;;  %v4618_v31 = vld [vmem:[%s6986_s4 + $0x88] sm:$0xff] }
 0x144   : > { %v1203_v51 = vpack.c.bf16 %v1199_v49, %v1197_v45  ;;  %v1204_v52 = vpack.c.bf16 %v1200_v50, %v1198_v46  ;;  %v360_v46 = vld [vmem:[%s6985_s3 + $0x18] sm:$0xff] }
 0x145   : > { %v5619_v53 = vpop.f32.mrf.mxu0  ;;  %1289 = vperm.xlu2 %4736, %v360_v46  }
 0x146   : > { %1232 = vmatpush.bf16.msra.mxu0 %v1203_v51  ;;  %1251 = vmatpush.bf16.msra.mxu1 %v1204_v52  ;;  %v5621_v55 = vpop.f32.mrf.mxu1 }
 0x148   : > { %v1167_v54 = vpop.permute.xlu0 %1166  ;;  %v1169_v60 = vpop.permute.xlu1 %1168 }
 0x149   : > { %v1183_v61 = vsel %vm7012_vm8, %v1167_v54, %v1175_v56  ;;  %v1187_v62 = vsel %vm7012_vm8, %v1175_v56, %v1167_v54 }
 0x14a   : > { %v1193_v3 = vmul.f32 %v5598_v33, %v1183_v61  ;;  %v1194_v4 = vmul.f32 %v5603_v34, %v1187_v62 }
 0x14d   : > { %v487_v17 = vpop.f32.mrf.mxu0 }
 0x14e   : > { %v506_v7 = vpop.f32.mrf.mxu1 }
 0x150   : > { %v1177_v1 = vpop.permute.xlu0 %1176 }
 0x151   : > { %v1184_v0 = vsel %vm7012_vm8, %v1169_v60, %v1177_v1  ;;  %v1188_v16 = vsel %vm7012_vm8, %v1177_v1, %v1169_v60  ;;  %4247 = vmatmul.msk.bf16.gmra.mxu2 %vm6999_vm2, %v4616_v57 }
 0x152   : > { %v1195_v5 = vmul.f32 %v5598_v33, %v1184_v0  ;;  %v1196_v6 = vmul.f32 %v5603_v34, %v1188_v16  ;;  %4249 = vmatmul.msk.bf16.gmra.mxu3 %vm6999_vm2, %v4616_v57 }
 0x154   : > { %v1201_v8 = vpack.c.bf16 %v1195_v5, %v1193_v3  ;;  %v1202_v9 = vpack.c.bf16 %v1196_v6, %v1194_v4 }
 0x155   : > { %v5648_v21 = vpop.f32.mrf.mxu0 }
 0x156   : > { %1233 = vmatpush.bf16.msra.mxu0 %v1201_v8  ;;  %1252 = vmatpush.bf16.msra.mxu1 %v1202_v9  ;;  %v5650_v24 = vpop.f32.mrf.mxu1 }
 0x159   : > { %4262 = vmatmul.msk.bf16.vlgmr.msra.gmra.mxu0 %vm6999_vm2, %v4617_v10  ;;  %4264 = vmatmul.msk.bf16.vlgmr.msra.gmra.mxu1 %vm6999_vm2, %v4617_v10 }
 0x15b   : > { %v536_v20 = vpop.f32.mrf.mxu2 }
 0x15c   : > { %v537_v22 = vadd.f32 %v536_v20, %v482_v32  ;;  %v555_v23 = vpop.f32.mrf.mxu3 }
 0x15d   : > { %v556_v25 = vadd.f32 %v555_v23, %v501_v36 }
 0x163   : > { %v5652_v26 = vpop.f32.mrf.mxu2 }
 0x164   : > { %v5654_v27 = vpop.f32.mrf.mxu3 }
 0x165   : > { %v634_v28 = vpop.f32.mrf.mxu0 }
 0x166   : > { %v663_v35 = vadd.f32 %v634_v28, %v537_v22 }
 0x167   : > { %v653_v37 = vpop.f32.mrf.mxu1 }
 0x168   : > { %v664_v38 = vadd.f32 %v653_v37, %v556_v25 }
 0x169   : > { %4263 = vmatmul.msk.bf16.gmra.mxu0 %vm6999_vm2, %v4618_v31  ;;  %4265 = vmatmul.msk.bf16.gmra.mxu1 %vm6999_vm2, %v4618_v31 }
 0x16b   : > { %v541_v32 = vpop.f32.mrf.mxu2 }
 0x16c   : > { %v542_v39 = vadd.f32 %v541_v32, %v487_v17 }
 0x16d   : > { %v560_v42 = vpop.f32.mrf.mxu3  ;;  %v5661_v43 = vpop.f32.mrf.mxu0 }
 0x16e   : > { %v561_v36 = vadd.f32 %v560_v42, %v506_v7 }
 0x16f   : > { %v5663_v44 = vpop.f32.mrf.mxu1 }
 0x173   : > { %v543_v52 = vpop.f32.mrf.mxu2 }
 0x175   : > { %v639_v45 = vpop.f32.mrf.mxu0  ;;  %v562_v54 = vpop.f32.mrf.mxu3 }
 0x176   : > { %v667_v49 = vadd.f32 %v639_v45, %v542_v39 }
 0x177   : > { %v658_v50 = vpop.f32.mrf.mxu1 }
 0x178   : > { %v668_v51 = vadd.f32 %v658_v50, %v561_v36 }
 0x17d   : > { %v641_v56 = vpop.f32.mrf.mxu0 }
 0x17f   : > { %v660_v57 = vpop.f32.mrf.mxu1 }
 0x183   : > { %v740_v60 = vpop.f32.mrf.mxu2 }
 0x184   : > { %v769_v61 = vadd.f32 %v740_v60, %v663_v35  ;;  %v759_v62 = vpop.f32.mrf.mxu3 }
 0x185   : > { %v770_v1 = vadd.f32 %v759_v62, %v664_v38  ;;  %v811_v0 = vpop.f32.mrf.mxu0 }
 0x186   : > { %v840_v16 = vadd.f32 %v811_v0, %v769_v61 }
 0x187   : > { %v830_v17 = vpop.f32.mrf.mxu1 }
 0x188   : > { %v841_v3 = vadd.f32 %v830_v17, %v770_v1 }
 0x18b   : > { %v5668_v4 = vpop.f32.mrf.mxu2 }
 0x18c   : > { %v5670_v5 = vpop.f32.mrf.mxu3 }
 0x18d   : > { %v5672_v6 = vpop.f32.mrf.mxu0 }
 0x18e   : > { %7032 = vst [vmem:[#allocation14_spill] sm:$0xff] %v5672_v6 }
 0x18f   : > { %v5674_v7 = vpop.f32.mrf.mxu1 }
 0x190   : > { %7033 = vst [vmem:[#allocation15_spill] sm:$0xff] %v5674_v7 }
 0x193   : > { %v745_v8 = vpop.f32.mrf.mxu2 }
 0x194   : > { %v764_v9 = vpop.f32.mrf.mxu3 }
 0x195   : > { %v816_v10 = vpop.f32.mrf.mxu0 }
 0x197   : > { %v835_v11 = vpop.f32.mrf.mxu1 }
 0x19b   : > { %v747_v12 = vpop.f32.mrf.mxu2 }
 0x19c   : > { %v766_v20 = vpop.f32.mrf.mxu3 }
 0x19d   : > { %v818_v22 = vpop.f32.mrf.mxu0 }
 0x19f   : > { %v837_v23 = vpop.f32.mrf.mxu1 }
 0x1a3   : > { %v917_v25 = vpop.f32.mrf.mxu2 }
 0x1a4   : > { %v946_v28 = vadd.f32 %v917_v25, %v840_v16  ;;  %v936_v31 = vpop.f32.mrf.mxu3 }
 0x1a5   : > { %v947_v35 = vadd.f32 %v936_v31, %v841_v3  ;;  %v1023_v37 = vpop.f32.mrf.mxu0 }
 0x1a6   : > { %v1052_v38 = vadd.f32 %v1023_v37, %v946_v28 }
 0x1a7   : > { %v1042_v32 = vpop.f32.mrf.mxu1 }
 0x1a8   : > { %v1053_v39 = vadd.f32 %v1042_v32, %v947_v35 }
 0x1ab   : > { %v5676_v42 = vpop.f32.mrf.mxu2 }
 0x1ac   : > { %7034 = vst [vmem:[#allocation16_spill] sm:$0xff] %v5676_v42  ;;  %v5678_v36 = vpop.f32.mrf.mxu3  ;;  %v544_v42 = vadd.f32 %v543_v52, %v5648_v21 }
 0x1ad   : > { %7035 = vst [vmem:[#allocation17_spill] sm:$0xff] %v5678_v36  ;;  %v5680_v50 = vpop.f32.mrf.mxu0  ;;  %v774_v36 = vadd.f32 %v764_v9, %v668_v51 }
 0x1ae   : > { %7036 = vst [vmem:[#allocation18_spill] sm:$0xff] %v5680_v50 }
 0x1af   : > { %v5682_v60 = vpop.f32.mrf.mxu1 }
 0x1b0   : > { %7037 = vst [vmem:[#allocation19_spill] sm:$0xff] %v5682_v60  ;;  %v773_v60 = vadd.f32 %v745_v8, %v667_v49 }
 0x1b3   : > { %v922_v45 = vpop.f32.mrf.mxu2 }
 0x1b4   : > { %v941_v46 = vpop.f32.mrf.mxu3 }
 0x1b5   : > { %v1028_v1 = vpop.f32.mrf.mxu0 }
 0x1b7   : > { %v1047_v0 = vpop.f32.mrf.mxu1 }
 0x1bb   : > { %v924_v61 = vpop.f32.mrf.mxu2 }
 0x1bc   : > { %v943_v62 = vpop.f32.mrf.mxu3 }
 0x1bd   : > { %v1030_v28 = vpop.f32.mrf.mxu0 }
 0x1bf   : > { %v1049_v31 = vpop.f32.mrf.mxu1 }
 0x1c4   : > { %v1129_v16 = vpop.f32.mrf.mxu2 }
 0x1c5   : > { %v1158_v17 = vadd.f32 %v1129_v16, %v1052_v38  ;;  %v1148_v3 = vpop.f32.mrf.mxu3  ;;  %v563_v38 = vadd.f32 %v562_v54, %v5650_v24  ;;  %v844_v16 = vadd.f32 %v816_v10, %v773_v60  ;;  %v1285_v54 = vpop.permute.xlu1 %1284 }
 0x1c6   : > { %v1159_v25 = vadd.f32 %v1148_v3, %v1053_v39  ;;  %v845_v39 = vadd.f32 %v835_v11, %v774_v36 }
 0x1c7   : > { %v950_v6 = vadd.f32 %v922_v45, %v844_v16 }
 0x1c8   : > { %v951_v59 = vadd.f32 %v941_v46, %v845_v39 }
 0x1c9   : > { %v1056_v49 = vadd.f32 %v1028_v1, %v950_v6  ;;  %v1290_v1 = vpop.permute.xlu2 %1289 }
 0x1ca   : > { %v1057_v51 = vadd.f32 %v1047_v0, %v951_v59 }
 0x1cc   : > { %v5684_v35 = vpop.f32.mrf.mxu2 }
 0x1cd   : > { %7038 = vst [vmem:[#allocation20_spill] sm:$0xff] %v5684_v35  ;;  %v5686_v37 = vpop.f32.mrf.mxu3  ;;  %v669_v35 = vadd.f32 %v641_v56, %v544_v42 }
 0x1ce   : > { %7039 = vst [vmem:[#allocation21_spill] sm:$0xff] %v5686_v37  ;;  %v670_v37 = vadd.f32 %v660_v57, %v563_v38 }
 0x1d6   : > { %v1235_v32 = vpop.f32.mrf.mxu0  ;;  %v1254_v34 = vpop.f32.mrf.mxu1 }
 0x1d7   : > { %v5688_v33 = vadd.f32 %v1235_v32, %v1158_v17  ;;  %v5690_v50 = vadd.f32 %v1254_v34, %v1159_v25  ;;  %v1134_v17 = vpop.f32.mrf.mxu2  ;;  %v1153_v32 = vpop.f32.mrf.mxu3  ;;  %v775_v34 = vadd.f32 %v747_v12, %v669_v35  ;;  %v776_v25 = vadd.f32 %v766_v20, %v670_v37 }
 0x1d8   : > { %v1162_v52 = vadd.f32 %v1134_v17, %v1056_v49  ;;  %v1163_v24 = vadd.f32 %v1153_v32, %v1057_v51 }
 0x1d9   : > { %v846_v8 = vadd.f32 %v818_v22, %v775_v34  ;;  %v847_v21 = vadd.f32 %v837_v23, %v776_v25 }
 0x1db   : > { %v952_v11 = vadd.f32 %v924_v61, %v846_v8  ;;  %v953_v36 = vadd.f32 %v943_v62, %v847_v21 }
 0x1dd   : > { %v1058_v20 = vadd.f32 %v1030_v28, %v952_v11  ;;  %v1059_v6 = vadd.f32 %v1049_v31, %v953_v36 }
 0x1de   : > { %v5694_v3 = vpop.f32.mrf.mxu0  ;;  %v5696_v7 = vpop.f32.mrf.mxu1 }
 0x1df   : > { %v1136_v45 = vpop.f32.mrf.mxu2  ;;  %v1155_v12 = vpop.f32.mrf.mxu3 }
 0x1e0   : > { %v1164_v23 = vadd.f32 %v1136_v45, %v1058_v20  ;;  %v1165_v46 = vadd.f32 %v1155_v12, %v1059_v6 }
 0x1e6   : > { %v1240_v9 = vpop.f32.mrf.mxu0  ;;  %v1259_v10 = vpop.f32.mrf.mxu1 }
 0x1e7   : > { %v1268_v60 = vadd.f32 %v1240_v9, %v1162_v52  ;;  %v1269_v56 = vadd.f32 %v1259_v10, %v1163_v24 }
 0x1e9   : > { %v5698_v57 = vadd.f32 %v1285_v54, %v1268_v60  ;;  %v5700_v42 = vadd.f32 %v1285_v54, %v1269_v56 }
 0x1eb   : > { %v4270_v59 = vmul.f32 -1.442695, %v5698_v57  ;;  %v4271_v22 = vmul.f32 -1.442695, %v5700_v42 }
 0x1ed   : > { %4740 = vpow2.f32 %v4270_v59 }
 0x1ee   : > { %4742 = vpow2.f32 %v4271_v22  ;;  %v1242_v61 = vpop.f32.mrf.mxu0  ;;  %v1261_v62 = vpop.f32.mrf.mxu1 }
 0x1ef   : > { %v1270_v0 = vadd.f32 %v1242_v61, %v1164_v23  ;;  %v1271_v35 = vadd.f32 %v1261_v62, %v1165_v46 }
 0x1f1   : > { %v5704_v37 = vadd.f32 %v1290_v1, %v1270_v0  ;;  %v5706_v38 = vadd.f32 %v1290_v1, %v1271_v35 }
 0x1f3   : > { %v4741_v16 = vpop.eup %4740  ;;  %v4272_v28 = vmul.f32 -1.442695, %v5704_v37  ;;  %v4273_v17 = vmul.f32 -1.442695, %v5706_v38 }
 0x1f4   : > { %v4743_v31 = vpop.eup %4742  ;;  %v1328_v39 = vadd.f32 1.0, %v4741_v16 }
 0x1f5   : > { %v1329_v32 = vadd.f32 1.0, %v4743_v31  ;;  %4744 = vpow2.f32 %v4272_v28 }
 0x1f6   : > { %4746 = vrcp.f32 %v1328_v39  ;;  %v1401_v9 = vand.u32 2147483647, %v1328_v39  ;;  %v1403_v10 = vand.u32 2147483648, %v1328_v39  ;;  %vm1397_vm11 = vweird.f32 %v1328_v39 }
 0x1f7   : > { %4748 = vrcp.f32 %v1329_v32  ;;  %v1418_v60 = vand.u32 2147483648, %v1329_v32  ;;  %v1416_v45 = vand.u32 2147483647, %v1329_v32  ;;  %vm1412_vm13 = vweird.f32 %v1329_v32 }
 0x1f8   : > { %4750 = vpow2.f32 %v4273_v17  ;;  %v1404_v6 = vor.u32 1.1754944e-38, %v1403_v10  ;;  %vm1402_vm14 = vcmp.eq.f32.partialorder %v1401_v9, 8.507059e+37 }
 0x1f9   : > { %v1419_v23 = vor.u32 1.1754944e-38, %v1418_v60  ;;  %vm1417_vm2 = vcmp.eq.f32.partialorder %v1416_v45, 8.507059e+37  ;;  %v358_v60 = vld [vmem:[%s6985_s3 + $0x8] sm:$0xff]  ;;  %v365_v45 = vld [vmem:[%s6985_s3 + $0x40] sm:$0xff] }
 0x1fb   : > { %v4745_v34 = vpop.eup %4744 }
 0x1fc   : > { %v4747_v25 = vpop.eup %4746  ;;  %v1330_v49 = vadd.f32 1.0, %v4745_v34 }
 0x1fd   : > { %v4749_v51 = vpop.eup %4748  ;;  %v1393_v8 = vmul.f32 %v4747_v25, %v1328_v39  ;;  %vm1398_vm9 = vweird.f32 %v4747_v25 }
 0x1fe   : > { %v4751_v21 = vpop.eup %4750  ;;  %v1408_v52 = vmul.f32 %v4749_v51, %v1329_v32  ;;  %4752 = vrcp.f32 %v1330_v49  ;;  %vm1413_vm10 = vweird.f32 %v4749_v51  ;;  %vm1399_vm12 = vmor %vm1397_vm11, %vm1398_vm9  ;;  %v1433_v31 = vand.u32 2147483648, %v1330_v49 }
 0x1ff   : > { %v1394_v24 = vsub.f32 1.0, %v1393_v8  ;;  %v1331_v54 = vadd.f32 1.0, %v4751_v21  ;;  %vm1414_vm15 = vmor %vm1412_vm13, %vm1413_vm10  ;;  %v1431_v32 = vand.u32 2147483647, %v1330_v49 }
 0x200   : > { %v1409_v11 = vsub.f32 1.0, %v1408_v52 }
 0x201   : > { %v1395_v36 = vmul.f32 %v4747_v25, %v1394_v24  ;;  %4754 = vrcp.f32 %v1331_v54  ;;  %v1446_v8 = vand.u32 2147483647, %v1331_v54  ;;  %vm1442_vm13 = vweird.f32 %v1331_v54 }
 0x202   : > { %v1410_v56 = vmul.f32 %v4749_v51, %v1409_v11 }
 0x203   : > { %v1396_v12 = vadd.f32 %v4747_v25, %v1395_v36 }
 0x204   : > { %v4753_v20 = vpop.eup %4752  ;;  %v1411_v59 = vadd.f32 %v4749_v51, %v1410_v56 }
 0x205   : > { %v1400_v22 = vsel %vm1399_vm12, %v4747_v25, %v1396_v12  ;;  %v1423_v46 = vmul.f32 %v4753_v20, %v1330_v49  ;;  %vm1428_vm9 = vweird.f32 %v4753_v20  ;;  %v1448_v25 = vand.u32 2147483648, %v1331_v54  ;;  %v366_v12 = vld [vmem:[%s6985_s3 + $0x48] sm:$0xff] }
 0x206   : > { %v1405_v1 = vsel %vm1402_vm14, %v1404_v6, %v1400_v22  ;;  %v1415_v61 = vsel %vm1414_vm15, %v4749_v51, %v1411_v59  ;;  %vm1432_vm12 = vcmp.eq.f32.partialorder %v1431_v32, 8.507059e+37  ;;  %vm1447_vm15 = vcmp.eq.f32.partialorder %v1446_v8, 8.507059e+37  ;;  %v364_v6 = vld [vmem:[%s6985_s3 + $0x38] sm:$0xff] }
 0x207   : > { %v4755_v62 = vpop.eup %4754  ;;  %v1420_v0 = vsel %vm1417_vm2, %v1419_v23, %v1415_v61  ;;  %v5711_v35 = vmul.f32 %v1405_v1, %v5698_v57  ;;  %v1424_v16 = vsub.f32 1.0, %v1423_v46  ;;  %vm1427_vm2 = vweird.f32 %v1330_v49 }
 0x208   : > { %v5714_v28 = vmul.f32 %v1420_v0, %v5700_v42  ;;  %v1438_v39 = vmul.f32 %v4755_v62, %v1331_v54  ;;  %vm1429_vm10 = vmor %vm1427_vm2, %vm1428_vm9  ;;  %v1434_v42 = vor.u32 1.1754944e-38, %v1433_v31  ;;  %vm1443_vm11 = vweird.f32 %v4755_v62  ;;  %v362_v54 = vld [vmem:[%s6985_s3 + $0x28] sm:$0xff] }
 0x209   : > { %v1425_v17 = vmul.f32 %v4753_v20, %v1424_v16  ;;  %1460 = vrot.lane.b32.xlu1 %v5711_v35, %s7008_s12  ;;  %1480 = vrot.lane.b32.xlu0 %v5711_v35, %s4959_s30  ;;  %vm1444_vm14 = vmor %vm1442_vm13, %vm1443_vm11  ;;  %v1449_v9 = vor.u32 1.1754944e-38, %v1448_v25  ;;  %vm1506_vm9 = vcmask 130048  }
 0x20a   : > { %v1439_v34 = vsub.f32 1.0, %v1438_v39  ;;  %1484 = vrot.lane.b32.xlu2 %v5714_v28, %s4959_s30 }
 0x20b   : > { %v1426_v57 = vadd.f32 %v4753_v20, %v1425_v17 }
 0x20c   : > { %v1440_v51 = vmul.f32 %v4755_v62, %v1439_v34 }
 0x20d   : > { %v1430_v21 = vsel %vm1429_vm10, %v4753_v20, %v1426_v57 }
 0x20e   : > { %v1435_v52 = vsel %vm1432_vm12, %v1434_v42, %v1430_v21  ;;  %v1441_v24 = vadd.f32 %v4755_v62, %v1440_v51 }
 0x20f   : > { %v5723_v10 = vmul.f32 %v1435_v52, %v5704_v37  ;;  %v357_v37 = vld [vmem:[%s6985_s3] sm:$0xff] }
 0x210   : > { %v1445_v11 = vsel %vm1444_vm14, %v4755_v62, %v1441_v24 }
 0x211   : > { %v1450_v36 = vsel %vm1447_vm15, %v1449_v9, %v1445_v11  ;;  %1482 = vrot.lane.b32.xlu1 %v5723_v10, %s4959_s30  ;;  %v4620_v11 = vld [vmem:[#allocation5 + $0x8] sm:$0xff] }
 0x212   : > { %v5728_v49 = vmul.f32 %v1450_v36, %v5706_v38  ;;  %1574 = vrot.lane.b32.xlu2 %v5711_v35, %s7010_s13  ;;  %v361_v38 = vld [vmem:[%s6985_s3 + $0x20] sm:$0xff] }
 0x214   : > { %1486 = vrot.lane.b32.xlu0 %v5728_v49, %s4959_s30 }
 0x219   : > { %1578 = vrot.lane.b32.xlu1 %v5714_v28, %s7010_s13 }
 0x21a   : > { %1462 = vrot.lane.b32.xlu2 %v5723_v10, %s7008_s12 }
 0x21c   : > { %1464 = vrot.lane.b32.xlu0 %v5714_v28, %s7008_s12 }
 0x221   : > { %1466 = vrot.lane.b32.xlu1 %v5728_v49, %s7008_s12  ;;  %s7065_s12 = smov 17  }
 0x222   : > { %1580 = vrot.lane.b32.xlu2 %v5728_v49, %s7010_s13 }
 0x224   : > { %1635 = vrot.lane.b32.xlu0 %v5711_v35, %s7006_s16 }
 0x229   : > { %1741 = vrot.lane.b32.xlu1 %v5711_v35, %s7000_s17 }
 0x22a   : > { %1639 = vrot.lane.b32.xlu2 %v5714_v28, %s7006_s16 }
 0x22c   : > { %1576 = vrot.lane.b32.xlu0 %v5723_v10, %s7010_s13  ;;  %s7067_s13 = smov 1  }
 0x231   : > { %1637 = vrot.lane.b32.xlu1 %v5723_v10, %s7006_s16 }
 0x232   : > { %1802 = vrot.lane.b32.xlu2 %v5711_v35, %s7004_s18 }
 0x234   : > { %1641 = vrot.lane.b32.xlu0 %v5728_v49, %s7006_s16  ;;  %s7068_s16 = smov 113  }
 0x239   : > { %1806 = vrot.lane.b32.xlu1 %v5714_v28, %s7004_s18 }
 0x23a   : > { %1743 = vrot.lane.b32.xlu2 %v5723_v10, %s7000_s17 }
 0x23c   : > { %1745 = vrot.lane.b32.xlu0 %v5714_v28, %s7000_s17 }
 0x241   : > { %1747 = vrot.lane.b32.xlu1 %v5728_v49, %s7000_s17  ;;  %s4600_s17 = sshll.u32 %s332_s22, 6  ;;  %s7069_s22 = smov 127  }
 0x242   : > { %1808 = vrot.lane.b32.xlu2 %v5728_v49, %s7004_s18  ;;  %s5809_s9 = scalar_lea.vmem %s6983_s1, %s4600_s17 }
 0x243   : > { %v351_v59 = vld [vmem:[%s5809_s9 + $0x10] sm:$0xff]  ;;  %v356_v46 = vld [vmem:[%s5809_s9 + $0x38] sm:$0xff]  ;;  %v350_v0 = vld [vmem:[%s5809_s9 + $0x8] sm:$0xff] }
 0x244   : > { %1863 = vrot.lane.b32.xlu0 %v5711_v35, %s7002_s14  ;;  %v355_v23 = vld [vmem:[%s5809_s9 + $0x30] sm:$0xff]  ;;  %v353_v16 = vld [vmem:[%s5809_s9 + $0x20] sm:$0xff] }
 0x249   : > { %1924 = vrot.lane.b32.xlu1 %v5711_v35, %s7040_s11 }
 0x24a   : > { %1867 = vrot.lane.b32.xlu2 %v5714_v28, %s7002_s14 }
 0x24c   : > { %1804 = vrot.lane.b32.xlu0 %v5723_v10, %s7004_s18 }
 0x251   : > { %1865 = vrot.lane.b32.xlu1 %v5723_v10, %s7002_s14 }
 0x252   : > { %1926 = vrot.lane.b32.xlu2 %v5723_v10, %s7040_s11 }
 0x254   : > { %1869 = vrot.lane.b32.xlu0 %v5728_v49, %s7002_s14 }
 0x259   : > { %1930 = vrot.lane.b32.xlu1 %v5728_v49, %s7040_s11 }
 0x25a   : > { %1274 = vperm.xlu2 %4736, %v357_v37  }
 0x25c   : > { %1928 = vrot.lane.b32.xlu0 %v5714_v28, %s7040_s11 }
 0x261   : > { %1987 = vperm.xlu1 %4735, %v361_v38  }
 0x262   : > { %1992 = vperm.xlu2 %4736, %v362_v54  }
 0x264   : > { %1279 = vperm.xlu0 %4737, %v358_v60   ;;  %v1485_v56 = vpop.permute.xlu2 %1484 }
 0x269   : > { %2132 = vperm.xlu1 %4735, %v365_v45  }
 0x26a   : > { %2137 = vperm.xlu2 %4736, %v366_v12  }
 0x26c   : > { %v1575_v20 = vpop.permute.xlu2 %1574 }
 0x271   : > { %2127 = vperm.xlu1 %4735, %v364_v6  }
 0x272   : > { %2168 = vperm.xlu2 %4736, %v351_v59  }
 0x274   : > { %v1463_v22 = vpop.permute.xlu2 %1462 }
 0x279   : > { %2196 = vperm.xlu1 %4735, %v355_v23  }
 0x27a   : > { %2201 = vperm.xlu2 %4736, %v356_v46  }
 0x27b   : > { %v1461_v1 = vpop.permute.xlu1 %1460  ;;  %v1481_v61 = vpop.permute.xlu0 %1480 }
 0x27c   : > { %v1581_v62 = vpop.permute.xlu2 %1580  ;;  %v1488_v17 = vsel %vm428_vm0, %v1481_v61, %v1485_v56  ;;  %v1490_v32 = vsel %vm428_vm0, %v1485_v56, %v1481_v61 }
 0x27d   : > { %v1492_v42 = vmul.f32 %v1490_v32, %v5254_v18  ;;  %v1493_v51 = vmul.f32 %v1488_v17, %v5257_v19 }
 0x281   : > { %2163 = vperm.xlu1 %4735, %v350_v0  }
 0x282   : > { %2186 = vperm.xlu2 %4736, %v353_v16  }
 0x283   : > { %v1483_v31 = vpop.permute.xlu1 %1482 }
 0x284   : > { %v1640_v39 = vpop.permute.xlu2 %1639 }
 0x286   : > { %v1487_v34 = vpop.permute.xlu0 %1486 }
 0x287   : > { %v1489_v57 = vsel %vm428_vm0, %v1483_v31, %v1487_v34  ;;  %v1491_v25 = vsel %vm428_vm0, %v1487_v34, %v1483_v31  ;;  %v4619_v31 = vld [vmem:[#allocation5] sm:$0xff] }
 0x288   : > { %v1494_v8 = vmul.f32 %v1491_v25, %v5254_v18  ;;  %v1495_v21 = vmul.f32 %v1489_v57, %v5257_v19 }
 0x28a   : > { %v1496_v52 = vpack.c.bf16 %v1494_v8, %v1492_v42  ;;  %v1497_v24 = vpack.c.bf16 %v1495_v21, %v1493_v51 }
 0x28b   : > { %v1579_v9 = vpop.permute.xlu1 %1578 }
 0x28c   : > { %1517 = vmatpush.bf16.msra.mxu2 %v1496_v52  ;;  %1531 = vmatpush.bf16.msra.mxu3 %v1497_v24  ;;  %v5831_v36 = vpop.permute.xlu2 %1802  ;;  %v1582_v17 = vsel %vm581_vm3, %v1575_v20, %v1579_v9  ;;  %v1584_v32 = vsel %vm581_vm3, %v1579_v9, %v1575_v20  ;;  %v1697_v9 = vpack.c.bf16 %v5728_v49, %v5714_v28 }
 0x28d   : > { %v1586_v51 = vmul.f32 %v1584_v32, %v5361_v29  ;;  %v1587_v8 = vmul.f32 %v1582_v17, %v5364_v30 }
 0x28e   : > { %v1465_v37 = vpop.permute.xlu0 %1464 }
 0x28f   : > { %4278 = vmatmul.msk.bf16.vlgmr.msra.gmra.mxu2 %vm1506_vm9, %v4620_v11  ;;  %4279 = vmatmul.msk.bf16.vlgmr.msra.gmra.mxu3 %vm1506_vm9, %v4620_v11  ;;  %v1468_v38 = vsel %vm385_vm1, %v1461_v1, %v1465_v37  ;;  %v1470_v54 = vsel %vm385_vm1, %v1465_v37, %v1461_v1  ;;  %v4621_v37 = vld [vmem:[#allocation5 + $0x10] sm:$0xff] }
 0x290   : > { %v1472_v12 = vmul.f32 %v1470_v54, %v5298_v47  ;;  %v1473_v6 = vmul.f32 %v1468_v38, %v5301_v48 }
 0x293   : > { %v1467_v60 = vpop.permute.xlu1 %1466 }
 0x294   : > { %v1469_v56 = vsel %vm385_vm1, %v1463_v22, %v1467_v60  ;;  %v1471_v45 = vsel %vm385_vm1, %v1467_v60, %v1463_v22  ;;  %v5845_v59 = vpop.permute.xlu2 %1743  ;;  %v363_v22 = vld [vmem:[%s6985_s3 + $0x30] sm:$0xff]  ;;  %v352_v60 = vld [vmem:[%s5809_s9 + $0x18] sm:$0xff] }
 0x295   : > { %v1474_v23 = vmul.f32 %v1471_v45, %v5298_v47  ;;  %v1475_v46 = vmul.f32 %v1469_v56, %v5301_v48  ;;  %2122 = vperm.xlu0 %4737, %v363_v22  }
 0x296   : > { %v1636_v61 = vpop.permute.xlu0 %1635 }
 0x297   : > { %v1476_v0 = vpack.c.bf16 %v1474_v23, %v1472_v12  ;;  %v1477_v1 = vpack.c.bf16 %v1475_v46, %v1473_v6  ;;  %v1643_v38 = vsel %vm687_vm4, %v1636_v61, %v1640_v39  ;;  %v1645_v54 = vsel %vm687_vm4, %v1640_v39, %v1636_v61  ;;  %v4622_v61 = vld [vmem:[#allocation5 + $0x18] sm:$0xff] }
 0x298   : > { %v1648_v49 = vmul.f32 %v1643_v38, %v5425_v2 }
 0x299   : > { %1553 = vmatpush.bf16.msrb.mxu2 %v1476_v0  ;;  %1567 = vmatpush.bf16.msrb.mxu3 %v1477_v1  ;;  %v349_v0 = vld [vmem:[%s5809_s9] sm:$0xff] }
 0x29b   : > { %v1742_v16 = vpop.permute.xlu1 %1741 }
 0x29c   : > { %v5860_v42 = vpop.permute.xlu2 %1808 }
 0x29d   : > { %2173 = vperm.xlu0 %4737, %v352_v60  }
 0x29e   : > { %v1577_v34 = vpop.permute.xlu0 %1576 }
 0x29f   : > { %v1583_v57 = vsel %vm581_vm3, %v1577_v34, %v1581_v62  ;;  %v1585_v25 = vsel %vm581_vm3, %v1581_v62, %v1577_v34  ;;  %4284 = vmatmul.msk.bf16.vlgmr.msrb.gmra.mxu2 %vm1506_vm9, %v4619_v31  ;;  %4285 = vmatmul.msk.bf16.vlgmr.msrb.gmra.mxu3 %vm1506_vm9, %v4619_v31  ;;  %v1696_v62 = vpack.c.bf16 %v5723_v10, %v5711_v35  ;;  %v4623_v34 = vld [vmem:[#allocation5 + $0x20] sm:$0xff] }
 0x2a0   : > { %v1588_v20 = vmul.f32 %v1585_v25, %v5361_v29  ;;  %v1589_v21 = vmul.f32 %v1583_v57, %v5364_v30  ;;  %v1647_v10 = vmul.f32 %v1645_v54, %v5422_v63 }
 0x2a2   : > { %v1590_v52 = vpack.c.bf16 %v1588_v20, %v1586_v51  ;;  %v1591_v24 = vpack.c.bf16 %v1589_v21, %v1587_v8  ;;  %v354_v51 = vld [vmem:[%s5809_s9 + $0x28] sm:$0xff]  ;;  %s7063_s9 = smov 15  }
 0x2a3   : > { %v1638_v11 = vpop.permute.xlu1 %1637 }
 0x2a4   : > { %1610 = vmatpush.bf16.msrb.mxu0 %v1590_v52  ;;  %1624 = vmatpush.bf16.msrb.mxu1 %v1591_v24  ;;  %v1868_v12 = vpop.permute.xlu2 %1867 }
 0x2a5   : > { %2158 = vperm.xlu0 %4737, %v349_v0  }
 0x2a6   : > { %v1642_v56 = vpop.permute.xlu0 %1641 }
 0x2a7   : > { %v1644_v35 = vsel %vm687_vm4, %v1638_v11, %v1642_v56  ;;  %v1646_v28 = vsel %vm687_vm4, %v1642_v56, %v1638_v11  ;;  %4290 = vmatmul.msk.bf16.vlgmr.msrb.gmra.mxu0 %vm1506_vm9, %v4621_v37  ;;  %4291 = vmatmul.msk.bf16.vlgmr.msrb.gmra.mxu1 %vm1506_vm9, %v4621_v37 }
 0x2a8   : > { %1716 = vmatpush.bf16.msra.mxu0 %v1696_v62  ;;  %1730 = vmatpush.bf16.msra.mxu1 %v1697_v9  ;;  %v1649_v39 = vmul.f32 %v1646_v28, %v5422_v63  ;;  %v1650_v45 = vmul.f32 %v1644_v35, %v5425_v2  ;;  %v4624_v9 = vld [vmem:[#allocation5 + $0x28] sm:$0xff] }
 0x2aa   : > { %v1651_v6 = vpack.c.bf16 %v1649_v39, %v1647_v10  ;;  %v1652_v23 = vpack.c.bf16 %v1650_v45, %v1648_v49  ;;  %v558_v45 = vadd.f32 %v5654_v27, %v5621_v55 }
 0x2ab   : > { %v1807_v46 = vpop.permute.xlu1 %1806 }
 0x2ac   : > { %1671 = vmatpush.bf16.msra.mxu2 %v1651_v6  ;;  %1685 = vmatpush.bf16.msra.mxu3 %v1652_v23  ;;  %v5894_v17 = vpop.permute.xlu2 %1926  ;;  %v1810_v37 = vsel %vm970_vm6, %v5831_v36, %v1807_v46  ;;  %v1812_v54 = vsel %vm970_vm6, %v1807_v46, %v5831_v36  ;;  %v539_v36 = vadd.f32 %v5652_v26, %v5619_v53 }
 0x2ad   : > { %2191 = vperm.xlu0 %4737, %v354_v51   ;;  %v1814_v49 = vmul.f32 %v1810_v37, %v5509_v13  ;;  %v1815_v39 = vmul.f32 %v1812_v54, %v5512_v15  ;;  %v666_v26 = vadd.f32 %v5663_v44, %v558_v45 }
 0x2ae   : > { %v1746_v1 = vpop.permute.xlu0 %1745 }
 0x2af   : > { %4296 = vmatmul.msk.bf16.vlgmr.msra.gmra.mxu2 %vm1506_vm9, %v4622_v61  ;;  %4297 = vmatmul.msk.bf16.vlgmr.msra.gmra.mxu3 %vm1506_vm9, %v4622_v61  ;;  %v1749_v31 = vsel %vm7014_vm5, %v1742_v16, %v1746_v1  ;;  %v1751_v22 = vsel %vm7014_vm5, %v1746_v1, %v1742_v16 }
 0x2b0   : > { %v1753_v21 = vmul.f32 %v1749_v31, %v5463_v40  ;;  %v1754_v16 = vmul.f32 %v1751_v22, %v5466_v41 }
 0x2b3   : > { %v1748_v32 = vpop.permute.xlu1 %1747 }
 0x2b4   : > { %v1750_v57 = vsel %vm7014_vm5, %v5845_v59, %v1748_v32  ;;  %v1752_v25 = vsel %vm7014_vm5, %v1748_v32, %v5845_v59  ;;  %v1275_v11 = vpop.permute.xlu2 %1274  ;;  %v7041_v32 = vld [vmem:[#allocation11_spill] sm:$0xff] }
 0x2b5   : > { %v1755_v8 = vmul.f32 %v1750_v57, %v5463_v40  ;;  %v1756_v20 = vmul.f32 %v1752_v25, %v5466_v41  ;;  %v5924_v35 = vadd.f32 %v1275_v11, %v5688_v33  ;;  %v665_v33 = vadd.f32 %v5661_v43, %v539_v36  ;;  %v7042_v25 = vld [vmem:[#allocation14_spill] sm:$0xff] }
 0x2b6   : > { %v1864_v52 = vpop.permute.xlu0 %1863  ;;  %v772_v43 = vadd.f32 %v5670_v5, %v666_v26 }
 0x2b7   : > { %4302 = vmatmul.msk.bf16.vlgmr.msra.gmra.mxu0 %vm1506_vm9, %v4623_v34  ;;  %4303 = vmatmul.msk.bf16.vlgmr.msra.gmra.mxu1 %vm1506_vm9, %v4623_v34  ;;  %v1757_v24 = vpack.c.bf16 %v1755_v8, %v1753_v21  ;;  %v1758_v62 = vpack.c.bf16 %v1756_v20, %v1754_v16  ;;  %v1871_v23 = vsel %vm7013_vm7, %v1864_v52, %v1868_v12  ;;  %v4266_v46 = vmul.f32 -1.442695, %v5924_v35  ;;  %v7043_v8 = vld [vmem:[#allocation15_spill] sm:$0xff]  ;;  %v4626_v16 = vld [vmem:[#allocation5 + $0x38] sm:$0xff] }
 0x2b8   : > { %v1873_v0 = vsel %vm7013_vm7, %v1868_v12, %v1864_v52  ;;  %v771_v1 = vadd.f32 %v5668_v4, %v665_v33  ;;  %v1875_v31 = vmul.f32 %v1871_v23, %v5555_v58  ;;  %v843_v20 = vadd.f32 %v7043_v8, %v772_v43  ;;  %v7048_v33 = vld [vmem:[#allocation18_spill] sm:$0xff]  ;;  %v7049_v23 = vld [vmem:[#allocation19_spill] sm:$0xff] }
 0x2b9   : > { %1777 = vmatpush.bf16.msrb.mxu2 %v1757_v24  ;;  %1791 = vmatpush.bf16.msrb.mxu3 %v1758_v62  ;;  %v1876_v12 = vmul.f32 %v1873_v0, %v7041_v32  ;;  %4756 = vpow2.f32 %v4266_v46  ;;  %v7044_v62 = vld [vmem:[#allocation16_spill] sm:$0xff] }
 0x2ba   : > { %v842_v51 = vadd.f32 %v7042_v25, %v771_v1  ;;  %v7050_v0 = vld [vmem:[#allocation20_spill] sm:$0xff]  ;;  %v7051_v1 = vld [vmem:[#allocation21_spill] sm:$0xff] }
 0x2bb   : > { %v1925_v59 = vpop.permute.xlu1 %1924 }
 0x2be   : > { %v1805_v38 = vpop.permute.xlu0 %1804 }
 0x2bf   : > { %v1811_v60 = vsel %vm970_vm6, %v1805_v38, %v5860_v42  ;;  %v1813_v56 = vsel %vm970_vm6, %v5860_v42, %v1805_v38  ;;  %4308 = vmatmul.msk.bf16.vlgmr.msrb.gmra.mxu2 %vm1506_vm9, %v4624_v9  ;;  %4309 = vmatmul.msk.bf16.vlgmr.msrb.gmra.mxu3 %vm1506_vm9, %v4624_v9  ;;  %v5933_v42 = vadd.f32 %v1275_v11, %v5690_v50  ;;  %v4625_v50 = vld [vmem:[#allocation5 + $0x30] sm:$0xff]  ;;  %v7045_v11 = vld [vmem:[#allocation17_spill] sm:$0xff]  ;;  %v4757_v38 = vpop.eup %4756 }
 0x2c0   : > { %v1816_v28 = vmul.f32 %v1811_v60, %v5509_v13  ;;  %v1817_v10 = vmul.f32 %v1813_v56, %v5512_v15  ;;  %v948_v9 = vadd.f32 %v7044_v62, %v842_v51  ;;  %v949_v37 = vadd.f32 %v7045_v11, %v843_v20  ;;  %v7046_v60 = vld [vmem:[#allocation12_spill] sm:$0xff] }
 0x2c1   : > { %v4267_v55 = vmul.f32 -1.442695, %v5933_v42 }
 0x2c2   : > { %v1818_v61 = vpack.c.bf16 %v1816_v28, %v1814_v49  ;;  %v1819_v53 = vpack.c.bf16 %v1817_v10, %v1815_v39  ;;  %v7047_v28 = vld [vmem:[#allocation13_spill] sm:$0xff]  ;;  %v1055_v46 = vadd.f32 %v7049_v23, %v949_v37 }
 0x2c3   : > { %v1866_v6 = vpop.permute.xlu1 %1865  ;;  %4758 = vpow2.f32 %v4267_v55 }
 0x2c4   : > { %1838 = vmatpush.bf16.msrb.mxu0 %v1818_v61  ;;  %1852 = vmatpush.bf16.msrb.mxu1 %v1819_v53  ;;  %v1324_v61 = vadd.f32 1.0, %v4757_v38 }
 0x2c6   : > { %v1870_v27 = vpop.permute.xlu0 %1869  ;;  %4760 = vrcp.f32 %v1324_v61  ;;  %v1341_v62 = vand.u32 2147483647, %v1324_v61  ;;  %v1343_v37 = vand.u32 2147483648, %v1324_v61  ;;  %vm1337_vm10 = vweird.f32 %v1324_v61 }
 0x2c7   : > { %v1872_v22 = vsel %vm7013_vm7, %v1866_v6, %v1870_v27  ;;  %v1874_v44 = vsel %vm7013_vm7, %v1870_v27, %v1866_v6  ;;  %4314 = vmatmul.msk.bf16.vlgmr.msrb.gmra.mxu0 %vm1506_vm9, %v4625_v50  ;;  %4315 = vmatmul.msk.bf16.vlgmr.msrb.gmra.mxu1 %vm1506_vm9, %v4625_v50  ;;  %v1054_v6 = vadd.f32 %v7048_v33, %v948_v9 }
 0x2c8   : > { %v1877_v4 = vmul.f32 %v1872_v22, %v5555_v58  ;;  %v1878_v34 = vmul.f32 %v1874_v44, %v7041_v32  ;;  %vm5995_vm14 = vcmp.eq.f32.partialorder %v1341_v62, 8.507059e+37 }
 0x2c9   : > { %v1160_v50 = vadd.f32 %v7050_v0, %v1054_v6 }
 0x2ca   : > { %v1879_v5 = vpack.c.bf16 %v1877_v4, %v1875_v31  ;;  %v1880_v57 = vpack.c.bf16 %v1878_v34, %v1876_v12  ;;  %v4627_v31 = vld [vmem:[#allocation5 + $0x40] sm:$0xff] }
 0x2cb   : > { %v1931_v21 = vpop.permute.xlu1 %1930  ;;  %v1266_v27 = vadd.f32 %v5694_v3, %v1160_v50 }
 0x2cc   : > { %1899 = vmatpush.bf16.msra.mxu2 %v1879_v5  ;;  %1913 = vmatpush.bf16.msra.mxu3 %v1880_v57  ;;  %v1933_v52 = vsel %vm7012_vm8, %v5894_v17, %v1931_v21  ;;  %v1935_v24 = vsel %vm7012_vm8, %v1931_v21, %v5894_v17  ;;  %v4759_v17 = vpop.eup %4758 }
 0x2cd   : > { %v1938_v56 = vmul.f32 %v7046_v60, %v1933_v52  ;;  %v1939_v10 = vmul.f32 %v7047_v28, %v1935_v24  ;;  %v1325_v55 = vadd.f32 1.0, %v4759_v17  ;;  %v4761_v5 = vpop.eup %4760 }
 0x2ce   : > { %v1929_v54 = vpop.permute.xlu0 %1928  ;;  %v1333_v3 = vmul.f32 %v4761_v5, %v1324_v61  ;;  %vm1338_vm2 = vweird.f32 %v4761_v5 }
 0x2cf   : > { %v1932_v36 = vsel %vm7012_vm8, %v1925_v59, %v1929_v54  ;;  %v1934_v49 = vsel %vm7012_vm8, %v1929_v54, %v1925_v59  ;;  %4320 = vmatmul.msk.bf16.vlgmr.msra.gmra.mxu2 %vm1506_vm9, %v4626_v16  ;;  %4321 = vmatmul.msk.bf16.vlgmr.msra.gmra.mxu3 %vm1506_vm9, %v4626_v16  ;;  %v1161_v59 = vadd.f32 %v7051_v1, %v1055_v46  ;;  %4762 = vrcp.f32 %v1325_v55  ;;  %vm5991_vm13 = vmor %vm1337_vm10, %vm1338_vm2 }
 0x2d0   : > { %v1936_v39 = vmul.f32 %v7046_v60, %v1932_v36  ;;  %v1937_v45 = vmul.f32 %v7047_v28, %v1934_v49  ;;  %v1334_v8 = vsub.f32 1.0, %v1333_v3  ;;  %vm1352_vm11 = vweird.f32 %v1325_v55 }
 0x2d1   : > { %v1267_v43 = vadd.f32 %v5696_v7, %v1161_v59  ;;  %v1356_v36 = vand.u32 2147483647, %v1325_v55  ;;  %v1358_v49 = vand.u32 2147483648, %v1325_v55 }
 0x2d2   : > { %v1940_v53 = vpack.c.bf16 %v1938_v56, %v1936_v39  ;;  %v1941_v26 = vpack.c.bf16 %v1939_v10, %v1937_v45  ;;  %v1335_v52 = vmul.f32 %v4761_v5, %v1334_v8  ;;  %v1344_v45 = vor.u32 1.1754944e-38, %v1343_v37 }
 0x2d3   : > { %vm1357_vm8 = vcmp.eq.f32.partialorder %v1356_v36, 8.507059e+37  ;;  %v1359_v1 = vor.u32 1.1754944e-38, %v1358_v49 }
 0x2d4   : > { %1960 = vmatpush.bf16.msra.mxu0 %v1940_v53  ;;  %1974 = vmatpush.bf16.msra.mxu1 %v1941_v26  ;;  %v1336_v11 = vadd.f32 %v4761_v5, %v1335_v52 }
 0x2d5   : > { %v4763_v7 = vpop.eup %4762 }
 0x2d6   : > { %v1280_v22 = vpop.permute.xlu0 %1279  ;;  %v1348_v57 = vmul.f32 %v4763_v7, %v1325_v55  ;;  %vm1353_vm12 = vweird.f32 %v4763_v7  ;;  %v1340_v39 = vsel %vm5991_vm13, %v4761_v5, %v1336_v11 }
 0x2d7   : > { %v5983_v44 = vadd.f32 %v1280_v22, %v1266_v27  ;;  %v5985_v12 = vadd.f32 %v1280_v22, %v1267_v43  ;;  %4326 = vmatmul.msk.bf16.vlgmr.msra.gmra.mxu0 %vm1506_vm9, %v4627_v31  ;;  %4327 = vmatmul.msk.bf16.vlgmr.msra.gmra.mxu1 %vm1506_vm9, %v4627_v31  ;;  %vm6001_vm15 = vmor %vm1352_vm11, %vm1353_vm12  ;;  %v1345_v55 = vsel %vm5995_vm14, %v1344_v45, %v1340_v39  ;;  %v4628_v45 = vld [vmem:[%s6988_s6] sm:$0xff] }
 0x2d8   : > { %v1349_v16 = vsub.f32 1.0, %v1348_v57 }
 0x2d9   : > { %v4268_v4 = vmul.f32 -1.442695, %v5983_v44  ;;  %v4269_v34 = vmul.f32 -1.442695, %v5985_v12 }
 0x2da   : > { %v1350_v24 = vmul.f32 %v4763_v7, %v1349_v16 }
 0x2db   : > { %4764 = vpow2.f32 %v4268_v4 }
 0x2dc   : > { %4766 = vpow2.f32 %v4269_v34  ;;  %v1351_v60 = vadd.f32 %v4763_v7, %v1350_v24 }
 0x2de   : > { %v1355_v26 = vsel %vm6001_vm15, %v4763_v7, %v1351_v60  ;;  %v1452_v7 = vmul.f32 %v1345_v55, %v5924_v35 }
 0x2df   : > { %v1360_v31 = vsel %vm1357_vm8, %v1359_v1, %v1355_v26 }
 0x2e1   : > { %v4765_v25 = vpop.eup %4764 }
 0x2e2   : > { %v4767_v51 = vpop.eup %4766  ;;  %v1326_v20 = vadd.f32 1.0, %v4765_v25  ;;  %v1453_v25 = vmul.f32 %v1360_v31, %v5933_v42 }
 0x2e3   : > { %v1327_v21 = vadd.f32 1.0, %v4767_v51 }
 0x2e4   : > { %4768 = vrcp.f32 %v1326_v20  ;;  %v1373_v33 = vand.u32 2147483648, %v1326_v20  ;;  %v1371_v61 = vand.u32 2147483647, %v1326_v20  ;;  %vm1367_vm13 = vweird.f32 %v1326_v20 }
 0x2e5   : > { %4770 = vrcp.f32 %v1327_v21  ;;  %v1388_v53 = vand.u32 2147483648, %v1327_v21  ;;  %v1386_v50 = vand.u32 2147483647, %v1327_v21  ;;  %vm1382_vm12 = vweird.f32 %v1327_v21 }
 0x2e6   : > { %v1374_v27 = vor.u32 1.1754944e-38, %v1373_v33  ;;  %vm1372_vm7 = vcmp.eq.f32.partialorder %v1371_v61, 8.507059e+37 }
 0x2e7   : > { %v1389_v4 = vor.u32 1.1754944e-38, %v1388_v53  ;;  %vm1387_vm15 = vcmp.eq.f32.partialorder %v1386_v50, 8.507059e+37 }
 0x2ea   : > { %v4769_v9 = vpop.eup %4768 }
 0x2eb   : > { %v4771_v38 = vpop.eup %4770  ;;  %v1363_v54 = vmul.f32 %v4769_v9, %v1326_v20  ;;  %vm1368_vm2 = vweird.f32 %v4769_v9 }
 0x2ec   : > { %v1378_v56 = vmul.f32 %v4771_v38, %v1327_v21  ;;  %vm1383_vm10 = vweird.f32 %v4771_v38  ;;  %vm1369_vm11 = vmor %vm1367_vm13, %vm1368_vm2 }
 0x2ed   : > { %v1364_v17 = vsub.f32 1.0, %v1363_v54  ;;  %vm1384_vm5 = vmor %vm1382_vm12, %vm1383_vm10 }
 0x2ee   : > { %v1379_v6 = vsub.f32 1.0, %v1378_v56 }
 0x2ef   : > { %v1365_v46 = vmul.f32 %v4769_v9, %v1364_v17 }
 0x2f0   : > { %v1380_v0 = vmul.f32 %v4771_v38, %v1379_v6 }
 0x2f1   : > { %v1366_v59 = vadd.f32 %v4769_v9, %v1365_v46 }
 0x2f2   : > { %v1381_v43 = vadd.f32 %v4771_v38, %v1380_v0 }
 0x2f3   : > { %v1370_v22 = vsel %vm1369_vm11, %v4769_v9, %v1366_v59 }
 0x2f4   : > { %v1375_v34 = vsel %vm1372_vm7, %v1374_v27, %v1370_v22  ;;  %v1385_v5 = vsel %vm1384_vm5, %v4771_v38, %v1381_v43  ;;  %vm7071_vm5 = vcmask 261120  }
 0x2f5   : > { %v1390_v3 = vsel %vm1387_vm15, %v1389_v4, %v1385_v5  ;;  %v1454_v57 = vmul.f32 %v1375_v34, %v5983_v44  ;;  %vm7072_vm7 = vmmov %vm7071_vm5 }
 0x2f6   : > { %v1455_v51 = vmul.f32 %v1390_v3, %v5985_v12  ;;  %vm7073_vm8 = vmmov %vm7071_vm5 }
 0x2f7   : > { %v2003_v8 = vpack.c.bf16 %v1454_v57, %v1452_v7  ;;  %vm7074_vm14 = vmmov %vm7071_vm5 }
 0x2f8   : > { %v2004_v20 = vpack.c.bf16 %v1455_v51, %v1453_v25  ;;  %v4629_v25 = vld [vmem:[%s6988_s6 + $0x8] sm:$0xff]  ;;  %vm7075_vm2 = vmmov %vm7071_vm5 }
 0x2f9   : > { %2089 = vmatpush.bf16.msrb.mxu0 %v2003_v8  ;;  %vm7076_vm10 = vmmov %vm7075_vm2 }
 0x2fa   : > { %2108 = vmatpush.bf16.msrb.mxu1 %v2004_v20  ;;  %vm7077_vm13 = vmmov %vm7075_vm2 }
 0x2fb   : > { %vm7078_vm11 = vmmov %vm7075_vm2 }
 0x2fc   : > { %4352 = vmatmul.msk.bf16.vlgmr.msrb.gmra.mxu0 %vm1506_vm9, %v4628_v45  ;;  %vm7079_vm12 = vmmov %vm7075_vm2 }
 0x2fd   : > { %4354 = vmatmul.msk.bf16.vlgmr.msrb.gmra.mxu1 %vm1506_vm9, %v4628_v45  ;;  %v1988_v45 = vpop.permute.xlu1 %1987  ;;  %vm7080_vm15 = vmmov %vm7075_vm2 }
 0x30c   : > { %4353 = vmatmul.msk.bf16.gmra.mxu0 %vm1506_vm9, %v4629_v25 }
 0x30d   : > { %4355 = vmatmul.msk.bf16.gmra.mxu1 %vm1506_vm9, %v4629_v25 }
 0x312   : > { %v1519_v21 = vpop.f32.mrf.mxu2  ;;  %v1533_v16 = vpop.f32.mrf.mxu3 }
 0x31a   : > { %v1521_v52 = vpop.f32.mrf.mxu2  ;;  %v1535_v24 = vpop.f32.mrf.mxu3 }
 0x322   : > { %v1555_v62 = vpop.f32.mrf.mxu2  ;;  %v1569_v9 = vpop.f32.mrf.mxu3 }
 0x323   : > { %v1556_v23 = vadd.f32 %v1555_v62, %v1519_v21  ;;  %v1570_v46 = vadd.f32 %v1569_v9, %v1533_v16 }
 0x324   : > { %v1612_v11 = vpop.f32.mrf.mxu0  ;;  %v1626_v37 = vpop.f32.mrf.mxu1 }
 0x325   : > { %v1631_v50 = vadd.f32 %v1612_v11, %v1556_v23  ;;  %v1632_v1 = vadd.f32 %v1626_v37, %v1570_v46 }
 0x32a   : > { %v1557_v35 = vpop.f32.mrf.mxu2  ;;  %v1571_v38 = vpop.f32.mrf.mxu3 }
 0x32b   : > { %v1558_v61 = vadd.f32 %v1557_v35, %v1521_v52  ;;  %v1572_v53 = vadd.f32 %v1571_v38, %v1535_v24 }
 0x32c   : > { %v1614_v54 = vpop.f32.mrf.mxu0  ;;  %v1628_v44 = vpop.f32.mrf.mxu1 }
 0x32d   : > { %v1633_v59 = vadd.f32 %v1614_v54, %v1558_v61  ;;  %v1634_v55 = vadd.f32 %v1628_v44, %v1572_v53 }
 0x332   : > { %v1673_v60 = vpop.f32.mrf.mxu2  ;;  %v1687_v42 = vpop.f32.mrf.mxu3 }
 0x333   : > { %v1692_v27 = vadd.f32 %v1673_v60, %v1631_v50  ;;  %v1693_v43 = vadd.f32 %v1687_v42, %v1632_v1  ;;  %v2133_v1 = vpop.permute.xlu1 %2132 }
 0x334   : > { %v1718_v56 = vpop.f32.mrf.mxu0  ;;  %v1732_v12 = vpop.f32.mrf.mxu1 }
 0x335   : > { %v1737_v5 = vadd.f32 %v1718_v56, %v1692_v27  ;;  %v1738_v7 = vadd.f32 %v1732_v12, %v1693_v43 }
 0x33a   : > { %v1675_v28 = vpop.f32.mrf.mxu2  ;;  %v1689_v10 = vpop.f32.mrf.mxu3 }
 0x33b   : > { %v1694_v4 = vadd.f32 %v1675_v28, %v1633_v59  ;;  %v1695_v34 = vadd.f32 %v1689_v10, %v1634_v55  ;;  %v2123_v59 = vpop.permute.xlu0 %2122  ;;  %v2128_v27 = vpop.permute.xlu1 %2127 }
 0x33c   : > { %v1720_v36 = vpop.f32.mrf.mxu0  ;;  %v1734_v49 = vpop.f32.mrf.mxu1 }
 0x33d   : > { %v1739_v51 = vadd.f32 %v1720_v36, %v1694_v4  ;;  %v1740_v8 = vadd.f32 %v1734_v49, %v1695_v34 }
 0x342   : > { %v1779_v17 = vpop.f32.mrf.mxu2  ;;  %v1793_v39 = vpop.f32.mrf.mxu3 }
 0x343   : > { %v1798_v20 = vadd.f32 %v1779_v17, %v1737_v5  ;;  %v1799_v21 = vadd.f32 %v1793_v39, %v1738_v7  ;;  %v1993_v39 = vpop.permute.xlu2 %1992 }
 0x344   : > { %v1840_v33 = vpop.f32.mrf.mxu0  ;;  %v1854_v6 = vpop.f32.mrf.mxu1 }
 0x345   : > { %v1859_v9 = vadd.f32 %v1840_v33, %v1798_v20  ;;  %v1860_v11 = vadd.f32 %v1854_v6, %v1799_v21 }
 0x34a   : > { %v1781_v26 = vpop.f32.mrf.mxu2  ;;  %v1795_v0 = vpop.f32.mrf.mxu3 }
 0x34b   : > { %v1800_v16 = vadd.f32 %v1781_v26, %v1739_v51  ;;  %v1801_v52 = vadd.f32 %v1795_v0, %v1740_v8  ;;  %v4630_v26 = vld [vmem:[%s6988_s6 + $0x10] sm:$0xff]  ;;  %v4631_v0 = vld [vmem:[%s6988_s6 + $0x18] sm:$0xff]  ;;  %v6033_v50 = vpop.permute.xlu2 %2137 }
 0x34c   : > { %v1842_v31 = vpop.f32.mrf.mxu0  ;;  %v1856_v22 = vpop.f32.mrf.mxu1 }
 0x34d   : > { %v1861_v37 = vadd.f32 %v1842_v31, %v1800_v16  ;;  %v1862_v35 = vadd.f32 %v1856_v22, %v1801_v52  ;;  %v6035_v22 = vpop.permute.xlu0 %2173  ;;  %v4804_v16 = vld [vmem:[%s5110_s29] sm:$0xff] }
 0x352   : > { %v1901_v3 = vpop.f32.mrf.mxu2  ;;  %v1915_v57 = vpop.f32.mrf.mxu3 }
 0x353   : > { %v1920_v38 = vadd.f32 %v1901_v3, %v1859_v9  ;;  %v1921_v54 = vadd.f32 %v1915_v57, %v1860_v11  ;;  %v2169_v55 = vpop.permute.xlu2 %2168  ;;  %v2197_v57 = vpop.permute.xlu1 %2196 }
 0x354   : > { %v1962_v24 = vpop.f32.mrf.mxu0  ;;  %v1976_v62 = vpop.f32.mrf.mxu1 }
 0x355   : > { %v1981_v12 = vadd.f32 %v1962_v24, %v1920_v38  ;;  %v1982_v28 = vadd.f32 %v1976_v62, %v1921_v54  ;;  %v2159_v21 = vpop.permute.xlu0 %2158  ;;  %v4805_v24 = vld [vmem:[%s5110_s29 + $0x8] sm:$0xff] }
 0x357   : > { %v1995_v23 = vadd.f32 %v1988_v45, %v1981_v12  ;;  %v1996_v46 = vadd.f32 %v1988_v45, %v1982_v28 }
 0x35a   : > { %v1903_v44 = vpop.f32.mrf.mxu2  ;;  %v1917_v60 = vpop.f32.mrf.mxu3 }
 0x35b   : > { %v1922_v42 = vadd.f32 %v1903_v44, %v1861_v37  ;;  %v1923_v56 = vadd.f32 %v1917_v60, %v1862_v35  ;;  %v6037_v4 = vpop.permute.xlu2 %2201  ;;  %v2164_v28 = vpop.permute.xlu1 %2163 }
 0x35c   : > { %v1964_v10 = vpop.f32.mrf.mxu0  ;;  %v1978_v36 = vpop.f32.mrf.mxu1 }
 0x35d   : > { %v1983_v49 = vadd.f32 %v1964_v10, %v1922_v42  ;;  %v1984_v17 = vadd.f32 %v1978_v36, %v1923_v56  ;;  %v4806_v10 = vld [vmem:[%s5110_s29 + $0x10] sm:$0xff] }
 0x35f   : > { %v1997_v33 = vadd.f32 %v1993_v39, %v1983_v49  ;;  %v1998_v6 = vadd.f32 %v1993_v39, %v1984_v17  ;;  %v4807_v49 = vld [vmem:[%s5110_s29 + $0x18] sm:$0xff] }
 0x361   : > { %v2010_v61 = vpack.c.bf16 %v1997_v33, %v1995_v23  ;;  %v2011_v53 = vpack.c.bf16 %v1998_v6, %v1996_v46  ;;  %v2192_v23 = vpop.permute.xlu0 %2191 }
 0x363   : > { %2035 = vmatpush.bf16.msrb.mxu2 %v2010_v61  ;;  %2054 = vmatpush.bf16.msrb.mxu3 %v2011_v53  ;;  %v2187_v9 = vpop.permute.xlu2 %2186 }
 0x366   : > { %4340 = vmatmul.msk.bf16.vlgmr.msrb.gmra.mxu2 %vm1506_vm9, %v4630_v26  ;;  %4342 = vmatmul.msk.bf16.vlgmr.msrb.gmra.mxu3 %vm1506_vm9, %v4630_v26 }
 0x376   : > { %4341 = vmatmul.msk.bf16.gmra.mxu2 %vm1506_vm9, %v4631_v0  ;;  %4343 = vmatmul.msk.bf16.gmra.mxu3 %vm1506_vm9, %v4631_v0 }
 0x379   : > { %v2091_v43 = vpop.f32.mrf.mxu0 }
 0x37a   : > { %v2110_v31 = vpop.f32.mrf.mxu1 }
 0x381   : > { %v2093_v8 = vpop.f32.mrf.mxu0 }
 0x382   : > { %v2112_v20 = vpop.f32.mrf.mxu1 }
 0x389   : > { %v2096_v39 = vpop.f32.mrf.mxu0 }
 0x38a   : > { %v2115_v45 = vpop.f32.mrf.mxu1 }
 0x3e9   : > { %v2037_v34 = vpop.f32.mrf.mxu2  ;;  %v2056_v5 = vpop.f32.mrf.mxu3 }
 0x3ea   : > { %v2092_v7 = vadd.f32 %v2091_v43, %v2037_v34  ;;  %v2111_v3 = vadd.f32 %v2110_v31, %v2056_v5  ;;  %v4808_v31 = vld [vmem:[%s5110_s29 + $0x20] sm:$0xff]  ;;  %v4809_v5 = vld [vmem:[%s5110_s29 + $0x28] sm:$0xff] }
 0x3ec   : > { %v2140_v25 = vadd.f32 %v2123_v59, %v2092_v7  ;;  %v2141_v51 = vadd.f32 %v2123_v59, %v2111_v3 }
 0x3ee   : > { %v2148_v52 = vadd.f32 %v4804_v16, %v2140_v25  ;;  %v2149_v62 = vadd.f32 %v4805_v24, %v2141_v51  ;;  %v2098_v51 = vpop.f32.mrf.mxu0 }
 0x3f0   : > { %v2176_v11 = vmul.f32 %v2159_v21, %v2148_v52  ;;  %v2177_v37 = vmul.f32 %v2159_v21, %v2149_v62 }
 0x3f1   : > { %v2039_v35 = vpop.f32.mrf.mxu2  ;;  %v2058_v38 = vpop.f32.mrf.mxu3 }
 0x3f2   : > { %v6041_v54 = vadd.f32 %v2187_v9, %v2176_v11  ;;  %v6043_v44 = vadd.f32 %v2187_v9, %v2177_v37  ;;  %v2094_v60 = vadd.f32 %v2093_v8, %v2039_v35  ;;  %v2113_v42 = vadd.f32 %v2112_v20, %v2058_v38  ;;  %v4811_v35 = vld [vmem:[%s5110_s29 + $0x38] sm:$0xff] }
 0x3f4   : > { %7058 = vst [vmem:[#allocation11_spill] sm:$0xff] %v6043_v44  ;;  %v2142_v56 = vadd.f32 %v2128_v27, %v2094_v60  ;;  %v2143_v12 = vadd.f32 %v2128_v27, %v2113_v42  ;;  %2271 = vrot.lane.b32.xlu1 %v6043_v44, %s4959_s30  ;;  %2263 = vrot.lane.b32.xlu2 %v6041_v54, %s4959_s30 }
 0x3f6   : > { %v2150_v36 = vadd.f32 %v4806_v10, %v2142_v56  ;;  %v2151_v17 = vadd.f32 %v4807_v49, %v2143_v12 }
 0x3f8   : > { %v2178_v46 = vmul.f32 %v2164_v28, %v2150_v36  ;;  %v2179_v33 = vmul.f32 %v2164_v28, %v2151_v17 }
 0x3f9   : > { %v2042_v6 = vpop.f32.mrf.mxu2  ;;  %v2061_v61 = vpop.f32.mrf.mxu3 }
 0x3fa   : > { %v6051_v53 = vadd.f32 %v2192_v23, %v2178_v46  ;;  %v6053_v26 = vadd.f32 %v2192_v23, %v2179_v33  ;;  %v2097_v0 = vadd.f32 %v2096_v39, %v2042_v6  ;;  %v2116_v59 = vadd.f32 %v2115_v45, %v2061_v61 }
 0x3fc   : > { %7059 = vst [vmem:[#allocation14_spill] sm:$0xff] %v6051_v53  ;;  %v2144_v27 = vadd.f32 %v2133_v1, %v2097_v0  ;;  %v2145_v43 = vadd.f32 %v2133_v1, %v2116_v59  ;;  %2273 = vrot.lane.b32.xlu2 %v6053_v26, %s4959_s30  ;;  %2265 = vrot.lane.b32.xlu0 %v6051_v53, %s4959_s30 }
 0x3fd   : > { %7060 = vst [vmem:[#allocation15_spill] sm:$0xff] %v6053_v26 }
 0x3fe   : > { %v2152_v34 = vadd.f32 %v4808_v31, %v2144_v27  ;;  %v2153_v7 = vadd.f32 %v4809_v5, %v2145_v43 }
 0x400   : > { %v2180_v3 = vmul.f32 %v2169_v55, %v2152_v34  ;;  %v2181_v25 = vmul.f32 %v2169_v55, %v2153_v7  ;;  %v4810_v55 = vld [vmem:[%s5110_s29 + $0x30] sm:$0xff] }
 0x401   : > { %v2044_v8 = vpop.f32.mrf.mxu2  ;;  %v2063_v62 = vpop.f32.mrf.mxu3 }
 0x402   : > { %v6061_v20 = vadd.f32 %v2197_v57, %v2180_v3  ;;  %v6063_v21 = vadd.f32 %v2197_v57, %v2181_v25  ;;  %v2099_v1 = vadd.f32 %v2098_v51, %v2044_v8  ;;  %v2117_v57 = vpop.f32.mrf.mxu1 }
 0x403   : > { %v2118_v11 = vadd.f32 %v2117_v57, %v2063_v62 }
 0x404   : > { %7061 = vst [vmem:[#allocation16_spill] sm:$0xff] %v6061_v20  ;;  %v2146_v16 = vadd.f32 %v6033_v50, %v2099_v1  ;;  %2424 = vrot.lane.b32.xlu2 %v6063_v21, %s7063_s9  ;;  %2275 = vrot.lane.b32.xlu0 %v6063_v21, %s4959_s30 }
 0x405   : > { %7062 = vst [vmem:[#allocation17_spill] sm:$0xff] %v6063_v21  ;;  %2267 = vrot.lane.b32.xlu1 %v6061_v20, %s4959_s30  ;;  %v2147_v37 = vadd.f32 %v6033_v50, %v2118_v11 }
 0x406   : > { %v2154_v52 = vadd.f32 %v4810_v55, %v2146_v16 }
 0x407   : > { %v2155_v38 = vadd.f32 %v4811_v35, %v2147_v37 }
 0x408   : > { %v2182_v24 = vmul.f32 %v6035_v22, %v2154_v52 }
 0x409   : > { %v2183_v60 = vmul.f32 %v6035_v22, %v2155_v38 }
 0x40a   : > { %v6075_v9 = vadd.f32 %v6037_v4, %v2182_v24 }
 0x40b   : > { %v6093_v42 = vadd.f32 %v6037_v4, %v2183_v60 }
 0x40c   : > { %7064 = vst [vmem:[#allocation12_spill] sm:$0xff] %v6075_v9  ;;  %2416 = vrot.lane.b32.xlu0 %v6061_v20, %s7063_s9  ;;  %2269 = vrot.lane.b32.xlu2 %v6075_v9, %s4959_s30 }
 0x40d   : > { %2226 = vrot.lane.b32.xlu1 %v6061_v20, %s7065_s12  ;;  %7066 = vst [vmem:[#allocation13_spill] sm:$0xff] %v6093_v42 }
 0x414   : > { %2234 = vrot.lane.b32.xlu0 %v6063_v21, %s7065_s12  ;;  %2412 = vrot.lane.b32.xlu2 %v6041_v54, %s7063_s9 }
 0x415   : > { %2420 = vrot.lane.b32.xlu1 %v6043_v44, %s7063_s9 }
 0x41c   : > { %2414 = vrot.lane.b32.xlu0 %v6051_v53, %s7063_s9  ;;  %2422 = vrot.lane.b32.xlu2 %v6053_v26, %s7063_s9 }
 0x41d   : > { %2277 = vrot.lane.b32.xlu1 %v6093_v42, %s4959_s30 }
 0x424   : > { %2222 = vrot.lane.b32.xlu0 %v6041_v54, %s7065_s12  ;;  %2230 = vrot.lane.b32.xlu2 %v6043_v44, %s7065_s12 }
 0x425   : > { %2224 = vrot.lane.b32.xlu1 %v6051_v53, %s7065_s12 }
 0x42c   : > { %2232 = vrot.lane.b32.xlu0 %v6053_v26, %s7065_s12  ;;  %2228 = vrot.lane.b32.xlu2 %v6075_v9, %s7065_s12 }
 0x42d   : > { %2519 = vrot.lane.b32.xlu1 %v6061_v20, %s7067_s13 }
 0x434   : > { %2426 = vrot.lane.b32.xlu0 %v6093_v42, %s7063_s9  ;;  %2515 = vrot.lane.b32.xlu2 %v6041_v54, %s7067_s13 }
 0x435   : > { %2418 = vrot.lane.b32.xlu1 %v6075_v9, %s7063_s9 }
 0x43c   : > { %2527 = vrot.lane.b32.xlu0 %v6063_v21, %s7067_s13  ;;  %2525 = vrot.lane.b32.xlu2 %v6053_v26, %s7067_s13 }
 0x43d   : > { %2236 = vrot.lane.b32.xlu1 %v6093_v42, %s7065_s12 }
 0x444   : > { %2517 = vrot.lane.b32.xlu0 %v6051_v53, %s7067_s13  ;;  %2804 = vrot.lane.b32.xlu2 %v6063_v21, %s7068_s16 }
 0x445   : > { %2523 = vrot.lane.b32.xlu1 %v6043_v44, %s7067_s13 }
 0x44c   : > { %2796 = vrot.lane.b32.xlu0 %v6061_v20, %s7068_s16  ;;  %2521 = vrot.lane.b32.xlu2 %v6075_v9, %s7067_s13 }
 0x44d   : > { %2693 = vrot.lane.b32.xlu1 %v6061_v20, %s7069_s22 }
 0x44e   : > { %v2264_v50 = vpop.permute.xlu2 %2263 }
 0x454   : > { %2701 = vrot.lane.b32.xlu0 %v6063_v21, %s7069_s22  ;;  %2792 = vrot.lane.b32.xlu2 %v6041_v54, %s7068_s16 }
 0x455   : > { %2800 = vrot.lane.b32.xlu1 %v6043_v44, %s7068_s16 }
 0x456   : > { %v2274_v22 = vpop.permute.xlu2 %2273 }
 0x45c   : > { %2794 = vrot.lane.b32.xlu0 %v6051_v53, %s7068_s16  ;;  %2802 = vrot.lane.b32.xlu2 %v6053_v26, %s7068_s16 }
 0x45d   : > { %2529 = vrot.lane.b32.xlu1 %v6093_v42, %s7067_s13 }
 0x45e   : > { %v6149_v4 = vpop.permute.xlu2 %2424 }
 0x464   : > { %2689 = vrot.lane.b32.xlu0 %v6041_v54, %s7069_s22  ;;  %2697 = vrot.lane.b32.xlu2 %v6043_v44, %s7069_s22 }
 0x465   : > { %2691 = vrot.lane.b32.xlu1 %v6051_v53, %s7069_s22 }
 0x466   : > { %v2270_v56 = vpop.permute.xlu2 %2269  ;;  %v2272_v28 = vpop.permute.xlu1 %2271 }
 0x467   : > { %v2283_v8 = vsel %vm428_vm0, %v2272_v28, %v2264_v50  ;;  %v2279_v1 = vsel %vm428_vm0, %v2264_v50, %v2272_v28  ;;  %v4634_v50 = vld [vmem:[%s6986_s4 + $0xa0] sm:$0xff]  ;;  %v2215_v28 = vld [vmem:[%s6985_s3 + $0x68] sm:$0xff] }
 0x468   : > { %v2287_v62 = vmul.f32 %v2283_v8, %v5254_v18  ;;  %v2288_v57 = vmul.f32 %v2279_v1, %v5257_v19 }
 0x46c   : > { %2699 = vrot.lane.b32.xlu0 %v6053_v26, %s7069_s22  ;;  %2695 = vrot.lane.b32.xlu2 %v6075_v9, %s7069_s22 }
 0x46d   : > { %3002 = vrot.lane.b32.xlu1 %v6061_v20, %s7040_s11 }
 0x46e   : > { %v2266_v12 = vpop.permute.xlu0 %2265  ;;  %v6163_v10 = vpop.permute.xlu2 %2412 }
 0x46f   : > { %v2280_v43 = vsel %vm428_vm0, %v2266_v12, %v2274_v22  ;;  %v2284_v31 = vsel %vm428_vm0, %v2274_v22, %v2266_v12  ;;  %v2214_v22 = vld [vmem:[%s6985_s3 + $0x60] sm:$0xff] }
 0x470   : > { %v2289_v16 = vmul.f32 %v2284_v31, %v5254_v18  ;;  %v2290_v24 = vmul.f32 %v2280_v43, %v5257_v19 }
 0x472   : > { %v2295_v35 = vpack.c.bf16 %v2289_v16, %v2287_v62  ;;  %v2296_v60 = vpack.c.bf16 %v2290_v24, %v2288_v57 }
 0x474   : > { %2806 = vrot.lane.b32.xlu0 %v6093_v42, %s7068_s16  ;;  %2899 = vrot.lane.b32.xlu2 %v6061_v20, %s7070_s19 }
 0x475   : > { %2798 = vrot.lane.b32.xlu1 %v6075_v9, %s7068_s16 }
 0x476   : > { %v2276_v36 = vpop.permute.xlu0 %2275  ;;  %v6171_v17 = vpop.permute.xlu2 %2422 }
 0x477   : > { %v2268_v49 = vpop.permute.xlu1 %2267 }
 0x478   : > { %v2281_v6 = vsel %vm428_vm0, %v2268_v49, %v2276_v36  ;;  %v2285_v61 = vsel %vm428_vm0, %v2276_v36, %v2268_v49 }
 0x479   : > { %v2291_v7 = vmul.f32 %v2285_v61, %v5254_v18  ;;  %v2292_v3 = vmul.f32 %v2281_v6, %v5257_v19 }
 0x47c   : > { %3010 = vrot.lane.b32.xlu0 %v6063_v21, %s7040_s11  ;;  %3006 = vrot.lane.b32.xlu2 %v6043_v44, %s7040_s11 }
 0x47d   : > { %2703 = vrot.lane.b32.xlu1 %v6093_v42, %s7069_s22 }
 0x47e   : > { %v2417_v39 = vpop.permute.xlu0 %2416  ;;  %v6181_v23 = vpop.permute.xlu2 %2230 }
 0x47f   : > { %v6179_v45 = vpop.permute.xlu1 %2226  ;;  %v2430_v49 = vsel %vm581_vm3, %v2417_v39, %v6149_v4  ;;  %v2434_v6 = vsel %vm581_vm3, %v6149_v4, %v2417_v39  ;;  %v4635_v4 = vld [vmem:[%s6986_s4 + $0xa8] sm:$0xff] }
 0x480   : > { %v2440_v39 = vmul.f32 %v2434_v6, %v5361_v29 }
 0x484   : > { %2998 = vrot.lane.b32.xlu0 %v6041_v54, %s7040_s11  ;;  %3004 = vrot.lane.b32.xlu2 %v6075_v9, %s7040_s11 }
 0x485   : > { %2907 = vrot.lane.b32.xlu1 %v6063_v21, %s7070_s19 }
 0x486   : > { %v6189_v46 = vpop.permute.xlu0 %2234  ;;  %v6203_v0 = vpop.permute.xlu2 %2228 }
 0x487   : > { %v6191_v33 = vpop.permute.xlu1 %2420 }
 0x48c   : > { %3008 = vrot.lane.b32.xlu0 %v6053_v26, %s7040_s11  ;;  %2909 = vrot.lane.b32.xlu2 %v6093_v42, %s7070_s19 }
 0x48d   : > { %3000 = vrot.lane.b32.xlu1 %v6051_v53, %s7040_s11 }
 0x48e   : > { %v2415_v59 = vpop.permute.xlu0 %2414  ;;  %v6233_v38 = vpop.permute.xlu2 %2515 }
 0x48f   : > { %v2278_v27 = vpop.permute.xlu1 %2277  ;;  %v2429_v43 = vsel %vm581_vm3, %v2415_v59, %v6171_v17  ;;  %v2433_v31 = vsel %vm581_vm3, %v6171_v17, %v2415_v59  ;;  %v2428_v17 = vsel %vm581_vm3, %v6163_v10, %v6191_v33  ;;  %v2432_v59 = vsel %vm581_vm3, %v6191_v33, %v6163_v10 }
 0x490   : > { %v2282_v34 = vsel %vm428_vm0, %v2270_v56, %v2278_v27  ;;  %v2286_v5 = vsel %vm428_vm0, %v2278_v27, %v2270_v56  ;;  %v2439_v8 = vmul.f32 %v2429_v43, %v5364_v30  ;;  %v2437_v24 = vmul.f32 %v2428_v17, %v5364_v30 }
 0x491   : > { %v2293_v25 = vmul.f32 %v2286_v5, %v5254_v18  ;;  %v2294_v51 = vmul.f32 %v2282_v34, %v5257_v19  ;;  %v2240_v10 = vsel %vm385_vm1, %v6179_v45, %v6189_v46  ;;  %v2244_v33 = vsel %vm385_vm1, %v6189_v46, %v6179_v45 }
 0x492   : > { %v2250_v6 = vmul.f32 %v2244_v33, %v5298_v47  ;;  %v4633_v33 = vld [vmem:[%s6986_s4 + $0x98] sm:$0xff] }
 0x493   : > { %v2297_v55 = vpack.c.bf16 %v2293_v25, %v2291_v7  ;;  %v2298_v52 = vpack.c.bf16 %v2294_v51, %v2292_v3  ;;  %v2441_v7 = vmul.f32 %v2430_v49, %v5364_v30  ;;  %v2438_v51 = vmul.f32 %v2433_v31, %v5361_v29 }
 0x494   : > { %2901 = vrot.lane.b32.xlu0 %v6075_v9, %s7070_s19  ;;  %2897 = vrot.lane.b32.xlu2 %v6051_v53, %s7070_s19 }
 0x495   : > { %2895 = vrot.lane.b32.xlu1 %v6041_v54, %s7070_s19  ;;  %2326 = vmatpush.bf16.msra.mxu2 %v2297_v55 }
 0x496   : > { %2345 = vmatpush.bf16.msra.mxu3 %v2298_v52  ;;  %v6231_v11 = vpop.permute.xlu0 %2222  ;;  %v6252_v36 = vpop.permute.xlu2 %2525  ;;  %v2436_v52 = vmul.f32 %v2432_v59, %v5361_v29 }
 0x497   : > { %v2225_v37 = vpop.permute.xlu1 %2224 }
 0x499   : > { %2327 = vmatpush.bf16.msra.mxu2 %v2295_v35  ;;  %v2444_v35 = vpack.c.bf16 %v2438_v51, %v2436_v52  ;;  %v4632_v51 = vld [vmem:[%s6986_s4 + $0x90] sm:$0xff] }
 0x49a   : > { %2346 = vmatpush.bf16.msra.mxu3 %v2296_v60  ;;  %v2445_v60 = vpack.c.bf16 %v2439_v8, %v2437_v24  ;;  %v4636_v8 = vld [vmem:[%s6986_s4 + $0xb0] sm:$0xff] }
 0x49c   : > { %4372 = vmatmul.msk.bf16.vlgmr.msra.gmra.mxu2 %vm7071_vm5, %v4634_v50  ;;  %2903 = vrot.lane.b32.xlu0 %v6043_v44, %s7070_s19  ;;  %vm7081_vm5 = vmmov %vm7075_vm2 }
 0x49d   : > { %4374 = vmatmul.msk.bf16.vlgmr.msra.gmra.mxu3 %vm7072_vm7, %v4634_v50  ;;  %3012 = vrot.lane.b32.xlu1 %v6093_v42, %s7040_s11  ;;  %v2620_v50 = vpack.c.bf16 %v6075_v9, %v6061_v20  ;;  %vm7082_vm7 = vmmov %vm7075_vm2 }
 0x49e   : > { %3113 = vperm.xlu2 %4736, %v2214_v22   ;;  %v2233_v56 = vpop.permute.xlu0 %2232  ;;  %v6289_v55 = vpop.permute.xlu2 %2804  ;;  %v2621_v22 = vpack.c.bf16 %v6093_v42, %v6063_v21 }
 0x49f   : > { %v6247_v12 = vpop.permute.xlu1 %2519  ;;  %v2243_v49 = vsel %vm385_vm1, %v2233_v56, %v2225_v37 }
 0x4a4   : > { %3118 = vperm.xlu0 %4737, %v2215_v28   ;;  %v2239_v28 = vsel %vm385_vm1, %v2225_v37, %v2233_v56  ;;  %v2238_v37 = vsel %vm385_vm1, %v6231_v11, %v6181_v23  ;;  %v2242_v56 = vsel %vm385_vm1, %v6181_v23, %v6231_v11  ;;  %v2619_v23 = vpack.c.bf16 %v6053_v26, %v6043_v44 }
 0x4a5   : > { %2905 = vrot.lane.b32.xlu1 %v6053_v26, %s7070_s19  ;;  %v2249_v31 = vmul.f32 %v2239_v28, %v5301_v48 }
 0x4a6   : > { %v2427_v61 = vpop.permute.xlu0 %2426  ;;  %v2522_v11 = vpop.permute.xlu2 %2521 }
 0x4a7   : > { %v2419_v27 = vpop.permute.xlu1 %2418 }
 0x4a8   : > { %v2431_v34 = vsel %vm581_vm3, %v2419_v27, %v2427_v61  ;;  %v2435_v5 = vsel %vm581_vm3, %v2427_v61, %v2419_v27  ;;  %v2251_v61 = vmul.f32 %v2240_v10, %v5301_v48 }
 0x4a9   : > { %v2442_v3 = vmul.f32 %v2435_v5, %v5361_v29  ;;  %v2443_v25 = vmul.f32 %v2431_v34, %v5364_v30 }
 0x4ab   : > { %v2446_v1 = vpack.c.bf16 %v2442_v3, %v2440_v39  ;;  %v2447_v16 = vpack.c.bf16 %v2443_v25, %v2441_v7  ;;  %v2246_v39 = vmul.f32 %v2242_v56, %v5298_v47  ;;  %v2247_v7 = vmul.f32 %v2238_v37, %v5301_v48 }
 0x4ac   : > { %4373 = vmatmul.msk.bf16.gmra.mxu2 %vm7073_vm8, %v4635_v4  ;;  %vm7083_vm8 = vmmov %vm7075_vm2 }
 0x4ad   : > { %4375 = vmatmul.msk.bf16.gmra.mxu3 %vm7074_vm14, %v4635_v4  ;;  %2475 = vmatpush.bf16.msrb.mxu2 %v2446_v1  ;;  %v2618_v4 = vpack.c.bf16 %v6051_v53, %v6041_v54  ;;  %v2255_v59 = vpack.c.bf16 %v2249_v31, %v2247_v7  ;;  %vm7084_vm14 = vmmov %vm7075_vm2 }
 0x4ae   : > { %2494 = vmatpush.bf16.msrb.mxu3 %v2447_v16  ;;  %v2528_v62 = vpop.permute.xlu0 %2527  ;;  %v6349_v52 = vpop.permute.xlu2 %2792 }
 0x4af   : > { %v2237_v57 = vpop.permute.xlu1 %2236 }
 0x4b0   : > { %v2241_v45 = vsel %vm385_vm1, %v6203_v0, %v2237_v57  ;;  %v2245_v46 = vsel %vm385_vm1, %v2237_v57, %v6203_v0  ;;  %v2248_v0 = vmul.f32 %v2243_v49, %v5298_v47  ;;  %v4637_v57 = vld [vmem:[%s6986_s4 + $0xb8] sm:$0xff] }
 0x4b1   : > { %v2252_v27 = vmul.f32 %v2245_v46, %v5298_v47  ;;  %v2253_v43 = vmul.f32 %v2241_v45, %v5301_v48  ;;  %2476 = vmatpush.bf16.msrb.mxu2 %v2444_v35 }
 0x4b2   : > { %2495 = vmatpush.bf16.msrb.mxu3 %v2445_v60  ;;  %v2254_v17 = vpack.c.bf16 %v2248_v0, %v2246_v39  ;;  %v2533_v60 = vsel %vm687_vm4, %v6247_v12, %v2528_v62 }
 0x4b3   : > { %v2256_v34 = vpack.c.bf16 %v2252_v27, %v2250_v6  ;;  %v2257_v5 = vpack.c.bf16 %v2253_v43, %v2251_v61  ;;  %v2544_v27 = vmul.f32 %v2533_v60, %v5425_v2 }
 0x4b5   : > { %2649 = vmatpush.bf16.msra.mxu2 %v2620_v50  ;;  %2380 = vmatpush.bf16.msra.mxu0 %v2256_v34  ;;  %v2537_v50 = vsel %vm687_vm4, %v2528_v62, %v6247_v12 }
 0x4b6   : > { %2668 = vmatpush.bf16.msra.mxu3 %v2621_v22  ;;  %2399 = vmatpush.bf16.msra.mxu1 %v2257_v5  ;;  %v2518_v3 = vpop.permute.xlu0 %2517  ;;  %v2803_v35 = vpop.permute.xlu2 %2802  ;;  %v2543_v61 = vmul.f32 %v2537_v50, %v5422_v63 }
 0x4b7   : > { %v2524_v25 = vpop.permute.xlu1 %2523  ;;  %v2532_v28 = vsel %vm687_vm4, %v2518_v3, %v6252_v36  ;;  %v2536_v49 = vsel %vm687_vm4, %v6252_v36, %v2518_v3  ;;  %v4640_v3 = vld [vmem:[%s6986_s4 + $0xd0] sm:$0xff] }
 0x4b8   : > { %v2531_v46 = vsel %vm687_vm4, %v6233_v38, %v2524_v25  ;;  %v2535_v6 = vsel %vm687_vm4, %v2524_v25, %v6233_v38  ;;  %v2541_v37 = vmul.f32 %v2536_v49, %v5422_v63  ;;  %v2542_v56 = vmul.f32 %v2532_v28, %v5425_v2 }
 0x4b9   : > { %2650 = vmatpush.bf16.msra.mxu2 %v2618_v4  ;;  %2381 = vmatpush.bf16.msra.mxu0 %v2254_v17  ;;  %v2539_v38 = vmul.f32 %v2535_v6, %v5422_v63  ;;  %v2540_v0 = vmul.f32 %v2531_v46, %v5425_v2 }
 0x4ba   : > { %2669 = vmatpush.bf16.msra.mxu3 %v2619_v23  ;;  %2400 = vmatpush.bf16.msra.mxu1 %v2255_v59 }
 0x4bb   : > { %v2547_v7 = vpack.c.bf16 %v2541_v37, %v2539_v38  ;;  %v2548_v23 = vpack.c.bf16 %v2542_v56, %v2540_v0 }
 0x4bc   : > { %4384 = vmatmul.msk.bf16.vlgmr.msra.gmra.mxu0 %vm7075_vm2, %v4632_v51  ;;  %4400 = vmatmul.msk.bf16.vlgmr.msrb.gmra.mxu2 %vm7077_vm13, %v4636_v8  ;;  %vm7086_vm13 = vmmov %vm7075_vm2 }
 0x4bd   : > { %4386 = vmatmul.msk.bf16.vlgmr.msra.gmra.mxu1 %vm7076_vm10, %v4632_v51  ;;  %4402 = vmatmul.msk.bf16.vlgmr.msrb.gmra.mxu3 %vm7078_vm11, %v4636_v8  ;;  %vm7085_vm10 = vmmov %vm7075_vm2 }
 0x4be   : > { %v2797_v1 = vpop.permute.xlu0 %2796  ;;  %v6395_v5 = vpop.permute.xlu2 %2697  ;;  %vm7087_vm11 = vmmov %vm7075_vm2 }
 0x4bf   : > { %v6347_v16 = vpop.permute.xlu1 %2693  ;;  %v2810_v51 = vsel %vm970_vm6, %v2797_v1, %v6289_v55  ;;  %v2814_v8 = vsel %vm970_vm6, %v6289_v55, %v2797_v1  ;;  %v4639_v55 = vld [vmem:[%s6986_s4 + $0xc8] sm:$0xff] }
 0x4c0   : > { %v2820_v1 = vmul.f32 %v2810_v51, %v5509_v13  ;;  %v2821_v46 = vmul.f32 %v2814_v8, %v5512_v15 }
 0x4c6   : > { %v6351_v24 = vpop.permute.xlu0 %2701  ;;  %v2696_v25 = vpop.permute.xlu2 %2695 }
 0x4c7   : > { %v6353_v10 = vpop.permute.xlu1 %2800 }
 0x4cc   : > { %4385 = vmatmul.msk.bf16.gmra.mxu0 %vm7079_vm12, %v4633_v33  ;;  %4401 = vmatmul.msk.bf16.gmra.mxu2 %vm7081_vm5, %v4637_v57  ;;  %vm7088_vm12 = vmmov %vm7075_vm2  ;;  %vm7090_vm5 = vcmp.lt.s32.totalorder %v5234_v14, 127 }
 0x4cd   : > { %4387 = vmatmul.msk.bf16.gmra.mxu1 %vm7080_vm15, %v4633_v33  ;;  %4403 = vmatmul.msk.bf16.gmra.mxu3 %vm7082_vm7, %v4637_v57  ;;  %vm7089_vm15 = vmmov %vm7075_vm2 }
 0x4ce   : > { %v2795_v22 = vpop.permute.xlu0 %2794  ;;  %v6419_v28 = vpop.permute.xlu2 %2899  ;;  %vm7091_vm7 = vmmov %vm7090_vm5 }
 0x4cf   : > { %v2530_v45 = vpop.permute.xlu1 %2529  ;;  %v2809_v60 = vsel %vm970_vm6, %v2795_v22, %v2803_v35  ;;  %v2813_v50 = vsel %vm970_vm6, %v2803_v35, %v2795_v22  ;;  %v4641_v22 = vld [vmem:[%s6986_s4 + $0xd8] sm:$0xff] }
 0x4d0   : > { %v2534_v12 = vsel %vm687_vm4, %v2522_v11, %v2530_v45  ;;  %v2538_v62 = vsel %vm687_vm4, %v2530_v45, %v2522_v11  ;;  %v4638_v11 = vld [vmem:[%s6986_s4 + $0xc0] sm:$0xff] }
 0x4d1   : > { %v2545_v36 = vmul.f32 %v2538_v62, %v5422_v63  ;;  %v2546_v43 = vmul.f32 %v2534_v12, %v5425_v2  ;;  %v2808_v12 = vsel %vm970_vm6, %v6349_v52, %v6353_v10  ;;  %v2812_v62 = vsel %vm970_vm6, %v6353_v10, %v6349_v52 }
 0x4d2   : > { %v2816_v37 = vmul.f32 %v2808_v12, %v5509_v13  ;;  %v2817_v56 = vmul.f32 %v2812_v62, %v5512_v15  ;;  %v2707_v52 = vsel %vm7090_vm5, %v6347_v16, %v6351_v24  ;;  %v2711_v10 = vsel %vm7091_vm7, %v6351_v24, %v6347_v16 }
 0x4d3   : > { %v2549_v31 = vpack.c.bf16 %v2545_v36, %v2543_v61  ;;  %v2550_v34 = vpack.c.bf16 %v2546_v43, %v2544_v27  ;;  %v2818_v61 = vmul.f32 %v2809_v60, %v5509_v13  ;;  %v2819_v27 = vmul.f32 %v2813_v50, %v5512_v15 }
 0x4d4   : > { %v2717_v16 = vmul.f32 %v2707_v52, %v5463_v40  ;;  %v2718_v24 = vmul.f32 %v2711_v10, %v5466_v41 }
 0x4d5   : > { %2578 = vmatpush.bf16.msrb.mxu0 %v2549_v31  ;;  %2597 = vmatpush.bf16.msrb.mxu1 %v2550_v34  ;;  %v2824_v31 = vpack.c.bf16 %v2818_v61, %v2816_v37  ;;  %v2825_v34 = vpack.c.bf16 %v2819_v27, %v2817_v56 }
 0x4d6   : > { %v2690_v4 = vpop.permute.xlu0 %2689 }
 0x4d7   : > { %v2692_v39 = vpop.permute.xlu1 %2691 }
 0x4d9   : > { %2579 = vmatpush.bf16.msrb.mxu0 %v2547_v7  ;;  %2598 = vmatpush.bf16.msrb.mxu1 %v2548_v23 }
 0x4dc   : > { %4416 = vmatmul.msk.bf16.vlgmr.msrb.gmra.mxu0 %vm7083_vm8, %v4638_v11  ;;  %4432 = vmatmul.msk.bf16.vlgmr.msra.gmra.mxu2 %vm7075_vm2, %v4640_v3  ;;  %vm7092_vm8 = vmmov %vm7090_vm5 }
 0x4dd   : > { %4418 = vmatmul.msk.bf16.vlgmr.msrb.gmra.mxu1 %vm7084_vm14, %v4638_v11  ;;  %4434 = vmatmul.msk.bf16.vlgmr.msra.gmra.mxu3 %vm7085_vm10, %v4640_v3  ;;  %vm7093_vm14 = vmmov %vm7090_vm5 }
 0x4de   : > { %v2700_v17 = vpop.permute.xlu0 %2699  ;;  %vm7094_vm2 = vmmov %vm7090_vm5 }
 0x4df   : > { %v6407_v59 = vpop.permute.xlu1 %3002  ;;  %v2706_v7 = vsel %vm7092_vm8, %v2692_v39, %v2700_v17  ;;  %v2710_v23 = vsel %vm7093_vm14, %v2700_v17, %v2692_v39  ;;  %vm7095_vm10 = vmmov %vm7094_vm2  ;;  %v3007_v17 = vpop.permute.xlu2 %3006  ;;  %vm7101_vm8 = vcmp.lt.s32.totalorder %v5234_v14, 112 }
 0x4e0   : > { %vm7099_vm5 = vmmov %vm7088_vm12 }
 0x4e1   : > { %vm7100_vm7 = vmmov %vm7099_vm5 }
 0x4e2   : > { %vm7102_vm14 = vmmov %vm7101_vm8 }
 0x4e6   : > { %v2807_v33 = vpop.permute.xlu0 %2806 }
 0x4e7   : > { %v2799_v57 = vpop.permute.xlu1 %2798 }
 0x4e8   : > { %v2811_v49 = vsel %vm970_vm6, %v2799_v57, %v2807_v33  ;;  %v2815_v45 = vsel %vm970_vm6, %v2807_v33, %v2799_v57  ;;  %v2716_v57 = vmul.f32 %v2710_v23, %v5466_v41 }
 0x4e9   : > { %v2822_v6 = vmul.f32 %v2811_v49, %v5509_v13  ;;  %v2823_v35 = vmul.f32 %v2815_v45, %v5512_v15 }
 0x4eb   : > { %v2826_v36 = vpack.c.bf16 %v2822_v6, %v2820_v1  ;;  %v2827_v43 = vpack.c.bf16 %v2823_v35, %v2821_v46  ;;  %v3005_v35 = vpop.permute.xlu2 %3004 }
 0x4ec   : > { %4417 = vmatmul.msk.bf16.gmra.mxu0 %vm7086_vm13, %v4639_v55  ;;  %4433 = vmatmul.msk.bf16.gmra.mxu2 %vm7088_vm12, %v4641_v22  ;;  %vm7096_vm13 = vmmov %vm7094_vm2 }
 0x4ed   : > { %4419 = vmatmul.msk.bf16.gmra.mxu1 %vm7087_vm11, %v4639_v55  ;;  %4435 = vmatmul.msk.bf16.gmra.mxu3 %vm7089_vm15, %v4641_v22  ;;  %v2705_v33 = vsel %vm7096_vm13, %v2690_v4, %v6395_v5  ;;  %vm7097_vm11 = vmmov %vm7094_vm2 }
 0x4ee   : > { %2855 = vmatpush.bf16.msrb.mxu2 %v2826_v36  ;;  %2874 = vmatpush.bf16.msrb.mxu3 %v2827_v43  ;;  %v3011_v38 = vpop.permute.xlu0 %3010  ;;  %v2709_v39 = vsel %vm7097_vm11, %v6395_v5, %v2690_v4  ;;  %v2713_v49 = vmul.f32 %v2705_v33, %v5463_v40  ;;  %v4642_v5 = vld [vmem:[%s6986_s4 + $0xe0] sm:$0xff]  ;;  %v4644_v4 = vld [vmem:[%s6986_s4 + $0xf0] sm:$0xff]  ;;  %vm7098_vm15 = vmmov %vm7088_vm12 }
 0x4ef   : > { %v2704_v0 = vpop.permute.xlu1 %2703  ;;  %v2714_v45 = vmul.f32 %v2709_v39, %v5466_v41  ;;  %vm7105_vm13 = vmmov %vm7099_vm5  ;;  %v6532_v39 = vld [vmem:[%s6984_s2 + $0x10] ss:$0 sm:$0xff] }
 0x4f0   : > { %v2708_v11 = vsel %vm7094_vm2, %v2696_v25, %v2704_v0  ;;  %v2712_v3 = vsel %vm7095_vm10, %v2704_v0, %v2696_v25  ;;  %v2715_v25 = vmul.f32 %v2706_v7, %v5463_v40  ;;  %vm7103_vm2 = vmmov %vm7101_vm8 }
 0x4f1   : > { %v2719_v51 = vmul.f32 %v2708_v11, %v5463_v40  ;;  %v2720_v8 = vmul.f32 %v2712_v3, %v5466_v41  ;;  %v2722_v6 = vpack.c.bf16 %v2716_v57, %v2714_v45  ;;  %vm7104_vm10 = vmmov %vm7103_vm2 }
 0x4f2   : > { %2856 = vmatpush.bf16.msrb.mxu2 %v2824_v31  ;;  %2875 = vmatpush.bf16.msrb.mxu3 %v2825_v34  ;;  %v2721_v46 = vpack.c.bf16 %v2715_v25, %v2713_v49  ;;  %v4645_v34 = vld [vmem:[%s6986_s4 + $0xf8] sm:$0xff]  ;;  %vm7106_vm11 = vmmov %vm7099_vm5 }
 0x4f3   : > { %v2723_v60 = vpack.c.bf16 %v2719_v51, %v2717_v16  ;;  %v2724_v50 = vpack.c.bf16 %v2720_v8, %v2718_v24  ;;  %v2910_v27 = vpop.permute.xlu2 %2909 }
 0x4f5   : > { %2752 = vmatpush.bf16.msra.mxu0 %v2723_v60  ;;  %2771 = vmatpush.bf16.msra.mxu1 %v2724_v50 }
 0x4f6   : > { %v2999_v55 = vpop.permute.xlu0 %2998 }
 0x4f7   : > { %v2908_v1 = vpop.permute.xlu1 %2907 }
 0x4f8   : > { %v2913_v62 = vsel %vm7101_vm8, %v6419_v28, %v2908_v1  ;;  %v2917_v61 = vsel %vm7102_vm14, %v2908_v1, %v6419_v28  ;;  %v4643_v28 = vld [vmem:[%s6986_s4 + $0xe8] sm:$0xff] }
 0x4f9   : > { %2753 = vmatpush.bf16.msra.mxu0 %v2721_v46  ;;  %2772 = vmatpush.bf16.msra.mxu1 %v2722_v6  ;;  %v2923_v52 = vmul.f32 %v2913_v62, %v5555_v58  ;;  %v2924_v10 = vmul.f32 %v2917_v61, %v7041_v32 }
 0x4fc   : > { %4448 = vmatmul.msk.bf16.vlgmr.msra.gmra.mxu0 %vm7088_vm12, %v4642_v5  ;;  %4464 = vmatmul.msk.bf16.vlgmr.msrb.gmra.mxu2 %vm7099_vm5, %v4644_v4  ;;  %vm7107_vm12 = vmmov %vm7099_vm5 }
 0x4fd   : > { %4450 = vmatmul.msk.bf16.vlgmr.msra.gmra.mxu1 %vm7098_vm15, %v4642_v5  ;;  %4466 = vmatmul.msk.bf16.vlgmr.msrb.gmra.mxu3 %vm7100_vm7, %v4644_v4  ;;  %vm7108_vm15 = vmmov %vm7099_vm5  ;;  %vm7109_vm5 = vcmp.lt.s32.totalorder %v5234_v14, 111 }
 0x4fe   : > { %v3009_v22 = vpop.permute.xlu0 %3008  ;;  %v3016_v11 = vsel %vm7109_vm5, %v6407_v59, %v3011_v38  ;;  %vm7110_vm7 = vmmov %vm7109_vm5 }
 0x4ff   : > { %v3001_v12 = vpop.permute.xlu1 %3000  ;;  %v3020_v3 = vsel %vm7110_vm7, %v3011_v38, %v6407_v59  ;;  %vm7111_vm8 = vmmov %vm7109_vm5  ;;  %v3026_v59 = vmul.f32 %v6532_v39, %v3016_v11  ;;  %v6538_v38 = vld [vmem:[%s6984_s2 + $0x18] ss:$0 sm:$0xff] }
 0x500   : > { %v3015_v24 = vsel %vm7111_vm8, %v3001_v12, %v3009_v22  ;;  %vm7112_vm14 = vmmov %vm7109_vm5  ;;  %v3027_v25 = vmul.f32 %v6538_v38, %v3020_v3  ;;  %vm7121_vm8 = vcmask 261120   ;;  %v4649_v3 = vld [vmem:[%s6986_s4 + $0x118] sm:$0xff] }
 0x501   : > { %v3019_v51 = vsel %vm7112_vm14, %v3009_v22, %v3001_v12  ;;  %v3024_v1 = vmul.f32 %v6532_v39, %v3015_v24  ;;  %vm7122_vm14 = vmmov %vm7121_vm8 }
 0x502   : > { %v3025_v46 = vmul.f32 %v6538_v38, %v3019_v51 }
 0x506   : > { %v2902_v36 = vpop.permute.xlu0 %2901 }
 0x507   : > { %v2914_v43 = vsel %vm7103_vm2, %v2902_v36, %v2910_v27  ;;  %v2918_v37 = vsel %vm7104_vm10, %v2910_v27, %v2902_v36  ;;  %v2896_v56 = vpop.permute.xlu1 %2895  ;;  %vm7113_vm2 = vmmov %vm7109_vm5 }
 0x508   : > { %v2925_v0 = vmul.f32 %v2914_v43, %v5555_v58  ;;  %v2926_v31 = vmul.f32 %v2918_v37, %v7041_v32  ;;  %vm7114_vm10 = vmmov %vm7113_vm2 }
 0x50a   : > { %v2929_v7 = vpack.c.bf16 %v2925_v0, %v2923_v52  ;;  %v2930_v23 = vpack.c.bf16 %v2926_v31, %v2924_v10 }
 0x50c   : > { %4449 = vmatmul.msk.bf16.gmra.mxu0 %vm7105_vm13, %v4643_v28  ;;  %4465 = vmatmul.msk.bf16.gmra.mxu2 %vm7107_vm12, %v4645_v34  ;;  %vm7115_vm13 = vmmov %vm7113_vm2  ;;  %vm7117_vm12 = vcmp.lt.s32.totalorder %v5234_v14, 112 }
 0x50d   : > { %4451 = vmatmul.msk.bf16.gmra.mxu1 %vm7106_vm11, %v4643_v28  ;;  %4467 = vmatmul.msk.bf16.gmra.mxu3 %vm7108_vm15, %v4645_v34  ;;  %v3014_v50 = vsel %vm7115_vm13, %v2999_v55, %v3007_v17  ;;  %vm7116_vm11 = vmmov %vm7113_vm2  ;;  %v4646_v28 = vld [vmem:[%s6986_s4 + $0x100] sm:$0xff] }
 0x50e   : > { %2958 = vmatpush.bf16.msrb.mxu0 %v2929_v7  ;;  %2977 = vmatpush.bf16.msrb.mxu1 %v2930_v23  ;;  %v3018_v49 = vsel %vm7116_vm11, %v3007_v17, %v2999_v55  ;;  %v2904_v45 = vpop.permute.xlu0 %2903  ;;  %v3022_v4 = vmul.f32 %v6532_v39, %v3014_v50  ;;  %vm7118_vm15 = vmmov %vm7117_vm12  ;;  %v2898_v17 = vpop.permute.xlu2 %2897 }
 0x50f   : > { %v3013_v16 = vpop.permute.xlu1 %3012  ;;  %v2911_v22 = vsel %vm7117_vm12, %v2896_v56, %v2904_v45  ;;  %v2915_v12 = vsel %vm7118_vm15, %v2904_v45, %v2896_v56  ;;  %vm7119_vm5 = vmmov %vm7117_vm12  ;;  %v4648_v56 = vld [vmem:[%s6986_s4 + $0x110] sm:$0xff] }
 0x510   : > { %v3017_v8 = vsel %vm7113_vm2, %v3005_v35, %v3013_v16  ;;  %v3021_v33 = vsel %vm7114_vm10, %v3013_v16, %v3005_v35  ;;  %v3023_v35 = vmul.f32 %v6538_v38, %v3018_v49  ;;  %v3030_v62 = vpack.c.bf16 %v3024_v1, %v3022_v4  ;;  %vm7120_vm7 = vmmov %vm7119_vm5  ;;  %v4647_v16 = vld [vmem:[%s6986_s4 + $0x108] sm:$0xff] }
 0x511   : > { %v3028_v57 = vmul.f32 %v6532_v39, %v3017_v8  ;;  %v3029_v60 = vmul.f32 %v6538_v38, %v3021_v33  ;;  %v2919_v27 = vmul.f32 %v2911_v22, %v5555_v58  ;;  %v2920_v37 = vmul.f32 %v2915_v12, %v7041_v32  ;;  %vm7123_vm2 = vmmov %vm7121_vm8 }
 0x512   : > { %v3031_v61 = vpack.c.bf16 %v3025_v46, %v3023_v35  ;;  %vm7124_vm10 = vmmov %vm7123_vm2 }
 0x513   : > { %v3032_v6 = vpack.c.bf16 %v3028_v57, %v3026_v59  ;;  %v3033_v5 = vpack.c.bf16 %v3029_v60, %v3027_v25  ;;  %vm7125_vm13 = vmmov %vm7123_vm2 }
 0x514   : > { %vm7126_vm11 = vmmov %vm7123_vm2 }
 0x515   : > { %3061 = vmatpush.bf16.msra.mxu2 %v3032_v6  ;;  %3080 = vmatpush.bf16.msra.mxu3 %v3033_v5  ;;  %vm7127_vm12 = vmmov %vm7123_vm2 }
 0x516   : > { %vm7128_vm15 = vmmov %vm7123_vm2 }
 0x517   : > { %v2906_v55 = vpop.permute.xlu1 %2905 }
 0x518   : > { %v2912_v36 = vsel %vm7119_vm5, %v2898_v17, %v2906_v55  ;;  %v2916_v43 = vsel %vm7120_vm7, %v2906_v55, %v2898_v17 }
 0x519   : > { %v2921_v52 = vmul.f32 %v2912_v36, %v5555_v58  ;;  %v2922_v10 = vmul.f32 %v2916_v43, %v7041_v32  ;;  %3062 = vmatpush.bf16.msra.mxu2 %v3030_v62  ;;  %3081 = vmatpush.bf16.msra.mxu3 %v3031_v61 }
 0x51b   : > { %v2927_v0 = vpack.c.bf16 %v2921_v52, %v2919_v27  ;;  %v2928_v31 = vpack.c.bf16 %v2922_v10, %v2920_v37 }
 0x51c   : > { %4496 = vmatmul.msk.bf16.vlgmr.msra.gmra.mxu2 %vm7121_vm8, %v4648_v56 }
 0x51d   : > { %4498 = vmatmul.msk.bf16.vlgmr.msra.gmra.mxu3 %vm7122_vm14, %v4648_v56  ;;  %2959 = vmatpush.bf16.msrb.mxu0 %v2927_v0 }
 0x51e   : > { %2978 = vmatpush.bf16.msrb.mxu1 %v2928_v31 }
 0x51f   : > { %v2329_v34 = vpop.f32.mrf.mxu2 }
 0x520   : > { %v2348_v7 = vpop.f32.mrf.mxu3  ;;  %4480 = vmatmul.msk.bf16.vlgmr.msrb.gmra.mxu0 %vm7123_vm2, %v4646_v28 }
 0x521   : > { %4482 = vmatmul.msk.bf16.vlgmr.msrb.gmra.mxu1 %vm7124_vm10, %v4646_v28 }
 0x527   : > { %v2331_v23 = vpop.f32.mrf.mxu2 }
 0x528   : > { %v2350_v11 = vpop.f32.mrf.mxu3 }
 0x52c   : > { %4497 = vmatmul.msk.bf16.gmra.mxu2 %vm7125_vm13, %v4649_v3 }
 0x52d   : > { %4499 = vmatmul.msk.bf16.gmra.mxu3 %vm7126_vm11, %v4649_v3 }
 0x52f   : > { %v2334_v24 = vpop.f32.mrf.mxu2 }
 0x530   : > { %v2353_v51 = vpop.f32.mrf.mxu3  ;;  %4481 = vmatmul.msk.bf16.gmra.mxu0 %vm7127_vm12, %v4647_v16 }
 0x531   : > { %4483 = vmatmul.msk.bf16.gmra.mxu1 %vm7128_vm15, %v4647_v16 }
 0x537   : > { %v2336_v8 = vpop.f32.mrf.mxu2 }
 0x538   : > { %v6583_v33 = vpop.f32.mrf.mxu3 }
 0x539   : > { %v2383_v59 = vpop.f32.mrf.mxu0 }
 0x53a   : > { %v2402_v25 = vpop.f32.mrf.mxu1  ;;  %v2384_v57 = vadd.f32 %v2383_v59, %v2329_v34 }
 0x53b   : > { %v2403_v60 = vadd.f32 %v2402_v25, %v2348_v7 }
 0x53f   : > { %v2478_v50 = vpop.f32.mrf.mxu2 }
 0x540   : > { %v2497_v49 = vpop.f32.mrf.mxu3  ;;  %v2507_v45 = vadd.f32 %v2478_v50, %v2384_v57 }
 0x541   : > { %v2508_v1 = vadd.f32 %v2497_v49, %v2403_v60  ;;  %v2385_v46 = vpop.f32.mrf.mxu0 }
 0x542   : > { %v2404_v6 = vpop.f32.mrf.mxu1 }
 0x547   : > { %v2480_v5 = vpop.f32.mrf.mxu2 }
 0x548   : > { %v2499_v4 = vpop.f32.mrf.mxu3 }
 0x549   : > { %v2388_v35 = vpop.f32.mrf.mxu0 }
 0x54a   : > { %v2407_v22 = vpop.f32.mrf.mxu1  ;;  %v2389_v12 = vadd.f32 %v2388_v35, %v2334_v24 }
 0x54b   : > { %v2408_v17 = vadd.f32 %v2407_v22, %v2353_v51 }
 0x54f   : > { %v2483_v55 = vpop.f32.mrf.mxu2 }
 0x550   : > { %v2502_v62 = vpop.f32.mrf.mxu3  ;;  %v6585_v61 = vadd.f32 %v2483_v55, %v2389_v12 }
 0x551   : > { %v6587_v27 = vadd.f32 %v2502_v62, %v2408_v17  ;;  %v2390_v36 = vpop.f32.mrf.mxu0 }
 0x552   : > { %v6589_v43 = vpop.f32.mrf.mxu1  ;;  %v2391_v22 = vadd.f32 %v2390_v36, %v2336_v8 }
 0x557   : > { %v2485_v37 = vpop.f32.mrf.mxu2 }
 0x558   : > { %v6591_v52 = vpop.f32.mrf.mxu3  ;;  %v2513_v12 = vadd.f32 %v2485_v37, %v2391_v22 }
 0x559   : > { %v2581_v10 = vpop.f32.mrf.mxu0 }
 0x55a   : > { %v2600_v56 = vpop.f32.mrf.mxu1  ;;  %v2610_v0 = vadd.f32 %v2581_v10, %v2507_v45 }
 0x55b   : > { %v2611_v31 = vadd.f32 %v2600_v56, %v2508_v1  ;;  %v2386_v56 = vadd.f32 %v2385_v46, %v2331_v23 }
 0x55f   : > { %v2652_v28 = vpop.f32.mrf.mxu2 }
 0x560   : > { %v2671_v34 = vpop.f32.mrf.mxu3  ;;  %v2681_v7 = vadd.f32 %v2652_v28, %v2610_v0  ;;  %v2405_v0 = vadd.f32 %v2404_v6, %v2350_v11 }
 0x561   : > { %v2682_v3 = vadd.f32 %v2671_v34, %v2611_v31  ;;  %v2583_v16 = vpop.f32.mrf.mxu0  ;;  %v2509_v34 = vadd.f32 %v2480_v5, %v2386_v56 }
 0x562   : > { %v2602_v24 = vpop.f32.mrf.mxu1  ;;  %v2510_v42 = vadd.f32 %v2499_v4, %v2405_v0 }
 0x563   : > { %v2612_v9 = vadd.f32 %v2583_v16, %v2509_v34 }
 0x564   : > { %v2613_v21 = vadd.f32 %v2602_v24, %v2510_v42 }
 0x567   : > { %v2654_v51 = vpop.f32.mrf.mxu2 }
 0x568   : > { %v2673_v59 = vpop.f32.mrf.mxu3  ;;  %v2683_v20 = vadd.f32 %v2654_v51, %v2612_v9 }
 0x569   : > { %v2586_v25 = vpop.f32.mrf.mxu0  ;;  %v2684_v26 = vadd.f32 %v2673_v59, %v2613_v21 }
 0x56a   : > { %v2605_v57 = vpop.f32.mrf.mxu1 }
 0x56b   : > { %v2615_v56 = vadd.f32 %v2605_v57, %v6587_v27 }
 0x56f   : > { %v2657_v60 = vpop.f32.mrf.mxu2 }
 0x570   : > { %v2676_v50 = vpop.f32.mrf.mxu3 }
 0x571   : > { %v2588_v49 = vpop.f32.mrf.mxu0 }
 0x572   : > { %v6593_v35 = vpop.f32.mrf.mxu1  ;;  %v2616_v17 = vadd.f32 %v2588_v49, %v2513_v12 }
 0x577   : > { %v2659_v45 = vpop.f32.mrf.mxu2 }
 0x578   : > { %v6595_v1 = vpop.f32.mrf.mxu3  ;;  %v6597_v55 = vadd.f32 %v2659_v45, %v2616_v17 }
 0x579   : > { %v2755_v62 = vpop.f32.mrf.mxu0 }
 0x57a   : > { %v2774_v10 = vpop.f32.mrf.mxu1  ;;  %v2784_v31 = vadd.f32 %v2755_v62, %v2681_v7 }
 0x57b   : > { %v2785_v28 = vadd.f32 %v2774_v10, %v2682_v3  ;;  %v2614_v10 = vadd.f32 %v2586_v25, %v6585_v61 }
 0x57f   : > { %v2858_v8 = vpop.f32.mrf.mxu2 }
 0x580   : > { %v2877_v36 = vpop.f32.mrf.mxu3  ;;  %v2887_v37 = vadd.f32 %v2858_v8, %v2784_v31  ;;  %v2685_v8 = vadd.f32 %v2657_v60, %v2614_v10 }
 0x581   : > { %v2888_v49 = vadd.f32 %v2877_v36, %v2785_v28  ;;  %v2757_v22 = vpop.f32.mrf.mxu0  ;;  %v2686_v36 = vadd.f32 %v2676_v50, %v2615_v56 }
 0x582   : > { %v2776_v12 = vpop.f32.mrf.mxu1  ;;  %v2786_v17 = vadd.f32 %v2757_v22, %v2683_v20  ;;  %v2410_v22 = vadd.f32 %v6589_v43, %v6583_v33 }
 0x583   : > { %v2787_v45 = vadd.f32 %v2776_v12, %v2684_v26 }
 0x587   : > { %v2860_v53 = vpop.f32.mrf.mxu2 }
 0x588   : > { %v2879_v44 = vpop.f32.mrf.mxu3  ;;  %v2889_v23 = vadd.f32 %v2860_v53, %v2786_v17 }
 0x589   : > { %v2890_v11 = vadd.f32 %v2879_v44, %v2787_v45  ;;  %v2760_v46 = vpop.f32.mrf.mxu0  ;;  %v2514_v45 = vadd.f32 %v6591_v52, %v2410_v22 }
 0x58a   : > { %v2779_v6 = vpop.f32.mrf.mxu1  ;;  %v2788_v12 = vadd.f32 %v2760_v46, %v2685_v8 }
 0x58b   : > { %v2789_v17 = vadd.f32 %v2779_v6, %v2686_v36 }
 0x58f   : > { %v2863_v5 = vpop.f32.mrf.mxu2 }
 0x590   : > { %v2882_v4 = vpop.f32.mrf.mxu3  ;;  %v2891_v61 = vadd.f32 %v2863_v5, %v2788_v12 }
 0x591   : > { %v2762_v7 = vpop.f32.mrf.mxu0  ;;  %v2892_v25 = vadd.f32 %v2882_v4, %v2789_v17 }
 0x592   : > { %v2781_v42 = vpop.f32.mrf.mxu1  ;;  %v2790_v33 = vadd.f32 %v2762_v7, %v6597_v55 }
 0x597   : > { %v2865_v9 = vpop.f32.mrf.mxu2 }
 0x598   : > { %v2884_v21 = vpop.f32.mrf.mxu3  ;;  %v2893_v6 = vadd.f32 %v2865_v9, %v2790_v33 }
 0x59d   : > { %v2961_v3 = vpop.f32.mrf.mxu0 }
 0x59e   : > { %v2980_v16 = vpop.f32.mrf.mxu1  ;;  %v2990_v24 = vadd.f32 %v2961_v3, %v2887_v37 }
 0x59f   : > { %v2991_v51 = vadd.f32 %v2980_v16, %v2888_v49  ;;  %v3064_v59 = vpop.f32.mrf.mxu2 }
 0x5a0   : > { %v3083_v62 = vpop.f32.mrf.mxu3  ;;  %v6599_v20 = vadd.f32 %v3064_v59, %v2990_v24  ;;  %v3114_v59 = vpop.permute.xlu2 %3113 }
 0x5a1   : > { %v6601_v26 = vadd.f32 %v3083_v62, %v2991_v51 }
 0x5a5   : > { %v2963_v53 = vpop.f32.mrf.mxu0 }
 0x5a6   : > { %v2982_v44 = vpop.f32.mrf.mxu1  ;;  %v2992_v0 = vadd.f32 %v2963_v53, %v2889_v23  ;;  %v2617_v23 = vadd.f32 %v6593_v35, %v2514_v45 }
 0x5a7   : > { %v2993_v31 = vadd.f32 %v2982_v44, %v2890_v11  ;;  %v3066_v28 = vpop.f32.mrf.mxu2 }
 0x5a8   : > { %v3085_v34 = vpop.f32.mrf.mxu3  ;;  %v6605_v37 = vadd.f32 %v3066_v28, %v2992_v0  ;;  %v2688_v16 = vadd.f32 %v6595_v1, %v2617_v23 }
 0x5a9   : > { %v6607_v49 = vadd.f32 %v3085_v34, %v2993_v31 }
 0x5aa   : > { %v2791_v43 = vadd.f32 %v2781_v42, %v2688_v16  ;;  %v3119_v42 = vpop.permute.xlu0 %3118 }
 0x5ac   : > { %v2894_v5 = vadd.f32 %v2884_v21, %v2791_v43 }
 0x5ad   : > { %v2966_v27 = vpop.f32.mrf.mxu0 }
 0x5ae   : > { %v2985_v57 = vpop.f32.mrf.mxu1  ;;  %v2994_v11 = vadd.f32 %v2966_v27, %v2891_v61 }
 0x5af   : > { %v2995_v60 = vadd.f32 %v2985_v57, %v2892_v25  ;;  %v3069_v50 = vpop.f32.mrf.mxu2 }
 0x5b0   : > { %v3088_v3 = vpop.f32.mrf.mxu3  ;;  %v3097_v24 = vadd.f32 %v3069_v50, %v2994_v11 }
 0x5b1   : > { %v3098_v51 = vadd.f32 %v3088_v3, %v2995_v60 }
 0x5b2   : > { %v6615_v46 = vadd.f32 %v3114_v59, %v3097_v24 }
 0x5b3   : > { %v6617_v52 = vadd.f32 %v3114_v59, %v3098_v51 }
 0x5b4   : > { %v4504_v35 = vmul.f32 -1.442695, %v6615_v46 }
 0x5b5   : > { %v4505_v4 = vmul.f32 -1.442695, %v6617_v52  ;;  %v2968_v62 = vpop.f32.mrf.mxu0 }
 0x5b6   : > { %v2987_v53 = vpop.f32.mrf.mxu1  ;;  %4772 = vpow2.f32 %v4504_v35  ;;  %v2996_v1 = vadd.f32 %v2968_v62, %v2893_v6 }
 0x5b7   : > { %v2997_v44 = vadd.f32 %v2987_v53, %v2894_v5  ;;  %4774 = vpow2.f32 %v4505_v4  ;;  %v3071_v10 = vpop.f32.mrf.mxu2 }
 0x5b8   : > { %v3090_v56 = vpop.f32.mrf.mxu3  ;;  %v3099_v55 = vadd.f32 %v3071_v10, %v2996_v1 }
 0x5b9   : > { %v3100_v7 = vadd.f32 %v3090_v56, %v2997_v44 }
 0x5ba   : > { %v6621_v0 = vadd.f32 %v3119_v42, %v3099_v55 }
 0x5bb   : > { %v6623_v31 = vadd.f32 %v3119_v42, %v3100_v7 }
 0x5bc   : > { %v4773_v9 = vpop.eup %4772  ;;  %v4506_v21 = vmul.f32 -1.442695, %v6621_v0 }
 0x5bd   : > { %v4775_v28 = vpop.eup %4774  ;;  %v3157_v34 = vadd.f32 1.0, %v4773_v9  ;;  %v4507_v8 = vmul.f32 -1.442695, %v6623_v31 }
 0x5be   : > { %v3158_v36 = vadd.f32 1.0, %v4775_v28  ;;  %4776 = vpow2.f32 %v4506_v21 }
 0x5bf   : > { %4778 = vrcp.f32 %v3157_v34  ;;  %v3230_v11 = vand.u32 2147483647, %v3157_v34  ;;  %v3232_v60 = vand.u32 2147483648, %v3157_v34  ;;  %vm3226_vm8 = vweird.f32 %v3157_v34 }
 0x5c0   : > { %4780 = vrcp.f32 %v3158_v36  ;;  %v3247_v16 = vand.u32 2147483648, %v3158_v36  ;;  %v3245_v51 = vand.u32 2147483647, %v3158_v36  ;;  %vm3241_vm2 = vweird.f32 %v3158_v36 }
 0x5c1   : > { %4782 = vpow2.f32 %v4507_v8  ;;  %v3233_v43 = vor.u32 1.1754944e-38, %v3232_v60  ;;  %vm3231_vm10 = vcmp.eq.f32.partialorder %v3230_v11, 8.507059e+37  ;;  %v2217_v11 = vld [vmem:[%s6985_s3 + $0x78] sm:$0xff] }
 0x5c2   : > { %v3248_v35 = vor.u32 1.1754944e-38, %v3247_v16  ;;  %vm3246_vm11 = vcmp.eq.f32.partialorder %v3245_v51, 8.507059e+37  ;;  %v2220_v16 = vld [vmem:[%s6985_s3 + $0x90] sm:$0xff]  ;;  %v2221_v51 = vld [vmem:[%s6985_s3 + $0x98] sm:$0xff] }
 0x5c4   : > { %v4777_v22 = vpop.eup %4776 }
 0x5c5   : > { %v4779_v12 = vpop.eup %4778  ;;  %v6627_v17 = vadd.f32 1.0, %v4777_v22 }
 0x5c6   : > { %v4781_v45 = vpop.eup %4780  ;;  %v3222_v61 = vmul.f32 %v4779_v12, %v3157_v34  ;;  %vm3227_vm5 = vweird.f32 %v4779_v12 }
 0x5c7   : > { %v4783_v25 = vpop.eup %4782  ;;  %v3237_v27 = vmul.f32 %v4781_v45, %v3158_v36  ;;  %4784 = vrcp.f32 %v6627_v17  ;;  %vm3242_vm7 = vweird.f32 %v4781_v45  ;;  %vm3228_vm14 = vmor %vm3226_vm8, %vm3227_vm5  ;;  %vm3256_vm5 = vweird.f32 %v6627_v17 }
 0x5c8   : > { %v3223_v57 = vsub.f32 1.0, %v3222_v61  ;;  %v3160_v23 = vadd.f32 1.0, %v4783_v25  ;;  %vm3243_vm13 = vmor %vm3241_vm2, %vm3242_vm7  ;;  %v3260_v8 = vand.u32 2147483647, %v6627_v17 }
 0x5c9   : > { %v3238_v50 = vsub.f32 1.0, %v3237_v27 }
 0x5ca   : > { %v3224_v3 = vmul.f32 %v4779_v12, %v3223_v57  ;;  %4786 = vrcp.f32 %v3160_v23  ;;  %v3277_v34 = vand.u32 2147483648, %v3160_v23  ;;  %vm3271_vm8 = vweird.f32 %v3160_v23 }
 0x5cb   : > { %v3239_v24 = vmul.f32 %v4781_v45, %v3238_v50  ;;  %v3275_v36 = vand.u32 2147483647, %v3160_v23  ;;  %vm3261_vm2 = vcmp.eq.f32.partialorder %v3260_v8, 8.507059e+37  ;;  %v2218_v50 = vld [vmem:[%s6985_s3 + $0x80] sm:$0xff] }
 0x5cc   : > { %v3225_v59 = vadd.f32 %v4779_v12, %v3224_v3  ;;  %v3278_v61 = vor.u32 1.1754944e-38, %v3277_v34  ;;  %v2219_v3 = vld [vmem:[%s6985_s3 + $0x88] sm:$0xff] }
 0x5cd   : > { %v4785_v33 = vpop.eup %4784  ;;  %v3240_v6 = vadd.f32 %v4781_v45, %v3239_v24 }
 0x5ce   : > { %v3229_v5 = vsel %vm3228_vm14, %v4779_v12, %v3225_v59  ;;  %v3252_v4 = vmul.f32 %v4785_v33, %v6627_v17  ;;  %vm3257_vm12 = vweird.f32 %v4785_v33 }
 0x5cf   : > { %v3234_v62 = vsel %vm3231_vm10, %v3233_v43, %v3229_v5  ;;  %v3244_v53 = vsel %vm3243_vm13, %v4781_v45, %v3240_v6  ;;  %vm3258_vm7 = vmor %vm3256_vm5, %vm3257_vm12  ;;  %vm3276_vm10 = vcmp.eq.f32.partialorder %v3275_v36, 8.507059e+37 }
 0x5d0   : > { %v4787_v1 = vpop.eup %4786  ;;  %v6632_v44 = vmul.f32 %v3234_v62, %v6615_v46  ;;  %v3249_v10 = vsel %vm3246_vm11, %v3248_v35, %v3244_v53  ;;  %v3253_v56 = vsub.f32 1.0, %v3252_v4 }
 0x5d1   : > { %v6635_v55 = vmul.f32 %v3249_v10, %v6617_v52  ;;  %v3267_v7 = vmul.f32 %v4787_v1, %v3160_v23  ;;  %vm3272_vm15 = vweird.f32 %v4787_v1  ;;  %v3262_v52 = vand.u32 2147483648, %v6627_v17  ;;  %v2216_v23 = vld [vmem:[%s6985_s3 + $0x70] sm:$0xff] }
 0x5d2   : > { %v3254_v42 = vmul.f32 %v4785_v33, %v3253_v56  ;;  %3403 = vrot.lane.b32.xlu2 %v6632_v44, %s7063_s9  ;;  %3310 = vrot.lane.b32.xlu1 %v6632_v44, %s4959_s30  ;;  %vm3273_vm14 = vmor %vm3271_vm8, %vm3272_vm15  ;;  %vm7137_vm15 = vcmp.lt.s32.totalorder %v5234_v14, 112 }
 0x5d3   : > { %v3268_v9 = vsub.f32 1.0, %v3267_v7  ;;  %3314 = vrot.lane.b32.xlu0 %v6635_v55, %s4959_s30  ;;  %v3263_v45 = vor.u32 1.1754944e-38, %v3262_v52  ;;  %vm7138_vm5 = vmmov %vm7137_vm15 }
 0x5d4   : > { %v3255_v21 = vadd.f32 %v4785_v33, %v3254_v42  ;;  %vm7140_vm8 = vmmov %vm7138_vm5 }
 0x5d5   : > { %v3269_v46 = vmul.f32 %v4787_v1, %v3268_v9 }
 0x5d6   : > { %v3259_v22 = vsel %vm3258_vm7, %v4785_v33, %v3255_v21  ;;  %vm7139_vm7 = vmmov %vm7138_vm5 }
 0x5d7   : > { %v3270_v28 = vadd.f32 %v4787_v1, %v3269_v46  ;;  %v3264_v25 = vsel %vm3261_vm2, %v3263_v45, %v3259_v22 }
 0x5d8   : > { %v6653_v27 = vmul.f32 %v3264_v25, %v6621_v0  ;;  %v2212_v0 = vld [vmem:[%s6985_s3 + $0x50] sm:$0xff] }
 0x5d9   : > { %v3274_v12 = vsel %vm3273_vm14, %v4787_v1, %v3270_v28 }
 0x5da   : > { %3293 = vrot.lane.b32.xlu2 %v6635_v55, %s7065_s12  ;;  %3407 = vrot.lane.b32.xlu1 %v6635_v55, %s7063_s9  ;;  %v3279_v17 = vsel %vm3276_vm10, %v3278_v61, %v3274_v12 }
 0x5db   : > { %3289 = vrot.lane.b32.xlu0 %v6632_v44, %s7065_s12  ;;  %v6656_v57 = vmul.f32 %v3279_v17, %v6623_v31  ;;  %v2213_v31 = vld [vmem:[%s6985_s3 + $0x58] sm:$0xff] }
 0x5e2   : > { %3316 = vrot.lane.b32.xlu1 %v6656_v57, %s4959_s30  ;;  %3312 = vrot.lane.b32.xlu2 %v6653_v27, %s4959_s30 }
 0x5e3   : > { %3405 = vrot.lane.b32.xlu0 %v6653_v27, %s7063_s9 }
 0x5ea   : > { %3464 = vrot.lane.b32.xlu1 %v6632_v44, %s7067_s13  ;;  %3409 = vrot.lane.b32.xlu2 %v6656_v57, %s7063_s9  ;;  %s7148_s9 = sshll.u32 %s5104_s23, 6 }
 0x5eb   : > { %3295 = vrot.lane.b32.xlu0 %v6656_v57, %s7065_s12 }
 0x5f2   : > { %3291 = vrot.lane.b32.xlu1 %v6653_v27, %s7065_s12  ;;  %3631 = vrot.lane.b32.xlu2 %v6632_v44, %s7068_s16  ;;  %s6925_s12 = scalar_lea.vmem [#allocation7], %s7148_s9  ;;  %s4902_s9 = scalar_lea.hbm %s6989_s7, 128 }
 0x5f3   : > { %3468 = vrot.lane.b32.xlu0 %v6635_v55, %s7067_s13  ;;  %s4015_s14 = sshll.u32 %s6925_s12, 4  ;;  %s4016_s14 = int_to_ptr.vmem [resolvable:$true] %s4015_s14 }
 0x5fa   : > { %3635 = vrot.lane.b32.xlu1 %v6635_v55, %s7068_s16  ;;  %3574 = vrot.lane.b32.xlu2 %v6635_v55, %s7069_s22 }
 0x5fb   : > { %3570 = vrot.lane.b32.xlu0 %v6632_v44, %s7069_s22 }
 0x602   : > { %3470 = vrot.lane.b32.xlu1 %v6656_v57, %s7067_s13  ;;  %3466 = vrot.lane.b32.xlu2 %v6653_v27, %s7067_s13  ;;  %s4663_s13 = sshll.u32 %s5030_s28, 6 }
 0x603   : > { %3633 = vrot.lane.b32.xlu0 %v6653_v27, %s7068_s16 }
 0x60a   : > { %3753 = vrot.lane.b32.xlu1 %v6632_v44, %s7040_s11  ;;  %3637 = vrot.lane.b32.xlu2 %v6656_v57, %s7068_s16 }
 0x60b   : > { %3576 = vrot.lane.b32.xlu0 %v6656_v57, %s7069_s22 }
 0x612   : > { %3572 = vrot.lane.b32.xlu1 %v6653_v27, %s7069_s22  ;;  %3692 = vrot.lane.b32.xlu2 %v6632_v44, %s7070_s19 }
 0x613   : > { %3757 = vrot.lane.b32.xlu0 %v6635_v55, %s7040_s11 }
 0x61a   : > { %3759 = vrot.lane.b32.xlu1 %v6656_v57, %s7040_s11  ;;  %3755 = vrot.lane.b32.xlu2 %v6653_v27, %s7040_s11  ;;  %s4014_s11 = scalar_lea.hbm %s6989_s7, %s4663_s13 }
 0x61b   : > { %3694 = vrot.lane.b32.xlu0 %v6653_v27, %s7070_s19  ;;  %s4017_s28 = sshll.u32 %s4014_s11, 4  ;;  %s4018_s28 = int_to_ptr.hbm [resolvable:$true] %s4017_s28 }
 0x61c   : > { %s4896_s5 = sshra.s32 %s4018_s28, 4  ;;  %s4897_s5 = int_to_ptr.hbm [resolvable:$true] %s4896_s5 }
 0x61d   : > { %s4898_s17 = scalar_lea.hbm %s4897_s5, 64  ;;  %p4903_p9 = scmp.lt.s32.totalorder %s4897_s5, %s6989_s7 }
 0x61e   : > { %p4899_p4 = scmp.ne.s32.totalorder %s4897_s5, %s4898_s17  ;;  %p4904_p2 = scmp.lt.s32.totalorder %s4902_s9, %s4898_s17 }
 0x620   : > { %p4900_p8 = pnand %p4899_p4, %p5076_p7  ;;  %p4905_p10 = por %p4904_p2, %p4903_p9 }
 0x622   : > { %3696 = vrot.lane.b32.xlu1 %v6635_v55, %s7070_s19  ;;  %3698 = vrot.lane.b32.xlu2 %v6656_v57, %s7070_s19  ;;  %p4901_p11 = pneg %p4900_p8 }
 0x623   : > { %3103 = vperm.xlu0 %4737, %v2212_v0   ;;  %v4651_v0 = vld [vmem:[#allocation5 + $0x50] sm:$0xff] }
 0x624   : > { %p4906_p12 = pnand %p4905_p10, %p4901_p11 }
 0x62a   : > { %3108 = vperm.xlu1 %4735, %v2213_v31   ;;  %3816 = vperm.xlu2 %4736, %v2216_v23   ;;  %v3526_v31 = vpack.c.bf16 %v6656_v57, %v6635_v55  ;;  %v4652_v23 = vld [vmem:[#allocation5 + $0x58] sm:$0xff] }
 0x62b   : > { %3821 = vperm.xlu0 %4737, %v2217_v11  }
 0x62c   : > { %v3404_v60 = vpop.permute.xlu2 %3403 }
 0x632   : > { %3952 = vperm.xlu1 %4735, %v2218_v50   ;;  %3957 = vperm.xlu2 %4736, %v2219_v3  }
 0x633   : > { %3962 = vperm.xlu0 %4737, %v2220_v16  }
 0x634   : > { %v3294_v24 = vpop.permute.xlu2 %3293 }
 0x63a   : > { %3967 = vperm.xlu1 %4735, %v2221_v51  }
 0x63c   : > { %v3313_v59 = vpop.permute.xlu2 %3312 }
 0x644   : > { %v3311_v33 = vpop.permute.xlu1 %3310  ;;  %v3410_v6 = vpop.permute.xlu2 %3409 }
 0x645   : > { %v3315_v43 = vpop.permute.xlu0 %3314 }
 0x646   : > { %v3318_v4 = vsel %vm428_vm0, %v3311_v33, %v3315_v43  ;;  %v3320_v62 = vsel %vm428_vm0, %v3315_v43, %v3311_v33 }
 0x647   : > { %v3322_v7 = vmul.f32 %v3320_v62, %v5254_v18  ;;  %v3323_v42 = vmul.f32 %v3318_v4, %v5257_v19 }
 0x64c   : > { %v3408_v5 = vpop.permute.xlu1 %3407  ;;  %v6742_v10 = vpop.permute.xlu2 %3631 }
 0x64d   : > { %v3290_v35 = vpop.permute.xlu0 %3289  ;;  %v3411_v53 = vsel %vm581_vm3, %v3404_v60, %v3408_v5  ;;  %v3413_v1 = vsel %vm581_vm3, %v3408_v5, %v3404_v60  ;;  %v4654_v5 = vld [vmem:[#allocation5 + $0x68] sm:$0xff] }
 0x64e   : > { %v3415_v36 = vmul.f32 %v3413_v1, %v5361_v29  ;;  %v3416_v22 = vmul.f32 %v3411_v53, %v5364_v30  ;;  %v3299_v55 = vsel %vm385_vm1, %v3294_v24, %v3290_v35 }
 0x64f   : > { %v3301_v3 = vmul.f32 %v3299_v55, %v5298_v47 }
 0x654   : > { %v3317_v56 = vpop.permute.xlu1 %3316  ;;  %v6766_v11 = vpop.permute.xlu2 %3574 }
 0x655   : > { %v3319_v9 = vsel %vm428_vm0, %v3313_v59, %v3317_v56  ;;  %v3321_v46 = vsel %vm428_vm0, %v3317_v56, %v3313_v59  ;;  %v3406_v21 = vpop.permute.xlu0 %3405  ;;  %vm7129_vm0 = vcmp.lt.s32.totalorder %v5234_v14, 127 }
 0x656   : > { %v3324_v52 = vmul.f32 %v3321_v46, %v5254_v18  ;;  %v3325_v28 = vmul.f32 %v3319_v9, %v5257_v19  ;;  %v3412_v34 = vsel %vm581_vm3, %v3406_v21, %v3410_v6  ;;  %v3414_v8 = vsel %vm581_vm3, %v3410_v6, %v3406_v21  ;;  %vm7131_vm3 = vmmov %vm7129_vm0 }
 0x657   : > { %v3417_v12 = vmul.f32 %v3414_v8, %v5361_v29  ;;  %v3418_v45 = vmul.f32 %v3412_v34, %v5364_v30  ;;  %v3525_v19 = vpack.c.bf16 %v6653_v27, %v6632_v44  ;;  %v3297_v44 = vsel %vm385_vm1, %v3290_v35, %v3294_v24  ;;  %v4650_v24 = vld [vmem:[#allocation5 + $0x48] sm:$0xff] }
 0x658   : > { %v3326_v61 = vpack.c.bf16 %v3324_v52, %v3322_v7  ;;  %v3327_v25 = vpack.c.bf16 %v3325_v28, %v3323_v42  ;;  %v3302_v16 = vmul.f32 %v3297_v44, %v5301_v48 }
 0x659   : > { %v3419_v17 = vpack.c.bf16 %v3417_v12, %v3415_v36  ;;  %v3420_v18 = vpack.c.bf16 %v3418_v45, %v3416_v22 }
 0x65a   : > { %3346 = vmatpush.bf16.msra.mxu0 %v3326_v61  ;;  %3360 = vmatpush.bf16.msra.mxu1 %v3327_v25 }
 0x65b   : > { %3439 = vmatpush.bf16.msrb.mxu2 %v3419_v17  ;;  %3453 = vmatpush.bf16.msrb.mxu3 %v3420_v18  ;;  %v4653_v17 = vld [vmem:[#allocation5 + $0x60] sm:$0xff] }
 0x65c   : > { %v3465_v29 = vpop.permute.xlu1 %3464  ;;  %v3467_v33 = vpop.permute.xlu2 %3466 }
 0x65d   : > { %v3296_v30 = vpop.permute.xlu0 %3295  ;;  %4512 = vmatmul.msk.bf16.vlgmr.msra.gmra.mxu0 %vm1506_vm9, %v4651_v0  ;;  %4513 = vmatmul.msk.bf16.vlgmr.msra.gmra.mxu1 %vm1506_vm9, %v4651_v0 }
 0x65e   : > { %4524 = vmatmul.msk.bf16.vlgmr.msrb.gmra.mxu2 %vm1506_vm9, %v4652_v23  ;;  %4525 = vmatmul.msk.bf16.vlgmr.msrb.gmra.mxu3 %vm1506_vm9, %v4652_v23 }
 0x65f   : > { %3545 = vmatpush.bf16.msra.mxu2 %v3525_v19  ;;  %3559 = vmatpush.bf16.msra.mxu3 %v3526_v31 }
 0x664   : > { %v3292_v27 = vpop.permute.xlu1 %3291  ;;  %v3638_v62 = vpop.permute.xlu2 %3637 }
 0x665   : > { %v3298_v57 = vsel %vm385_vm1, %v3292_v27, %v3296_v30  ;;  %v3300_v60 = vsel %vm385_vm1, %v3296_v30, %v3292_v27  ;;  %v3469_v50 = vpop.permute.xlu0 %3468  ;;  %vm7130_vm1 = vmmov %vm7129_vm0 }
 0x666   : > { %v3303_v51 = vmul.f32 %v3300_v60, %v5298_v47  ;;  %v3304_v59 = vmul.f32 %v3298_v57, %v5301_v48  ;;  %v3472_v47 = vsel %vm687_vm4, %v3465_v29, %v3469_v50  ;;  %v3474_v48 = vsel %vm687_vm4, %v3469_v50, %v3465_v29 }
 0x667   : > { %v3476_v7 = vmul.f32 %v3474_v48, %v5422_v63  ;;  %v3477_v42 = vmul.f32 %v3472_v47, %v5425_v2 }
 0x668   : > { %v3305_v43 = vpack.c.bf16 %v3303_v51, %v3301_v3  ;;  %v3306_v6 = vpack.c.bf16 %v3304_v59, %v3302_v16 }
 0x66a   : > { %3382 = vmatpush.bf16.msrb.mxu0 %v3305_v43  ;;  %3396 = vmatpush.bf16.msrb.mxu1 %v3306_v6 }
 0x66c   : > { %v3636_v35 = vpop.permute.xlu1 %3635  ;;  %v3693_v18 = vpop.permute.xlu2 %3692 }
 0x66d   : > { %v3571_v4 = vpop.permute.xlu0 %3570  ;;  %4518 = vmatmul.msk.bf16.vlgmr.msrb.gmra.mxu0 %vm1506_vm9, %v4650_v24  ;;  %4519 = vmatmul.msk.bf16.vlgmr.msrb.gmra.mxu1 %vm1506_vm9, %v4650_v24  ;;  %v3639_v53 = vsel %vm970_vm6, %v6742_v10, %v3636_v35  ;;  %v3641_v1 = vsel %vm970_vm6, %v3636_v35, %v6742_v10 }
 0x66e   : > { %4536 = vmatmul.msk.bf16.vlgmr.msra.gmra.mxu2 %vm1506_vm9, %v4654_v5  ;;  %4537 = vmatmul.msk.bf16.vlgmr.msra.gmra.mxu3 %vm1506_vm9, %v4654_v5  ;;  %v3643_v8 = vmul.f32 %v3639_v53, %v5509_v13  ;;  %v3644_v36 = vmul.f32 %v3641_v1, %v5512_v15 }
 0x674   : > { %v3471_v56 = vpop.permute.xlu1 %3470  ;;  %v3756_v27 = vpop.permute.xlu2 %3755 }
 0x675   : > { %v3473_v9 = vsel %vm687_vm4, %v3467_v33, %v3471_v56  ;;  %v3475_v46 = vsel %vm687_vm4, %v3471_v56, %v3467_v33  ;;  %v3634_v21 = vpop.permute.xlu0 %3633  ;;  %vm7132_vm4 = vmmov %vm7129_vm0 }
 0x676   : > { %v3478_v52 = vmul.f32 %v3475_v46, %v5422_v63  ;;  %v3479_v28 = vmul.f32 %v3473_v9, %v5425_v2  ;;  %v3640_v34 = vsel %vm970_vm6, %v3634_v21, %v3638_v62  ;;  %v3642_v10 = vsel %vm970_vm6, %v3638_v62, %v3634_v21  ;;  %v4656_v2 = vld [vmem:[#allocation5 + $0x78] sm:$0xff]  ;;  %v4658_v62 = vld [vmem:[#allocation5 + $0x88] sm:$0xff] }
 0x677   : > { %v3645_v22 = vmul.f32 %v3640_v34, %v5509_v13  ;;  %v3646_v12 = vmul.f32 %v3642_v10, %v5512_v15  ;;  %v3578_v13 = vsel %vm7129_vm0, %v3571_v4, %v6766_v11  ;;  %v3580_v15 = vsel %vm7130_vm1, %v6766_v11, %v3571_v4  ;;  %v4655_v11 = vld [vmem:[#allocation5 + $0x70] sm:$0xff] }
 0x678   : > { %v3480_v45 = vpack.c.bf16 %v3478_v52, %v3476_v7  ;;  %v3481_v61 = vpack.c.bf16 %v3479_v28, %v3477_v42  ;;  %v3582_v44 = vmul.f32 %v3578_v13, %v5463_v40  ;;  %v3583_v55 = vmul.f32 %v3580_v15, %v5466_v41 }
 0x679   : > { %v3647_v25 = vpack.c.bf16 %v3645_v22, %v3643_v8  ;;  %v3648_v63 = vpack.c.bf16 %v3646_v12, %v3644_v36  ;;  %vm7133_vm6 = vcmp.lt.s32.totalorder %v5234_v14, 111  ;;  %v4657_v8 = vld [vmem:[#allocation5 + $0x80] sm:$0xff] }
 0x67a   : > { %3500 = vmatpush.bf16.msra.mxu0 %v3480_v45  ;;  %3514 = vmatpush.bf16.msra.mxu1 %v3481_v61  ;;  %vm7134_vm13 = vmmov %vm7133_vm6 }
 0x67b   : > { %3667 = vmatpush.bf16.msrb.mxu2 %v3647_v25  ;;  %3681 = vmatpush.bf16.msrb.mxu3 %v3648_v63  ;;  %vm7135_vm11 = vmmov %vm7133_vm6 }
 0x67c   : > { %v3754_v0 = vpop.permute.xlu1 %3753  ;;  %vm7136_vm12 = vmmov %vm7133_vm6  ;;  %v3699_v35 = vpop.permute.xlu2 %3698 }
 0x67d   : > { %v3577_v19 = vpop.permute.xlu0 %3576  ;;  %4530 = vmatmul.msk.bf16.vlgmr.msra.gmra.mxu0 %vm1506_vm9, %v4653_v17  ;;  %4531 = vmatmul.msk.bf16.vlgmr.msra.gmra.mxu1 %vm1506_vm9, %v4653_v17 }
 0x67e   : > { %4548 = vmatmul.msk.bf16.vlgmr.msrb.gmra.mxu2 %vm1506_vm9, %v4656_v2  ;;  %4549 = vmatmul.msk.bf16.vlgmr.msrb.gmra.mxu3 %vm1506_vm9, %v4656_v2 }
 0x684   : > { %v3573_v31 = vpop.permute.xlu1 %3572 }
 0x685   : > { %v3579_v23 = vsel %vm7131_vm3, %v3573_v31, %v3577_v19  ;;  %v3581_v29 = vsel %vm7132_vm4, %v3577_v19, %v3573_v31  ;;  %v3758_v30 = vpop.permute.xlu0 %3757 }
 0x686   : > { %v3584_v57 = vmul.f32 %v3579_v23, %v5463_v40  ;;  %v3585_v60 = vmul.f32 %v3581_v29, %v5466_v41  ;;  %v3761_v16 = vsel %vm7133_vm6, %v3754_v0, %v3758_v30  ;;  %v3763_v51 = vsel %vm7134_vm13, %v3758_v30, %v3754_v0 }
 0x687   : > { %v3765_v41 = vmul.f32 %v6532_v39, %v3761_v16  ;;  %v3766_v6 = vmul.f32 %v6538_v38, %v3763_v51 }
 0x688   : > { %v3586_v50 = vpack.c.bf16 %v3584_v57, %v3582_v44  ;;  %v3587_v3 = vpack.c.bf16 %v3585_v60, %v3583_v55 }
 0x68a   : > { %3606 = vmatpush.bf16.msrb.mxu0 %v3586_v50  ;;  %3620 = vmatpush.bf16.msrb.mxu1 %v3587_v3 }
 0x68c   : > { %v3760_v59 = vpop.permute.xlu1 %3759 }
 0x68d   : > { %v3762_v33 = vsel %vm7135_vm11, %v3756_v27, %v3760_v59  ;;  %v3764_v40 = vsel %vm7136_vm12, %v3760_v59, %v3756_v27  ;;  %v3695_v43 = vpop.permute.xlu0 %3694  ;;  %4542 = vmatmul.msk.bf16.vlgmr.msrb.gmra.mxu0 %vm1506_vm9, %v4655_v11  ;;  %4543 = vmatmul.msk.bf16.vlgmr.msrb.gmra.mxu1 %vm1506_vm9, %v4655_v11 }
 0x68e   : > { %v3767_v24 = vmul.f32 %v6532_v39, %v3762_v33  ;;  %v3768_v5 = vmul.f32 %v6538_v38, %v3764_v40  ;;  %v3701_v48 = vsel %vm7137_vm15, %v3695_v43, %v3699_v35  ;;  %v3703_v53 = vsel %vm7138_vm5, %v3699_v35, %v3695_v43 }
 0x68f   : > { %v3706_v1 = vmul.f32 %v3701_v48, %v5555_v58  ;;  %v3707_v7 = vmul.f32 %v3703_v53, %v7041_v32 }
 0x690   : > { %v3769_v4 = vpack.c.bf16 %v3767_v24, %v3765_v41  ;;  %v3770_v47 = vpack.c.bf16 %v3768_v5, %v3766_v6 }
 0x692   : > { %3789 = vmatpush.bf16.msra.mxu2 %v3769_v4  ;;  %3803 = vmatpush.bf16.msra.mxu3 %v3770_v47 }
 0x694   : > { %v3697_v56 = vpop.permute.xlu1 %3696 }
 0x695   : > { %v3700_v39 = vsel %vm7139_vm7, %v3693_v18, %v3697_v56  ;;  %v3702_v38 = vsel %vm7140_vm8, %v3697_v56, %v3693_v18  ;;  %v3104_v42 = vpop.permute.xlu0 %3103  ;;  %4560 = vmatmul.msk.bf16.vlgmr.msra.gmra.mxu2 %vm1506_vm9, %v4658_v62  ;;  %4561 = vmatmul.msk.bf16.vlgmr.msra.gmra.mxu3 %vm1506_vm9, %v4658_v62 }
 0x696   : > { %v3704_v9 = vmul.f32 %v3700_v39, %v5555_v58  ;;  %v3705_v46 = vmul.f32 %v3702_v38, %v7041_v32  ;;  %v6859_v21 = vadd.f32 %v3104_v42, %v6599_v20  ;;  %v6862_v52 = vadd.f32 %v3104_v42, %v6601_v26 }
 0x698   : > { %v3708_v28 = vpack.c.bf16 %v3706_v1, %v3704_v9  ;;  %v3709_v34 = vpack.c.bf16 %v3707_v7, %v3705_v46  ;;  %v4500_v14 = vmul.f32 -1.442695, %v6859_v21  ;;  %v4501_v10 = vmul.f32 -1.442695, %v6862_v52 }
 0x69a   : > { %4788 = vpow2.f32 %v4500_v14  ;;  %3728 = vmatpush.bf16.msra.mxu0 %v3708_v28  ;;  %3742 = vmatpush.bf16.msra.mxu1 %v3709_v34 }
 0x69b   : > { %4790 = vpow2.f32 %v4501_v10 }
 0x69c   : > { %v3109_v58 = vpop.permute.xlu1 %3108 }
 0x69d   : > { %v6867_v32 = vadd.f32 %v3109_v58, %v6605_v37  ;;  %v6870_v20 = vadd.f32 %v3109_v58, %v6607_v49  ;;  %4554 = vmatmul.msk.bf16.vlgmr.msra.gmra.mxu0 %vm1506_vm9, %v4657_v8  ;;  %4555 = vmatmul.msk.bf16.vlgmr.msra.gmra.mxu1 %vm1506_vm9, %v4657_v8 }
 0x69f   : > { %v4502_v26 = vmul.f32 -1.442695, %v6867_v32  ;;  %v4503_v36 = vmul.f32 -1.442695, %v6870_v20 }
 0x6a0   : > { %v4789_v22 = vpop.eup %4788 }
 0x6a1   : > { %v4791_v12 = vpop.eup %4790  ;;  %v3153_v45 = vadd.f32 1.0, %v4789_v22  ;;  %4792 = vpow2.f32 %v4502_v26 }
 0x6a2   : > { %v3154_v61 = vadd.f32 1.0, %v4791_v12  ;;  %4794 = vpow2.f32 %v4503_v36 }
 0x6a3   : > { %4796 = vrcp.f32 %v3153_v45  ;;  %v3170_v29 = vand.u32 2147483647, %v3153_v45  ;;  %vm3166_vm2 = vweird.f32 %v3153_v45  ;;  %v3172_v27 = vand.u32 2147483648, %v3153_v45 }
 0x6a4   : > { %4798 = vrcp.f32 %v3154_v61  ;;  %vm3181_vm10 = vweird.f32 %v3154_v61  ;;  %v3185_v57 = vand.u32 2147483647, %v3154_v61  ;;  %v3187_v51 = vand.u32 2147483648, %v3154_v61 }
 0x6a5   : > { %vm6880_vm3 = vcmp.eq.f32.partialorder %v3170_v29, 8.507059e+37  ;;  %v3173_v6 = vor.u32 1.1754944e-38, %v3172_v27  ;;  %v4660_v27 = vld [vmem:[%s6988_s6 + $0x28] sm:$0xff] }
 0x6a6   : > { %vm3186_vm12 = vcmp.eq.f32.partialorder %v3185_v57, 8.507059e+37  ;;  %v3188_v53 = vor.u32 1.1754944e-38, %v3187_v51 }
 0x6a7   : > { %v4793_v37 = vpop.eup %4792 }
 0x6a8   : > { %v4795_v25 = vpop.eup %4794  ;;  %v3155_v49 = vadd.f32 1.0, %v4793_v37 }
 0x6a9   : > { %v4797_v63 = vpop.eup %4796  ;;  %v3156_v17 = vadd.f32 1.0, %v4795_v25 }
 0x6aa   : > { %v4799_v2 = vpop.eup %4798  ;;  %v3162_v18 = vmul.f32 %v4797_v63, %v3153_v45  ;;  %4800 = vrcp.f32 %v3155_v49  ;;  %vm3167_vm14 = vweird.f32 %v4797_v63  ;;  %v3200_v59 = vand.u32 2147483647, %v3155_v49 }
 0x6ab   : > { %v3177_v0 = vmul.f32 %v4799_v2, %v3154_v61  ;;  %4802 = vrcp.f32 %v3156_v17  ;;  %vm3182_vm0 = vweird.f32 %v4799_v2  ;;  %vm6876_vm1 = vmor %vm3166_vm2, %vm3167_vm14  ;;  %v3202_v33 = vand.u32 2147483648, %v3155_v49 }
 0x6ac   : > { %v3163_v19 = vsub.f32 1.0, %v3162_v18  ;;  %vm6887_vm6 = vmor %vm3181_vm10, %vm3182_vm0  ;;  %vm3196_vm13 = vweird.f32 %v3155_v49  ;;  %v3215_v5 = vand.u32 2147483647, %v3156_v17  ;;  %v3217_v35 = vand.u32 2147483648, %v3156_v17 }
 0x6ad   : > { %v3178_v13 = vsub.f32 1.0, %v3177_v0  ;;  %v3203_v1 = vor.u32 1.1754944e-38, %v3202_v33  ;;  %vm3201_vm5 = vcmp.eq.f32.partialorder %v3200_v59, 8.507059e+37  ;;  %vm3211_vm7 = vweird.f32 %v3156_v17 }
 0x6ae   : > { %v3164_v15 = vmul.f32 %v4797_v63, %v3163_v19  ;;  %v3218_v42 = vor.u32 1.1754944e-38, %v3217_v35  ;;  %vm3216_vm14 = vcmp.eq.f32.partialorder %v3215_v5, 8.507059e+37 }
 0x6af   : > { %v3179_v31 = vmul.f32 %v4799_v2, %v3178_v13 }
 0x6b0   : > { %v4801_v23 = vpop.eup %4800  ;;  %v3165_v30 = vadd.f32 %v4797_v63, %v3164_v15  ;;  %v4659_v15 = vld [vmem:[%s6988_s6 + $0x20] sm:$0xff] }
 0x6b1   : > { %v3192_v44 = vmul.f32 %v4801_v23, %v3155_v49  ;;  %v4803_v55 = vpop.eup %4802  ;;  %v3180_v60 = vadd.f32 %v4799_v2, %v3179_v31  ;;  %vm3197_vm4 = vweird.f32 %v4801_v23 }
 0x6b2   : > { %v3207_v3 = vmul.f32 %v4803_v55, %v3156_v17  ;;  %v3169_v40 = vsel %vm6876_vm1, %v4797_v63, %v3165_v30  ;;  %vm3212_vm11 = vweird.f32 %v4803_v55  ;;  %vm3198_vm15 = vmor %vm3196_vm13, %vm3197_vm4 }
 0x6b3   : > { %v3193_v50 = vsub.f32 1.0, %v3192_v44  ;;  %v3184_v4 = vsel %vm6887_vm6, %v4799_v2, %v3180_v60  ;;  %v3174_v62 = vsel %vm6880_vm3, %v3173_v6, %v3169_v40  ;;  %vm3213_vm8 = vmor %vm3211_vm7, %vm3212_vm11 }
 0x6b4   : > { %v3208_v41 = vsub.f32 1.0, %v3207_v3  ;;  %v3189_v39 = vsel %vm3186_vm12, %v3188_v53, %v3184_v4  ;;  %v3281_v9 = vmul.f32 %v3174_v62, %v6859_v21 }
 0x6b5   : > { %v3194_v43 = vmul.f32 %v4801_v23, %v3193_v50  ;;  %v3282_v14 = vmul.f32 %v3189_v39, %v6862_v52 }
 0x6b6   : > { %v3209_v48 = vmul.f32 %v4803_v55, %v3208_v41 }
 0x6b7   : > { %v3195_v47 = vadd.f32 %v4801_v23, %v3194_v43 }
 0x6b8   : > { %v3210_v7 = vadd.f32 %v4803_v55, %v3209_v48 }
 0x6b9   : > { %v3199_v56 = vsel %vm3198_vm15, %v4801_v23, %v3195_v47 }
 0x6ba   : > { %v3204_v38 = vsel %vm3201_vm5, %v3203_v1, %v3199_v56  ;;  %v3214_v46 = vsel %vm3213_vm8, %v4803_v55, %v3210_v7 }
 0x6bb   : > { %v3283_v28 = vmul.f32 %v3204_v38, %v6867_v32  ;;  %v3219_v34 = vsel %vm3216_vm14, %v3218_v42, %v3214_v46 }
 0x6bc   : > { %v3284_v10 = vmul.f32 %v3219_v34, %v6870_v20 }
 0x6bd   : > { %v3833_v8 = vpack.c.bf16 %v3283_v28, %v3281_v9 }
 0x6be   : > { %v3834_v58 = vpack.c.bf16 %v3284_v10, %v3282_v14 }
 0x6bf   : > { %3919 = vmatpush.bf16.msrb.mxu2 %v3833_v8 }
 0x6c0   : > { %3938 = vmatpush.bf16.msrb.mxu3 %v3834_v58 }
 0x6c2   : > { %4590 = vmatmul.msk.bf16.vlgmr.msrb.gmra.mxu2 %vm1506_vm9, %v4659_v15 }
 0x6c3   : > { %4592 = vmatmul.msk.bf16.vlgmr.msrb.gmra.mxu3 %vm1506_vm9, %v4659_v15 }
 0x6d2   : > { %4591 = vmatmul.msk.bf16.gmra.mxu2 %vm1506_vm9, %v4660_v27 }
 0x6d3   : > { %4593 = vmatmul.msk.bf16.gmra.mxu3 %vm1506_vm9, %v4660_v27 }
 0x6da   : > { %v3348_v26 = vpop.f32.mrf.mxu0  ;;  %v3362_v36 = vpop.f32.mrf.mxu1 }
 0x6e1   : > { %v3441_v22 = vpop.f32.mrf.mxu2  ;;  %v3455_v12 = vpop.f32.mrf.mxu3 }
 0x6e2   : > { %v3350_v45 = vpop.f32.mrf.mxu0  ;;  %v3364_v61 = vpop.f32.mrf.mxu1 }
 0x6e9   : > { %v3443_v21 = vpop.f32.mrf.mxu2  ;;  %v3457_v37 = vpop.f32.mrf.mxu3 }
 0x6ea   : > { %v3384_v25 = vpop.f32.mrf.mxu0  ;;  %v3398_v49 = vpop.f32.mrf.mxu1 }
 0x6eb   : > { %v3385_v44 = vadd.f32 %v3384_v25, %v3348_v26  ;;  %v3399_v55 = vadd.f32 %v3398_v49, %v3362_v36  ;;  %v3822_v25 = vpop.permute.xlu0 %3821 }
 0x6ed   : > { %v3460_v57 = vadd.f32 %v3441_v22, %v3385_v44  ;;  %v3461_v60 = vadd.f32 %v3455_v12, %v3399_v55 }
 0x6f1   : > { %v3547_v17 = vpop.f32.mrf.mxu2  ;;  %v3561_v52 = vpop.f32.mrf.mxu3 }
 0x6f2   : > { %v3386_v32 = vpop.f32.mrf.mxu0  ;;  %v3400_v63 = vpop.f32.mrf.mxu1 }
 0x6f3   : > { %v3387_v50 = vadd.f32 %v3386_v32, %v3350_v45  ;;  %v3401_v3 = vadd.f32 %v3400_v63, %v3364_v61 }
 0x6f5   : > { %v3462_v43 = vadd.f32 %v3443_v21, %v3387_v50  ;;  %v3463_v41 = vadd.f32 %v3457_v37, %v3401_v3  ;;  %v3817_v37 = vpop.permute.xlu2 %3816  ;;  %v4814_v3 = vld [vmem:[%s5110_s29] sm:$0xff] }
 0x6f9   : > { %v3549_v18 = vpop.f32.mrf.mxu2  ;;  %v3563_v0 = vpop.f32.mrf.mxu3 }
 0x6fa   : > { %v3502_v2 = vpop.f32.mrf.mxu0  ;;  %v3516_v20 = vpop.f32.mrf.mxu1 }
 0x6fb   : > { %v3521_v33 = vadd.f32 %v3502_v2, %v3460_v57  ;;  %v3522_v40 = vadd.f32 %v3516_v20, %v3461_v60  ;;  %v4661_v20 = vld [vmem:[%s6988_s6 + $0x30] sm:$0xff] }
 0x6fc   : > { %v7147_v60 = vld [vmem:[#allocation11_spill] sm:$0xff] }
 0x6fd   : > { %v3566_v6 = vadd.f32 %v3547_v17, %v3521_v33  ;;  %v3567_v24 = vadd.f32 %v3561_v52, %v3522_v40 }
 0x701   : > { %v3669_v31 = vpop.f32.mrf.mxu2  ;;  %v3683_v23 = vpop.f32.mrf.mxu3 }
 0x702   : > { %v3504_v19 = vpop.f32.mrf.mxu0  ;;  %v3518_v13 = vpop.f32.mrf.mxu1 }
 0x703   : > { %v3523_v5 = vadd.f32 %v3504_v19, %v3462_v43  ;;  %v3524_v35 = vadd.f32 %v3518_v13, %v3463_v41 }
 0x705   : > { %v3568_v56 = vadd.f32 %v3549_v18, %v3523_v5  ;;  %v3569_v7 = vadd.f32 %v3563_v0, %v3524_v35  ;;  %v4662_v18 = vld [vmem:[%s6988_s6 + $0x38] sm:$0xff]  ;;  %v7150_v35 = vld [vmem:[#allocation15_spill] sm:$0xff] }
 0x709   : > { %v3671_v11 = vpop.f32.mrf.mxu2  ;;  %v3685_v16 = vpop.f32.mrf.mxu3 }
 0x70a   : > { %v3608_v29 = vpop.f32.mrf.mxu0  ;;  %v3622_v30 = vpop.f32.mrf.mxu1 }
 0x70b   : > { %v3627_v4 = vadd.f32 %v3608_v29, %v3566_v6  ;;  %v3628_v47 = vadd.f32 %v3622_v30, %v3567_v24  ;;  %v3953_v29 = vpop.permute.xlu1 %3952  ;;  %v7149_v24 = vld [vmem:[#allocation14_spill] sm:$0xff] }
 0x70d   : > { %v3688_v39 = vadd.f32 %v3669_v31, %v3627_v4  ;;  %v3689_v38 = vadd.f32 %v3683_v23, %v3628_v47 }
 0x712   : > { %v3610_v51 = vpop.f32.mrf.mxu0  ;;  %v3624_v59 = vpop.f32.mrf.mxu1 }
 0x713   : > { %v3629_v42 = vadd.f32 %v3610_v51, %v3568_v56  ;;  %v3630_v9 = vadd.f32 %v3624_v59, %v3569_v7 }
 0x715   : > { %v3690_v34 = vadd.f32 %v3671_v11, %v3629_v42  ;;  %v3691_v14 = vadd.f32 %v3685_v16, %v3630_v9  ;;  %v4815_v16 = vld [vmem:[%s5110_s29 + $0x8] sm:$0xff]  ;;  %v3963_v9 = vpop.permute.xlu0 %3962 }
 0x718   : > { %v3791_v48 = vpop.f32.mrf.mxu2  ;;  %v3805_v62 = vpop.f32.mrf.mxu3 }
 0x71a   : > { %v3730_v53 = vpop.f32.mrf.mxu0  ;;  %v3744_v1 = vpop.f32.mrf.mxu1 }
 0x71b   : > { %v3749_v46 = vadd.f32 %v3730_v53, %v3688_v39  ;;  %v3750_v28 = vadd.f32 %v3744_v1, %v3689_v38  ;;  %v4817_v1 = vld [vmem:[%s5110_s29 + $0x18] sm:$0xff] }
 0x71d   : > { %v3810_v58 = vadd.f32 %v3791_v48, %v3749_v46  ;;  %v3811_v26 = vadd.f32 %v3805_v62, %v3750_v28  ;;  %v4816_v62 = vld [vmem:[%s5110_s29 + $0x10] sm:$0xff] }
 0x71f   : > { %v3824_v49 = vadd.f32 %v3817_v37, %v3810_v58  ;;  %v3825_v32 = vadd.f32 %v3817_v37, %v3811_v26  ;;  %v4818_v58 = vld [vmem:[%s5110_s29 + $0x20] sm:$0xff] }
 0x720   : > { %v3793_v12 = vpop.f32.mrf.mxu2  ;;  %v3807_v45 = vpop.f32.mrf.mxu3 }
 0x722   : > { %v3732_v10 = vpop.f32.mrf.mxu0  ;;  %v3746_v8 = vpop.f32.mrf.mxu1 }
 0x723   : > { %v3751_v36 = vadd.f32 %v3732_v10, %v3690_v34  ;;  %v3752_v22 = vadd.f32 %v3746_v8, %v3691_v14  ;;  %v7151_v34 = vld [vmem:[#allocation16_spill] sm:$0xff]  ;;  %v7152_v10 = vld [vmem:[#allocation17_spill] sm:$0xff] }
 0x725   : > { %v3812_v61 = vadd.f32 %v3793_v12, %v3751_v36  ;;  %v3813_v21 = vadd.f32 %v3807_v45, %v3752_v22  ;;  %v4819_v36 = vld [vmem:[%s5110_s29 + $0x28] sm:$0xff] }
 0x727   : > { %v3826_v63 = vadd.f32 %v3822_v25, %v3812_v61  ;;  %v3827_v17 = vadd.f32 %v3822_v25, %v3813_v21 }
 0x729   : > { %v3840_v52 = vpack.c.bf16 %v3826_v63, %v3824_v49  ;;  %v3841_v2 = vpack.c.bf16 %v3827_v17, %v3825_v32  ;;  %v3968_v49 = vpop.permute.xlu1 %3967  ;;  %v7153_v17 = vld [vmem:[#allocation12_spill] sm:$0xff] }
 0x72b   : > { %3865 = vmatpush.bf16.msrb.mxu0 %v3840_v52  ;;  %3884 = vmatpush.bf16.msrb.mxu1 %v3841_v2  ;;  %v7154_v2 = vld [vmem:[#allocation13_spill] sm:$0xff] }
 0x72e   : > { %4578 = vmatmul.msk.bf16.vlgmr.msrb.gmra.mxu0 %vm1506_vm9, %v4661_v20  ;;  %4580 = vmatmul.msk.bf16.vlgmr.msrb.gmra.mxu1 %vm1506_vm9, %v4661_v20 }
 0x73e   : > { %4579 = vmatmul.msk.bf16.gmra.mxu0 %vm1506_vm9, %v4662_v18  ;;  %4581 = vmatmul.msk.bf16.gmra.mxu1 %vm1506_vm9, %v4662_v18  ;;  %v4820_v18 = vld [vmem:[%s5110_s29 + $0x30] sm:$0xff] }
 0x745   : > { %v3921_v0 = vpop.f32.mrf.mxu2 }
 0x746   : > { %v3940_v19 = vpop.f32.mrf.mxu3 }
 0x74d   : > { %v3923_v55 = vpop.f32.mrf.mxu2 }
 0x74e   : > { %v3942_v27 = vpop.f32.mrf.mxu3 }
 0x755   : > { %v3926_v47 = vpop.f32.mrf.mxu2 }
 0x756   : > { %v3945_v48 = vpop.f32.mrf.mxu3 }
 0x75d   : > { %v3928_v12 = vpop.f32.mrf.mxu2 }
 0x75e   : > { %v3947_v45 = vpop.f32.mrf.mxu3 }
 0x7ab   : > { %v3867_v13 = vpop.f32.mrf.mxu0  ;;  %v3886_v15 = vpop.f32.mrf.mxu1 }
 0x7ac   : > { %v3922_v31 = vadd.f32 %v3921_v0, %v3867_v13  ;;  %v3941_v23 = vadd.f32 %v3940_v19, %v3886_v15  ;;  %v4821_v19 = vld [vmem:[%s5110_s29 + $0x38] sm:$0xff] }
 0x7ae   : > { %v3970_v30 = vadd.f32 %v3953_v29, %v3922_v31  ;;  %v3971_v44 = vadd.f32 %v3953_v29, %v3941_v23 }
 0x7b0   : > { %v3978_v57 = vadd.f32 %v3970_v30, %v6041_v54  ;;  %v3979_v50 = vadd.f32 %v3971_v44, %v7147_v60  ;;  %v3958_v54 = vpop.permute.xlu2 %3957 }
 0x7b2   : > { %v3986_v11 = vadd.f32 %v4814_v3, %v3978_v57  ;;  %v3987_v51 = vadd.f32 %v4815_v16, %v3979_v50 }
 0x7b3   : > { %v3869_v59 = vpop.f32.mrf.mxu0  ;;  %v3888_v33 = vpop.f32.mrf.mxu1 }
 0x7b4   : > { %3994 = vst [vmem:[%s6925_s12] sm:$0xff] %v3986_v11  ;;  %v3924_v40 = vadd.f32 %v3923_v55, %v3869_v59  ;;  %v3943_v43 = vadd.f32 %v3942_v27, %v3888_v33 }
 0x7b5   : > { %3995 = vst [vmem:[%s6925_s12 + $0x8] sm:$0xff] %v3987_v51 }
 0x7b6   : > { %v3972_v41 = vadd.f32 %v3958_v54, %v3924_v40  ;;  %v3973_v6 = vadd.f32 %v3958_v54, %v3943_v43 }
 0x7b8   : > { %v3980_v5 = vadd.f32 %v3972_v41, %v7149_v24  ;;  %v3981_v4 = vadd.f32 %v3973_v6, %v7150_v35 }
 0x7ba   : > { %v3988_v53 = vadd.f32 %v4816_v62, %v3980_v5  ;;  %v3989_v56 = vadd.f32 %v4817_v1, %v3981_v4 }
 0x7bb   : > { %v3872_v7 = vpop.f32.mrf.mxu0  ;;  %v3891_v39 = vpop.f32.mrf.mxu1 }
 0x7bc   : > { %3996 = vst [vmem:[%s6925_s12 + $0x10] sm:$0xff] %v3988_v53  ;;  %v3927_v38 = vadd.f32 %v3926_v47, %v3872_v7  ;;  %v3946_v42 = vadd.f32 %v3945_v48, %v3891_v39 }
 0x7bd   : > { %3997 = vst [vmem:[%s6925_s12 + $0x18] sm:$0xff] %v3989_v56 }
 0x7be   : > { %v3974_v46 = vadd.f32 %v3963_v9, %v3927_v38  ;;  %v3975_v28 = vadd.f32 %v3963_v9, %v3946_v42 }
 0x7c0   : > { %v3982_v14 = vadd.f32 %v3974_v46, %v7151_v34  ;;  %v3983_v8 = vadd.f32 %v3975_v28, %v7152_v10 }
 0x7c2   : > { %v3990_v26 = vadd.f32 %v4818_v58, %v3982_v14  ;;  %v3991_v22 = vadd.f32 %v4819_v36, %v3983_v8 }
 0x7c3   : > { %v3874_v61 = vpop.f32.mrf.mxu0  ;;  %v3893_v21 = vpop.f32.mrf.mxu1 }
 0x7c4   : > { %3998 = vst [vmem:[%s6925_s12 + $0x20] sm:$0xff] %v3990_v26  ;;  %v3929_v37 = vadd.f32 %v3928_v12, %v3874_v61  ;;  %v3948_v25 = vadd.f32 %v3947_v45, %v3893_v21 }
 0x7c5   : > { %3999 = vst [vmem:[%s6925_s12 + $0x28] sm:$0xff] %v3991_v22 }
 0x7c6   : > { %v3976_v32 = vadd.f32 %v3968_v49, %v3929_v37  ;;  %v3977_v63 = vadd.f32 %v3968_v49, %v3948_v25 }
 0x7c8   : > { %v3984_v52 = vadd.f32 %v3976_v32, %v7153_v17  ;;  %v3985_v20 = vadd.f32 %v3977_v63, %v7154_v2 }
 0x7ca   : > { %v3992_v0 = vadd.f32 %v4820_v18, %v3984_v52  ;;  %v3993_v13 = vadd.f32 %v4821_v19, %v3985_v20 }
 0x7cc   : > { %4000 = vst [vmem:[%s6925_s12 + $0x30] sm:$0xff] %v3992_v0 }
 0x7cd   : > { %4001 = vst [vmem:[%s6925_s12 + $0x38] sm:$0xff] %v3993_v13 }
 0x7ce   : > { %4909 = shalt.err (!%p4906_p12)
}
 0x7cf   : > { %s4968_s23 = smov 256  }
 0x7d0   : > { %4670 = dma.vmem_to_hbm [thread:$0]  (%p5076_p7), %s4016_s14, 1024, %s4018_s28, %s4003_s10, %s4968_s23, %s4968_s23, %s4959_s30  }
 0x7d1 PF: > { %s4032_s29 = sand.u32 1, %s4940_s24   ;;  %p7155_p13 = scmp.ge.s32.totalorder %s4952_s27, 2 }
 0x7d2   : > { %s4033_s12 = scalar_lea.sflag [#allocation4], %s4032_s29 }
 0x7d3   : > { %p4681_p0 = pnand %p7155_p13, %p5044_p6 }
 0x7d5   : > { %p4682_p3 = pneg %p4681_p0 }
 0x7d7   : > { %4935 = dma.done.wait (%p4682_p3), %s4033_s12, 1024  }
 0x7d8   : > { %4937 = vsyncadd (%p4682_p3), %s4033_s12, 4294966272  ;;  %p21_p5 = scmp.ge.s32.totalorder %s5062_s15, 4   ;;  %s7156_s24 = smov %s4944_s25 }
 0x7d9   : > { %s7157_s25 = smov %s4948_s26  ;;  %s7158_s26 = smov %s5072_s20 }
 0x7da   : > { %s7159_s27 = smov %s5062_s15  ;;  %23 = sbr.rel (!%p21_p5) target bundleno = 8 (0x8), region = 137 }
 0x7df   :  { %4039 = vsyncpa [#allocation3], 1 }
 0x7e0   :  { %4041 = vsyncpa [#allocation3 + $0x1], 1 }
 0x7e1   :  { %4042 = vsyncpa [#allocation6], 1 }
 0x7e2   :  { %4043 = vsyncpa [#allocation4], 1 }
 0x7e3   :  { %4045 = vsyncpa [#allocation4 + $0x1], 1 }

// kernel: tpu_custom_call.1
= control target key start
LH: loop header
LB: loop body
LE: loop exit
PB: predicated region body
PF: predicated region fallthrough
CT: control target
= control target key end

     0   :  { %s6982_s0 = inlined_call_operand.hbm [shape: f32[2,32,256], index: 0, kind: input, shape index: {}]   ;;  %s6983_s1 = inlined_call_operand.vmem [shape: f32[2,64,1], index: 1, kind: input, shape index: {}]   ;;  %s6984_s2 = inlined_call_operand.vmem [shape: f32[9,256], index: 2, kind: input, shape index: {}]   ;;  %s6985_s3 = inlined_call_operand.vmem [shape: f32[160,1], index: 3, kind: input, shape index: {}]   ;;  %s6986_s4 = inlined_call_operand.vmem [shape: bf16[2,9,32,32], index: 4, kind: input, shape index: {}]   ;;  %s6987_s5 = inlined_call_operand.hbm [shape: bf16[2,9,16,16], index: 5, kind: input, shape index: {}]   ;;  %s6988_s6 = inlined_call_operand.vmem [shape: bf16[2,2,32,16], index: 6, kind: input, shape index: {}]   ;;  %s6989_s7 = inlined_call_operand.hbm [shape: f32[2,32,256], index: 7, kind: output, shape index: {}]  }
   0x1   :  { %7022 = sst [smem:[#allocation22_spill]] %s6987_s5 }
   0x2   :  { %12 = vsyncpa [#allocation3], 0 }
   0x3   :  { %14 = vsyncpa [#allocation3 + $0x1], 0 }
   0x4   :  { %15 = vsyncpa [#allocation6], 0 }
   0x5   :  { %16 = vsyncpa [#allocation4], 0 }
   0x6   :  { %18 = vsyncpa [#allocation4 + $0x1], 0  ;;  %s5009_s24 = smov 0   ;;  %s5011_s25 = smov 0  }
   0x7   :  { %s5013_s26 = smov 0   ;;  %s5015_s27 = smov 0  }
   0x8 LB: > { %s5030_s28 = sadd.s32 4294967295, %s4952_s27   ;;  %s4113_s29 = sadd.s32 4294967294, %s4952_s27   ;;  %s4952_s27 = sphi %s5015_s27, %s7159_s27   ;;  %s4948_s26 = sphi %s5013_s26, %s7158_s26   ;;  %s4944_s25 = sphi %s5011_s25, %s7157_s25   ;;  %s4940_s24 = sphi %s5009_s24, %s7156_s24  }
   0x9   : > { %p44_p0 = scmp.ne.s32.totalorder %s4944_s25, %s4940_s24  ;;  %p45_p1 = scmp.eq.s32.totalorder %s5030_s28, 0 }
   0xa   : > { %p199_p2 = scmp.eq.s32.totalorder %s5030_s28, 1  ;;  %p205_p3 = scmp.eq.s32.totalorder %s4113_s29, 1 }
   0xb   : > { %p5039_p4 = por %p45_p1, %p44_p0  ;;  %p4114_p5 = scmp.ge.s32.totalorder %s4952_s27, 1 }
   0xc   : > { %p5044_p6 = por %p205_p3, %p44_p0  ;;  %p212_p7 = scmp.lt.s32.totalorder %s4952_s27, 3 }
   0xd   : > { %s7025_s5 = sld [smem:[#allocation22_spill]]  ;;  %s4954_s13 = smov [#allocation5]  }
   0xe   : > { %p5052_p8 = pnand %p4114_p5, %p212_p7  ;;  %s234_s14 = sshll.u32 %s4954_s13, 4  ;;  %s235_s14 = int_to_ptr.vmem [resolvable:$true] %s234_s14 }
   0xf   : > { %s5062_s15 = sadd.s32 1, %s4952_s27   ;;  %s4955_s16 = smov 64  }
  0x10   : > { %p4672_p9 = pneg %p5052_p8  ;;  %s4956_s17 = smov 4  }
  0x11   : > { %s28_s18 = ssub.s32 %s4952_s27, %s5062_s15  ;;  %s31_s19 = sadd.s32 1, %s4948_s26 }
  0x12   : > { %p4673_p10 = pnand %p4672_p9, %p45_p1  ;;  %p29_p12 = scmp.eq.s32.totalorder %s28_s18, 0 }
  0x13   : > { %s232_s11 = sshll.u32 %s7025_s5, 4  ;;  %p38_p13 = scmp.ne.s32.totalorder %s4948_s26, %s4944_s25  ;;  %s233_s11 = int_to_ptr.hbm [resolvable:$true] %s232_s11 }
  0x14   : > { %4675 = dma.hbm_to_vmem [thread:$0]  (!%p4673_p10), %s233_s11, 2304, %s235_s14, [#allocation6], %s4955_s16, %s4955_s16, %s4956_s17  }
  0x15   : > { %p39_p0 = scmp.eq.s32.totalorder %s4952_s27, 0  ;;  %p4685_p3 = scmp.lt.s32.totalorder %s4952_s27, 2 }
  0x16   : > { %s5072_s20 = scalar_select %p29_p12, %s4948_s26, %s31_s19  }
  0x17   : > { %p40_p5 = por %p39_p0, %p38_p13  ;;  %p5076_p7 = por %p199_p2, %p38_p13 }
  0x18   : > { %s251_s22 = sand.u32 1, %s4948_s26   ;;  %s4599_s23 = sshll.u32 %s4952_s27, 6 }
  0x19   : > { %s4117_s29 = sshll.u32 %s251_s22, 6  ;;  %s260_s11 = scalar_lea.hbm %s6982_s0, %s4599_s23 }
  0x1a   : > { %s261_s13 = sshll.u32 %s260_s11, 4  ;;  %s255_s14 = scalar_lea.vmem [#allocation2], %s4117_s29  ;;  %s262_s13 = int_to_ptr.hbm [resolvable:$true] %s261_s13 }
  0x1b   : > { %s263_s16 = sshll.u32 %s255_s14, 4  ;;  %p5087_p9 = pnand %p4685_p3, %p40_p5  ;;  %s264_s16 = int_to_ptr.vmem [resolvable:$true] %s263_s16 }
  0x1c   : > { %s252_s18 = scalar_lea.sflag [#allocation3], %s251_s22  ;;  %s4852_s19 = sshra.s32 %s262_s13, 4  ;;  %s4853_s19 = int_to_ptr.hbm [resolvable:$true] %s4852_s19 }
  0x1d   : > { %s4854_s5 = scalar_lea.hbm %s4853_s19, 64  ;;  %p4856_p10 = pneg %p5087_p9 }
  0x1e   : > { %p4855_p2 = scmp.ne.s32.totalorder %s4853_s19, %s4854_s5  ;;  %s4859_s9 = scalar_lea.hbm %s6982_s0, 128 }
  0x1f   : > { %p4860_p0 = scmp.lt.s32.totalorder %s4853_s19, %s6982_s0  ;;  %p4861_p3 = scmp.lt.s32.totalorder %s4859_s9, %s4854_s5 }
  0x20   : > { %p4857_p12 = pnand %p4856_p10, %p4855_p2 }
  0x21   : > { %p4862_p5 = por %p4861_p3, %p4860_p0 }
  0x22   : > { %p4858_p13 = pneg %p4857_p12 }
  0x24   : > { %p4863_p11 = pnand %p4862_p5, %p4858_p13 }
  0x26   : > { %4866 = shalt.err (!%p4863_p11)
}
  0x27   : > { %s4957_s22 = smov 256   ;;  %s4958_s14 = smov 16  }
  0x28   : > { %4679 = dma.hbm_to_vmem [thread:$0]  (!%p5087_p9), %s262_s13, 1024, %s264_s16, %s252_s18, %s4957_s22, %s4957_s22, %s4958_s14  }
  0x29   : > { %283 = sbr.rel (%p5052_p8) target bundleno = 2001 (0x7d1), region = 48 }
  0x2e   : > { %s5104_s23 = sand.u32 1, %s4944_s25  }
  0x2f   : > { %s6990_s19 = sshll.u32 %s5104_s23, 6  ;;  %s286_s5 = scalar_lea.sflag [#allocation3], %s5104_s23 }
  0x30   : > { %s5110_s29 = scalar_lea.vmem [#allocation2], %s6990_s19 }
  0x31   : > { %4927 = dma.done.wait (%p5039_p4), %s286_s5, 1024  }
  0x32   : > { %4929 = vsyncadd (%p5039_p4), %s286_s5, 4294966272 }
  0x33   : > { %4931 = dma.done.wait (%p45_p1), [#allocation6], 2304  }
  0x34   : > { %4933 = vsyncadd (%p45_p1), [#allocation6], 4294964992  ;;  %v5121_v0 = vld [vmem:[%s5110_s29 + $0x28] sm:$0xff]  ;;  %v5124_v1 = vld [vmem:[%s5110_s29 + $0x20] sm:$0xff]  ;;  %s4959_s30 = smov 16   ;;  %s7008_s12 = smov 17   ;;  %v383_v11 = vlaneseq }
  0x35   : > { %424 = vrot.lane.b32.xlu1 %v5121_v0, %s4959_s30  ;;  %416 = vrot.lane.b32.xlu0 %v5124_v1, %s4959_s30  ;;  %v5131_v2 = vld [vmem:[%s5110_s29] sm:$0xff]  ;;  %v5136_v3 = vld [vmem:[%s5110_s29 + $0x38] sm:$0xff]  ;;  %s7010_s13 = smov 15   ;;  %s7006_s16 = smov 1   ;;  %vm6999_vm2 = vcmask 261120  }
  0x36   : > { %412 = vrot.lane.b32.xlu2 %v5131_v2, %s4959_s30  ;;  %v5139_v4 = vld [vmem:[%s5110_s29 + $0x30] sm:$0xff]  ;;  %v5151_v6 = vld [vmem:[%s5110_s29 + $0x18] sm:$0xff]  ;;  %v5154_v7 = vld [vmem:[%s5110_s29 + $0x8] sm:$0xff]  ;;  %s7000_s17 = smov 127   ;;  %s7004_s18 = smov 113   ;;  %v5234_v14 = vand.u32 127, %v383_v11 }
  0x37   : > { %v5142_v5 = vld [vmem:[%s5110_s29 + $0x10] sm:$0xff]  ;;  %v5241_v16 = vld [vmem:[%s6984_s2] sm:$0xff]  ;;  %v5246_v17 = vld [vmem:[%s6984_s2 + $0x8] sm:$0xff]  ;;  %s7002_s14 = smov 112   ;;  %s6991_s10 = smov 111  }
  0x38   : > { %vm428_vm0 = vcmp.lt.s32.totalorder %v5234_v14, 16  ;;  %v5254_v18 = vperm.slane %v5241_v16, 1  ;;  %v5257_v19 = vperm.slane %v5246_v17, 1  ;;  %v4603_v46 = vld [vmem:[%s6986_s4 + $0x10] sm:$0xff]  ;;  %vm385_vm1 = vcmp.lt.s32.totalorder %v5234_v14, 17  ;;  %s7040_s11 = smov 111  }
  0x39   : > { %v5298_v47 = vperm.slane %v5241_v16, 0  ;;  %v5301_v48 = vperm.slane %v5246_v17, 0  ;;  %vm581_vm3 = vcmp.lt.s32.totalorder %v5234_v14, 15  ;;  %vm687_vm4 = vcmp.lt.s32.totalorder %v5234_v14, 1  ;;  %p331_p1 = scmp.lt.s32.totalorder %s5030_s28, 1  ;;  %s7070_s19 = smov 112  }
  0x3a   : > { %vm7014_vm5 = vcmp.lt.s32.totalorder %v5234_v14, 127  ;;  %vm970_vm6 = vcmp.lt.s32.totalorder %v5234_v14, 113  ;;  %vm7013_vm7 = vcmp.lt.s32.totalorder %v5234_v14, 112  ;;  %vm7012_vm8 = vcmp.lt.s32.totalorder %v5234_v14, 111 }
  0x3b   : > { %s332_s22 = scalar_select %p331_p1, %s5030_s28, 1 }
  0x3d   : > { %426 = vrot.lane.b32.xlu1 %v5136_v3, %s4959_s30  ;;  %418 = vrot.lane.b32.xlu0 %v5139_v4, %s4959_s30 }
  0x3e   : > { %414 = vrot.lane.b32.xlu2 %v5142_v5, %s4959_s30 }
  0x45   : > { %422 = vrot.lane.b32.xlu1 %v5151_v6, %s4959_s30  ;;  %420 = vrot.lane.b32.xlu0 %v5154_v7, %s4959_s30 }
  0x46   : > { %371 = vrot.lane.b32.xlu2 %v5124_v1, %s7008_s12 }
  0x4d   : > { %379 = vrot.lane.b32.xlu1 %v5121_v0, %s7008_s12  ;;  %373 = vrot.lane.b32.xlu0 %v5139_v4, %s7008_s12 }
  0x4e   : > { %381 = vrot.lane.b32.xlu2 %v5136_v3, %s7008_s12 }
  0x55   : > { %369 = vrot.lane.b32.xlu1 %v5142_v5, %s7008_s12  ;;  %367 = vrot.lane.b32.xlu0 %v5131_v2, %s7008_s12 }
  0x56   : > { %375 = vrot.lane.b32.xlu2 %v5154_v7, %s7008_s12 }
  0x5d   : > { %569 = vrot.lane.b32.xlu1 %v5124_v1, %s7010_s13  ;;  %377 = vrot.lane.b32.xlu0 %v5151_v6, %s7008_s12 }
  0x5e   : > { %571 = vrot.lane.b32.xlu2 %v5139_v4, %s7010_s13 }
  0x65   : > { %579 = vrot.lane.b32.xlu1 %v5136_v3, %s7010_s13  ;;  %577 = vrot.lane.b32.xlu0 %v5121_v0, %s7010_s13 }
  0x66   : > { %565 = vrot.lane.b32.xlu2 %v5131_v2, %s7010_s13 }
  0x6d   : > { %573 = vrot.lane.b32.xlu1 %v5154_v7, %s7010_s13  ;;  %567 = vrot.lane.b32.xlu0 %v5142_v5, %s7010_s13 }
  0x6e   : > { %575 = vrot.lane.b32.xlu2 %v5151_v6, %s7010_s13 }
  0x75   : > { %677 = vrot.lane.b32.xlu1 %v5139_v4, %s7006_s16  ;;  %675 = vrot.lane.b32.xlu0 %v5124_v1, %s7006_s16 }
  0x76   : > { %683 = vrot.lane.b32.xlu2 %v5121_v0, %s7006_s16 }
  0x7d   : > { %671 = vrot.lane.b32.xlu1 %v5131_v2, %s7006_s16  ;;  %685 = vrot.lane.b32.xlu0 %v5136_v3, %s7006_s16 }
  0x7e   : > { %673 = vrot.lane.b32.xlu2 %v5142_v5, %s7006_s16 }
  0x85   : > { %681 = vrot.lane.b32.xlu1 %v5151_v6, %s7006_s16  ;;  %679 = vrot.lane.b32.xlu0 %v5154_v7, %s7006_s16 }
  0x86   : > { %852 = vrot.lane.b32.xlu2 %v5124_v1, %s7000_s17 }
  0x8d   : > { %860 = vrot.lane.b32.xlu1 %v5121_v0, %s7000_s17  ;;  %854 = vrot.lane.b32.xlu0 %v5139_v4, %s7000_s17 }
  0x8e   : > { %862 = vrot.lane.b32.xlu2 %v5136_v3, %s7000_s17 }
  0x90   : > { %v413_v8 = vpop.permute.xlu2 %412 }
  0x95   : > { %850 = vrot.lane.b32.xlu1 %v5142_v5, %s7000_s17  ;;  %848 = vrot.lane.b32.xlu0 %v5131_v2, %s7000_s17 }
  0x96   : > { %856 = vrot.lane.b32.xlu2 %v5154_v7, %s7000_s17 }
  0x98   : > { %v415_v9 = vpop.permute.xlu2 %414 }
  0x9d   : > { %958 = vrot.lane.b32.xlu1 %v5124_v1, %s7004_s18  ;;  %858 = vrot.lane.b32.xlu0 %v5151_v6, %s7000_s17 }
  0x9e   : > { %960 = vrot.lane.b32.xlu2 %v5139_v4, %s7004_s18 }
  0xa0   : > { %v5228_v10 = vpop.permute.xlu2 %371 }
  0xa5   : > { %968 = vrot.lane.b32.xlu1 %v5136_v3, %s7004_s18  ;;  %966 = vrot.lane.b32.xlu0 %v5121_v0, %s7004_s18 }
  0xa6   : > { %954 = vrot.lane.b32.xlu2 %v5131_v2, %s7004_s18 }
  0xa7   : > { %v425_v12 = vpop.permute.xlu1 %424  ;;  %v417_v13 = vpop.permute.xlu0 %416 }
  0xa8   : > { %v382_v15 = vpop.permute.xlu2 %381  ;;  %v435_v20 = vsel %vm428_vm0, %v425_v12, %v417_v13  ;;  %v431_v21 = vsel %vm428_vm0, %v417_v13, %v425_v12 }
  0xa9   : > { %v443_v26 = vmul.f32 %v5254_v18, %v435_v20  ;;  %v444_v28 = vmul.f32 %v5257_v19, %v431_v21 }
  0xad   : > { %962 = vrot.lane.b32.xlu1 %v5154_v7, %s7004_s18  ;;  %956 = vrot.lane.b32.xlu0 %v5142_v5, %s7004_s18 }
  0xae   : > { %964 = vrot.lane.b32.xlu2 %v5151_v6, %s7004_s18 }
  0xaf   : > { %v427_v22 = vpop.permute.xlu1 %426  ;;  %v419_v23 = vpop.permute.xlu0 %418 }
  0xb0   : > { %v436_v24 = vsel %vm428_vm0, %v427_v22, %v419_v23  ;;  %v432_v25 = vsel %vm428_vm0, %v419_v23, %v427_v22  ;;  %v376_v30 = vpop.permute.xlu2 %375 }
  0xb1   : > { %v445_v27 = vmul.f32 %v5254_v18, %v436_v24  ;;  %v446_v29 = vmul.f32 %v5257_v19, %v432_v25 }
  0xb3   : > { %v449_v31 = vpack.c.bf16 %v445_v27, %v443_v26  ;;  %v450_v32 = vpack.c.bf16 %v446_v29, %v444_v28  ;;  %v4601_v28 = vld [vmem:[%s6986_s4] sm:$0xff]  ;;  %v5361_v29 = vperm.slane %v5241_v16, 2 }
  0xb5   : > { %479 = vmatpush.bf16.msra.mxu0 %v449_v31  ;;  %498 = vmatpush.bf16.msra.mxu1 %v450_v32 }
  0xb6   : > { %1066 = vrot.lane.b32.xlu1 %v5139_v4, %s7002_s14  ;;  %1064 = vrot.lane.b32.xlu0 %v5124_v1, %s7002_s14 }
  0xb7   : > { %v423_v33 = vpop.permute.xlu1 %422  ;;  %v421_v34 = vpop.permute.xlu0 %420  ;;  %1072 = vrot.lane.b32.xlu2 %v5121_v0, %s7002_s14 }
  0xb8   : > { %v430_v35 = vsel %vm428_vm0, %v415_v9, %v423_v33  ;;  %v434_v36 = vsel %vm428_vm0, %v423_v33, %v415_v9  ;;  %v429_v37 = vsel %vm428_vm0, %v413_v8, %v421_v34  ;;  %v433_v38 = vsel %vm428_vm0, %v421_v34, %v413_v8  ;;  %v5291_v43 = vpop.permute.xlu2 %571  ;;  %v4604_v9 = vld [vmem:[%s6986_s4 + $0x18] sm:$0xff] }
  0xb9   : > { %v439_v39 = vmul.f32 %v5254_v18, %v433_v38  ;;  %v441_v40 = vmul.f32 %v5254_v18, %v434_v36  ;;  %v440_v41 = vmul.f32 %v5257_v19, %v429_v37  ;;  %v442_v42 = vmul.f32 %v5257_v19, %v430_v35 }
  0xbb   : > { %v447_v44 = vpack.c.bf16 %v441_v40, %v439_v39  ;;  %v448_v45 = vpack.c.bf16 %v442_v42, %v440_v41 }
  0xbd   : > { %480 = vmatpush.bf16.msra.mxu0 %v447_v44  ;;  %499 = vmatpush.bf16.msra.mxu1 %v448_v45 }
  0xbe   : > { %1060 = vrot.lane.b32.xlu1 %v5131_v2, %s7002_s14  ;;  %1074 = vrot.lane.b32.xlu0 %v5136_v3, %s7002_s14 }
  0xbf   : > { %v380_v49 = vpop.permute.xlu1 %379  ;;  %v374_v50 = vpop.permute.xlu0 %373  ;;  %1062 = vrot.lane.b32.xlu2 %v5142_v5, %s7002_s14 }
  0xc0   : > { %v392_v51 = vsel %vm385_vm1, %v380_v49, %v5228_v10  ;;  %v393_v52 = vsel %vm385_vm1, %v382_v15, %v374_v50  ;;  %v388_v53 = vsel %vm385_vm1, %v5228_v10, %v380_v49  ;;  %v389_v54 = vsel %vm385_vm1, %v374_v50, %v382_v15  ;;  %4138 = vmatmul.msk.bf16.vlgmr.msra.gmra.mxu0 %vm6999_vm2, %v4603_v46  ;;  %v566_v59 = vpop.permute.xlu2 %565 }
  0xc1   : > { %v400_v55 = vmul.f32 %v5298_v47, %v392_v51  ;;  %v402_v56 = vmul.f32 %v5298_v47, %v393_v52  ;;  %v401_v57 = vmul.f32 %v5301_v48, %v388_v53  ;;  %v403_v58 = vmul.f32 %v5301_v48, %v389_v54  ;;  %4140 = vmatmul.msk.bf16.vlgmr.msra.gmra.mxu1 %vm6999_vm2, %v4603_v46 }
  0xc3   : > { %v406_v60 = vpack.c.bf16 %v402_v56, %v400_v55  ;;  %v407_v61 = vpack.c.bf16 %v403_v58, %v401_v57  ;;  %v779_v56 = vpack.c.bf16 %v5139_v4, %v5124_v1  ;;  %v780_v57 = vpack.c.bf16 %v5136_v3, %v5121_v0 }
  0xc5   : > { %533 = vmatpush.bf16.msra.mxu2 %v406_v60  ;;  %552 = vmatpush.bf16.msra.mxu3 %v407_v61  ;;  %v4602_v60 = vld [vmem:[%s6986_s4 + $0x8] sm:$0xff]  ;;  %v4605_v61 = vld [vmem:[%s6986_s4 + $0x20] sm:$0xff] }
  0xc6   : > { %1070 = vrot.lane.b32.xlu1 %v5151_v6, %s7002_s14  ;;  %1068 = vrot.lane.b32.xlu0 %v5154_v7, %s7002_s14 }
  0xc7   : > { %v370_v62 = vpop.permute.xlu1 %369  ;;  %v368_v63 = vpop.permute.xlu0 %367  ;;  %1170 = vrot.lane.b32.xlu2 %v5124_v1, %s6991_s10  ;;  %v777_v1 = vpack.c.bf16 %v5142_v5, %v5131_v2 }
  0xc8   : > { %v576_v8 = vpop.permute.xlu2 %575  ;;  %v386_v10 = vsel %vm385_vm1, %v368_v63, %v376_v30  ;;  %v390_v11 = vsel %vm385_vm1, %v376_v30, %v368_v63  ;;  %v5364_v30 = vperm.slane %v5246_v17, 2  ;;  %v5422_v63 = vperm.slane %v5241_v16, 3 }
  0xc9   : > { %v396_v21 = vmul.f32 %v5298_v47, %v390_v11  ;;  %v397_v23 = vmul.f32 %v5301_v48, %v386_v10 }
  0xce   : > { %1178 = vrot.lane.b32.xlu1 %v5121_v0, %s6991_s10  ;;  %1172 = vrot.lane.b32.xlu0 %v5139_v4, %s6991_s10  ;;  %v778_v0 = vpack.c.bf16 %v5151_v6, %v5154_v7 }
  0xcf   : > { %v570_v12 = vpop.permute.xlu1 %569  ;;  %v378_v13 = vpop.permute.xlu0 %377  ;;  %1180 = vrot.lane.b32.xlu2 %v5136_v3, %s6991_s10 }
  0xd0   : > { %v387_v15 = vsel %vm385_vm1, %v370_v62, %v378_v13  ;;  %v391_v20 = vsel %vm385_vm1, %v378_v13, %v370_v62  ;;  %4139 = vmatmul.msk.bf16.gmra.mxu0 %vm6999_vm2, %v4604_v9  ;;  %v5354_v25 = vpop.permute.xlu2 %683 }
  0xd1   : > { %v398_v22 = vmul.f32 %v5298_v47, %v391_v20  ;;  %v399_v24 = vmul.f32 %v5301_v48, %v387_v15  ;;  %4141 = vmatmul.msk.bf16.gmra.mxu1 %vm6999_vm2, %v4604_v9 }
  0xd3   : > { %v404_v26 = vpack.c.bf16 %v398_v22, %v396_v21  ;;  %v405_v27 = vpack.c.bf16 %v399_v24, %v397_v23  ;;  %v4606_v23 = vld [vmem:[%s6986_s4 + $0x28] sm:$0xff] }
  0xd5   : > { %534 = vmatpush.bf16.msra.mxu2 %v404_v26  ;;  %553 = vmatpush.bf16.msra.mxu3 %v405_v27 }
  0xd6   : > { %1166 = vrot.lane.b32.xlu0 %v5131_v2, %s6991_s10  ;;  %1168 = vrot.lane.b32.xlu1 %v5142_v5, %s6991_s10  ;;  %v5425_v2 = vperm.slane %v5246_v17, 3 }
  0xd7   : > { %v580_v31 = vpop.permute.xlu1 %579  ;;  %v578_v32 = vpop.permute.xlu0 %577  ;;  %1174 = vrot.lane.b32.xlu2 %v5154_v7, %s6991_s10 }
  0xd8   : > { %v585_v33 = vsel %vm581_vm3, %v5291_v43, %v580_v31  ;;  %v589_v34 = vsel %vm581_vm3, %v580_v31, %v5291_v43  ;;  %v584_v35 = vsel %vm581_vm3, %v570_v12, %v578_v32  ;;  %v588_v36 = vsel %vm581_vm3, %v578_v32, %v570_v12  ;;  %4150 = vmatmul.msk.bf16.vlgmr.msra.gmra.mxu2 %vm6999_vm2, %v4601_v28  ;;  %v674_v41 = vpop.permute.xlu2 %673 }
  0xd9   : > { %4152 = vmatmul.msk.bf16.vlgmr.msra.gmra.mxu3 %vm6999_vm2, %v4601_v28  ;;  %v596_v37 = vmul.f32 %v5361_v29, %v588_v36  ;;  %v598_v38 = vmul.f32 %v5361_v29, %v589_v34  ;;  %v597_v39 = vmul.f32 %v5364_v30, %v584_v35  ;;  %v599_v40 = vmul.f32 %v5364_v30, %v585_v33 }
  0xdb   : > { %v602_v42 = vpack.c.bf16 %v598_v38, %v596_v37  ;;  %v603_v43 = vpack.c.bf16 %v599_v40, %v597_v39  ;;  %v4607_v39 = vld [vmem:[%s6986_s4 + $0x30] sm:$0xff]  ;;  %v5463_v40 = vperm.slane %v5241_v16, 5 }
  0xdd   : > { %631 = vmatpush.bf16.msrb.mxu0 %v602_v42  ;;  %650 = vmatpush.bf16.msrb.mxu1 %v603_v43 }
  0xde   : > { %1176 = vrot.lane.b32.xlu0 %v5151_v6, %s6991_s10  ;;  %s4003_s10 = scalar_lea.sflag [#allocation4], %s5104_s23 }
  0xdf   : > { %v574_v44 = vpop.permute.xlu1 %573  ;;  %v568_v45 = vpop.permute.xlu0 %567 }
  0xe0   : > { %v582_v46 = vsel %vm581_vm3, %v566_v59, %v574_v44  ;;  %v586_v49 = vsel %vm581_vm3, %v574_v44, %v566_v59  ;;  %v583_v50 = vsel %vm581_vm3, %v568_v45, %v576_v8  ;;  %v587_v51 = vsel %vm581_vm3, %v576_v8, %v568_v45  ;;  %v853_v62 = vpop.permute.xlu2 %852 }
  0xe1   : > { %v592_v52 = vmul.f32 %v5361_v29, %v586_v49  ;;  %v594_v53 = vmul.f32 %v5361_v29, %v587_v51  ;;  %v593_v54 = vmul.f32 %v5364_v30, %v582_v46  ;;  %v595_v55 = vmul.f32 %v5364_v30, %v583_v50 }
  0xe3   : > { %v600_v58 = vpack.c.bf16 %v594_v53, %v592_v52  ;;  %v601_v59 = vpack.c.bf16 %v595_v55, %v593_v54 }
  0xe5   : > { %632 = vmatpush.bf16.msrb.mxu0 %v600_v58  ;;  %651 = vmatpush.bf16.msrb.mxu1 %v601_v59 }
  0xe7   : > { %v678_v3 = vpop.permute.xlu1 %677  ;;  %v676_v4 = vpop.permute.xlu0 %675 }
  0xe8   : > { %4151 = vmatmul.msk.bf16.gmra.mxu2 %vm6999_vm2, %v4602_v60  ;;  %4166 = vmatmul.msk.bf16.vlgmr.msrb.gmra.mxu0 %vm6999_vm2, %v4605_v61  ;;  %v690_v5 = vsel %vm687_vm4, %v676_v4, %v5354_v25  ;;  %v694_v6 = vsel %vm687_vm4, %v5354_v25, %v676_v4  ;;  %v863_v7 = vpop.permute.xlu2 %862 }
  0xe9   : > { %808 = vmatpush.bf16.msra.mxu0 %v779_v56  ;;  %827 = vmatpush.bf16.msra.mxu1 %v780_v57  ;;  %v702_v12 = vmul.f32 %v5422_v63, %v694_v6  ;;  %v703_v15 = vmul.f32 %v5425_v2, %v690_v5  ;;  %v4609_v57 = vld [vmem:[%s6986_s4 + $0x40] sm:$0xff] }
  0xea   : > { %4153 = vmatmul.msk.bf16.gmra.mxu3 %vm6999_vm2, %v4602_v60  ;;  %4168 = vmatmul.msk.bf16.vlgmr.msrb.gmra.mxu1 %vm6999_vm2, %v4605_v61  ;;  %v4608_v60 = vld [vmem:[%s6986_s4 + $0x38] sm:$0xff] }
  0xed   : > { %809 = vmatpush.bf16.msra.mxu0 %v777_v1  ;;  %828 = vmatpush.bf16.msra.mxu1 %v778_v0 }
  0xef   : > { %v672_v8 = vpop.permute.xlu1 %671  ;;  %v686_v9 = vpop.permute.xlu0 %685 }
  0xf0   : > { %v691_v10 = vsel %vm687_vm4, %v678_v3, %v686_v9  ;;  %v695_v11 = vsel %vm687_vm4, %v686_v9, %v678_v3  ;;  %v857_v32 = vpop.permute.xlu2 %856 }
  0xf1   : > { %v704_v13 = vmul.f32 %v5422_v63, %v695_v11  ;;  %v705_v20 = vmul.f32 %v5425_v2, %v691_v10 }
  0xf3   : > { %v708_v21 = vpack.c.bf16 %v704_v13, %v702_v12  ;;  %v709_v22 = vpack.c.bf16 %v705_v20, %v703_v15  ;;  %v4610_v12 = vld [vmem:[%s6986_s4 + $0x48] sm:$0xff]  ;;  %v5509_v13 = vperm.slane %v5241_v16, 6  ;;  %v5512_v15 = vperm.slane %v5246_v17, 6 }
  0xf5   : > { %737 = vmatpush.bf16.msrb.mxu2 %v708_v21  ;;  %756 = vmatpush.bf16.msrb.mxu3 %v709_v22 }
  0xf7   : > { %v682_v24 = vpop.permute.xlu1 %681  ;;  %v680_v25 = vpop.permute.xlu0 %679 }
  0xf8   : > { %v689_v26 = vsel %vm687_vm4, %v674_v41, %v682_v24  ;;  %v693_v27 = vsel %vm687_vm4, %v682_v24, %v674_v41  ;;  %v688_v28 = vsel %vm687_vm4, %v672_v8, %v680_v25  ;;  %v692_v31 = vsel %vm687_vm4, %v680_v25, %v672_v8  ;;  %4167 = vmatmul.msk.bf16.gmra.mxu0 %vm6999_vm2, %v4606_v23  ;;  %v961_v54 = vpop.permute.xlu2 %960 }
  0xf9   : > { %v698_v33 = vmul.f32 %v5422_v63, %v692_v31  ;;  %v700_v34 = vmul.f32 %v5422_v63, %v693_v27  ;;  %v699_v35 = vmul.f32 %v5425_v2, %v688_v28  ;;  %v701_v36 = vmul.f32 %v5425_v2, %v689_v26 }
  0xfa   : > { %4169 = vmatmul.msk.bf16.gmra.mxu1 %vm6999_vm2, %v4606_v23  ;;  %v5466_v41 = vperm.slane %v5246_v17, 5 }
  0xfb   : > { %v706_v37 = vpack.c.bf16 %v700_v34, %v698_v33  ;;  %v707_v38 = vpack.c.bf16 %v701_v36, %v699_v35  ;;  %v4611_v35 = vld [vmem:[%s6986_s4 + $0x50] sm:$0xff] }
  0xfd   : > { %738 = vmatpush.bf16.msrb.mxu2 %v706_v37  ;;  %757 = vmatpush.bf16.msrb.mxu3 %v707_v38 }
  0xff   : > { %v861_v42 = vpop.permute.xlu1 %860  ;;  %v855_v43 = vpop.permute.xlu0 %854 }
 0x100   : > { %v867_v44 = vsel %vm7014_vm5, %v853_v62, %v861_v42  ;;  %v871_v45 = vsel %vm7014_vm5, %v861_v42, %v853_v62  ;;  %v868_v46 = vsel %vm7014_vm5, %v855_v43, %v863_v7  ;;  %v872_v49 = vsel %vm7014_vm5, %v863_v7, %v855_v43  ;;  %4182 = vmatmul.msk.bf16.vlgmr.msrb.gmra.mxu2 %vm6999_vm2, %v4607_v39  ;;  %v955_v61 = vpop.permute.xlu2 %954 }
 0x101   : > { %v879_v50 = vmul.f32 %v5463_v40, %v867_v44  ;;  %v880_v51 = vmul.f32 %v5466_v41, %v871_v45  ;;  %v881_v52 = vmul.f32 %v5463_v40, %v868_v46  ;;  %v882_v53 = vmul.f32 %v5466_v41, %v872_v49  ;;  %4184 = vmatmul.msk.bf16.vlgmr.msrb.gmra.mxu3 %vm6999_vm2, %v4607_v39 }
 0x103   : > { %v885_v55 = vpack.c.bf16 %v881_v52, %v879_v50  ;;  %v886_v56 = vpack.c.bf16 %v882_v53, %v880_v51  ;;  %v4613_v53 = vld [vmem:[%s6986_s4 + $0x60] sm:$0xff] }
 0x105   : > { %914 = vmatpush.bf16.msra.mxu2 %v885_v55  ;;  %933 = vmatpush.bf16.msra.mxu3 %v886_v56 }
 0x107   : > { %v851_v58 = vpop.permute.xlu1 %850  ;;  %v849_v59 = vpop.permute.xlu0 %848 }
 0x108   : > { %4198 = vmatmul.msk.bf16.vlgmr.msra.gmra.mxu0 %vm6999_vm2, %v4609_v57  ;;  %v865_v62 = vsel %vm7014_vm5, %v849_v59, %v857_v32  ;;  %v869_v1 = vsel %vm7014_vm5, %v857_v32, %v849_v59  ;;  %v965_v20 = vpop.permute.xlu2 %964  ;;  %v5558_v59 = vperm.slane %v5246_v17, 7 }
 0x109   : > { %v875_v6 = vmul.f32 %v5463_v40, %v865_v62  ;;  %v876_v7 = vmul.f32 %v5466_v41, %v869_v1 }
 0x10a   : > { %4200 = vmatmul.msk.bf16.vlgmr.msra.gmra.mxu1 %vm6999_vm2, %v4609_v57  ;;  %v4612_v57 = vld [vmem:[%s6986_s4 + $0x58] sm:$0xff]  ;;  %7029 = vst [vmem:[#allocation11_spill] sm:$0xff] %v5558_v59 }
 0x10f   : > { %v959_v0 = vpop.permute.xlu1 %958  ;;  %v859_v3 = vpop.permute.xlu0 %858 }
 0x110   : > { %v866_v4 = vsel %vm7014_vm5, %v851_v58, %v859_v3  ;;  %v870_v5 = vsel %vm7014_vm5, %v859_v3, %v851_v58  ;;  %4183 = vmatmul.msk.bf16.gmra.mxu2 %vm6999_vm2, %v4608_v60  ;;  %v5555_v58 = vperm.slane %v5241_v16, 7 }
 0x111   : > { %v877_v8 = vmul.f32 %v5463_v40, %v866_v4  ;;  %v878_v9 = vmul.f32 %v5466_v41, %v870_v5  ;;  %4185 = vmatmul.msk.bf16.gmra.mxu3 %vm6999_vm2, %v4608_v60  ;;  %v1073_v44 = vpop.permute.xlu2 %1072 }
 0x113   : > { %v883_v10 = vpack.c.bf16 %v877_v8, %v875_v6  ;;  %v884_v11 = vpack.c.bf16 %v878_v9, %v876_v7  ;;  %v4614_v9 = vld [vmem:[%s6986_s4 + $0x68] sm:$0xff] }
 0x115   : > { %915 = vmatpush.bf16.msra.mxu2 %v883_v10  ;;  %934 = vmatpush.bf16.msra.mxu3 %v884_v11 }
 0x117   : > { %v969_v21 = vpop.permute.xlu1 %968  ;;  %v967_v22 = vpop.permute.xlu0 %966 }
 0x118   : > { %v974_v23 = vsel %vm970_vm6, %v961_v54, %v969_v21  ;;  %v978_v24 = vsel %vm970_vm6, %v969_v21, %v961_v54  ;;  %v973_v25 = vsel %vm970_vm6, %v959_v0, %v967_v22  ;;  %v977_v26 = vsel %vm970_vm6, %v967_v22, %v959_v0  ;;  %4199 = vmatmul.msk.bf16.gmra.mxu0 %vm6999_vm2, %v4610_v12 }
 0x119   : > { %v987_v27 = vmul.f32 %v5509_v13, %v974_v23  ;;  %v988_v28 = vmul.f32 %v5512_v15, %v978_v24  ;;  %v985_v31 = vmul.f32 %v5509_v13, %v973_v25  ;;  %v986_v32 = vmul.f32 %v5512_v15, %v977_v26  ;;  %v1063_v56 = vpop.permute.xlu2 %1062 }
 0x11a   : > { %4201 = vmatmul.msk.bf16.gmra.mxu1 %vm6999_vm2, %v4610_v12 }
 0x11b   : > { %v991_v33 = vpack.c.bf16 %v987_v27, %v985_v31  ;;  %v992_v34 = vpack.c.bf16 %v988_v28, %v986_v32  ;;  %v4615_v31 = vld [vmem:[%s6986_s4 + $0x70] sm:$0xff] }
 0x11d   : > { %1020 = vmatpush.bf16.msrb.mxu0 %v991_v33  ;;  %1039 = vmatpush.bf16.msrb.mxu1 %v992_v34  ;;  %v5598_v33 = vld [vmem:[%s6984_s2 + $0x10] ss:$0 sm:$0xff]  ;;  %v5603_v34 = vld [vmem:[%s6984_s2 + $0x18] ss:$0 sm:$0xff] }
 0x11e   : > { %7030 = vst [vmem:[#allocation12_spill] sm:$0xff] %v5598_v33 }
 0x11f   : > { %v963_v36 = vpop.permute.xlu1 %962  ;;  %v957_v37 = vpop.permute.xlu0 %956  ;;  %7031 = vst [vmem:[#allocation13_spill] sm:$0xff] %v5603_v34 }
 0x120   : > { %v971_v38 = vsel %vm970_vm6, %v955_v61, %v963_v36  ;;  %v975_v39 = vsel %vm970_vm6, %v963_v36, %v955_v61  ;;  %v972_v42 = vsel %vm970_vm6, %v957_v37, %v965_v20  ;;  %v976_v43 = vsel %vm970_vm6, %v965_v20, %v957_v37  ;;  %4214 = vmatmul.msk.bf16.vlgmr.msra.gmra.mxu2 %vm6999_vm2, %v4611_v35 }
 0x121   : > { %v981_v45 = vmul.f32 %v5509_v13, %v971_v38  ;;  %v982_v46 = vmul.f32 %v5512_v15, %v975_v39  ;;  %v983_v49 = vmul.f32 %v5509_v13, %v972_v42  ;;  %v984_v50 = vmul.f32 %v5512_v15, %v976_v43  ;;  %4216 = vmatmul.msk.bf16.vlgmr.msra.gmra.mxu3 %vm6999_vm2, %v4611_v35  ;;  %v1171_v8 = vpop.permute.xlu2 %1170 }
 0x123   : > { %v989_v51 = vpack.c.bf16 %v983_v49, %v981_v45  ;;  %v990_v52 = vpack.c.bf16 %v984_v50, %v982_v46 }
 0x125   : > { %1021 = vmatpush.bf16.msrb.mxu0 %v989_v51  ;;  %1040 = vmatpush.bf16.msrb.mxu1 %v990_v52 }
 0x128   : > { %v1067_v54 = vpop.permute.xlu1 %1066  ;;  %v1065_v55 = vpop.permute.xlu0 %1064  ;;  %4230 = vmatmul.msk.bf16.vlgmr.msrb.gmra.mxu0 %vm6999_vm2, %v4613_v53 }
 0x129   : > { %v1079_v60 = vsel %vm7013_vm7, %v1065_v55, %v1073_v44  ;;  %v1083_v61 = vsel %vm7013_vm7, %v1073_v44, %v1065_v55  ;;  %v1181_v35 = vpop.permute.xlu2 %1180 }
 0x12a   : > { %4232 = vmatmul.msk.bf16.vlgmr.msrb.gmra.mxu1 %vm6999_vm2, %v4613_v53  ;;  %v1091_v17 = vmul.f32 %v5555_v58, %v1079_v60  ;;  %v1092_v3 = vmul.f32 %v5558_v59, %v1083_v61 }
 0x130   : > { %v1061_v62 = vpop.permute.xlu1 %1060  ;;  %v1075_v1 = vpop.permute.xlu0 %1074  ;;  %4215 = vmatmul.msk.bf16.gmra.mxu2 %vm6999_vm2, %v4612_v57 }
 0x131   : > { %v1080_v0 = vsel %vm7013_vm7, %v1067_v54, %v1075_v1  ;;  %v1084_v16 = vsel %vm7013_vm7, %v1075_v1, %v1067_v54  ;;  %4217 = vmatmul.msk.bf16.gmra.mxu3 %vm6999_vm2, %v4612_v57  ;;  %v4616_v57 = vld [vmem:[%s6986_s4 + $0x78] sm:$0xff] }
 0x132   : > { %v1093_v4 = vmul.f32 %v5555_v58, %v1080_v0  ;;  %v1094_v5 = vmul.f32 %v5558_v59, %v1084_v16 }
 0x134   : > { %v1097_v6 = vpack.c.bf16 %v1093_v4, %v1091_v17  ;;  %v1098_v7 = vpack.c.bf16 %v1094_v5, %v1092_v3 }
 0x136   : > { %1126 = vmatpush.bf16.msrb.mxu2 %v1097_v6  ;;  %1145 = vmatpush.bf16.msrb.mxu3 %v1098_v7 }
 0x138   : > { %v1071_v10 = vpop.permute.xlu1 %1070  ;;  %v1069_v11 = vpop.permute.xlu0 %1068  ;;  %4231 = vmatmul.msk.bf16.gmra.mxu0 %vm6999_vm2, %v4614_v9 }
 0x139   : > { %v1078_v12 = vsel %vm7013_vm7, %v1063_v56, %v1071_v10  ;;  %v1082_v20 = vsel %vm7013_vm7, %v1071_v10, %v1063_v56  ;;  %v1077_v21 = vsel %vm7013_vm7, %v1061_v62, %v1069_v11  ;;  %v1081_v22 = vsel %vm7013_vm7, %v1069_v11, %v1061_v62  ;;  %v1175_v56 = vpop.permute.xlu2 %1174  ;;  %v4617_v10 = vld [vmem:[%s6986_s4 + $0x80] sm:$0xff]  ;;  %v359_v11 = vld [vmem:[%s6985_s3 + $0x10] sm:$0xff] }
 0x13a   : > { %4233 = vmatmul.msk.bf16.gmra.mxu1 %vm6999_vm2, %v4614_v9  ;;  %v1089_v23 = vmul.f32 %v5555_v58, %v1078_v12  ;;  %v1090_v24 = vmul.f32 %v5558_v59, %v1082_v20  ;;  %v1087_v25 = vmul.f32 %v5555_v58, %v1077_v21  ;;  %v1088_v26 = vmul.f32 %v5558_v59, %v1081_v22 }
 0x13b   : > { %v4967_v12 = vmov 0  }
 0x13c   : > { %v1095_v27 = vpack.c.bf16 %v1089_v23, %v1087_v25  ;;  %v1096_v28 = vpack.c.bf16 %v1090_v24, %v1088_v26  ;;  %4735 = vset.pattern.permute.xlu1 %v4967_v12  ;;  %4736 = vset.pattern.permute.xlu2 %v4967_v12 }
 0x13d   : > { %v482_v32 = vpop.f32.mrf.mxu0  ;;  %1284 = vperm.xlu1 %4735, %v359_v11   ;;  %4737 = vset.pattern.permute.xlu0 %v4967_v12 }
 0x13e   : > { %1127 = vmatpush.bf16.msrb.mxu2 %v1095_v27  ;;  %1146 = vmatpush.bf16.msrb.mxu3 %v1096_v28  ;;  %v501_v36 = vpop.f32.mrf.mxu1 }
 0x140   : > { %v1179_v37 = vpop.permute.xlu1 %1178  ;;  %v1173_v38 = vpop.permute.xlu0 %1172 }
 0x141   : > { %v1185_v39 = vsel %vm7012_vm8, %v1171_v8, %v1179_v37  ;;  %v1189_v42 = vsel %vm7012_vm8, %v1179_v37, %v1171_v8  ;;  %v1186_v43 = vsel %vm7012_vm8, %v1173_v38, %v1181_v35  ;;  %v1190_v44 = vsel %vm7012_vm8, %v1181_v35, %v1173_v38  ;;  %4246 = vmatmul.msk.bf16.vlgmr.msrb.gmra.mxu2 %vm6999_vm2, %v4615_v31 }
 0x142   : > { %v1197_v45 = vmul.f32 %v5598_v33, %v1185_v39  ;;  %v1198_v46 = vmul.f32 %v5603_v34, %v1189_v42  ;;  %v1199_v49 = vmul.f32 %v5598_v33, %v1186_v43  ;;  %v1200_v50 = vmul.f32 %v5603_v34, %v1190_v44  ;;  %4248 = vmatmul.msk.bf16.vlgmr.msrb.gmra.mxu3 %vm6999_vm2, %v4615_v31  ;;  %v4618_v31 = vld [vmem:[%s6986_s4 + $0x88] sm:$0xff] }
 0x144   : > { %v1203_v51 = vpack.c.bf16 %v1199_v49, %v1197_v45  ;;  %v1204_v52 = vpack.c.bf16 %v1200_v50, %v1198_v46  ;;  %v360_v46 = vld [vmem:[%s6985_s3 + $0x18] sm:$0xff] }
 0x145   : > { %v5619_v53 = vpop.f32.mrf.mxu0  ;;  %1289 = vperm.xlu2 %4736, %v360_v46  }
 0x146   : > { %1232 = vmatpush.bf16.msra.mxu0 %v1203_v51  ;;  %1251 = vmatpush.bf16.msra.mxu1 %v1204_v52  ;;  %v5621_v55 = vpop.f32.mrf.mxu1 }
 0x148   : > { %v1167_v54 = vpop.permute.xlu0 %1166  ;;  %v1169_v60 = vpop.permute.xlu1 %1168 }
 0x149   : > { %v1183_v61 = vsel %vm7012_vm8, %v1167_v54, %v1175_v56  ;;  %v1187_v62 = vsel %vm7012_vm8, %v1175_v56, %v1167_v54 }
 0x14a   : > { %v1193_v3 = vmul.f32 %v5598_v33, %v1183_v61  ;;  %v1194_v4 = vmul.f32 %v5603_v34, %v1187_v62 }
 0x14d   : > { %v487_v17 = vpop.f32.mrf.mxu0 }
 0x14e   : > { %v506_v7 = vpop.f32.mrf.mxu1 }
 0x150   : > { %v1177_v1 = vpop.permute.xlu0 %1176 }
 0x151   : > { %v1184_v0 = vsel %vm7012_vm8, %v1169_v60, %v1177_v1  ;;  %v1188_v16 = vsel %vm7012_vm8, %v1177_v1, %v1169_v60  ;;  %4247 = vmatmul.msk.bf16.gmra.mxu2 %vm6999_vm2, %v4616_v57 }
 0x152   : > { %v1195_v5 = vmul.f32 %v5598_v33, %v1184_v0  ;;  %v1196_v6 = vmul.f32 %v5603_v34, %v1188_v16  ;;  %4249 = vmatmul.msk.bf16.gmra.mxu3 %vm6999_vm2, %v4616_v57 }
 0x154   : > { %v1201_v8 = vpack.c.bf16 %v1195_v5, %v1193_v3  ;;  %v1202_v9 = vpack.c.bf16 %v1196_v6, %v1194_v4 }
 0x155   : > { %v5648_v21 = vpop.f32.mrf.mxu0 }
 0x156   : > { %1233 = vmatpush.bf16.msra.mxu0 %v1201_v8  ;;  %1252 = vmatpush.bf16.msra.mxu1 %v1202_v9  ;;  %v5650_v24 = vpop.f32.mrf.mxu1 }
 0x159   : > { %4262 = vmatmul.msk.bf16.vlgmr.msra.gmra.mxu0 %vm6999_vm2, %v4617_v10  ;;  %4264 = vmatmul.msk.bf16.vlgmr.msra.gmra.mxu1 %vm6999_vm2, %v4617_v10 }
 0x15b   : > { %v536_v20 = vpop.f32.mrf.mxu2 }
 0x15c   : > { %v537_v22 = vadd.f32 %v536_v20, %v482_v32  ;;  %v555_v23 = vpop.f32.mrf.mxu3 }
 0x15d   : > { %v556_v25 = vadd.f32 %v555_v23, %v501_v36 }
 0x163   : > { %v5652_v26 = vpop.f32.mrf.mxu2 }
 0x164   : > { %v5654_v27 = vpop.f32.mrf.mxu3 }
 0x165   : > { %v634_v28 = vpop.f32.mrf.mxu0 }
 0x166   : > { %v663_v35 = vadd.f32 %v634_v28, %v537_v22 }
 0x167   : > { %v653_v37 = vpop.f32.mrf.mxu1 }
 0x168   : > { %v664_v38 = vadd.f32 %v653_v37, %v556_v25 }
 0x169   : > { %4263 = vmatmul.msk.bf16.gmra.mxu0 %vm6999_vm2, %v4618_v31  ;;  %4265 = vmatmul.msk.bf16.gmra.mxu1 %vm6999_vm2, %v4618_v31 }
 0x16b   : > { %v541_v32 = vpop.f32.mrf.mxu2 }
 0x16c   : > { %v542_v39 = vadd.f32 %v541_v32, %v487_v17 }
 0x16d   : > { %v560_v42 = vpop.f32.mrf.mxu3  ;;  %v5661_v43 = vpop.f32.mrf.mxu0 }
 0x16e   : > { %v561_v36 = vadd.f32 %v560_v42, %v506_v7 }
 0x16f   : > { %v5663_v44 = vpop.f32.mrf.mxu1 }
 0x173   : > { %v543_v52 = vpop.f32.mrf.mxu2 }
 0x175   : > { %v639_v45 = vpop.f32.mrf.mxu0  ;;  %v562_v54 = vpop.f32.mrf.mxu3 }
 0x176   : > { %v667_v49 = vadd.f32 %v639_v45, %v542_v39 }
 0x177   : > { %v658_v50 = vpop.f32.mrf.mxu1 }
 0x178   : > { %v668_v51 = vadd.f32 %v658_v50, %v561_v36 }
 0x17d   : > { %v641_v56 = vpop.f32.mrf.mxu0 }
 0x17f   : > { %v660_v57 = vpop.f32.mrf.mxu1 }
 0x183   : > { %v740_v60 = vpop.f32.mrf.mxu2 }
 0x184   : > { %v769_v61 = vadd.f32 %v740_v60, %v663_v35  ;;  %v759_v62 = vpop.f32.mrf.mxu3 }
 0x185   : > { %v770_v1 = vadd.f32 %v759_v62, %v664_v38  ;;  %v811_v0 = vpop.f32.mrf.mxu0 }
 0x186   : > { %v840_v16 = vadd.f32 %v811_v0, %v769_v61 }
 0x187   : > { %v830_v17 = vpop.f32.mrf.mxu1 }
 0x188   : > { %v841_v3 = vadd.f32 %v830_v17, %v770_v1 }
 0x18b   : > { %v5668_v4 = vpop.f32.mrf.mxu2 }
 0x18c   : > { %v5670_v5 = vpop.f32.mrf.mxu3 }
 0x18d   : > { %v5672_v6 = vpop.f32.mrf.mxu0 }
 0x18e   : > { %7032 = vst [vmem:[#allocation14_spill] sm:$0xff] %v5672_v6 }
 0x18f   : > { %v5674_v7 = vpop.f32.mrf.mxu1 }
 0x190   : > { %7033 = vst [vmem:[#allocation15_spill] sm:$0xff] %v5674_v7 }
 0x193   : > { %v745_v8 = vpop.f32.mrf.mxu2 }
 0x194   : > { %v764_v9 = vpop.f32.mrf.mxu3 }
 0x195   : > { %v816_v10 = vpop.f32.mrf.mxu0 }
 0x197   : > { %v835_v11 = vpop.f32.mrf.mxu1 }
 0x19b   : > { %v747_v12 = vpop.f32.mrf.mxu2 }
 0x19c   : > { %v766_v20 = vpop.f32.mrf.mxu3 }
 0x19d   : > { %v818_v22 = vpop.f32.mrf.mxu0 }
 0x19f   : > { %v837_v23 = vpop.f32.mrf.mxu1 }
 0x1a3   : > { %v917_v25 = vpop.f32.mrf.mxu2 }
 0x1a4   : > { %v946_v28 = vadd.f32 %v917_v25, %v840_v16  ;;  %v936_v31 = vpop.f32.mrf.mxu3 }
 0x1a5   : > { %v947_v35 = vadd.f32 %v936_v31, %v841_v3  ;;  %v1023_v37 = vpop.f32.mrf.mxu0 }
 0x1a6   : > { %v1052_v38 = vadd.f32 %v1023_v37, %v946_v28 }
 0x1a7   : > { %v1042_v32 = vpop.f32.mrf.mxu1 }
 0x1a8   : > { %v1053_v39 = vadd.f32 %v1042_v32, %v947_v35 }
 0x1ab   : > { %v5676_v42 = vpop.f32.mrf.mxu2 }
 0x1ac   : > { %7034 = vst [vmem:[#allocation16_spill] sm:$0xff] %v5676_v42  ;;  %v5678_v36 = vpop.f32.mrf.mxu3  ;;  %v544_v42 = vadd.f32 %v543_v52, %v5648_v21 }
 0x1ad   : > { %7035 = vst [vmem:[#allocation17_spill] sm:$0xff] %v5678_v36  ;;  %v5680_v50 = vpop.f32.mrf.mxu0  ;;  %v774_v36 = vadd.f32 %v764_v9, %v668_v51 }
 0x1ae   : > { %7036 = vst [vmem:[#allocation18_spill] sm:$0xff] %v5680_v50 }
 0x1af   : > { %v5682_v60 = vpop.f32.mrf.mxu1 }
 0x1b0   : > { %7037 = vst [vmem:[#allocation19_spill] sm:$0xff] %v5682_v60  ;;  %v773_v60 = vadd.f32 %v745_v8, %v667_v49 }
 0x1b3   : > { %v922_v45 = vpop.f32.mrf.mxu2 }
 0x1b4   : > { %v941_v46 = vpop.f32.mrf.mxu3 }
 0x1b5   : > { %v1028_v1 = vpop.f32.mrf.mxu0 }
 0x1b7   : > { %v1047_v0 = vpop.f32.mrf.mxu1 }
 0x1bb   : > { %v924_v61 = vpop.f32.mrf.mxu2 }
 0x1bc   : > { %v943_v62 = vpop.f32.mrf.mxu3 }
 0x1bd   : > { %v1030_v28 = vpop.f32.mrf.mxu0 }
 0x1bf   : > { %v1049_v31 = vpop.f32.mrf.mxu1 }
 0x1c4   : > { %v1129_v16 = vpop.f32.mrf.mxu2 }
 0x1c5   : > { %v1158_v17 = vadd.f32 %v1129_v16, %v1052_v38  ;;  %v1148_v3 = vpop.f32.mrf.mxu3  ;;  %v563_v38 = vadd.f32 %v562_v54, %v5650_v24  ;;  %v844_v16 = vadd.f32 %v816_v10, %v773_v60  ;;  %v1285_v54 = vpop.permute.xlu1 %1284 }
 0x1c6   : > { %v1159_v25 = vadd.f32 %v1148_v3, %v1053_v39  ;;  %v845_v39 = vadd.f32 %v835_v11, %v774_v36 }
 0x1c7   : > { %v950_v6 = vadd.f32 %v922_v45, %v844_v16 }
 0x1c8   : > { %v951_v59 = vadd.f32 %v941_v46, %v845_v39 }
 0x1c9   : > { %v1056_v49 = vadd.f32 %v1028_v1, %v950_v6  ;;  %v1290_v1 = vpop.permute.xlu2 %1289 }
 0x1ca   : > { %v1057_v51 = vadd.f32 %v1047_v0, %v951_v59 }
 0x1cc   : > { %v5684_v35 = vpop.f32.mrf.mxu2 }
 0x1cd   : > { %7038 = vst [vmem:[#allocation20_spill] sm:$0xff] %v5684_v35  ;;  %v5686_v37 = vpop.f32.mrf.mxu3  ;;  %v669_v35 = vadd.f32 %v641_v56, %v544_v42 }
 0x1ce   : > { %7039 = vst [vmem:[#allocation21_spill] sm:$0xff] %v5686_v37  ;;  %v670_v37 = vadd.f32 %v660_v57, %v563_v38 }
 0x1d6   : > { %v1235_v32 = vpop.f32.mrf.mxu0  ;;  %v1254_v34 = vpop.f32.mrf.mxu1 }
 0x1d7   : > { %v5688_v33 = vadd.f32 %v1235_v32, %v1158_v17  ;;  %v5690_v50 = vadd.f32 %v1254_v34, %v1159_v25  ;;  %v1134_v17 = vpop.f32.mrf.mxu2  ;;  %v1153_v32 = vpop.f32.mrf.mxu3  ;;  %v775_v34 = vadd.f32 %v747_v12, %v669_v35  ;;  %v776_v25 = vadd.f32 %v766_v20, %v670_v37 }
 0x1d8   : > { %v1162_v52 = vadd.f32 %v1134_v17, %v1056_v49  ;;  %v1163_v24 = vadd.f32 %v1153_v32, %v1057_v51 }
 0x1d9   : > { %v846_v8 = vadd.f32 %v818_v22, %v775_v34  ;;  %v847_v21 = vadd.f32 %v837_v23, %v776_v25 }
 0x1db   : > { %v952_v11 = vadd.f32 %v924_v61, %v846_v8  ;;  %v953_v36 = vadd.f32 %v943_v62, %v847_v21 }
 0x1dd   : > { %v1058_v20 = vadd.f32 %v1030_v28, %v952_v11  ;;  %v1059_v6 = vadd.f32 %v1049_v31, %v953_v36 }
 0x1de   : > { %v5694_v3 = vpop.f32.mrf.mxu0  ;;  %v5696_v7 = vpop.f32.mrf.mxu1 }
 0x1df   : > { %v1136_v45 = vpop.f32.mrf.mxu2  ;;  %v1155_v12 = vpop.f32.mrf.mxu3 }
 0x1e0   : > { %v1164_v23 = vadd.f32 %v1136_v45, %v1058_v20  ;;  %v1165_v46 = vadd.f32 %v1155_v12, %v1059_v6 }
 0x1e6   : > { %v1240_v9 = vpop.f32.mrf.mxu0  ;;  %v1259_v10 = vpop.f32.mrf.mxu1 }
 0x1e7   : > { %v1268_v60 = vadd.f32 %v1240_v9, %v1162_v52  ;;  %v1269_v56 = vadd.f32 %v1259_v10, %v1163_v24 }
 0x1e9   : > { %v5698_v57 = vadd.f32 %v1285_v54, %v1268_v60  ;;  %v5700_v42 = vadd.f32 %v1285_v54, %v1269_v56 }
 0x1eb   : > { %v4270_v59 = vmul.f32 -1.442695, %v5698_v57  ;;  %v4271_v22 = vmul.f32 -1.442695, %v5700_v42 }
 0x1ed   : > { %4740 = vpow2.f32 %v4270_v59 }
 0x1ee   : > { %4742 = vpow2.f32 %v4271_v22  ;;  %v1242_v61 = vpop.f32.mrf.mxu0  ;;  %v1261_v62 = vpop.f32.mrf.mxu1 }
 0x1ef   : > { %v1270_v0 = vadd.f32 %v1242_v61, %v1164_v23  ;;  %v1271_v35 = vadd.f32 %v1261_v62, %v1165_v46 }
 0x1f1   : > { %v5704_v37 = vadd.f32 %v1290_v1, %v1270_v0  ;;  %v5706_v38 = vadd.f32 %v1290_v1, %v1271_v35 }
 0x1f3   : > { %v4741_v16 = vpop.eup %4740  ;;  %v4272_v28 = vmul.f32 -1.442695, %v5704_v37  ;;  %v4273_v17 = vmul.f32 -1.442695, %v5706_v38 }
 0x1f4   : > { %v4743_v31 = vpop.eup %4742  ;;  %v1328_v39 = vadd.f32 1.0, %v4741_v16 }
 0x1f5   : > { %v1329_v32 = vadd.f32 1.0, %v4743_v31  ;;  %4744 = vpow2.f32 %v4272_v28 }
 0x1f6   : > { %4746 = vrcp.f32 %v1328_v39  ;;  %v1401_v9 = vand.u32 2147483647, %v1328_v39  ;;  %v1403_v10 = vand.u32 2147483648, %v1328_v39  ;;  %vm1397_vm11 = vweird.f32 %v1328_v39 }
 0x1f7   : > { %4748 = vrcp.f32 %v1329_v32  ;;  %v1418_v60 = vand.u32 2147483648, %v1329_v32  ;;  %v1416_v45 = vand.u32 2147483647, %v1329_v32  ;;  %vm1412_vm13 = vweird.f32 %v1329_v32 }
 0x1f8   : > { %4750 = vpow2.f32 %v4273_v17  ;;  %v1404_v6 = vor.u32 1.1754944e-38, %v1403_v10  ;;  %vm1402_vm14 = vcmp.eq.f32.partialorder %v1401_v9, 8.507059e+37 }
 0x1f9   : > { %v1419_v23 = vor.u32 1.1754944e-38, %v1418_v60  ;;  %vm1417_vm2 = vcmp.eq.f32.partialorder %v1416_v45, 8.507059e+37  ;;  %v358_v60 = vld [vmem:[%s6985_s3 + $0x8] sm:$0xff]  ;;  %v365_v45 = vld [vmem:[%s6985_s3 + $0x40] sm:$0xff] }
 0x1fb   : > { %v4745_v34 = vpop.eup %4744 }
 0x1fc   : > { %v4747_v25 = vpop.eup %4746  ;;  %v1330_v49 = vadd.f32 1.0, %v4745_v34 }
 0x1fd   : > { %v4749_v51 = vpop.eup %4748  ;;  %v1393_v8 = vmul.f32 %v4747_v25, %v1328_v39  ;;  %vm1398_vm9 = vweird.f32 %v4747_v25 }
 0x1fe   : > { %v4751_v21 = vpop.eup %4750  ;;  %v1408_v52 = vmul.f32 %v4749_v51, %v1329_v32  ;;  %4752 = vrcp.f32 %v1330_v49  ;;  %vm1413_vm10 = vweird.f32 %v4749_v51  ;;  %vm1399_vm12 = vmor %vm1397_vm11, %vm1398_vm9  ;;  %v1433_v31 = vand.u32 2147483648, %v1330_v49 }
 0x1ff   : > { %v1394_v24 = vsub.f32 1.0, %v1393_v8  ;;  %v1331_v54 = vadd.f32 1.0, %v4751_v21  ;;  %vm1414_vm15 = vmor %vm1412_vm13, %vm1413_vm10  ;;  %v1431_v32 = vand.u32 2147483647, %v1330_v49 }
 0x200   : > { %v1409_v11 = vsub.f32 1.0, %v1408_v52 }
 0x201   : > { %v1395_v36 = vmul.f32 %v4747_v25, %v1394_v24  ;;  %4754 = vrcp.f32 %v1331_v54  ;;  %v1446_v8 = vand.u32 2147483647, %v1331_v54  ;;  %vm1442_vm13 = vweird.f32 %v1331_v54 }
 0x202   : > { %v1410_v56 = vmul.f32 %v4749_v51, %v1409_v11 }
 0x203   : > { %v1396_v12 = vadd.f32 %v4747_v25, %v1395_v36 }
 0x204   : > { %v4753_v20 = vpop.eup %4752  ;;  %v1411_v59 = vadd.f32 %v4749_v51, %v1410_v56 }
 0x205   : > { %v1400_v22 = vsel %vm1399_vm12, %v4747_v25, %v1396_v12  ;;  %v1423_v46 = vmul.f32 %v4753_v20, %v1330_v49  ;;  %vm1428_vm9 = vweird.f32 %v4753_v20  ;;  %v1448_v25 = vand.u32 2147483648, %v1331_v54  ;;  %v366_v12 = vld [vmem:[%s6985_s3 + $0x48] sm:$0xff] }
 0x206   : > { %v1405_v1 = vsel %vm1402_vm14, %v1404_v6, %v1400_v22  ;;  %v1415_v61 = vsel %vm1414_vm15, %v4749_v51, %v1411_v59  ;;  %vm1432_vm12 = vcmp.eq.f32.partialorder %v1431_v32, 8.507059e+37  ;;  %vm1447_vm15 = vcmp.eq.f32.partialorder %v1446_v8, 8.507059e+37  ;;  %v364_v6 = vld [vmem:[%s6985_s3 + $0x38] sm:$0xff] }
 0x207   : > { %v4755_v62 = vpop.eup %4754  ;;  %v1420_v0 = vsel %vm1417_vm2, %v1419_v23, %v1415_v61  ;;  %v5711_v35 = vmul.f32 %v1405_v1, %v5698_v57  ;;  %v1424_v16 = vsub.f32 1.0, %v1423_v46  ;;  %vm1427_vm2 = vweird.f32 %v1330_v49 }
 0x208   : > { %v5714_v28 = vmul.f32 %v1420_v0, %v5700_v42  ;;  %v1438_v39 = vmul.f32 %v4755_v62, %v1331_v54  ;;  %vm1429_vm10 = vmor %vm1427_vm2, %vm1428_vm9  ;;  %v1434_v42 = vor.u32 1.1754944e-38, %v1433_v31  ;;  %vm1443_vm11 = vweird.f32 %v4755_v62  ;;  %v362_v54 = vld [vmem:[%s6985_s3 + $0x28] sm:$0xff] }
 0x209   : > { %v1425_v17 = vmul.f32 %v4753_v20, %v1424_v16  ;;  %1460 = vrot.lane.b32.xlu1 %v5711_v35, %s7008_s12  ;;  %1480 = vrot.lane.b32.xlu0 %v5711_v35, %s4959_s30  ;;  %vm1444_vm14 = vmor %vm1442_vm13, %vm1443_vm11  ;;  %v1449_v9 = vor.u32 1.1754944e-38, %v1448_v25  ;;  %vm1506_vm9 = vcmask 130048  }
 0x20a   : > { %v1439_v34 = vsub.f32 1.0, %v1438_v39  ;;  %1484 = vrot.lane.b32.xlu2 %v5714_v28, %s4959_s30 }
 0x20b   : > { %v1426_v57 = vadd.f32 %v4753_v20, %v1425_v17 }
 0x20c   : > { %v1440_v51 = vmul.f32 %v4755_v62, %v1439_v34 }
 0x20d   : > { %v1430_v21 = vsel %vm1429_vm10, %v4753_v20, %v1426_v57 }
 0x20e   : > { %v1435_v52 = vsel %vm1432_vm12, %v1434_v42, %v1430_v21  ;;  %v1441_v24 = vadd.f32 %v4755_v62, %v1440_v51 }
 0x20f   : > { %v5723_v10 = vmul.f32 %v1435_v52, %v5704_v37  ;;  %v357_v37 = vld [vmem:[%s6985_s3] sm:$0xff] }
 0x210   : > { %v1445_v11 = vsel %vm1444_vm14, %v4755_v62, %v1441_v24 }
 0x211   : > { %v1450_v36 = vsel %vm1447_vm15, %v1449_v9, %v1445_v11  ;;  %1482 = vrot.lane.b32.xlu1 %v5723_v10, %s4959_s30  ;;  %v4620_v11 = vld [vmem:[#allocation5 + $0x8] sm:$0xff] }
 0x212   : > { %v5728_v49 = vmul.f32 %v1450_v36, %v5706_v38  ;;  %1574 = vrot.lane.b32.xlu2 %v5711_v35, %s7010_s13  ;;  %v361_v38 = vld [vmem:[%s6985_s3 + $0x20] sm:$0xff] }
 0x214   : > { %1486 = vrot.lane.b32.xlu0 %v5728_v49, %s4959_s30 }
 0x219   : > { %1578 = vrot.lane.b32.xlu1 %v5714_v28, %s7010_s13 }
 0x21a   : > { %1462 = vrot.lane.b32.xlu2 %v5723_v10, %s7008_s12 }
 0x21c   : > { %1464 = vrot.lane.b32.xlu0 %v5714_v28, %s7008_s12 }
 0x221   : > { %1466 = vrot.lane.b32.xlu1 %v5728_v49, %s7008_s12  ;;  %s7065_s12 = smov 17  }
 0x222   : > { %1580 = vrot.lane.b32.xlu2 %v5728_v49, %s7010_s13 }
 0x224   : > { %1635 = vrot.lane.b32.xlu0 %v5711_v35, %s7006_s16 }
 0x229   : > { %1741 = vrot.lane.b32.xlu1 %v5711_v35, %s7000_s17 }
 0x22a   : > { %1639 = vrot.lane.b32.xlu2 %v5714_v28, %s7006_s16 }
 0x22c   : > { %1576 = vrot.lane.b32.xlu0 %v5723_v10, %s7010_s13  ;;  %s7067_s13 = smov 1  }
 0x231   : > { %1637 = vrot.lane.b32.xlu1 %v5723_v10, %s7006_s16 }
 0x232   : > { %1802 = vrot.lane.b32.xlu2 %v5711_v35, %s7004_s18 }
 0x234   : > { %1641 = vrot.lane.b32.xlu0 %v5728_v49, %s7006_s16  ;;  %s7068_s16 = smov 113  }
 0x239   : > { %1806 = vrot.lane.b32.xlu1 %v5714_v28, %s7004_s18 }
 0x23a   : > { %1743 = vrot.lane.b32.xlu2 %v5723_v10, %s7000_s17 }
 0x23c   : > { %1745 = vrot.lane.b32.xlu0 %v5714_v28, %s7000_s17 }
 0x241   : > { %1747 = vrot.lane.b32.xlu1 %v5728_v49, %s7000_s17  ;;  %s4600_s17 = sshll.u32 %s332_s22, 6  ;;  %s7069_s22 = smov 127  }
 0x242   : > { %1808 = vrot.lane.b32.xlu2 %v5728_v49, %s7004_s18  ;;  %s5809_s9 = scalar_lea.vmem %s6983_s1, %s4600_s17 }
 0x243   : > { %v351_v59 = vld [vmem:[%s5809_s9 + $0x10] sm:$0xff]  ;;  %v356_v46 = vld [vmem:[%s5809_s9 + $0x38] sm:$0xff]  ;;  %v350_v0 = vld [vmem:[%s5809_s9 + $0x8] sm:$0xff] }
 0x244   : > { %1863 = vrot.lane.b32.xlu0 %v5711_v35, %s7002_s14  ;;  %v355_v23 = vld [vmem:[%s5809_s9 + $0x30] sm:$0xff]  ;;  %v353_v16 = vld [vmem:[%s5809_s9 + $0x20] sm:$0xff] }
 0x249   : > { %1924 = vrot.lane.b32.xlu1 %v5711_v35, %s7040_s11 }
 0x24a   : > { %1867 = vrot.lane.b32.xlu2 %v5714_v28, %s7002_s14 }
 0x24c   : > { %1804 = vrot.lane.b32.xlu0 %v5723_v10, %s7004_s18 }
 0x251   : > { %1865 = vrot.lane.b32.xlu1 %v5723_v10, %s7002_s14 }
 0x252   : > { %1926 = vrot.lane.b32.xlu2 %v5723_v10, %s7040_s11 }
 0x254   : > { %1869 = vrot.lane.b32.xlu0 %v5728_v49, %s7002_s14 }
 0x259   : > { %1930 = vrot.lane.b32.xlu1 %v5728_v49, %s7040_s11 }
 0x25a   : > { %1274 = vperm.xlu2 %4736, %v357_v37  }
 0x25c   : > { %1928 = vrot.lane.b32.xlu0 %v5714_v28, %s7040_s11 }
 0x261   : > { %1987 = vperm.xlu1 %4735, %v361_v38  }
 0x262   : > { %1992 = vperm.xlu2 %4736, %v362_v54  }
 0x264   : > { %1279 = vperm.xlu0 %4737, %v358_v60   ;;  %v1485_v56 = vpop.permute.xlu2 %1484 }
 0x269   : > { %2132 = vperm.xlu1 %4735, %v365_v45  }
 0x26a   : > { %2137 = vperm.xlu2 %4736, %v366_v12  }
 0x26c   : > { %v1575_v20 = vpop.permute.xlu2 %1574 }
 0x271   : > { %2127 = vperm.xlu1 %4735, %v364_v6  }
 0x272   : > { %2168 = vperm.xlu2 %4736, %v351_v59  }
 0x274   : > { %v1463_v22 = vpop.permute.xlu2 %1462 }
 0x279   : > { %2196 = vperm.xlu1 %4735, %v355_v23  }
 0x27a   : > { %2201 = vperm.xlu2 %4736, %v356_v46  }
 0x27b   : > { %v1461_v1 = vpop.permute.xlu1 %1460  ;;  %v1481_v61 = vpop.permute.xlu0 %1480 }
 0x27c   : > { %v1581_v62 = vpop.permute.xlu2 %1580  ;;  %v1488_v17 = vsel %vm428_vm0, %v1481_v61, %v1485_v56  ;;  %v1490_v32 = vsel %vm428_vm0, %v1485_v56, %v1481_v61 }
 0x27d   : > { %v1492_v42 = vmul.f32 %v1490_v32, %v5254_v18  ;;  %v1493_v51 = vmul.f32 %v1488_v17, %v5257_v19 }
 0x281   : > { %2163 = vperm.xlu1 %4735, %v350_v0  }
 0x282   : > { %2186 = vperm.xlu2 %4736, %v353_v16  }
 0x283   : > { %v1483_v31 = vpop.permute.xlu1 %1482 }
 0x284   : > { %v1640_v39 = vpop.permute.xlu2 %1639 }
 0x286   : > { %v1487_v34 = vpop.permute.xlu0 %1486 }
 0x287   : > { %v1489_v57 = vsel %vm428_vm0, %v1483_v31, %v1487_v34  ;;  %v1491_v25 = vsel %vm428_vm0, %v1487_v34, %v1483_v31  ;;  %v4619_v31 = vld [vmem:[#allocation5] sm:$0xff] }
 0x288   : > { %v1494_v8 = vmul.f32 %v1491_v25, %v5254_v18  ;;  %v1495_v21 = vmul.f32 %v1489_v57, %v5257_v19 }
 0x28a   : > { %v1496_v52 = vpack.c.bf16 %v1494_v8, %v1492_v42  ;;  %v1497_v24 = vpack.c.bf16 %v1495_v21, %v1493_v51 }
 0x28b   : > { %v1579_v9 = vpop.permute.xlu1 %1578 }
 0x28c   : > { %1517 = vmatpush.bf16.msra.mxu2 %v1496_v52  ;;  %1531 = vmatpush.bf16.msra.mxu3 %v1497_v24  ;;  %v5831_v36 = vpop.permute.xlu2 %1802  ;;  %v1582_v17 = vsel %vm581_vm3, %v1575_v20, %v1579_v9  ;;  %v1584_v32 = vsel %vm581_vm3, %v1579_v9, %v1575_v20  ;;  %v1697_v9 = vpack.c.bf16 %v5728_v49, %v5714_v28 }
 0x28d   : > { %v1586_v51 = vmul.f32 %v1584_v32, %v5361_v29  ;;  %v1587_v8 = vmul.f32 %v1582_v17, %v5364_v30 }
 0x28e   : > { %v1465_v37 = vpop.permute.xlu0 %1464 }
 0x28f   : > { %4278 = vmatmul.msk.bf16.vlgmr.msra.gmra.mxu2 %vm1506_vm9, %v4620_v11  ;;  %4279 = vmatmul.msk.bf16.vlgmr.msra.gmra.mxu3 %vm1506_vm9, %v4620_v11  ;;  %v1468_v38 = vsel %vm385_vm1, %v1461_v1, %v1465_v37  ;;  %v1470_v54 = vsel %vm385_vm1, %v1465_v37, %v1461_v1  ;;  %v4621_v37 = vld [vmem:[#allocation5 + $0x10] sm:$0xff] }
 0x290   : > { %v1472_v12 = vmul.f32 %v1470_v54, %v5298_v47  ;;  %v1473_v6 = vmul.f32 %v1468_v38, %v5301_v48 }
 0x293   : > { %v1467_v60 = vpop.permute.xlu1 %1466 }
 0x294   : > { %v1469_v56 = vsel %vm385_vm1, %v1463_v22, %v1467_v60  ;;  %v1471_v45 = vsel %vm385_vm1, %v1467_v60, %v1463_v22  ;;  %v5845_v59 = vpop.permute.xlu2 %1743  ;;  %v363_v22 = vld [vmem:[%s6985_s3 + $0x30] sm:$0xff]  ;;  %v352_v60 = vld [vmem:[%s5809_s9 + $0x18] sm:$0xff] }
 0x295   : > { %v1474_v23 = vmul.f32 %v1471_v45, %v5298_v47  ;;  %v1475_v46 = vmul.f32 %v1469_v56, %v5301_v48  ;;  %2122 = vperm.xlu0 %4737, %v363_v22  }
 0x296   : > { %v1636_v61 = vpop.permute.xlu0 %1635 }
 0x297   : > { %v1476_v0 = vpack.c.bf16 %v1474_v23, %v1472_v12  ;;  %v1477_v1 = vpack.c.bf16 %v1475_v46, %v1473_v6  ;;  %v1643_v38 = vsel %vm687_vm4, %v1636_v61, %v1640_v39  ;;  %v1645_v54 = vsel %vm687_vm4, %v1640_v39, %v1636_v61  ;;  %v4622_v61 = vld [vmem:[#allocation5 + $0x18] sm:$0xff] }
 0x298   : > { %v1648_v49 = vmul.f32 %v1643_v38, %v5425_v2 }
 0x299   : > { %1553 = vmatpush.bf16.msrb.mxu2 %v1476_v0  ;;  %1567 = vmatpush.bf16.msrb.mxu3 %v1477_v1  ;;  %v349_v0 = vld [vmem:[%s5809_s9] sm:$0xff] }
 0x29b   : > { %v1742_v16 = vpop.permute.xlu1 %1741 }
 0x29c   : > { %v5860_v42 = vpop.permute.xlu2 %1808 }
 0x29d   : > { %2173 = vperm.xlu0 %4737, %v352_v60  }
 0x29e   : > { %v1577_v34 = vpop.permute.xlu0 %1576 }
 0x29f   : > { %v1583_v57 = vsel %vm581_vm3, %v1577_v34, %v1581_v62  ;;  %v1585_v25 = vsel %vm581_vm3, %v1581_v62, %v1577_v34  ;;  %4284 = vmatmul.msk.bf16.vlgmr.msrb.gmra.mxu2 %vm1506_vm9, %v4619_v31  ;;  %4285 = vmatmul.msk.bf16.vlgmr.msrb.gmra.mxu3 %vm1506_vm9, %v4619_v31  ;;  %v1696_v62 = vpack.c.bf16 %v5723_v10, %v5711_v35  ;;  %v4623_v34 = vld [vmem:[#allocation5 + $0x20] sm:$0xff] }
 0x2a0   : > { %v1588_v20 = vmul.f32 %v1585_v25, %v5361_v29  ;;  %v1589_v21 = vmul.f32 %v1583_v57, %v5364_v30  ;;  %v1647_v10 = vmul.f32 %v1645_v54, %v5422_v63 }
 0x2a2   : > { %v1590_v52 = vpack.c.bf16 %v1588_v20, %v1586_v51  ;;  %v1591_v24 = vpack.c.bf16 %v1589_v21, %v1587_v8  ;;  %v354_v51 = vld [vmem:[%s5809_s9 + $0x28] sm:$0xff]  ;;  %s7063_s9 = smov 15  }
 0x2a3   : > { %v1638_v11 = vpop.permute.xlu1 %1637 }
 0x2a4   : > { %1610 = vmatpush.bf16.msrb.mxu0 %v1590_v52  ;;  %1624 = vmatpush.bf16.msrb.mxu1 %v1591_v24  ;;  %v1868_v12 = vpop.permute.xlu2 %1867 }
 0x2a5   : > { %2158 = vperm.xlu0 %4737, %v349_v0  }
 0x2a6   : > { %v1642_v56 = vpop.permute.xlu0 %1641 }
 0x2a7   : > { %v1644_v35 = vsel %vm687_vm4, %v1638_v11, %v1642_v56  ;;  %v1646_v28 = vsel %vm687_vm4, %v1642_v56, %v1638_v11  ;;  %4290 = vmatmul.msk.bf16.vlgmr.msrb.gmra.mxu0 %vm1506_vm9, %v4621_v37  ;;  %4291 = vmatmul.msk.bf16.vlgmr.msrb.gmra.mxu1 %vm1506_vm9, %v4621_v37 }
 0x2a8   : > { %1716 = vmatpush.bf16.msra.mxu0 %v1696_v62  ;;  %1730 = vmatpush.bf16.msra.mxu1 %v1697_v9  ;;  %v1649_v39 = vmul.f32 %v1646_v28, %v5422_v63  ;;  %v1650_v45 = vmul.f32 %v1644_v35, %v5425_v2  ;;  %v4624_v9 = vld [vmem:[#allocation5 + $0x28] sm:$0xff] }
 0x2aa   : > { %v1651_v6 = vpack.c.bf16 %v1649_v39, %v1647_v10  ;;  %v1652_v23 = vpack.c.bf16 %v1650_v45, %v1648_v49  ;;  %v558_v45 = vadd.f32 %v5654_v27, %v5621_v55 }
 0x2ab   : > { %v1807_v46 = vpop.permute.xlu1 %1806 }
 0x2ac   : > { %1671 = vmatpush.bf16.msra.mxu2 %v1651_v6  ;;  %1685 = vmatpush.bf16.msra.mxu3 %v1652_v23  ;;  %v5894_v17 = vpop.permute.xlu2 %1926  ;;  %v1810_v37 = vsel %vm970_vm6, %v5831_v36, %v1807_v46  ;;  %v1812_v54 = vsel %vm970_vm6, %v1807_v46, %v5831_v36  ;;  %v539_v36 = vadd.f32 %v5652_v26, %v5619_v53 }
 0x2ad   : > { %2191 = vperm.xlu0 %4737, %v354_v51   ;;  %v1814_v49 = vmul.f32 %v1810_v37, %v5509_v13  ;;  %v1815_v39 = vmul.f32 %v1812_v54, %v5512_v15  ;;  %v666_v26 = vadd.f32 %v5663_v44, %v558_v45 }
 0x2ae   : > { %v1746_v1 = vpop.permute.xlu0 %1745 }
 0x2af   : > { %4296 = vmatmul.msk.bf16.vlgmr.msra.gmra.mxu2 %vm1506_vm9, %v4622_v61  ;;  %4297 = vmatmul.msk.bf16.vlgmr.msra.gmra.mxu3 %vm1506_vm9, %v4622_v61  ;;  %v1749_v31 = vsel %vm7014_vm5, %v1742_v16, %v1746_v1  ;;  %v1751_v22 = vsel %vm7014_vm5, %v1746_v1, %v1742_v16 }
 0x2b0   : > { %v1753_v21 = vmul.f32 %v1749_v31, %v5463_v40  ;;  %v1754_v16 = vmul.f32 %v1751_v22, %v5466_v41 }
 0x2b3   : > { %v1748_v32 = vpop.permute.xlu1 %1747 }
 0x2b4   : > { %v1750_v57 = vsel %vm7014_vm5, %v5845_v59, %v1748_v32  ;;  %v1752_v25 = vsel %vm7014_vm5, %v1748_v32, %v5845_v59  ;;  %v1275_v11 = vpop.permute.xlu2 %1274  ;;  %v7041_v32 = vld [vmem:[#allocation11_spill] sm:$0xff] }
 0x2b5   : > { %v1755_v8 = vmul.f32 %v1750_v57, %v5463_v40  ;;  %v1756_v20 = vmul.f32 %v1752_v25, %v5466_v41  ;;  %v5924_v35 = vadd.f32 %v1275_v11, %v5688_v33  ;;  %v665_v33 = vadd.f32 %v5661_v43, %v539_v36  ;;  %v7042_v25 = vld [vmem:[#allocation14_spill] sm:$0xff] }
 0x2b6   : > { %v1864_v52 = vpop.permute.xlu0 %1863  ;;  %v772_v43 = vadd.f32 %v5670_v5, %v666_v26 }
 0x2b7   : > { %4302 = vmatmul.msk.bf16.vlgmr.msra.gmra.mxu0 %vm1506_vm9, %v4623_v34  ;;  %4303 = vmatmul.msk.bf16.vlgmr.msra.gmra.mxu1 %vm1506_vm9, %v4623_v34  ;;  %v1757_v24 = vpack.c.bf16 %v1755_v8, %v1753_v21  ;;  %v1758_v62 = vpack.c.bf16 %v1756_v20, %v1754_v16  ;;  %v1871_v23 = vsel %vm7013_vm7, %v1864_v52, %v1868_v12  ;;  %v4266_v46 = vmul.f32 -1.442695, %v5924_v35  ;;  %v7043_v8 = vld [vmem:[#allocation15_spill] sm:$0xff]  ;;  %v4626_v16 = vld [vmem:[#allocation5 + $0x38] sm:$0xff] }
 0x2b8   : > { %v1873_v0 = vsel %vm7013_vm7, %v1868_v12, %v1864_v52  ;;  %v771_v1 = vadd.f32 %v5668_v4, %v665_v33  ;;  %v1875_v31 = vmul.f32 %v1871_v23, %v5555_v58  ;;  %v843_v20 = vadd.f32 %v7043_v8, %v772_v43  ;;  %v7048_v33 = vld [vmem:[#allocation18_spill] sm:$0xff]  ;;  %v7049_v23 = vld [vmem:[#allocation19_spill] sm:$0xff] }
 0x2b9   : > { %1777 = vmatpush.bf16.msrb.mxu2 %v1757_v24  ;;  %1791 = vmatpush.bf16.msrb.mxu3 %v1758_v62  ;;  %v1876_v12 = vmul.f32 %v1873_v0, %v7041_v32  ;;  %4756 = vpow2.f32 %v4266_v46  ;;  %v7044_v62 = vld [vmem:[#allocation16_spill] sm:$0xff] }
 0x2ba   : > { %v842_v51 = vadd.f32 %v7042_v25, %v771_v1  ;;  %v7050_v0 = vld [vmem:[#allocation20_spill] sm:$0xff]  ;;  %v7051_v1 = vld [vmem:[#allocation21_spill] sm:$0xff] }
 0x2bb   : > { %v1925_v59 = vpop.permute.xlu1 %1924 }
 0x2be   : > { %v1805_v38 = vpop.permute.xlu0 %1804 }
 0x2bf   : > { %v1811_v60 = vsel %vm970_vm6, %v1805_v38, %v5860_v42  ;;  %v1813_v56 = vsel %vm970_vm6, %v5860_v42, %v1805_v38  ;;  %4308 = vmatmul.msk.bf16.vlgmr.msrb.gmra.mxu2 %vm1506_vm9, %v4624_v9  ;;  %4309 = vmatmul.msk.bf16.vlgmr.msrb.gmra.mxu3 %vm1506_vm9, %v4624_v9  ;;  %v5933_v42 = vadd.f32 %v1275_v11, %v5690_v50  ;;  %v4625_v50 = vld [vmem:[#allocation5 + $0x30] sm:$0xff]  ;;  %v7045_v11 = vld [vmem:[#allocation17_spill] sm:$0xff]  ;;  %v4757_v38 = vpop.eup %4756 }
 0x2c0   : > { %v1816_v28 = vmul.f32 %v1811_v60, %v5509_v13  ;;  %v1817_v10 = vmul.f32 %v1813_v56, %v5512_v15  ;;  %v948_v9 = vadd.f32 %v7044_v62, %v842_v51  ;;  %v949_v37 = vadd.f32 %v7045_v11, %v843_v20  ;;  %v7046_v60 = vld [vmem:[#allocation12_spill] sm:$0xff] }
 0x2c1   : > { %v4267_v55 = vmul.f32 -1.442695, %v5933_v42 }
 0x2c2   : > { %v1818_v61 = vpack.c.bf16 %v1816_v28, %v1814_v49  ;;  %v1819_v53 = vpack.c.bf16 %v1817_v10, %v1815_v39  ;;  %v7047_v28 = vld [vmem:[#allocation13_spill] sm:$0xff]  ;;  %v1055_v46 = vadd.f32 %v7049_v23, %v949_v37 }
 0x2c3   : > { %v1866_v6 = vpop.permute.xlu1 %1865  ;;  %4758 = vpow2.f32 %v4267_v55 }
 0x2c4   : > { %1838 = vmatpush.bf16.msrb.mxu0 %v1818_v61  ;;  %1852 = vmatpush.bf16.msrb.mxu1 %v1819_v53  ;;  %v1324_v61 = vadd.f32 1.0, %v4757_v38 }
 0x2c6   : > { %v1870_v27 = vpop.permute.xlu0 %1869  ;;  %4760 = vrcp.f32 %v1324_v61  ;;  %v1341_v62 = vand.u32 2147483647, %v1324_v61  ;;  %v1343_v37 = vand.u32 2147483648, %v1324_v61  ;;  %vm1337_vm10 = vweird.f32 %v1324_v61 }
 0x2c7   : > { %v1872_v22 = vsel %vm7013_vm7, %v1866_v6, %v1870_v27  ;;  %v1874_v44 = vsel %vm7013_vm7, %v1870_v27, %v1866_v6  ;;  %4314 = vmatmul.msk.bf16.vlgmr.msrb.gmra.mxu0 %vm1506_vm9, %v4625_v50  ;;  %4315 = vmatmul.msk.bf16.vlgmr.msrb.gmra.mxu1 %vm1506_vm9, %v4625_v50  ;;  %v1054_v6 = vadd.f32 %v7048_v33, %v948_v9 }
 0x2c8   : > { %v1877_v4 = vmul.f32 %v1872_v22, %v5555_v58  ;;  %v1878_v34 = vmul.f32 %v1874_v44, %v7041_v32  ;;  %vm5995_vm14 = vcmp.eq.f32.partialorder %v1341_v62, 8.507059e+37 }
 0x2c9   : > { %v1160_v50 = vadd.f32 %v7050_v0, %v1054_v6 }
 0x2ca   : > { %v1879_v5 = vpack.c.bf16 %v1877_v4, %v1875_v31  ;;  %v1880_v57 = vpack.c.bf16 %v1878_v34, %v1876_v12  ;;  %v4627_v31 = vld [vmem:[#allocation5 + $0x40] sm:$0xff] }
 0x2cb   : > { %v1931_v21 = vpop.permute.xlu1 %1930  ;;  %v1266_v27 = vadd.f32 %v5694_v3, %v1160_v50 }
 0x2cc   : > { %1899 = vmatpush.bf16.msra.mxu2 %v1879_v5  ;;  %1913 = vmatpush.bf16.msra.mxu3 %v1880_v57  ;;  %v1933_v52 = vsel %vm7012_vm8, %v5894_v17, %v1931_v21  ;;  %v1935_v24 = vsel %vm7012_vm8, %v1931_v21, %v5894_v17  ;;  %v4759_v17 = vpop.eup %4758 }
 0x2cd   : > { %v1938_v56 = vmul.f32 %v7046_v60, %v1933_v52  ;;  %v1939_v10 = vmul.f32 %v7047_v28, %v1935_v24  ;;  %v1325_v55 = vadd.f32 1.0, %v4759_v17  ;;  %v4761_v5 = vpop.eup %4760 }
 0x2ce   : > { %v1929_v54 = vpop.permute.xlu0 %1928  ;;  %v1333_v3 = vmul.f32 %v4761_v5, %v1324_v61  ;;  %vm1338_vm2 = vweird.f32 %v4761_v5 }
 0x2cf   : > { %v1932_v36 = vsel %vm7012_vm8, %v1925_v59, %v1929_v54  ;;  %v1934_v49 = vsel %vm7012_vm8, %v1929_v54, %v1925_v59  ;;  %4320 = vmatmul.msk.bf16.vlgmr.msra.gmra.mxu2 %vm1506_vm9, %v4626_v16  ;;  %4321 = vmatmul.msk.bf16.vlgmr.msra.gmra.mxu3 %vm1506_vm9, %v4626_v16  ;;  %v1161_v59 = vadd.f32 %v7051_v1, %v1055_v46  ;;  %4762 = vrcp.f32 %v1325_v55  ;;  %vm5991_vm13 = vmor %vm1337_vm10, %vm1338_vm2 }
 0x2d0   : > { %v1936_v39 = vmul.f32 %v7046_v60, %v1932_v36  ;;  %v1937_v45 = vmul.f32 %v7047_v28, %v1934_v49  ;;  %v1334_v8 = vsub.f32 1.0, %v1333_v3  ;;  %vm1352_vm11 = vweird.f32 %v1325_v55 }
 0x2d1   : > { %v1267_v43 = vadd.f32 %v5696_v7, %v1161_v59  ;;  %v1356_v36 = vand.u32 2147483647, %v1325_v55  ;;  %v1358_v49 = vand.u32 2147483648, %v1325_v55 }
 0x2d2   : > { %v1940_v53 = vpack.c.bf16 %v1938_v56, %v1936_v39  ;;  %v1941_v26 = vpack.c.bf16 %v1939_v10, %v1937_v45  ;;  %v1335_v52 = vmul.f32 %v4761_v5, %v1334_v8  ;;  %v1344_v45 = vor.u32 1.1754944e-38, %v1343_v37 }
 0x2d3   : > { %vm1357_vm8 = vcmp.eq.f32.partialorder %v1356_v36, 8.507059e+37  ;;  %v1359_v1 = vor.u32 1.1754944e-38, %v1358_v49 }
 0x2d4   : > { %1960 = vmatpush.bf16.msra.mxu0 %v1940_v53  ;;  %1974 = vmatpush.bf16.msra.mxu1 %v1941_v26  ;;  %v1336_v11 = vadd.f32 %v4761_v5, %v1335_v52 }
 0x2d5   : > { %v4763_v7 = vpop.eup %4762 }
 0x2d6   : > { %v1280_v22 = vpop.permute.xlu0 %1279  ;;  %v1348_v57 = vmul.f32 %v4763_v7, %v1325_v55  ;;  %vm1353_vm12 = vweird.f32 %v4763_v7  ;;  %v1340_v39 = vsel %vm5991_vm13, %v4761_v5, %v1336_v11 }
 0x2d7   : > { %v5983_v44 = vadd.f32 %v1280_v22, %v1266_v27  ;;  %v5985_v12 = vadd.f32 %v1280_v22, %v1267_v43  ;;  %4326 = vmatmul.msk.bf16.vlgmr.msra.gmra.mxu0 %vm1506_vm9, %v4627_v31  ;;  %4327 = vmatmul.msk.bf16.vlgmr.msra.gmra.mxu1 %vm1506_vm9, %v4627_v31  ;;  %vm6001_vm15 = vmor %vm1352_vm11, %vm1353_vm12  ;;  %v1345_v55 = vsel %vm5995_vm14, %v1344_v45, %v1340_v39  ;;  %v4628_v45 = vld [vmem:[%s6988_s6] sm:$0xff] }
 0x2d8   : > { %v1349_v16 = vsub.f32 1.0, %v1348_v57 }
 0x2d9   : > { %v4268_v4 = vmul.f32 -1.442695, %v5983_v44  ;;  %v4269_v34 = vmul.f32 -1.442695, %v5985_v12 }
 0x2da   : > { %v1350_v24 = vmul.f32 %v4763_v7, %v1349_v16 }
 0x2db   : > { %4764 = vpow2.f32 %v4268_v4 }
 0x2dc   : > { %4766 = vpow2.f32 %v4269_v34  ;;  %v1351_v60 = vadd.f32 %v4763_v7, %v1350_v24 }
 0x2de   : > { %v1355_v26 = vsel %vm6001_vm15, %v4763_v7, %v1351_v60  ;;  %v1452_v7 = vmul.f32 %v1345_v55, %v5924_v35 }
 0x2df   : > { %v1360_v31 = vsel %vm1357_vm8, %v1359_v1, %v1355_v26 }
 0x2e1   : > { %v4765_v25 = vpop.eup %4764 }
 0x2e2   : > { %v4767_v51 = vpop.eup %4766  ;;  %v1326_v20 = vadd.f32 1.0, %v4765_v25  ;;  %v1453_v25 = vmul.f32 %v1360_v31, %v5933_v42 }
 0x2e3   : > { %v1327_v21 = vadd.f32 1.0, %v4767_v51 }
 0x2e4   : > { %4768 = vrcp.f32 %v1326_v20  ;;  %v1373_v33 = vand.u32 2147483648, %v1326_v20  ;;  %v1371_v61 = vand.u32 2147483647, %v1326_v20  ;;  %vm1367_vm13 = vweird.f32 %v1326_v20 }
 0x2e5   : > { %4770 = vrcp.f32 %v1327_v21  ;;  %v1388_v53 = vand.u32 2147483648, %v1327_v21  ;;  %v1386_v50 = vand.u32 2147483647, %v1327_v21  ;;  %vm1382_vm12 = vweird.f32 %v1327_v21 }
 0x2e6   : > { %v1374_v27 = vor.u32 1.1754944e-38, %v1373_v33  ;;  %vm1372_vm7 = vcmp.eq.f32.partialorder %v1371_v61, 8.507059e+37 }
 0x2e7   : > { %v1389_v4 = vor.u32 1.1754944e-38, %v1388_v53  ;;  %vm1387_vm15 = vcmp.eq.f32.partialorder %v1386_v50, 8.507059e+37 }
 0x2ea   : > { %v4769_v9 = vpop.eup %4768 }
 0x2eb   : > { %v4771_v38 = vpop.eup %4770  ;;  %v1363_v54 = vmul.f32 %v4769_v9, %v1326_v20  ;;  %vm1368_vm2 = vweird.f32 %v4769_v9 }
 0x2ec   : > { %v1378_v56 = vmul.f32 %v4771_v38, %v1327_v21  ;;  %vm1383_vm10 = vweird.f32 %v4771_v38  ;;  %vm1369_vm11 = vmor %vm1367_vm13, %vm1368_vm2 }
 0x2ed   : > { %v1364_v17 = vsub.f32 1.0, %v1363_v54  ;;  %vm1384_vm5 = vmor %vm1382_vm12, %vm1383_vm10 }
 0x2ee   : > { %v1379_v6 = vsub.f32 1.0, %v1378_v56 }
 0x2ef   : > { %v1365_v46 = vmul.f32 %v4769_v9, %v1364_v17 }
 0x2f0   : > { %v1380_v0 = vmul.f32 %v4771_v38, %v1379_v6 }
 0x2f1   : > { %v1366_v59 = vadd.f32 %v4769_v9, %v1365_v46 }
 0x2f2   : > { %v1381_v43 = vadd.f32 %v4771_v38, %v1380_v0 }
 0x2f3   : > { %v1370_v22 = vsel %vm1369_vm11, %v4769_v9, %v1366_v59 }
 0x2f4   : > { %v1375_v34 = vsel %vm1372_vm7, %v1374_v27, %v1370_v22  ;;  %v1385_v5 = vsel %vm1384_vm5, %v4771_v38, %v1381_v43  ;;  %vm7071_vm5 = vcmask 261120  }
 0x2f5   : > { %v1390_v3 = vsel %vm1387_vm15, %v1389_v4, %v1385_v5  ;;  %v1454_v57 = vmul.f32 %v1375_v34, %v5983_v44  ;;  %vm7072_vm7 = vmmov %vm7071_vm5 }
 0x2f6   : > { %v1455_v51 = vmul.f32 %v1390_v3, %v5985_v12  ;;  %vm7073_vm8 = vmmov %vm7071_vm5 }
 0x2f7   : > { %v2003_v8 = vpack.c.bf16 %v1454_v57, %v1452_v7  ;;  %vm7074_vm14 = vmmov %vm7071_vm5 }
 0x2f8   : > { %v2004_v20 = vpack.c.bf16 %v1455_v51, %v1453_v25  ;;  %v4629_v25 = vld [vmem:[%s6988_s6 + $0x8] sm:$0xff]  ;;  %vm7075_vm2 = vmmov %vm7071_vm5 }
 0x2f9   : > { %2089 = vmatpush.bf16.msrb.mxu0 %v2003_v8  ;;  %vm7076_vm10 = vmmov %vm7075_vm2 }
 0x2fa   : > { %2108 = vmatpush.bf16.msrb.mxu1 %v2004_v20  ;;  %vm7077_vm13 = vmmov %vm7075_vm2 }
 0x2fb   : > { %vm7078_vm11 = vmmov %vm7075_vm2 }
 0x2fc   : > { %4352 = vmatmul.msk.bf16.vlgmr.msrb.gmra.mxu0 %vm1506_vm9, %v4628_v45  ;;  %vm7079_vm12 = vmmov %vm7075_vm2 }
 0x2fd   : > { %4354 = vmatmul.msk.bf16.vlgmr.msrb.gmra.mxu1 %vm1506_vm9, %v4628_v45  ;;  %v1988_v45 = vpop.permute.xlu1 %1987  ;;  %vm7080_vm15 = vmmov %vm7075_vm2 }
 0x30c   : > { %4353 = vmatmul.msk.bf16.gmra.mxu0 %vm1506_vm9, %v4629_v25 }
 0x30d   : > { %4355 = vmatmul.msk.bf16.gmra.mxu1 %vm1506_vm9, %v4629_v25 }
 0x312   : > { %v1519_v21 = vpop.f32.mrf.mxu2  ;;  %v1533_v16 = vpop.f32.mrf.mxu3 }
 0x31a   : > { %v1521_v52 = vpop.f32.mrf.mxu2  ;;  %v1535_v24 = vpop.f32.mrf.mxu3 }
 0x322   : > { %v1555_v62 = vpop.f32.mrf.mxu2  ;;  %v1569_v9 = vpop.f32.mrf.mxu3 }
 0x323   : > { %v1556_v23 = vadd.f32 %v1555_v62, %v1519_v21  ;;  %v1570_v46 = vadd.f32 %v1569_v9, %v1533_v16 }
 0x324   : > { %v1612_v11 = vpop.f32.mrf.mxu0  ;;  %v1626_v37 = vpop.f32.mrf.mxu1 }
 0x325   : > { %v1631_v50 = vadd.f32 %v1612_v11, %v1556_v23  ;;  %v1632_v1 = vadd.f32 %v1626_v37, %v1570_v46 }
 0x32a   : > { %v1557_v35 = vpop.f32.mrf.mxu2  ;;  %v1571_v38 = vpop.f32.mrf.mxu3 }
 0x32b   : > { %v1558_v61 = vadd.f32 %v1557_v35, %v1521_v52  ;;  %v1572_v53 = vadd.f32 %v1571_v38, %v1535_v24 }
 0x32c   : > { %v1614_v54 = vpop.f32.mrf.mxu0  ;;  %v1628_v44 = vpop.f32.mrf.mxu1 }
 0x32d   : > { %v1633_v59 = vadd.f32 %v1614_v54, %v1558_v61  ;;  %v1634_v55 = vadd.f32 %v1628_v44, %v1572_v53 }
 0x332   : > { %v1673_v60 = vpop.f32.mrf.mxu2  ;;  %v1687_v42 = vpop.f32.mrf.mxu3 }
 0x333   : > { %v1692_v27 = vadd.f32 %v1673_v60, %v1631_v50  ;;  %v1693_v43 = vadd.f32 %v1687_v42, %v1632_v1  ;;  %v2133_v1 = vpop.permute.xlu1 %2132 }
 0x334   : > { %v1718_v56 = vpop.f32.mrf.mxu0  ;;  %v1732_v12 = vpop.f32.mrf.mxu1 }
 0x335   : > { %v1737_v5 = vadd.f32 %v1718_v56, %v1692_v27  ;;  %v1738_v7 = vadd.f32 %v1732_v12, %v1693_v43 }
 0x33a   : > { %v1675_v28 = vpop.f32.mrf.mxu2  ;;  %v1689_v10 = vpop.f32.mrf.mxu3 }
 0x33b   : > { %v1694_v4 = vadd.f32 %v1675_v28, %v1633_v59  ;;  %v1695_v34 = vadd.f32 %v1689_v10, %v1634_v55  ;;  %v2123_v59 = vpop.permute.xlu0 %2122  ;;  %v2128_v27 = vpop.permute.xlu1 %2127 }
 0x33c   : > { %v1720_v36 = vpop.f32.mrf.mxu0  ;;  %v1734_v49 = vpop.f32.mrf.mxu1 }
 0x33d   : > { %v1739_v51 = vadd.f32 %v1720_v36, %v1694_v4  ;;  %v1740_v8 = vadd.f32 %v1734_v49, %v1695_v34 }
 0x342   : > { %v1779_v17 = vpop.f32.mrf.mxu2  ;;  %v1793_v39 = vpop.f32.mrf.mxu3 }
 0x343   : > { %v1798_v20 = vadd.f32 %v1779_v17, %v1737_v5  ;;  %v1799_v21 = vadd.f32 %v1793_v39, %v1738_v7  ;;  %v1993_v39 = vpop.permute.xlu2 %1992 }
 0x344   : > { %v1840_v33 = vpop.f32.mrf.mxu0  ;;  %v1854_v6 = vpop.f32.mrf.mxu1 }
 0x345   : > { %v1859_v9 = vadd.f32 %v1840_v33, %v1798_v20  ;;  %v1860_v11 = vadd.f32 %v1854_v6, %v1799_v21 }
 0x34a   : > { %v1781_v26 = vpop.f32.mrf.mxu2  ;;  %v1795_v0 = vpop.f32.mrf.mxu3 }
 0x34b   : > { %v1800_v16 = vadd.f32 %v1781_v26, %v1739_v51  ;;  %v1801_v52 = vadd.f32 %v1795_v0, %v1740_v8  ;;  %v4630_v26 = vld [vmem:[%s6988_s6 + $0x10] sm:$0xff]  ;;  %v4631_v0 = vld [vmem:[%s6988_s6 + $0x18] sm:$0xff]  ;;  %v6033_v50 = vpop.permute.xlu2 %2137 }
 0x34c   : > { %v1842_v31 = vpop.f32.mrf.mxu0  ;;  %v1856_v22 = vpop.f32.mrf.mxu1 }
 0x34d   : > { %v1861_v37 = vadd.f32 %v1842_v31, %v1800_v16  ;;  %v1862_v35 = vadd.f32 %v1856_v22, %v1801_v52  ;;  %v6035_v22 = vpop.permute.xlu0 %2173  ;;  %v4804_v16 = vld [vmem:[%s5110_s29] sm:$0xff] }
 0x352   : > { %v1901_v3 = vpop.f32.mrf.mxu2  ;;  %v1915_v57 = vpop.f32.mrf.mxu3 }
 0x353   : > { %v1920_v38 = vadd.f32 %v1901_v3, %v1859_v9  ;;  %v1921_v54 = vadd.f32 %v1915_v57, %v1860_v11  ;;  %v2169_v55 = vpop.permute.xlu2 %2168  ;;  %v2197_v57 = vpop.permute.xlu1 %2196 }
 0x354   : > { %v1962_v24 = vpop.f32.mrf.mxu0  ;;  %v1976_v62 = vpop.f32.mrf.mxu1 }
 0x355   : > { %v1981_v12 = vadd.f32 %v1962_v24, %v1920_v38  ;;  %v1982_v28 = vadd.f32 %v1976_v62, %v1921_v54  ;;  %v2159_v21 = vpop.permute.xlu0 %2158  ;;  %v4805_v24 = vld [vmem:[%s5110_s29 + $0x8] sm:$0xff] }
 0x357   : > { %v1995_v23 = vadd.f32 %v1988_v45, %v1981_v12  ;;  %v1996_v46 = vadd.f32 %v1988_v45, %v1982_v28 }
 0x35a   : > { %v1903_v44 = vpop.f32.mrf.mxu2  ;;  %v1917_v60 = vpop.f32.mrf.mxu3 }
 0x35b   : > { %v1922_v42 = vadd.f32 %v1903_v44, %v1861_v37  ;;  %v1923_v56 = vadd.f32 %v1917_v60, %v1862_v35  ;;  %v6037_v4 = vpop.permute.xlu2 %2201  ;;  %v2164_v28 = vpop.permute.xlu1 %2163 }
 0x35c   : > { %v1964_v10 = vpop.f32.mrf.mxu0  ;;  %v1978_v36 = vpop.f32.mrf.mxu1 }
 0x35d   : > { %v1983_v49 = vadd.f32 %v1964_v10, %v1922_v42  ;;  %v1984_v17 = vadd.f32 %v1978_v36, %v1923_v56  ;;  %v4806_v10 = vld [vmem:[%s5110_s29 + $0x10] sm:$0xff] }
 0x35f   : > { %v1997_v33 = vadd.f32 %v1993_v39, %v1983_v49  ;;  %v1998_v6 = vadd.f32 %v1993_v39, %v1984_v17  ;;  %v4807_v49 = vld [vmem:[%s5110_s29 + $0x18] sm:$0xff] }
 0x361   : > { %v2010_v61 = vpack.c.bf16 %v1997_v33, %v1995_v23  ;;  %v2011_v53 = vpack.c.bf16 %v1998_v6, %v1996_v46  ;;  %v2192_v23 = vpop.permute.xlu0 %2191 }
 0x363   : > { %2035 = vmatpush.bf16.msrb.mxu2 %v2010_v61  ;;  %2054 = vmatpush.bf16.msrb.mxu3 %v2011_v53  ;;  %v2187_v9 = vpop.permute.xlu2 %2186 }
 0x366   : > { %4340 = vmatmul.msk.bf16.vlgmr.msrb.gmra.mxu2 %vm1506_vm9, %v4630_v26  ;;  %4342 = vmatmul.msk.bf16.vlgmr.msrb.gmra.mxu3 %vm1506_vm9, %v4630_v26 }
 0x376   : > { %4341 = vmatmul.msk.bf16.gmra.mxu2 %vm1506_vm9, %v4631_v0  ;;  %4343 = vmatmul.msk.bf16.gmra.mxu3 %vm1506_vm9, %v4631_v0 }
 0x379   : > { %v2091_v43 = vpop.f32.mrf.mxu0 }
 0x37a   : > { %v2110_v31 = vpop.f32.mrf.mxu1 }
 0x381   : > { %v2093_v8 = vpop.f32.mrf.mxu0 }
 0x382   : > { %v2112_v20 = vpop.f32.mrf.mxu1 }
 0x389   : > { %v2096_v39 = vpop.f32.mrf.mxu0 }
 0x38a   : > { %v2115_v45 = vpop.f32.mrf.mxu1 }
 0x3e9   : > { %v2037_v34 = vpop.f32.mrf.mxu2  ;;  %v2056_v5 = vpop.f32.mrf.mxu3 }
 0x3ea   : > { %v2092_v7 = vadd.f32 %v2091_v43, %v2037_v34  ;;  %v2111_v3 = vadd.f32 %v2110_v31, %v2056_v5  ;;  %v4808_v31 = vld [vmem:[%s5110_s29 + $0x20] sm:$0xff]  ;;  %v4809_v5 = vld [vmem:[%s5110_s29 + $0x28] sm:$0xff] }
 0x3ec   : > { %v2140_v25 = vadd.f32 %v2123_v59, %v2092_v7  ;;  %v2141_v51 = vadd.f32 %v2123_v59, %v2111_v3 }
 0x3ee   : > { %v2148_v52 = vadd.f32 %v4804_v16, %v2140_v25  ;;  %v2149_v62 = vadd.f32 %v4805_v24, %v2141_v51  ;;  %v2098_v51 = vpop.f32.mrf.mxu0 }
 0x3f0   : > { %v2176_v11 = vmul.f32 %v2159_v21, %v2148_v52  ;;  %v2177_v37 = vmul.f32 %v2159_v21, %v2149_v62 }
 0x3f1   : > { %v2039_v35 = vpop.f32.mrf.mxu2  ;;  %v2058_v38 = vpop.f32.mrf.mxu3 }
 0x3f2   : > { %v6041_v54 = vadd.f32 %v2187_v9, %v2176_v11  ;;  %v6043_v44 = vadd.f32 %v2187_v9, %v2177_v37  ;;  %v2094_v60 = vadd.f32 %v2093_v8, %v2039_v35  ;;  %v2113_v42 = vadd.f32 %v2112_v20, %v2058_v38  ;;  %v4811_v35 = vld [vmem:[%s5110_s29 + $0x38] sm:$0xff] }
 0x3f4   : > { %7058 = vst [vmem:[#allocation11_spill] sm:$0xff] %v6043_v44  ;;  %v2142_v56 = vadd.f32 %v2128_v27, %v2094_v60  ;;  %v2143_v12 = vadd.f32 %v2128_v27, %v2113_v42  ;;  %2271 = vrot.lane.b32.xlu1 %v6043_v44, %s4959_s30  ;;  %2263 = vrot.lane.b32.xlu2 %v6041_v54, %s4959_s30 }
 0x3f6   : > { %v2150_v36 = vadd.f32 %v4806_v10, %v2142_v56  ;;  %v2151_v17 = vadd.f32 %v4807_v49, %v2143_v12 }
 0x3f8   : > { %v2178_v46 = vmul.f32 %v2164_v28, %v2150_v36  ;;  %v2179_v33 = vmul.f32 %v2164_v28, %v2151_v17 }
 0x3f9   : > { %v2042_v6 = vpop.f32.mrf.mxu2  ;;  %v2061_v61 = vpop.f32.mrf.mxu3 }
 0x3fa   : > { %v6051_v53 = vadd.f32 %v2192_v23, %v2178_v46  ;;  %v6053_v26 = vadd.f32 %v2192_v23, %v2179_v33  ;;  %v2097_v0 = vadd.f32 %v2096_v39, %v2042_v6  ;;  %v2116_v59 = vadd.f32 %v2115_v45, %v2061_v61 }
 0x3fc   : > { %7059 = vst [vmem:[#allocation14_spill] sm:$0xff] %v6051_v53  ;;  %v2144_v27 = vadd.f32 %v2133_v1, %v2097_v0  ;;  %v2145_v43 = vadd.f32 %v2133_v1, %v2116_v59  ;;  %2273 = vrot.lane.b32.xlu2 %v6053_v26, %s4959_s30  ;;  %2265 = vrot.lane.b32.xlu0 %v6051_v53, %s4959_s30 }
 0x3fd   : > { %7060 = vst [vmem:[#allocation15_spill] sm:$0xff] %v6053_v26 }
 0x3fe   : > { %v2152_v34 = vadd.f32 %v4808_v31, %v2144_v27  ;;  %v2153_v7 = vadd.f32 %v4809_v5, %v2145_v43 }
 0x400   : > { %v2180_v3 = vmul.f32 %v2169_v55, %v2152_v34  ;;  %v2181_v25 = vmul.f32 %v2169_v55, %v2153_v7  ;;  %v4810_v55 = vld [vmem:[%s5110_s29 + $0x30] sm:$0xff] }
 0x401   : > { %v2044_v8 = vpop.f32.mrf.mxu2  ;;  %v2063_v62 = vpop.f32.mrf.mxu3 }
 0x402   : > { %v6061_v20 = vadd.f32 %v2197_v57, %v2180_v3  ;;  %v6063_v21 = vadd.f32 %v2197_v57, %v2181_v25  ;;  %v2099_v1 = vadd.f32 %v2098_v51, %v2044_v8  ;;  %v2117_v57 = vpop.f32.mrf.mxu1 }
 0x403   : > { %v2118_v11 = vadd.f32 %v2117_v57, %v2063_v62 }
 0x404   : > { %7061 = vst [vmem:[#allocation16_spill] sm:$0xff] %v6061_v20  ;;  %v2146_v16 = vadd.f32 %v6033_v50, %v2099_v1  ;;  %2424 = vrot.lane.b32.xlu2 %v6063_v21, %s7063_s9  ;;  %2275 = vrot.lane.b32.xlu0 %v6063_v21, %s4959_s30 }
 0x405   : > { %7062 = vst [vmem:[#allocation17_spill] sm:$0xff] %v6063_v21  ;;  %2267 = vrot.lane.b32.xlu1 %v6061_v20, %s4959_s30  ;;  %v2147_v37 = vadd.f32 %v6033_v50, %v2118_v11 }
 0x406   : > { %v2154_v52 = vadd.f32 %v4810_v55, %v2146_v16 }
 0x407   : > { %v2155_v38 = vadd.f32 %v4811_v35, %v2147_v37 }
 0x408   : > { %v2182_v24 = vmul.f32 %v6035_v22, %v2154_v52 }
 0x409   : > { %v2183_v60 = vmul.f32 %v6035_v22, %v2155_v38 }
 0x40a   : > { %v6075_v9 = vadd.f32 %v6037_v4, %v2182_v24 }
 0x40b   : > { %v6093_v42 = vadd.f32 %v6037_v4, %v2183_v60 }
 0x40c   : > { %7064 = vst [vmem:[#allocation12_spill] sm:$0xff] %v6075_v9  ;;  %2416 = vrot.lane.b32.xlu0 %v6061_v20, %s7063_s9  ;;  %2269 = vrot.lane.b32.xlu2 %v6075_v9, %s4959_s30 }
 0x40d   : > { %2226 = vrot.lane.b32.xlu1 %v6061_v20, %s7065_s12  ;;  %7066 = vst [vmem:[#allocation13_spill] sm:$0xff] %v6093_v42 }
 0x414   : > { %2234 = vrot.lane.b32.xlu0 %v6063_v21, %s7065_s12  ;;  %2412 = vrot.lane.b32.xlu2 %v6041_v54, %s7063_s9 }
 0x415   : > { %2420 = vrot.lane.b32.xlu1 %v6043_v44, %s7063_s9 }
 0x41c   : > { %2414 = vrot.lane.b32.xlu0 %v6051_v53, %s7063_s9  ;;  %2422 = vrot.lane.b32.xlu2 %v6053_v26, %s7063_s9 }
 0x41d   : > { %2277 = vrot.lane.b32.xlu1 %v6093_v42, %s4959_s30 }
 0x424   : > { %2222 = vrot.lane.b32.xlu0 %v6041_v54, %s7065_s12  ;;  %2230 = vrot.lane.b32.xlu2 %v6043_v44, %s7065_s12 }
 0x425   : > { %2224 = vrot.lane.b32.xlu1 %v6051_v53, %s7065_s12 }
 0x42c   : > { %2232 = vrot.lane.b32.xlu0 %v6053_v26, %s7065_s12  ;;  %2228 = vrot.lane.b32.xlu2 %v6075_v9, %s7065_s12 }
 0x42d   : > { %2519 = vrot.lane.b32.xlu1 %v6061_v20, %s7067_s13 }
 0x434   : > { %2426 = vrot.lane.b32.xlu0 %v6093_v42, %s7063_s9  ;;  %2515 = vrot.lane.b32.xlu2 %v6041_v54, %s7067_s13 }
 0x435   : > { %2418 = vrot.lane.b32.xlu1 %v6075_v9, %s7063_s9 }
 0x43c   : > { %2527 = vrot.lane.b32.xlu0 %v6063_v21, %s7067_s13  ;;  %2525 = vrot.lane.b32.xlu2 %v6053_v26, %s7067_s13 }
 0x43d   : > { %2236 = vrot.lane.b32.xlu1 %v6093_v42, %s7065_s12 }
 0x444   : > { %2517 = vrot.lane.b32.xlu0 %v6051_v53, %s7067_s13  ;;  %2804 = vrot.lane.b32.xlu2 %v6063_v21, %s7068_s16 }
 0x445   : > { %2523 = vrot.lane.b32.xlu1 %v6043_v44, %s7067_s13 }
 0x44c   : > { %2796 = vrot.lane.b32.xlu0 %v6061_v20, %s7068_s16  ;;  %2521 = vrot.lane.b32.xlu2 %v6075_v9, %s7067_s13 }
 0x44d   : > { %2693 = vrot.lane.b32.xlu1 %v6061_v20, %s7069_s22 }
 0x44e   : > { %v2264_v50 = vpop.permute.xlu2 %2263 }
 0x454   : > { %2701 = vrot.lane.b32.xlu0 %v6063_v21, %s7069_s22  ;;  %2792 = vrot.lane.b32.xlu2 %v6041_v54, %s7068_s16 }
 0x455   : > { %2800 = vrot.lane.b32.xlu1 %v6043_v44, %s7068_s16 }
 0x456   : > { %v2274_v22 = vpop.permute.xlu2 %2273 }
 0x45c   : > { %2794 = vrot.lane.b32.xlu0 %v6051_v53, %s7068_s16  ;;  %2802 = vrot.lane.b32.xlu2 %v6053_v26, %s7068_s16 }
 0x45d   : > { %2529 = vrot.lane.b32.xlu1 %v6093_v42, %s7067_s13 }
 0x45e   : > { %v6149_v4 = vpop.permute.xlu2 %2424 }
 0x464   : > { %2689 = vrot.lane.b32.xlu0 %v6041_v54, %s7069_s22  ;;  %2697 = vrot.lane.b32.xlu2 %v6043_v44, %s7069_s22 }
 0x465   : > { %2691 = vrot.lane.b32.xlu1 %v6051_v53, %s7069_s22 }
 0x466   : > { %v2270_v56 = vpop.permute.xlu2 %2269  ;;  %v2272_v28 = vpop.permute.xlu1 %2271 }
 0x467   : > { %v2283_v8 = vsel %vm428_vm0, %v2272_v28, %v2264_v50  ;;  %v2279_v1 = vsel %vm428_vm0, %v2264_v50, %v2272_v28  ;;  %v4634_v50 = vld [vmem:[%s6986_s4 + $0xa0] sm:$0xff]  ;;  %v2215_v28 = vld [vmem:[%s6985_s3 + $0x68] sm:$0xff] }
 0x468   : > { %v2287_v62 = vmul.f32 %v2283_v8, %v5254_v18  ;;  %v2288_v57 = vmul.f32 %v2279_v1, %v5257_v19 }
 0x46c   : > { %2699 = vrot.lane.b32.xlu0 %v6053_v26, %s7069_s22  ;;  %2695 = vrot.lane.b32.xlu2 %v6075_v9, %s7069_s22 }
 0x46d   : > { %3002 = vrot.lane.b32.xlu1 %v6061_v20, %s7040_s11 }
 0x46e   : > { %v2266_v12 = vpop.permute.xlu0 %2265  ;;  %v6163_v10 = vpop.permute.xlu2 %2412 }
 0x46f   : > { %v2280_v43 = vsel %vm428_vm0, %v2266_v12, %v2274_v22  ;;  %v2284_v31 = vsel %vm428_vm0, %v2274_v22, %v2266_v12  ;;  %v2214_v22 = vld [vmem:[%s6985_s3 + $0x60] sm:$0xff] }
 0x470   : > { %v2289_v16 = vmul.f32 %v2284_v31, %v5254_v18  ;;  %v2290_v24 = vmul.f32 %v2280_v43, %v5257_v19 }
 0x472   : > { %v2295_v35 = vpack.c.bf16 %v2289_v16, %v2287_v62  ;;  %v2296_v60 = vpack.c.bf16 %v2290_v24, %v2288_v57 }
 0x474   : > { %2806 = vrot.lane.b32.xlu0 %v6093_v42, %s7068_s16  ;;  %2899 = vrot.lane.b32.xlu2 %v6061_v20, %s7070_s19 }
 0x475   : > { %2798 = vrot.lane.b32.xlu1 %v6075_v9, %s7068_s16 }
 0x476   : > { %v2276_v36 = vpop.permute.xlu0 %2275  ;;  %v6171_v17 = vpop.permute.xlu2 %2422 }
 0x477   : > { %v2268_v49 = vpop.permute.xlu1 %2267 }
 0x478   : > { %v2281_v6 = vsel %vm428_vm0, %v2268_v49, %v2276_v36  ;;  %v2285_v61 = vsel %vm428_vm0, %v2276_v36, %v2268_v49 }
 0x479   : > { %v2291_v7 = vmul.f32 %v2285_v61, %v5254_v18  ;;  %v2292_v3 = vmul.f32 %v2281_v6, %v5257_v19 }
 0x47c   : > { %3010 = vrot.lane.b32.xlu0 %v6063_v21, %s7040_s11  ;;  %3006 = vrot.lane.b32.xlu2 %v6043_v44, %s7040_s11 }
 0x47d   : > { %2703 = vrot.lane.b32.xlu1 %v6093_v42, %s7069_s22 }
 0x47e   : > { %v2417_v39 = vpop.permute.xlu0 %2416  ;;  %v6181_v23 = vpop.permute.xlu2 %2230 }
 0x47f   : > { %v6179_v45 = vpop.permute.xlu1 %2226  ;;  %v2430_v49 = vsel %vm581_vm3, %v2417_v39, %v6149_v4  ;;  %v2434_v6 = vsel %vm581_vm3, %v6149_v4, %v2417_v39  ;;  %v4635_v4 = vld [vmem:[%s6986_s4 + $0xa8] sm:$0xff] }
 0x480   : > { %v2440_v39 = vmul.f32 %v2434_v6, %v5361_v29 }
 0x484   : > { %2998 = vrot.lane.b32.xlu0 %v6041_v54, %s7040_s11  ;;  %3004 = vrot.lane.b32.xlu2 %v6075_v9, %s7040_s11 }
 0x485   : > { %2907 = vrot.lane.b32.xlu1 %v6063_v21, %s7070_s19 }
 0x486   : > { %v6189_v46 = vpop.permute.xlu0 %2234  ;;  %v6203_v0 = vpop.permute.xlu2 %2228 }
 0x487   : > { %v6191_v33 = vpop.permute.xlu1 %2420 }
 0x48c   : > { %3008 = vrot.lane.b32.xlu0 %v6053_v26, %s7040_s11  ;;  %2909 = vrot.lane.b32.xlu2 %v6093_v42, %s7070_s19 }
 0x48d   : > { %3000 = vrot.lane.b32.xlu1 %v6051_v53, %s7040_s11 }
 0x48e   : > { %v2415_v59 = vpop.permute.xlu0 %2414  ;;  %v6233_v38 = vpop.permute.xlu2 %2515 }
 0x48f   : > { %v2278_v27 = vpop.permute.xlu1 %2277  ;;  %v2429_v43 = vsel %vm581_vm3, %v2415_v59, %v6171_v17  ;;  %v2433_v31 = vsel %vm581_vm3, %v6171_v17, %v2415_v59  ;;  %v2428_v17 = vsel %vm581_vm3, %v6163_v10, %v6191_v33  ;;  %v2432_v59 = vsel %vm581_vm3, %v6191_v33, %v6163_v10 }
 0x490   : > { %v2282_v34 = vsel %vm428_vm0, %v2270_v56, %v2278_v27  ;;  %v2286_v5 = vsel %vm428_vm0, %v2278_v27, %v2270_v56  ;;  %v2439_v8 = vmul.f32 %v2429_v43, %v5364_v30  ;;  %v2437_v24 = vmul.f32 %v2428_v17, %v5364_v30 }
 0x491   : > { %v2293_v25 = vmul.f32 %v2286_v5, %v5254_v18  ;;  %v2294_v51 = vmul.f32 %v2282_v34, %v5257_v19  ;;  %v2240_v10 = vsel %vm385_vm1, %v6179_v45, %v6189_v46  ;;  %v2244_v33 = vsel %vm385_vm1, %v6189_v46, %v6179_v45 }
 0x492   : > { %v2250_v6 = vmul.f32 %v2244_v33, %v5298_v47  ;;  %v4633_v33 = vld [vmem:[%s6986_s4 + $0x98] sm:$0xff] }
 0x493   : > { %v2297_v55 = vpack.c.bf16 %v2293_v25, %v2291_v7  ;;  %v2298_v52 = vpack.c.bf16 %v2294_v51, %v2292_v3  ;;  %v2441_v7 = vmul.f32 %v2430_v49, %v5364_v30  ;;  %v2438_v51 = vmul.f32 %v2433_v31, %v5361_v29 }
 0x494   : > { %2901 = vrot.lane.b32.xlu0 %v6075_v9, %s7070_s19  ;;  %2897 = vrot.lane.b32.xlu2 %v6051_v53, %s7070_s19 }
 0x495   : > { %2895 = vrot.lane.b32.xlu1 %v6041_v54, %s7070_s19  ;;  %2326 = vmatpush.bf16.msra.mxu2 %v2297_v55 }
 0x496   : > { %2345 = vmatpush.bf16.msra.mxu3 %v2298_v52  ;;  %v6231_v11 = vpop.permute.xlu0 %2222  ;;  %v6252_v36 = vpop.permute.xlu2 %2525  ;;  %v2436_v52 = vmul.f32 %v2432_v59, %v5361_v29 }
 0x497   : > { %v2225_v37 = vpop.permute.xlu1 %2224 }
 0x499   : > { %2327 = vmatpush.bf16.msra.mxu2 %v2295_v35  ;;  %v2444_v35 = vpack.c.bf16 %v2438_v51, %v2436_v52  ;;  %v4632_v51 = vld [vmem:[%s6986_s4 + $0x90] sm:$0xff] }
 0x49a   : > { %2346 = vmatpush.bf16.msra.mxu3 %v2296_v60  ;;  %v2445_v60 = vpack.c.bf16 %v2439_v8, %v2437_v24  ;;  %v4636_v8 = vld [vmem:[%s6986_s4 + $0xb0] sm:$0xff] }
 0x49c   : > { %4372 = vmatmul.msk.bf16.vlgmr.msra.gmra.mxu2 %vm7071_vm5, %v4634_v50  ;;  %2903 = vrot.lane.b32.xlu0 %v6043_v44, %s7070_s19  ;;  %vm7081_vm5 = vmmov %vm7075_vm2 }
 0x49d   : > { %4374 = vmatmul.msk.bf16.vlgmr.msra.gmra.mxu3 %vm7072_vm7, %v4634_v50  ;;  %3012 = vrot.lane.b32.xlu1 %v6093_v42, %s7040_s11  ;;  %v2620_v50 = vpack.c.bf16 %v6075_v9, %v6061_v20  ;;  %vm7082_vm7 = vmmov %vm7075_vm2 }
 0x49e   : > { %3113 = vperm.xlu2 %4736, %v2214_v22   ;;  %v2233_v56 = vpop.permute.xlu0 %2232  ;;  %v6289_v55 = vpop.permute.xlu2 %2804  ;;  %v2621_v22 = vpack.c.bf16 %v6093_v42, %v6063_v21 }
 0x49f   : > { %v6247_v12 = vpop.permute.xlu1 %2519  ;;  %v2243_v49 = vsel %vm385_vm1, %v2233_v56, %v2225_v37 }
 0x4a4   : > { %3118 = vperm.xlu0 %4737, %v2215_v28   ;;  %v2239_v28 = vsel %vm385_vm1, %v2225_v37, %v2233_v56  ;;  %v2238_v37 = vsel %vm385_vm1, %v6231_v11, %v6181_v23  ;;  %v2242_v56 = vsel %vm385_vm1, %v6181_v23, %v6231_v11  ;;  %v2619_v23 = vpack.c.bf16 %v6053_v26, %v6043_v44 }
 0x4a5   : > { %2905 = vrot.lane.b32.xlu1 %v6053_v26, %s7070_s19  ;;  %v2249_v31 = vmul.f32 %v2239_v28, %v5301_v48 }
 0x4a6   : > { %v2427_v61 = vpop.permute.xlu0 %2426  ;;  %v2522_v11 = vpop.permute.xlu2 %2521 }
 0x4a7   : > { %v2419_v27 = vpop.permute.xlu1 %2418 }
 0x4a8   : > { %v2431_v34 = vsel %vm581_vm3, %v2419_v27, %v2427_v61  ;;  %v2435_v5 = vsel %vm581_vm3, %v2427_v61, %v2419_v27  ;;  %v2251_v61 = vmul.f32 %v2240_v10, %v5301_v48 }
 0x4a9   : > { %v2442_v3 = vmul.f32 %v2435_v5, %v5361_v29  ;;  %v2443_v25 = vmul.f32 %v2431_v34, %v5364_v30 }
 0x4ab   : > { %v2446_v1 = vpack.c.bf16 %v2442_v3, %v2440_v39  ;;  %v2447_v16 = vpack.c.bf16 %v2443_v25, %v2441_v7  ;;  %v2246_v39 = vmul.f32 %v2242_v56, %v5298_v47  ;;  %v2247_v7 = vmul.f32 %v2238_v37, %v5301_v48 }
 0x4ac   : > { %4373 = vmatmul.msk.bf16.gmra.mxu2 %vm7073_vm8, %v4635_v4  ;;  %vm7083_vm8 = vmmov %vm7075_vm2 }
 0x4ad   : > { %4375 = vmatmul.msk.bf16.gmra.mxu3 %vm7074_vm14, %v4635_v4  ;;  %2475 = vmatpush.bf16.msrb.mxu2 %v2446_v1  ;;  %v2618_v4 = vpack.c.bf16 %v6051_v53, %v6041_v54  ;;  %v2255_v59 = vpack.c.bf16 %v2249_v31, %v2247_v7  ;;  %vm7084_vm14 = vmmov %vm7075_vm2 }
 0x4ae   : > { %2494 = vmatpush.bf16.msrb.mxu3 %v2447_v16  ;;  %v2528_v62 = vpop.permute.xlu0 %2527  ;;  %v6349_v52 = vpop.permute.xlu2 %2792 }
 0x4af   : > { %v2237_v57 = vpop.permute.xlu1 %2236 }
 0x4b0   : > { %v2241_v45 = vsel %vm385_vm1, %v6203_v0, %v2237_v57  ;;  %v2245_v46 = vsel %vm385_vm1, %v2237_v57, %v6203_v0  ;;  %v2248_v0 = vmul.f32 %v2243_v49, %v5298_v47  ;;  %v4637_v57 = vld [vmem:[%s6986_s4 + $0xb8] sm:$0xff] }
 0x4b1   : > { %v2252_v27 = vmul.f32 %v2245_v46, %v5298_v47  ;;  %v2253_v43 = vmul.f32 %v2241_v45, %v5301_v48  ;;  %2476 = vmatpush.bf16.msrb.mxu2 %v2444_v35 }
 0x4b2   : > { %2495 = vmatpush.bf16.msrb.mxu3 %v2445_v60  ;;  %v2254_v17 = vpack.c.bf16 %v2248_v0, %v2246_v39  ;;  %v2533_v60 = vsel %vm687_vm4, %v6247_v12, %v2528_v62 }
 0x4b3   : > { %v2256_v34 = vpack.c.bf16 %v2252_v27, %v2250_v6  ;;  %v2257_v5 = vpack.c.bf16 %v2253_v43, %v2251_v61  ;;  %v2544_v27 = vmul.f32 %v2533_v60, %v5425_v2 }
 0x4b5   : > { %2649 = vmatpush.bf16.msra.mxu2 %v2620_v50  ;;  %2380 = vmatpush.bf16.msra.mxu0 %v2256_v34  ;;  %v2537_v50 = vsel %vm687_vm4, %v2528_v62, %v6247_v12 }
 0x4b6   : > { %2668 = vmatpush.bf16.msra.mxu3 %v2621_v22  ;;  %2399 = vmatpush.bf16.msra.mxu1 %v2257_v5  ;;  %v2518_v3 = vpop.permute.xlu0 %2517  ;;  %v2803_v35 = vpop.permute.xlu2 %2802  ;;  %v2543_v61 = vmul.f32 %v2537_v50, %v5422_v63 }
 0x4b7   : > { %v2524_v25 = vpop.permute.xlu1 %2523  ;;  %v2532_v28 = vsel %vm687_vm4, %v2518_v3, %v6252_v36  ;;  %v2536_v49 = vsel %vm687_vm4, %v6252_v36, %v2518_v3  ;;  %v4640_v3 = vld [vmem:[%s6986_s4 + $0xd0] sm:$0xff] }
 0x4b8   : > { %v2531_v46 = vsel %vm687_vm4, %v6233_v38, %v2524_v25  ;;  %v2535_v6 = vsel %vm687_vm4, %v2524_v25, %v6233_v38  ;;  %v2541_v37 = vmul.f32 %v2536_v49, %v5422_v63  ;;  %v2542_v56 = vmul.f32 %v2532_v28, %v5425_v2 }
 0x4b9   : > { %2650 = vmatpush.bf16.msra.mxu2 %v2618_v4  ;;  %2381 = vmatpush.bf16.msra.mxu0 %v2254_v17  ;;  %v2539_v38 = vmul.f32 %v2535_v6, %v5422_v63  ;;  %v2540_v0 = vmul.f32 %v2531_v46, %v5425_v2 }
 0x4ba   : > { %2669 = vmatpush.bf16.msra.mxu3 %v2619_v23  ;;  %2400 = vmatpush.bf16.msra.mxu1 %v2255_v59 }
 0x4bb   : > { %v2547_v7 = vpack.c.bf16 %v2541_v37, %v2539_v38  ;;  %v2548_v23 = vpack.c.bf16 %v2542_v56, %v2540_v0 }
 0x4bc   : > { %4384 = vmatmul.msk.bf16.vlgmr.msra.gmra.mxu0 %vm7075_vm2, %v4632_v51  ;;  %4400 = vmatmul.msk.bf16.vlgmr.msrb.gmra.mxu2 %vm7077_vm13, %v4636_v8  ;;  %vm7086_vm13 = vmmov %vm7075_vm2 }
 0x4bd   : > { %4386 = vmatmul.msk.bf16.vlgmr.msra.gmra.mxu1 %vm7076_vm10, %v4632_v51  ;;  %4402 = vmatmul.msk.bf16.vlgmr.msrb.gmra.mxu3 %vm7078_vm11, %v4636_v8  ;;  %vm7085_vm10 = vmmov %vm7075_vm2 }
 0x4be   : > { %v2797_v1 = vpop.permute.xlu0 %2796  ;;  %v6395_v5 = vpop.permute.xlu2 %2697  ;;  %vm7087_vm11 = vmmov %vm7075_vm2 }
 0x4bf   : > { %v6347_v16 = vpop.permute.xlu1 %2693  ;;  %v2810_v51 = vsel %vm970_vm6, %v2797_v1, %v6289_v55  ;;  %v2814_v8 = vsel %vm970_vm6, %v6289_v55, %v2797_v1  ;;  %v4639_v55 = vld [vmem:[%s6986_s4 + $0xc8] sm:$0xff] }
 0x4c0   : > { %v2820_v1 = vmul.f32 %v2810_v51, %v5509_v13  ;;  %v2821_v46 = vmul.f32 %v2814_v8, %v5512_v15 }
 0x4c6   : > { %v6351_v24 = vpop.permute.xlu0 %2701  ;;  %v2696_v25 = vpop.permute.xlu2 %2695 }
 0x4c7   : > { %v6353_v10 = vpop.permute.xlu1 %2800 }
 0x4cc   : > { %4385 = vmatmul.msk.bf16.gmra.mxu0 %vm7079_vm12, %v4633_v33  ;;  %4401 = vmatmul.msk.bf16.gmra.mxu2 %vm7081_vm5, %v4637_v57  ;;  %vm7088_vm12 = vmmov %vm7075_vm2  ;;  %vm7090_vm5 = vcmp.lt.s32.totalorder %v5234_v14, 127 }
 0x4cd   : > { %4387 = vmatmul.msk.bf16.gmra.mxu1 %vm7080_vm15, %v4633_v33  ;;  %4403 = vmatmul.msk.bf16.gmra.mxu3 %vm7082_vm7, %v4637_v57  ;;  %vm7089_vm15 = vmmov %vm7075_vm2 }
 0x4ce   : > { %v2795_v22 = vpop.permute.xlu0 %2794  ;;  %v6419_v28 = vpop.permute.xlu2 %2899  ;;  %vm7091_vm7 = vmmov %vm7090_vm5 }
 0x4cf   : > { %v2530_v45 = vpop.permute.xlu1 %2529  ;;  %v2809_v60 = vsel %vm970_vm6, %v2795_v22, %v2803_v35  ;;  %v2813_v50 = vsel %vm970_vm6, %v2803_v35, %v2795_v22  ;;  %v4641_v22 = vld [vmem:[%s6986_s4 + $0xd8] sm:$0xff] }
 0x4d0   : > { %v2534_v12 = vsel %vm687_vm4, %v2522_v11, %v2530_v45  ;;  %v2538_v62 = vsel %vm687_vm4, %v2530_v45, %v2522_v11  ;;  %v4638_v11 = vld [vmem:[%s6986_s4 + $0xc0] sm:$0xff] }
 0x4d1   : > { %v2545_v36 = vmul.f32 %v2538_v62, %v5422_v63  ;;  %v2546_v43 = vmul.f32 %v2534_v12, %v5425_v2  ;;  %v2808_v12 = vsel %vm970_vm6, %v6349_v52, %v6353_v10  ;;  %v2812_v62 = vsel %vm970_vm6, %v6353_v10, %v6349_v52 }
 0x4d2   : > { %v2816_v37 = vmul.f32 %v2808_v12, %v5509_v13  ;;  %v2817_v56 = vmul.f32 %v2812_v62, %v5512_v15  ;;  %v2707_v52 = vsel %vm7090_vm5, %v6347_v16, %v6351_v24  ;;  %v2711_v10 = vsel %vm7091_vm7, %v6351_v24, %v6347_v16 }
 0x4d3   : > { %v2549_v31 = vpack.c.bf16 %v2545_v36, %v2543_v61  ;;  %v2550_v34 = vpack.c.bf16 %v2546_v43, %v2544_v27  ;;  %v2818_v61 = vmul.f32 %v2809_v60, %v5509_v13  ;;  %v2819_v27 = vmul.f32 %v2813_v50, %v5512_v15 }
 0x4d4   : > { %v2717_v16 = vmul.f32 %v2707_v52, %v5463_v40  ;;  %v2718_v24 = vmul.f32 %v2711_v10, %v5466_v41 }
 0x4d5   : > { %2578 = vmatpush.bf16.msrb.mxu0 %v2549_v31  ;;  %2597 = vmatpush.bf16.msrb.mxu1 %v2550_v34  ;;  %v2824_v31 = vpack.c.bf16 %v2818_v61, %v2816_v37  ;;  %v2825_v34 = vpack.c.bf16 %v2819_v27, %v2817_v56 }
 0x4d6   : > { %v2690_v4 = vpop.permute.xlu0 %2689 }
 0x4d7   : > { %v2692_v39 = vpop.permute.xlu1 %2691 }
 0x4d9   : > { %2579 = vmatpush.bf16.msrb.mxu0 %v2547_v7  ;;  %2598 = vmatpush.bf16.msrb.mxu1 %v2548_v23 }
 0x4dc   : > { %4416 = vmatmul.msk.bf16.vlgmr.msrb.gmra.mxu0 %vm7083_vm8, %v4638_v11  ;;  %4432 = vmatmul.msk.bf16.vlgmr.msra.gmra.mxu2 %vm7075_vm2, %v4640_v3  ;;  %vm7092_vm8 = vmmov %vm7090_vm5 }
 0x4dd   : > { %4418 = vmatmul.msk.bf16.vlgmr.msrb.gmra.mxu1 %vm7084_vm14, %v4638_v11  ;;  %4434 = vmatmul.msk.bf16.vlgmr.msra.gmra.mxu3 %vm7085_vm10, %v4640_v3  ;;  %vm7093_vm14 = vmmov %vm7090_vm5 }
 0x4de   : > { %v2700_v17 = vpop.permute.xlu0 %2699  ;;  %vm7094_vm2 = vmmov %vm7090_vm5 }
 0x4df   : > { %v6407_v59 = vpop.permute.xlu1 %3002  ;;  %v2706_v7 = vsel %vm7092_vm8, %v2692_v39, %v2700_v17  ;;  %v2710_v23 = vsel %vm7093_vm14, %v2700_v17, %v2692_v39  ;;  %vm7095_vm10 = vmmov %vm7094_vm2  ;;  %v3007_v17 = vpop.permute.xlu2 %3006  ;;  %vm7101_vm8 = vcmp.lt.s32.totalorder %v5234_v14, 112 }
 0x4e0   : > { %vm7099_vm5 = vmmov %vm7088_vm12 }
 0x4e1   : > { %vm7100_vm7 = vmmov %vm7099_vm5 }
 0x4e2   : > { %vm7102_vm14 = vmmov %vm7101_vm8 }
 0x4e6   : > { %v2807_v33 = vpop.permute.xlu0 %2806 }
 0x4e7   : > { %v2799_v57 = vpop.permute.xlu1 %2798 }
 0x4e8   : > { %v2811_v49 = vsel %vm970_vm6, %v2799_v57, %v2807_v33  ;;  %v2815_v45 = vsel %vm970_vm6, %v2807_v33, %v2799_v57  ;;  %v2716_v57 = vmul.f32 %v2710_v23, %v5466_v41 }
 0x4e9   : > { %v2822_v6 = vmul.f32 %v2811_v49, %v5509_v13  ;;  %v2823_v35 = vmul.f32 %v2815_v45, %v5512_v15 }
 0x4eb   : > { %v2826_v36 = vpack.c.bf16 %v2822_v6, %v2820_v1  ;;  %v2827_v43 = vpack.c.bf16 %v2823_v35, %v2821_v46  ;;  %v3005_v35 = vpop.permute.xlu2 %3004 }
 0x4ec   : > { %4417 = vmatmul.msk.bf16.gmra.mxu0 %vm7086_vm13, %v4639_v55  ;;  %4433 = vmatmul.msk.bf16.gmra.mxu2 %vm7088_vm12, %v4641_v22  ;;  %vm7096_vm13 = vmmov %vm7094_vm2 }
 0x4ed   : > { %4419 = vmatmul.msk.bf16.gmra.mxu1 %vm7087_vm11, %v4639_v55  ;;  %4435 = vmatmul.msk.bf16.gmra.mxu3 %vm7089_vm15, %v4641_v22  ;;  %v2705_v33 = vsel %vm7096_vm13, %v2690_v4, %v6395_v5  ;;  %vm7097_vm11 = vmmov %vm7094_vm2 }
 0x4ee   : > { %2855 = vmatpush.bf16.msrb.mxu2 %v2826_v36  ;;  %2874 = vmatpush.bf16.msrb.mxu3 %v2827_v43  ;;  %v3011_v38 = vpop.permute.xlu0 %3010  ;;  %v2709_v39 = vsel %vm7097_vm11, %v6395_v5, %v2690_v4  ;;  %v2713_v49 = vmul.f32 %v2705_v33, %v5463_v40  ;;  %v4642_v5 = vld [vmem:[%s6986_s4 + $0xe0] sm:$0xff]  ;;  %v4644_v4 = vld [vmem:[%s6986_s4 + $0xf0] sm:$0xff]  ;;  %vm7098_vm15 = vmmov %vm7088_vm12 }
 0x4ef   : > { %v2704_v0 = vpop.permute.xlu1 %2703  ;;  %v2714_v45 = vmul.f32 %v2709_v39, %v5466_v41  ;;  %vm7105_vm13 = vmmov %vm7099_vm5  ;;  %v6532_v39 = vld [vmem:[%s6984_s2 + $0x10] ss:$0 sm:$0xff] }
 0x4f0   : > { %v2708_v11 = vsel %vm7094_vm2, %v2696_v25, %v2704_v0  ;;  %v2712_v3 = vsel %vm7095_vm10, %v2704_v0, %v2696_v25  ;;  %v2715_v25 = vmul.f32 %v2706_v7, %v5463_v40  ;;  %vm7103_vm2 = vmmov %vm7101_vm8 }
 0x4f1   : > { %v2719_v51 = vmul.f32 %v2708_v11, %v5463_v40  ;;  %v2720_v8 = vmul.f32 %v2712_v3, %v5466_v41  ;;  %v2722_v6 = vpack.c.bf16 %v2716_v57, %v2714_v45  ;;  %vm7104_vm10 = vmmov %vm7103_vm2 }
 0x4f2   : > { %2856 = vmatpush.bf16.msrb.mxu2 %v2824_v31  ;;  %2875 = vmatpush.bf16.msrb.mxu3 %v2825_v34  ;;  %v2721_v46 = vpack.c.bf16 %v2715_v25, %v2713_v49  ;;  %v4645_v34 = vld [vmem:[%s6986_s4 + $0xf8] sm:$0xff]  ;;  %vm7106_vm11 = vmmov %vm7099_vm5 }
 0x4f3   : > { %v2723_v60 = vpack.c.bf16 %v2719_v51, %v2717_v16  ;;  %v2724_v50 = vpack.c.bf16 %v2720_v8, %v2718_v24  ;;  %v2910_v27 = vpop.permute.xlu2 %2909 }
 0x4f5   : > { %2752 = vmatpush.bf16.msra.mxu0 %v2723_v60  ;;  %2771 = vmatpush.bf16.msra.mxu1 %v2724_v50 }
 0x4f6   : > { %v2999_v55 = vpop.permute.xlu0 %2998 }
 0x4f7   : > { %v2908_v1 = vpop.permute.xlu1 %2907 }
 0x4f8   : > { %v2913_v62 = vsel %vm7101_vm8, %v6419_v28, %v2908_v1  ;;  %v2917_v61 = vsel %vm7102_vm14, %v2908_v1, %v6419_v28  ;;  %v4643_v28 = vld [vmem:[%s6986_s4 + $0xe8] sm:$0xff] }
 0x4f9   : > { %2753 = vmatpush.bf16.msra.mxu0 %v2721_v46  ;;  %2772 = vmatpush.bf16.msra.mxu1 %v2722_v6  ;;  %v2923_v52 = vmul.f32 %v2913_v62, %v5555_v58  ;;  %v2924_v10 = vmul.f32 %v2917_v61, %v7041_v32 }
 0x4fc   : > { %4448 = vmatmul.msk.bf16.vlgmr.msra.gmra.mxu0 %vm7088_vm12, %v4642_v5  ;;  %4464 = vmatmul.msk.bf16.vlgmr.msrb.gmra.mxu2 %vm7099_vm5, %v4644_v4  ;;  %vm7107_vm12 = vmmov %vm7099_vm5 }
 0x4fd   : > { %4450 = vmatmul.msk.bf16.vlgmr.msra.gmra.mxu1 %vm7098_vm15, %v4642_v5  ;;  %4466 = vmatmul.msk.bf16.vlgmr.msrb.gmra.mxu3 %vm7100_vm7, %v4644_v4  ;;  %vm7108_vm15 = vmmov %vm7099_vm5  ;;  %vm7109_vm5 = vcmp.lt.s32.totalorder %v5234_v14, 111 }
 0x4fe   : > { %v3009_v22 = vpop.permute.xlu0 %3008  ;;  %v3016_v11 = vsel %vm7109_vm5, %v6407_v59, %v3011_v38  ;;  %vm7110_vm7 = vmmov %vm7109_vm5 }
 0x4ff   : > { %v3001_v12 = vpop.permute.xlu1 %3000  ;;  %v3020_v3 = vsel %vm7110_vm7, %v3011_v38, %v6407_v59  ;;  %vm7111_vm8 = vmmov %vm7109_vm5  ;;  %v3026_v59 = vmul.f32 %v6532_v39, %v3016_v11  ;;  %v6538_v38 = vld [vmem:[%s6984_s2 + $0x18] ss:$0 sm:$0xff] }
 0x500   : > { %v3015_v24 = vsel %vm7111_vm8, %v3001_v12, %v3009_v22  ;;  %vm7112_vm14 = vmmov %vm7109_vm5  ;;  %v3027_v25 = vmul.f32 %v6538_v38, %v3020_v3  ;;  %vm7121_vm8 = vcmask 261120   ;;  %v4649_v3 = vld [vmem:[%s6986_s4 + $0x118] sm:$0xff] }
 0x501   : > { %v3019_v51 = vsel %vm7112_vm14, %v3009_v22, %v3001_v12  ;;  %v3024_v1 = vmul.f32 %v6532_v39, %v3015_v24  ;;  %vm7122_vm14 = vmmov %vm7121_vm8 }
 0x502   : > { %v3025_v46 = vmul.f32 %v6538_v38, %v3019_v51 }
 0x506   : > { %v2902_v36 = vpop.permute.xlu0 %2901 }
 0x507   : > { %v2914_v43 = vsel %vm7103_vm2, %v2902_v36, %v2910_v27  ;;  %v2918_v37 = vsel %vm7104_vm10, %v2910_v27, %v2902_v36  ;;  %v2896_v56 = vpop.permute.xlu1 %2895  ;;  %vm7113_vm2 = vmmov %vm7109_vm5 }
 0x508   : > { %v2925_v0 = vmul.f32 %v2914_v43, %v5555_v58  ;;  %v2926_v31 = vmul.f32 %v2918_v37, %v7041_v32  ;;  %vm7114_vm10 = vmmov %vm7113_vm2 }
 0x50a   : > { %v2929_v7 = vpack.c.bf16 %v2925_v0, %v2923_v52  ;;  %v2930_v23 = vpack.c.bf16 %v2926_v31, %v2924_v10 }
 0x50c   : > { %4449 = vmatmul.msk.bf16.gmra.mxu0 %vm7105_vm13, %v4643_v28  ;;  %4465 = vmatmul.msk.bf16.gmra.mxu2 %vm7107_vm12, %v4645_v34  ;;  %vm7115_vm13 = vmmov %vm7113_vm2  ;;  %vm7117_vm12 = vcmp.lt.s32.totalorder %v5234_v14, 112 }
 0x50d   : > { %4451 = vmatmul.msk.bf16.gmra.mxu1 %vm7106_vm11, %v4643_v28  ;;  %4467 = vmatmul.msk.bf16.gmra.mxu3 %vm7108_vm15, %v4645_v34  ;;  %v3014_v50 = vsel %vm7115_vm13, %v2999_v55, %v3007_v17  ;;  %vm7116_vm11 = vmmov %vm7113_vm2  ;;  %v4646_v28 = vld [vmem:[%s6986_s4 + $0x100] sm:$0xff] }
 0x50e   : > { %2958 = vmatpush.bf16.msrb.mxu0 %v2929_v7  ;;  %2977 = vmatpush.bf16.msrb.mxu1 %v2930_v23  ;;  %v3018_v49 = vsel %vm7116_vm11, %v3007_v17, %v2999_v55  ;;  %v2904_v45 = vpop.permute.xlu0 %2903  ;;  %v3022_v4 = vmul.f32 %v6532_v39, %v3014_v50  ;;  %vm7118_vm15 = vmmov %vm7117_vm12  ;;  %v2898_v17 = vpop.permute.xlu2 %2897 }
 0x50f   : > { %v3013_v16 = vpop.permute.xlu1 %3012  ;;  %v2911_v22 = vsel %vm7117_vm12, %v2896_v56, %v2904_v45  ;;  %v2915_v12 = vsel %vm7118_vm15, %v2904_v45, %v2896_v56  ;;  %vm7119_vm5 = vmmov %vm7117_vm12  ;;  %v4648_v56 = vld [vmem:[%s6986_s4 + $0x110] sm:$0xff] }
 0x510   : > { %v3017_v8 = vsel %vm7113_vm2, %v3005_v35, %v3013_v16  ;;  %v3021_v33 = vsel %vm7114_vm10, %v3013_v16, %v3005_v35  ;;  %v3023_v35 = vmul.f32 %v6538_v38, %v3018_v49  ;;  %v3030_v62 = vpack.c.bf16 %v3024_v1, %v3022_v4  ;;  %vm7120_vm7 = vmmov %vm7119_vm5  ;;  %v4647_v16 = vld [vmem:[%s6986_s4 + $0x108] sm:$0xff] }
 0x511   : > { %v3028_v57 = vmul.f32 %v6532_v39, %v3017_v8  ;;  %v3029_v60 = vmul.f32 %v6538_v38, %v3021_v33  ;;  %v2919_v27 = vmul.f32 %v2911_v22, %v5555_v58  ;;  %v2920_v37 = vmul.f32 %v2915_v12, %v7041_v32  ;;  %vm7123_vm2 = vmmov %vm7121_vm8 }
 0x512   : > { %v3031_v61 = vpack.c.bf16 %v3025_v46, %v3023_v35  ;;  %vm7124_vm10 = vmmov %vm7123_vm2 }
 0x513   : > { %v3032_v6 = vpack.c.bf16 %v3028_v57, %v3026_v59  ;;  %v3033_v5 = vpack.c.bf16 %v3029_v60, %v3027_v25  ;;  %vm7125_vm13 = vmmov %vm7123_vm2 }
 0x514   : > { %vm7126_vm11 = vmmov %vm7123_vm2 }
 0x515   : > { %3061 = vmatpush.bf16.msra.mxu2 %v3032_v6  ;;  %3080 = vmatpush.bf16.msra.mxu3 %v3033_v5  ;;  %vm7127_vm12 = vmmov %vm7123_vm2 }
 0x516   : > { %vm7128_vm15 = vmmov %vm7123_vm2 }
 0x517   : > { %v2906_v55 = vpop.permute.xlu1 %2905 }
 0x518   : > { %v2912_v36 = vsel %vm7119_vm5, %v2898_v17, %v2906_v55  ;;  %v2916_v43 = vsel %vm7120_vm7, %v2906_v55, %v2898_v17 }
 0x519   : > { %v2921_v52 = vmul.f32 %v2912_v36, %v5555_v58  ;;  %v2922_v10 = vmul.f32 %v2916_v43, %v7041_v32  ;;  %3062 = vmatpush.bf16.msra.mxu2 %v3030_v62  ;;  %3081 = vmatpush.bf16.msra.mxu3 %v3031_v61 }
 0x51b   : > { %v2927_v0 = vpack.c.bf16 %v2921_v52, %v2919_v27  ;;  %v2928_v31 = vpack.c.bf16 %v2922_v10, %v2920_v37 }
 0x51c   : > { %4496 = vmatmul.msk.bf16.vlgmr.msra.gmra.mxu2 %vm7121_vm8, %v4648_v56 }
 0x51d   : > { %4498 = vmatmul.msk.bf16.vlgmr.msra.gmra.mxu3 %vm7122_vm14, %v4648_v56  ;;  %2959 = vmatpush.bf16.msrb.mxu0 %v2927_v0 }
 0x51e   : > { %2978 = vmatpush.bf16.msrb.mxu1 %v2928_v31 }
 0x51f   : > { %v2329_v34 = vpop.f32.mrf.mxu2 }
 0x520   : > { %v2348_v7 = vpop.f32.mrf.mxu3  ;;  %4480 = vmatmul.msk.bf16.vlgmr.msrb.gmra.mxu0 %vm7123_vm2, %v4646_v28 }
 0x521   : > { %4482 = vmatmul.msk.bf16.vlgmr.msrb.gmra.mxu1 %vm7124_vm10, %v4646_v28 }
 0x527   : > { %v2331_v23 = vpop.f32.mrf.mxu2 }
 0x528   : > { %v2350_v11 = vpop.f32.mrf.mxu3 }
 0x52c   : > { %4497 = vmatmul.msk.bf16.gmra.mxu2 %vm7125_vm13, %v4649_v3 }
 0x52d   : > { %4499 = vmatmul.msk.bf16.gmra.mxu3 %vm7126_vm11, %v4649_v3 }
 0x52f   : > { %v2334_v24 = vpop.f32.mrf.mxu2 }
 0x530   : > { %v2353_v51 = vpop.f32.mrf.mxu3  ;;  %4481 = vmatmul.msk.bf16.gmra.mxu0 %vm7127_vm12, %v4647_v16 }
 0x531   : > { %4483 = vmatmul.msk.bf16.gmra.mxu1 %vm7128_vm15, %v4647_v16 }
 0x537   : > { %v2336_v8 = vpop.f32.mrf.mxu2 }
 0x538   : > { %v6583_v33 = vpop.f32.mrf.mxu3 }
 0x539   : > { %v2383_v59 = vpop.f32.mrf.mxu0 }
 0x53a   : > { %v2402_v25 = vpop.f32.mrf.mxu1  ;;  %v2384_v57 = vadd.f32 %v2383_v59, %v2329_v34 }
 0x53b   : > { %v2403_v60 = vadd.f32 %v2402_v25, %v2348_v7 }
 0x53f   : > { %v2478_v50 = vpop.f32.mrf.mxu2 }
 0x540   : > { %v2497_v49 = vpop.f32.mrf.mxu3  ;;  %v2507_v45 = vadd.f32 %v2478_v50, %v2384_v57 }
 0x541   : > { %v2508_v1 = vadd.f32 %v2497_v49, %v2403_v60  ;;  %v2385_v46 = vpop.f32.mrf.mxu0 }
 0x542   : > { %v2404_v6 = vpop.f32.mrf.mxu1 }
 0x547   : > { %v2480_v5 = vpop.f32.mrf.mxu2 }
 0x548   : > { %v2499_v4 = vpop.f32.mrf.mxu3 }
 0x549   : > { %v2388_v35 = vpop.f32.mrf.mxu0 }
 0x54a   : > { %v2407_v22 = vpop.f32.mrf.mxu1  ;;  %v2389_v12 = vadd.f32 %v2388_v35, %v2334_v24 }
 0x54b   : > { %v2408_v17 = vadd.f32 %v2407_v22, %v2353_v51 }
 0x54f   : > { %v2483_v55 = vpop.f32.mrf.mxu2 }
 0x550   : > { %v2502_v62 = vpop.f32.mrf.mxu3  ;;  %v6585_v61 = vadd.f32 %v2483_v55, %v2389_v12 }
 0x551   : > { %v6587_v27 = vadd.f32 %v2502_v62, %v2408_v17  ;;  %v2390_v36 = vpop.f32.mrf.mxu0 }
 0x552   : > { %v6589_v43 = vpop.f32.mrf.mxu1  ;;  %v2391_v22 = vadd.f32 %v2390_v36, %v2336_v8 }
 0x557   : > { %v2485_v37 = vpop.f32.mrf.mxu2 }
 0x558   : > { %v6591_v52 = vpop.f32.mrf.mxu3  ;;  %v2513_v12 = vadd.f32 %v2485_v37, %v2391_v22 }
 0x559   : > { %v2581_v10 = vpop.f32.mrf.mxu0 }
 0x55a   : > { %v2600_v56 = vpop.f32.mrf.mxu1  ;;  %v2610_v0 = vadd.f32 %v2581_v10, %v2507_v45 }
 0x55b   : > { %v2611_v31 = vadd.f32 %v2600_v56, %v2508_v1  ;;  %v2386_v56 = vadd.f32 %v2385_v46, %v2331_v23 }
 0x55f   : > { %v2652_v28 = vpop.f32.mrf.mxu2 }
 0x560   : > { %v2671_v34 = vpop.f32.mrf.mxu3  ;;  %v2681_v7 = vadd.f32 %v2652_v28, %v2610_v0  ;;  %v2405_v0 = vadd.f32 %v2404_v6, %v2350_v11 }
 0x561   : > { %v2682_v3 = vadd.f32 %v2671_v34, %v2611_v31  ;;  %v2583_v16 = vpop.f32.mrf.mxu0  ;;  %v2509_v34 = vadd.f32 %v2480_v5, %v2386_v56 }
 0x562   : > { %v2602_v24 = vpop.f32.mrf.mxu1  ;;  %v2510_v42 = vadd.f32 %v2499_v4, %v2405_v0 }
 0x563   : > { %v2612_v9 = vadd.f32 %v2583_v16, %v2509_v34 }
 0x564   : > { %v2613_v21 = vadd.f32 %v2602_v24, %v2510_v42 }
 0x567   : > { %v2654_v51 = vpop.f32.mrf.mxu2 }
 0x568   : > { %v2673_v59 = vpop.f32.mrf.mxu3  ;;  %v2683_v20 = vadd.f32 %v2654_v51, %v2612_v9 }
 0x569   : > { %v2586_v25 = vpop.f32.mrf.mxu0  ;;  %v2684_v26 = vadd.f32 %v2673_v59, %v2613_v21 }
 0x56a   : > { %v2605_v57 = vpop.f32.mrf.mxu1 }
 0x56b   : > { %v2615_v56 = vadd.f32 %v2605_v57, %v6587_v27 }
 0x56f   : > { %v2657_v60 = vpop.f32.mrf.mxu2 }
 0x570   : > { %v2676_v50 = vpop.f32.mrf.mxu3 }
 0x571   : > { %v2588_v49 = vpop.f32.mrf.mxu0 }
 0x572   : > { %v6593_v35 = vpop.f32.mrf.mxu1  ;;  %v2616_v17 = vadd.f32 %v2588_v49, %v2513_v12 }
 0x577   : > { %v2659_v45 = vpop.f32.mrf.mxu2 }
 0x578   : > { %v6595_v1 = vpop.f32.mrf.mxu3  ;;  %v6597_v55 = vadd.f32 %v2659_v45, %v2616_v17 }
 0x579   : > { %v2755_v62 = vpop.f32.mrf.mxu0 }
 0x57a   : > { %v2774_v10 = vpop.f32.mrf.mxu1  ;;  %v2784_v31 = vadd.f32 %v2755_v62, %v2681_v7 }
 0x57b   : > { %v2785_v28 = vadd.f32 %v2774_v10, %v2682_v3  ;;  %v2614_v10 = vadd.f32 %v2586_v25, %v6585_v61 }
 0x57f   : > { %v2858_v8 = vpop.f32.mrf.mxu2 }
 0x580   : > { %v2877_v36 = vpop.f32.mrf.mxu3  ;;  %v2887_v37 = vadd.f32 %v2858_v8, %v2784_v31  ;;  %v2685_v8 = vadd.f32 %v2657_v60, %v2614_v10 }
 0x581   : > { %v2888_v49 = vadd.f32 %v2877_v36, %v2785_v28  ;;  %v2757_v22 = vpop.f32.mrf.mxu0  ;;  %v2686_v36 = vadd.f32 %v2676_v50, %v2615_v56 }
 0x582   : > { %v2776_v12 = vpop.f32.mrf.mxu1  ;;  %v2786_v17 = vadd.f32 %v2757_v22, %v2683_v20  ;;  %v2410_v22 = vadd.f32 %v6589_v43, %v6583_v33 }
 0x583   : > { %v2787_v45 = vadd.f32 %v2776_v12, %v2684_v26 }
 0x587   : > { %v2860_v53 = vpop.f32.mrf.mxu2 }
 0x588   : > { %v2879_v44 = vpop.f32.mrf.mxu3  ;;  %v2889_v23 = vadd.f32 %v2860_v53, %v2786_v17 }
 0x589   : > { %v2890_v11 = vadd.f32 %v2879_v44, %v2787_v45  ;;  %v2760_v46 = vpop.f32.mrf.mxu0  ;;  %v2514_v45 = vadd.f32 %v6591_v52, %v2410_v22 }
 0x58a   : > { %v2779_v6 = vpop.f32.mrf.mxu1  ;;  %v2788_v12 = vadd.f32 %v2760_v46, %v2685_v8 }
 0x58b   : > { %v2789_v17 = vadd.f32 %v2779_v6, %v2686_v36 }
 0x58f   : > { %v2863_v5 = vpop.f32.mrf.mxu2 }
 0x590   : > { %v2882_v4 = vpop.f32.mrf.mxu3  ;;  %v2891_v61 = vadd.f32 %v2863_v5, %v2788_v12 }
 0x591   : > { %v2762_v7 = vpop.f32.mrf.mxu0  ;;  %v2892_v25 = vadd.f32 %v2882_v4, %v2789_v17 }
 0x592   : > { %v2781_v42 = vpop.f32.mrf.mxu1  ;;  %v2790_v33 = vadd.f32 %v2762_v7, %v6597_v55 }
 0x597   : > { %v2865_v9 = vpop.f32.mrf.mxu2 }
 0x598   : > { %v2884_v21 = vpop.f32.mrf.mxu3  ;;  %v2893_v6 = vadd.f32 %v2865_v9, %v2790_v33 }
 0x59d   : > { %v2961_v3 = vpop.f32.mrf.mxu0 }
 0x59e   : > { %v2980_v16 = vpop.f32.mrf.mxu1  ;;  %v2990_v24 = vadd.f32 %v2961_v3, %v2887_v37 }
 0x59f   : > { %v2991_v51 = vadd.f32 %v2980_v16, %v2888_v49  ;;  %v3064_v59 = vpop.f32.mrf.mxu2 }
 0x5a0   : > { %v3083_v62 = vpop.f32.mrf.mxu3  ;;  %v6599_v20 = vadd.f32 %v3064_v59, %v2990_v24  ;;  %v3114_v59 = vpop.permute.xlu2 %3113 }
 0x5a1   : > { %v6601_v26 = vadd.f32 %v3083_v62, %v2991_v51 }
 0x5a5   : > { %v2963_v53 = vpop.f32.mrf.mxu0 }
 0x5a6   : > { %v2982_v44 = vpop.f32.mrf.mxu1  ;;  %v2992_v0 = vadd.f32 %v2963_v53, %v2889_v23  ;;  %v2617_v23 = vadd.f32 %v6593_v35, %v2514_v45 }
 0x5a7   : > { %v2993_v31 = vadd.f32 %v2982_v44, %v2890_v11  ;;  %v3066_v28 = vpop.f32.mrf.mxu2 }
 0x5a8   : > { %v3085_v34 = vpop.f32.mrf.mxu3  ;;  %v6605_v37 = vadd.f32 %v3066_v28, %v2992_v0  ;;  %v2688_v16 = vadd.f32 %v6595_v1, %v2617_v23 }
 0x5a9   : > { %v6607_v49 = vadd.f32 %v3085_v34, %v2993_v31 }
 0x5aa   : > { %v2791_v43 = vadd.f32 %v2781_v42, %v2688_v16  ;;  %v3119_v42 = vpop.permute.xlu0 %3118 }
 0x5ac   : > { %v2894_v5 = vadd.f32 %v2884_v21, %v2791_v43 }
 0x5ad   : > { %v2966_v27 = vpop.f32.mrf.mxu0 }
 0x5ae   : > { %v2985_v57 = vpop.f32.mrf.mxu1  ;;  %v2994_v11 = vadd.f32 %v2966_v27, %v2891_v61 }
 0x5af   : > { %v2995_v60 = vadd.f32 %v2985_v57, %v2892_v25  ;;  %v3069_v50 = vpop.f32.mrf.mxu2 }
 0x5b0   : > { %v3088_v3 = vpop.f32.mrf.mxu3  ;;  %v3097_v24 = vadd.f32 %v3069_v50, %v2994_v11 }
 0x5b1   : > { %v3098_v51 = vadd.f32 %v3088_v3, %v2995_v60 }
 0x5b2   : > { %v6615_v46 = vadd.f32 %v3114_v59, %v3097_v24 }
 0x5b3   : > { %v6617_v52 = vadd.f32 %v3114_v59, %v3098_v51 }
 0x5b4   : > { %v4504_v35 = vmul.f32 -1.442695, %v6615_v46 }
 0x5b5   : > { %v4505_v4 = vmul.f32 -1.442695, %v6617_v52  ;;  %v2968_v62 = vpop.f32.mrf.mxu0 }
 0x5b6   : > { %v2987_v53 = vpop.f32.mrf.mxu1  ;;  %4772 = vpow2.f32 %v4504_v35  ;;  %v2996_v1 = vadd.f32 %v2968_v62, %v2893_v6 }
 0x5b7   : > { %v2997_v44 = vadd.f32 %v2987_v53, %v2894_v5  ;;  %4774 = vpow2.f32 %v4505_v4  ;;  %v3071_v10 = vpop.f32.mrf.mxu2 }
 0x5b8   : > { %v3090_v56 = vpop.f32.mrf.mxu3  ;;  %v3099_v55 = vadd.f32 %v3071_v10, %v2996_v1 }
 0x5b9   : > { %v3100_v7 = vadd.f32 %v3090_v56, %v2997_v44 }
 0x5ba   : > { %v6621_v0 = vadd.f32 %v3119_v42, %v3099_v55 }
 0x5bb   : > { %v6623_v31 = vadd.f32 %v3119_v42, %v3100_v7 }
 0x5bc   : > { %v4773_v9 = vpop.eup %4772  ;;  %v4506_v21 = vmul.f32 -1.442695, %v6621_v0 }
 0x5bd   : > { %v4775_v28 = vpop.eup %4774  ;;  %v3157_v34 = vadd.f32 1.0, %v4773_v9  ;;  %v4507_v8 = vmul.f32 -1.442695, %v6623_v31 }
 0x5be   : > { %v3158_v36 = vadd.f32 1.0, %v4775_v28  ;;  %4776 = vpow2.f32 %v4506_v21 }
 0x5bf   : > { %4778 = vrcp.f32 %v3157_v34  ;;  %v3230_v11 = vand.u32 2147483647, %v3157_v34  ;;  %v3232_v60 = vand.u32 2147483648, %v3157_v34  ;;  %vm3226_vm8 = vweird.f32 %v3157_v34 }
 0x5c0   : > { %4780 = vrcp.f32 %v3158_v36  ;;  %v3247_v16 = vand.u32 2147483648, %v3158_v36  ;;  %v3245_v51 = vand.u32 2147483647, %v3158_v36  ;;  %vm3241_vm2 = vweird.f32 %v3158_v36 }
 0x5c1   : > { %4782 = vpow2.f32 %v4507_v8  ;;  %v3233_v43 = vor.u32 1.1754944e-38, %v3232_v60  ;;  %vm3231_vm10 = vcmp.eq.f32.partialorder %v3230_v11, 8.507059e+37  ;;  %v2217_v11 = vld [vmem:[%s6985_s3 + $0x78] sm:$0xff] }
 0x5c2   : > { %v3248_v35 = vor.u32 1.1754944e-38, %v3247_v16  ;;  %vm3246_vm11 = vcmp.eq.f32.partialorder %v3245_v51, 8.507059e+37  ;;  %v2220_v16 = vld [vmem:[%s6985_s3 + $0x90] sm:$0xff]  ;;  %v2221_v51 = vld [vmem:[%s6985_s3 + $0x98] sm:$0xff] }
 0x5c4   : > { %v4777_v22 = vpop.eup %4776 }
 0x5c5   : > { %v4779_v12 = vpop.eup %4778  ;;  %v6627_v17 = vadd.f32 1.0, %v4777_v22 }
 0x5c6   : > { %v4781_v45 = vpop.eup %4780  ;;  %v3222_v61 = vmul.f32 %v4779_v12, %v3157_v34  ;;  %vm3227_vm5 = vweird.f32 %v4779_v12 }
 0x5c7   : > { %v4783_v25 = vpop.eup %4782  ;;  %v3237_v27 = vmul.f32 %v4781_v45, %v3158_v36  ;;  %4784 = vrcp.f32 %v6627_v17  ;;  %vm3242_vm7 = vweird.f32 %v4781_v45  ;;  %vm3228_vm14 = vmor %vm3226_vm8, %vm3227_vm5  ;;  %vm3256_vm5 = vweird.f32 %v6627_v17 }
 0x5c8   : > { %v3223_v57 = vsub.f32 1.0, %v3222_v61  ;;  %v3160_v23 = vadd.f32 1.0, %v4783_v25  ;;  %vm3243_vm13 = vmor %vm3241_vm2, %vm3242_vm7  ;;  %v3260_v8 = vand.u32 2147483647, %v6627_v17 }
 0x5c9   : > { %v3238_v50 = vsub.f32 1.0, %v3237_v27 }
 0x5ca   : > { %v3224_v3 = vmul.f32 %v4779_v12, %v3223_v57  ;;  %4786 = vrcp.f32 %v3160_v23  ;;  %v3277_v34 = vand.u32 2147483648, %v3160_v23  ;;  %vm3271_vm8 = vweird.f32 %v3160_v23 }
 0x5cb   : > { %v3239_v24 = vmul.f32 %v4781_v45, %v3238_v50  ;;  %v3275_v36 = vand.u32 2147483647, %v3160_v23  ;;  %vm3261_vm2 = vcmp.eq.f32.partialorder %v3260_v8, 8.507059e+37  ;;  %v2218_v50 = vld [vmem:[%s6985_s3 + $0x80] sm:$0xff] }
 0x5cc   : > { %v3225_v59 = vadd.f32 %v4779_v12, %v3224_v3  ;;  %v3278_v61 = vor.u32 1.1754944e-38, %v3277_v34  ;;  %v2219_v3 = vld [vmem:[%s6985_s3 + $0x88] sm:$0xff] }
 0x5cd   : > { %v4785_v33 = vpop.eup %4784  ;;  %v3240_v6 = vadd.f32 %v4781_v45, %v3239_v24 }
 0x5ce   : > { %v3229_v5 = vsel %vm3228_vm14, %v4779_v12, %v3225_v59  ;;  %v3252_v4 = vmul.f32 %v4785_v33, %v6627_v17  ;;  %vm3257_vm12 = vweird.f32 %v4785_v33 }
 0x5cf   : > { %v3234_v62 = vsel %vm3231_vm10, %v3233_v43, %v3229_v5  ;;  %v3244_v53 = vsel %vm3243_vm13, %v4781_v45, %v3240_v6  ;;  %vm3258_vm7 = vmor %vm3256_vm5, %vm3257_vm12  ;;  %vm3276_vm10 = vcmp.eq.f32.partialorder %v3275_v36, 8.507059e+37 }
 0x5d0   : > { %v4787_v1 = vpop.eup %4786  ;;  %v6632_v44 = vmul.f32 %v3234_v62, %v6615_v46  ;;  %v3249_v10 = vsel %vm3246_vm11, %v3248_v35, %v3244_v53  ;;  %v3253_v56 = vsub.f32 1.0, %v3252_v4 }
 0x5d1   : > { %v6635_v55 = vmul.f32 %v3249_v10, %v6617_v52  ;;  %v3267_v7 = vmul.f32 %v4787_v1, %v3160_v23  ;;  %vm3272_vm15 = vweird.f32 %v4787_v1  ;;  %v3262_v52 = vand.u32 2147483648, %v6627_v17  ;;  %v2216_v23 = vld [vmem:[%s6985_s3 + $0x70] sm:$0xff] }
 0x5d2   : > { %v3254_v42 = vmul.f32 %v4785_v33, %v3253_v56  ;;  %3403 = vrot.lane.b32.xlu2 %v6632_v44, %s7063_s9  ;;  %3310 = vrot.lane.b32.xlu1 %v6632_v44, %s4959_s30  ;;  %vm3273_vm14 = vmor %vm3271_vm8, %vm3272_vm15  ;;  %vm7137_vm15 = vcmp.lt.s32.totalorder %v5234_v14, 112 }
 0x5d3   : > { %v3268_v9 = vsub.f32 1.0, %v3267_v7  ;;  %3314 = vrot.lane.b32.xlu0 %v6635_v55, %s4959_s30  ;;  %v3263_v45 = vor.u32 1.1754944e-38, %v3262_v52  ;;  %vm7138_vm5 = vmmov %vm7137_vm15 }
 0x5d4   : > { %v3255_v21 = vadd.f32 %v4785_v33, %v3254_v42  ;;  %vm7140_vm8 = vmmov %vm7138_vm5 }
 0x5d5   : > { %v3269_v46 = vmul.f32 %v4787_v1, %v3268_v9 }
 0x5d6   : > { %v3259_v22 = vsel %vm3258_vm7, %v4785_v33, %v3255_v21  ;;  %vm7139_vm7 = vmmov %vm7138_vm5 }
 0x5d7   : > { %v3270_v28 = vadd.f32 %v4787_v1, %v3269_v46  ;;  %v3264_v25 = vsel %vm3261_vm2, %v3263_v45, %v3259_v22 }
 0x5d8   : > { %v6653_v27 = vmul.f32 %v3264_v25, %v6621_v0  ;;  %v2212_v0 = vld [vmem:[%s6985_s3 + $0x50] sm:$0xff] }
 0x5d9   : > { %v3274_v12 = vsel %vm3273_vm14, %v4787_v1, %v3270_v28 }
 0x5da   : > { %3293 = vrot.lane.b32.xlu2 %v6635_v55, %s7065_s12  ;;  %3407 = vrot.lane.b32.xlu1 %v6635_v55, %s7063_s9  ;;  %v3279_v17 = vsel %vm3276_vm10, %v3278_v61, %v3274_v12 }
 0x5db   : > { %3289 = vrot.lane.b32.xlu0 %v6632_v44, %s7065_s12  ;;  %v6656_v57 = vmul.f32 %v3279_v17, %v6623_v31  ;;  %v2213_v31 = vld [vmem:[%s6985_s3 + $0x58] sm:$0xff] }
 0x5e2   : > { %3316 = vrot.lane.b32.xlu1 %v6656_v57, %s4959_s30  ;;  %3312 = vrot.lane.b32.xlu2 %v6653_v27, %s4959_s30 }
 0x5e3   : > { %3405 = vrot.lane.b32.xlu0 %v6653_v27, %s7063_s9 }
 0x5ea   : > { %3464 = vrot.lane.b32.xlu1 %v6632_v44, %s7067_s13  ;;  %3409 = vrot.lane.b32.xlu2 %v6656_v57, %s7063_s9  ;;  %s7148_s9 = sshll.u32 %s5104_s23, 6 }
 0x5eb   : > { %3295 = vrot.lane.b32.xlu0 %v6656_v57, %s7065_s12 }
 0x5f2   : > { %3291 = vrot.lane.b32.xlu1 %v6653_v27, %s7065_s12  ;;  %3631 = vrot.lane.b32.xlu2 %v6632_v44, %s7068_s16  ;;  %s6925_s12 = scalar_lea.vmem [#allocation7], %s7148_s9  ;;  %s4902_s9 = scalar_lea.hbm %s6989_s7, 128 }
 0x5f3   : > { %3468 = vrot.lane.b32.xlu0 %v6635_v55, %s7067_s13  ;;  %s4015_s14 = sshll.u32 %s6925_s12, 4  ;;  %s4016_s14 = int_to_ptr.vmem [resolvable:$true] %s4015_s14 }
 0x5fa   : > { %3635 = vrot.lane.b32.xlu1 %v6635_v55, %s7068_s16  ;;  %3574 = vrot.lane.b32.xlu2 %v6635_v55, %s7069_s22 }
 0x5fb   : > { %3570 = vrot.lane.b32.xlu0 %v6632_v44, %s7069_s22 }
 0x602   : > { %3470 = vrot.lane.b32.xlu1 %v6656_v57, %s7067_s13  ;;  %3466 = vrot.lane.b32.xlu2 %v6653_v27, %s7067_s13  ;;  %s4663_s13 = sshll.u32 %s5030_s28, 6 }
 0x603   : > { %3633 = vrot.lane.b32.xlu0 %v6653_v27, %s7068_s16 }
 0x60a   : > { %3753 = vrot.lane.b32.xlu1 %v6632_v44, %s7040_s11  ;;  %3637 = vrot.lane.b32.xlu2 %v6656_v57, %s7068_s16 }
 0x60b   : > { %3576 = vrot.lane.b32.xlu0 %v6656_v57, %s7069_s22 }
 0x612   : > { %3572 = vrot.lane.b32.xlu1 %v6653_v27, %s7069_s22  ;;  %3692 = vrot.lane.b32.xlu2 %v6632_v44, %s7070_s19 }
 0x613   : > { %3757 = vrot.lane.b32.xlu0 %v6635_v55, %s7040_s11 }
 0x61a   : > { %3759 = vrot.lane.b32.xlu1 %v6656_v57, %s7040_s11  ;;  %3755 = vrot.lane.b32.xlu2 %v6653_v27, %s7040_s11  ;;  %s4014_s11 = scalar_lea.hbm %s6989_s7, %s4663_s13 }
 0x61b   : > { %3694 = vrot.lane.b32.xlu0 %v6653_v27, %s7070_s19  ;;  %s4017_s28 = sshll.u32 %s4014_s11, 4  ;;  %s4018_s28 = int_to_ptr.hbm [resolvable:$true] %s4017_s28 }
 0x61c   : > { %s4896_s5 = sshra.s32 %s4018_s28, 4  ;;  %s4897_s5 = int_to_ptr.hbm [resolvable:$true] %s4896_s5 }
 0x61d   : > { %s4898_s17 = scalar_lea.hbm %s4897_s5, 64  ;;  %p4903_p9 = scmp.lt.s32.totalorder %s4897_s5, %s6989_s7 }
 0x61e   : > { %p4899_p4 = scmp.ne.s32.totalorder %s4897_s5, %s4898_s17  ;;  %p4904_p2 = scmp.lt.s32.totalorder %s4902_s9, %s4898_s17 }
 0x620   : > { %p4900_p8 = pnand %p4899_p4, %p5076_p7  ;;  %p4905_p10 = por %p4904_p2, %p4903_p9 }
 0x622   : > { %3696 = vrot.lane.b32.xlu1 %v6635_v55, %s7070_s19  ;;  %3698 = vrot.lane.b32.xlu2 %v6656_v57, %s7070_s19  ;;  %p4901_p11 = pneg %p4900_p8 }
 0x623   : > { %3103 = vperm.xlu0 %4737, %v2212_v0   ;;  %v4651_v0 = vld [vmem:[#allocation5 + $0x50] sm:$0xff] }
 0x624   : > { %p4906_p12 = pnand %p4905_p10, %p4901_p11 }
 0x62a   : > { %3108 = vperm.xlu1 %4735, %v2213_v31   ;;  %3816 = vperm.xlu2 %4736, %v2216_v23   ;;  %v3526_v31 = vpack.c.bf16 %v6656_v57, %v6635_v55  ;;  %v4652_v23 = vld [vmem:[#allocation5 + $0x58] sm:$0xff] }
 0x62b   : > { %3821 = vperm.xlu0 %4737, %v2217_v11  }
 0x62c   : > { %v3404_v60 = vpop.permute.xlu2 %3403 }
 0x632   : > { %3952 = vperm.xlu1 %4735, %v2218_v50   ;;  %3957 = vperm.xlu2 %4736, %v2219_v3  }
 0x633   : > { %3962 = vperm.xlu0 %4737, %v2220_v16  }
 0x634   : > { %v3294_v24 = vpop.permute.xlu2 %3293 }
 0x63a   : > { %3967 = vperm.xlu1 %4735, %v2221_v51  }
 0x63c   : > { %v3313_v59 = vpop.permute.xlu2 %3312 }
 0x644   : > { %v3311_v33 = vpop.permute.xlu1 %3310  ;;  %v3410_v6 = vpop.permute.xlu2 %3409 }
 0x645   : > { %v3315_v43 = vpop.permute.xlu0 %3314 }
 0x646   : > { %v3318_v4 = vsel %vm428_vm0, %v3311_v33, %v3315_v43  ;;  %v3320_v62 = vsel %vm428_vm0, %v3315_v43, %v3311_v33 }
 0x647   : > { %v3322_v7 = vmul.f32 %v3320_v62, %v5254_v18  ;;  %v3323_v42 = vmul.f32 %v3318_v4, %v5257_v19 }
 0x64c   : > { %v3408_v5 = vpop.permute.xlu1 %3407  ;;  %v6742_v10 = vpop.permute.xlu2 %3631 }
 0x64d   : > { %v3290_v35 = vpop.permute.xlu0 %3289  ;;  %v3411_v53 = vsel %vm581_vm3, %v3404_v60, %v3408_v5  ;;  %v3413_v1 = vsel %vm581_vm3, %v3408_v5, %v3404_v60  ;;  %v4654_v5 = vld [vmem:[#allocation5 + $0x68] sm:$0xff] }
 0x64e   : > { %v3415_v36 = vmul.f32 %v3413_v1, %v5361_v29  ;;  %v3416_v22 = vmul.f32 %v3411_v53, %v5364_v30  ;;  %v3299_v55 = vsel %vm385_vm1, %v3294_v24, %v3290_v35 }
 0x64f   : > { %v3301_v3 = vmul.f32 %v3299_v55, %v5298_v47 }
 0x654   : > { %v3317_v56 = vpop.permute.xlu1 %3316  ;;  %v6766_v11 = vpop.permute.xlu2 %3574 }
 0x655   : > { %v3319_v9 = vsel %vm428_vm0, %v3313_v59, %v3317_v56  ;;  %v3321_v46 = vsel %vm428_vm0, %v3317_v56, %v3313_v59  ;;  %v3406_v21 = vpop.permute.xlu0 %3405  ;;  %vm7129_vm0 = vcmp.lt.s32.totalorder %v5234_v14, 127 }
 0x656   : > { %v3324_v52 = vmul.f32 %v3321_v46, %v5254_v18  ;;  %v3325_v28 = vmul.f32 %v3319_v9, %v5257_v19  ;;  %v3412_v34 = vsel %vm581_vm3, %v3406_v21, %v3410_v6  ;;  %v3414_v8 = vsel %vm581_vm3, %v3410_v6, %v3406_v21  ;;  %vm7131_vm3 = vmmov %vm7129_vm0 }
 0x657   : > { %v3417_v12 = vmul.f32 %v3414_v8, %v5361_v29  ;;  %v3418_v45 = vmul.f32 %v3412_v34, %v5364_v30  ;;  %v3525_v19 = vpack.c.bf16 %v6653_v27, %v6632_v44  ;;  %v3297_v44 = vsel %vm385_vm1, %v3290_v35, %v3294_v24  ;;  %v4650_v24 = vld [vmem:[#allocation5 + $0x48] sm:$0xff] }
 0x658   : > { %v3326_v61 = vpack.c.bf16 %v3324_v52, %v3322_v7  ;;  %v3327_v25 = vpack.c.bf16 %v3325_v28, %v3323_v42  ;;  %v3302_v16 = vmul.f32 %v3297_v44, %v5301_v48 }
 0x659   : > { %v3419_v17 = vpack.c.bf16 %v3417_v12, %v3415_v36  ;;  %v3420_v18 = vpack.c.bf16 %v3418_v45, %v3416_v22 }
 0x65a   : > { %3346 = vmatpush.bf16.msra.mxu0 %v3326_v61  ;;  %3360 = vmatpush.bf16.msra.mxu1 %v3327_v25 }
 0x65b   : > { %3439 = vmatpush.bf16.msrb.mxu2 %v3419_v17  ;;  %3453 = vmatpush.bf16.msrb.mxu3 %v3420_v18  ;;  %v4653_v17 = vld [vmem:[#allocation5 + $0x60] sm:$0xff] }
 0x65c   : > { %v3465_v29 = vpop.permute.xlu1 %3464  ;;  %v3467_v33 = vpop.permute.xlu2 %3466 }
 0x65d   : > { %v3296_v30 = vpop.permute.xlu0 %3295  ;;  %4512 = vmatmul.msk.bf16.vlgmr.msra.gmra.mxu0 %vm1506_vm9, %v4651_v0  ;;  %4513 = vmatmul.msk.bf16.vlgmr.msra.gmra.mxu1 %vm1506_vm9, %v4651_v0 }
 0x65e   : > { %4524 = vmatmul.msk.bf16.vlgmr.msrb.gmra.mxu2 %vm1506_vm9, %v4652_v23  ;;  %4525 = vmatmul.msk.bf16.vlgmr.msrb.gmra.mxu3 %vm1506_vm9, %v4652_v23 }
 0x65f   : > { %3545 = vmatpush.bf16.msra.mxu2 %v3525_v19  ;;  %3559 = vmatpush.bf16.msra.mxu3 %v3526_v31 }
 0x664   : > { %v3292_v27 = vpop.permute.xlu1 %3291  ;;  %v3638_v62 = vpop.permute.xlu2 %3637 }
 0x665   : > { %v3298_v57 = vsel %vm385_vm1, %v3292_v27, %v3296_v30  ;;  %v3300_v60 = vsel %vm385_vm1, %v3296_v30, %v3292_v27  ;;  %v3469_v50 = vpop.permute.xlu0 %3468  ;;  %vm7130_vm1 = vmmov %vm7129_vm0 }
 0x666   : > { %v3303_v51 = vmul.f32 %v3300_v60, %v5298_v47  ;;  %v3304_v59 = vmul.f32 %v3298_v57, %v5301_v48  ;;  %v3472_v47 = vsel %vm687_vm4, %v3465_v29, %v3469_v50  ;;  %v3474_v48 = vsel %vm687_vm4, %v3469_v50, %v3465_v29 }
 0x667   : > { %v3476_v7 = vmul.f32 %v3474_v48, %v5422_v63  ;;  %v3477_v42 = vmul.f32 %v3472_v47, %v5425_v2 }
 0x668   : > { %v3305_v43 = vpack.c.bf16 %v3303_v51, %v3301_v3  ;;  %v3306_v6 = vpack.c.bf16 %v3304_v59, %v3302_v16 }
 0x66a   : > { %3382 = vmatpush.bf16.msrb.mxu0 %v3305_v43  ;;  %3396 = vmatpush.bf16.msrb.mxu1 %v3306_v6 }
 0x66c   : > { %v3636_v35 = vpop.permute.xlu1 %3635  ;;  %v3693_v18 = vpop.permute.xlu2 %3692 }
 0x66d   : > { %v3571_v4 = vpop.permute.xlu0 %3570  ;;  %4518 = vmatmul.msk.bf16.vlgmr.msrb.gmra.mxu0 %vm1506_vm9, %v4650_v24  ;;  %4519 = vmatmul.msk.bf16.vlgmr.msrb.gmra.mxu1 %vm1506_vm9, %v4650_v24  ;;  %v3639_v53 = vsel %vm970_vm6, %v6742_v10, %v3636_v35  ;;  %v3641_v1 = vsel %vm970_vm6, %v3636_v35, %v6742_v10 }
 0x66e   : > { %4536 = vmatmul.msk.bf16.vlgmr.msra.gmra.mxu2 %vm1506_vm9, %v4654_v5  ;;  %4537 = vmatmul.msk.bf16.vlgmr.msra.gmra.mxu3 %vm1506_vm9, %v4654_v5  ;;  %v3643_v8 = vmul.f32 %v3639_v53, %v5509_v13  ;;  %v3644_v36 = vmul.f32 %v3641_v1, %v5512_v15 }
 0x674   : > { %v3471_v56 = vpop.permute.xlu1 %3470  ;;  %v3756_v27 = vpop.permute.xlu2 %3755 }
 0x675   : > { %v3473_v9 = vsel %vm687_vm4, %v3467_v33, %v3471_v56  ;;  %v3475_v46 = vsel %vm687_vm4, %v3471_v56, %v3467_v33  ;;  %v3634_v21 = vpop.permute.xlu0 %3633  ;;  %vm7132_vm4 = vmmov %vm7129_vm0 }
 0x676   : > { %v3478_v52 = vmul.f32 %v3475_v46, %v5422_v63  ;;  %v3479_v28 = vmul.f32 %v3473_v9, %v5425_v2  ;;  %v3640_v34 = vsel %vm970_vm6, %v3634_v21, %v3638_v62  ;;  %v3642_v10 = vsel %vm970_vm6, %v3638_v62, %v3634_v21  ;;  %v4656_v2 = vld [vmem:[#allocation5 + $0x78] sm:$0xff]  ;;  %v4658_v62 = vld [vmem:[#allocation5 + $0x88] sm:$0xff] }
 0x677   : > { %v3645_v22 = vmul.f32 %v3640_v34, %v5509_v13  ;;  %v3646_v12 = vmul.f32 %v3642_v10, %v5512_v15  ;;  %v3578_v13 = vsel %vm7129_vm0, %v3571_v4, %v6766_v11  ;;  %v3580_v15 = vsel %vm7130_vm1, %v6766_v11, %v3571_v4  ;;  %v4655_v11 = vld [vmem:[#allocation5 + $0x70] sm:$0xff] }
 0x678   : > { %v3480_v45 = vpack.c.bf16 %v3478_v52, %v3476_v7  ;;  %v3481_v61 = vpack.c.bf16 %v3479_v28, %v3477_v42  ;;  %v3582_v44 = vmul.f32 %v3578_v13, %v5463_v40  ;;  %v3583_v55 = vmul.f32 %v3580_v15, %v5466_v41 }
 0x679   : > { %v3647_v25 = vpack.c.bf16 %v3645_v22, %v3643_v8  ;;  %v3648_v63 = vpack.c.bf16 %v3646_v12, %v3644_v36  ;;  %vm7133_vm6 = vcmp.lt.s32.totalorder %v5234_v14, 111  ;;  %v4657_v8 = vld [vmem:[#allocation5 + $0x80] sm:$0xff] }
 0x67a   : > { %3500 = vmatpush.bf16.msra.mxu0 %v3480_v45  ;;  %3514 = vmatpush.bf16.msra.mxu1 %v3481_v61  ;;  %vm7134_vm13 = vmmov %vm7133_vm6 }
 0x67b   : > { %3667 = vmatpush.bf16.msrb.mxu2 %v3647_v25  ;;  %3681 = vmatpush.bf16.msrb.mxu3 %v3648_v63  ;;  %vm7135_vm11 = vmmov %vm7133_vm6 }
 0x67c   : > { %v3754_v0 = vpop.permute.xlu1 %3753  ;;  %vm7136_vm12 = vmmov %vm7133_vm6  ;;  %v3699_v35 = vpop.permute.xlu2 %3698 }
 0x67d   : > { %v3577_v19 = vpop.permute.xlu0 %3576  ;;  %4530 = vmatmul.msk.bf16.vlgmr.msra.gmra.mxu0 %vm1506_vm9, %v4653_v17  ;;  %4531 = vmatmul.msk.bf16.vlgmr.msra.gmra.mxu1 %vm1506_vm9, %v4653_v17 }
 0x67e   : > { %4548 = vmatmul.msk.bf16.vlgmr.msrb.gmra.mxu2 %vm1506_vm9, %v4656_v2  ;;  %4549 = vmatmul.msk.bf16.vlgmr.msrb.gmra.mxu3 %vm1506_vm9, %v4656_v2 }
 0x684   : > { %v3573_v31 = vpop.permute.xlu1 %3572 }
 0x685   : > { %v3579_v23 = vsel %vm7131_vm3, %v3573_v31, %v3577_v19  ;;  %v3581_v29 = vsel %vm7132_vm4, %v3577_v19, %v3573_v31  ;;  %v3758_v30 = vpop.permute.xlu0 %3757 }
 0x686   : > { %v3584_v57 = vmul.f32 %v3579_v23, %v5463_v40  ;;  %v3585_v60 = vmul.f32 %v3581_v29, %v5466_v41  ;;  %v3761_v16 = vsel %vm7133_vm6, %v3754_v0, %v3758_v30  ;;  %v3763_v51 = vsel %vm7134_vm13, %v3758_v30, %v3754_v0 }
 0x687   : > { %v3765_v41 = vmul.f32 %v6532_v39, %v3761_v16  ;;  %v3766_v6 = vmul.f32 %v6538_v38, %v3763_v51 }
 0x688   : > { %v3586_v50 = vpack.c.bf16 %v3584_v57, %v3582_v44  ;;  %v3587_v3 = vpack.c.bf16 %v3585_v60, %v3583_v55 }
 0x68a   : > { %3606 = vmatpush.bf16.msrb.mxu0 %v3586_v50  ;;  %3620 = vmatpush.bf16.msrb.mxu1 %v3587_v3 }
 0x68c   : > { %v3760_v59 = vpop.permute.xlu1 %3759 }
 0x68d   : > { %v3762_v33 = vsel %vm7135_vm11, %v3756_v27, %v3760_v59  ;;  %v3764_v40 = vsel %vm7136_vm12, %v3760_v59, %v3756_v27  ;;  %v3695_v43 = vpop.permute.xlu0 %3694  ;;  %4542 = vmatmul.msk.bf16.vlgmr.msrb.gmra.mxu0 %vm1506_vm9, %v4655_v11  ;;  %4543 = vmatmul.msk.bf16.vlgmr.msrb.gmra.mxu1 %vm1506_vm9, %v4655_v11 }
 0x68e   : > { %v3767_v24 = vmul.f32 %v6532_v39, %v3762_v33  ;;  %v3768_v5 = vmul.f32 %v6538_v38, %v3764_v40  ;;  %v3701_v48 = vsel %vm7137_vm15, %v3695_v43, %v3699_v35  ;;  %v3703_v53 = vsel %vm7138_vm5, %v3699_v35, %v3695_v43 }
 0x68f   : > { %v3706_v1 = vmul.f32 %v3701_v48, %v5555_v58  ;;  %v3707_v7 = vmul.f32 %v3703_v53, %v7041_v32 }
 0x690   : > { %v3769_v4 = vpack.c.bf16 %v3767_v24, %v3765_v41  ;;  %v3770_v47 = vpack.c.bf16 %v3768_v5, %v3766_v6 }
 0x692   : > { %3789 = vmatpush.bf16.msra.mxu2 %v3769_v4  ;;  %3803 = vmatpush.bf16.msra.mxu3 %v3770_v47 }
 0x694   : > { %v3697_v56 = vpop.permute.xlu1 %3696 }
 0x695   : > { %v3700_v39 = vsel %vm7139_vm7, %v3693_v18, %v3697_v56  ;;  %v3702_v38 = vsel %vm7140_vm8, %v3697_v56, %v3693_v18  ;;  %v3104_v42 = vpop.permute.xlu0 %3103  ;;  %4560 = vmatmul.msk.bf16.vlgmr.msra.gmra.mxu2 %vm1506_vm9, %v4658_v62  ;;  %4561 = vmatmul.msk.bf16.vlgmr.msra.gmra.mxu3 %vm1506_vm9, %v4658_v62 }
 0x696   : > { %v3704_v9 = vmul.f32 %v3700_v39, %v5555_v58  ;;  %v3705_v46 = vmul.f32 %v3702_v38, %v7041_v32  ;;  %v6859_v21 = vadd.f32 %v3104_v42, %v6599_v20  ;;  %v6862_v52 = vadd.f32 %v3104_v42, %v6601_v26 }
 0x698   : > { %v3708_v28 = vpack.c.bf16 %v3706_v1, %v3704_v9  ;;  %v3709_v34 = vpack.c.bf16 %v3707_v7, %v3705_v46  ;;  %v4500_v14 = vmul.f32 -1.442695, %v6859_v21  ;;  %v4501_v10 = vmul.f32 -1.442695, %v6862_v52 }
 0x69a   : > { %4788 = vpow2.f32 %v4500_v14  ;;  %3728 = vmatpush.bf16.msra.mxu0 %v3708_v28  ;;  %3742 = vmatpush.bf16.msra.mxu1 %v3709_v34 }
 0x69b   : > { %4790 = vpow2.f32 %v4501_v10 }
 0x69c   : > { %v3109_v58 = vpop.permute.xlu1 %3108 }
 0x69d   : > { %v6867_v32 = vadd.f32 %v3109_v58, %v6605_v37  ;;  %v6870_v20 = vadd.f32 %v3109_v58, %v6607_v49  ;;  %4554 = vmatmul.msk.bf16.vlgmr.msra.gmra.mxu0 %vm1506_vm9, %v4657_v8  ;;  %4555 = vmatmul.msk.bf16.vlgmr.msra.gmra.mxu1 %vm1506_vm9, %v4657_v8 }
 0x69f   : > { %v4502_v26 = vmul.f32 -1.442695, %v6867_v32  ;;  %v4503_v36 = vmul.f32 -1.442695, %v6870_v20 }
 0x6a0   : > { %v4789_v22 = vpop.eup %4788 }
 0x6a1   : > { %v4791_v12 = vpop.eup %4790  ;;  %v3153_v45 = vadd.f32 1.0, %v4789_v22  ;;  %4792 = vpow2.f32 %v4502_v26 }
 0x6a2   : > { %v3154_v61 = vadd.f32 1.0, %v4791_v12  ;;  %4794 = vpow2.f32 %v4503_v36 }
 0x6a3   : > { %4796 = vrcp.f32 %v3153_v45  ;;  %v3170_v29 = vand.u32 2147483647, %v3153_v45  ;;  %vm3166_vm2 = vweird.f32 %v3153_v45  ;;  %v3172_v27 = vand.u32 2147483648, %v3153_v45 }
 0x6a4   : > { %4798 = vrcp.f32 %v3154_v61  ;;  %vm3181_vm10 = vweird.f32 %v3154_v61  ;;  %v3185_v57 = vand.u32 2147483647, %v3154_v61  ;;  %v3187_v51 = vand.u32 2147483648, %v3154_v61 }
 0x6a5   : > { %vm6880_vm3 = vcmp.eq.f32.partialorder %v3170_v29, 8.507059e+37  ;;  %v3173_v6 = vor.u32 1.1754944e-38, %v3172_v27  ;;  %v4660_v27 = vld [vmem:[%s6988_s6 + $0x28] sm:$0xff] }
 0x6a6   : > { %vm3186_vm12 = vcmp.eq.f32.partialorder %v3185_v57, 8.507059e+37  ;;  %v3188_v53 = vor.u32 1.1754944e-38, %v3187_v51 }
 0x6a7   : > { %v4793_v37 = vpop.eup %4792 }
 0x6a8   : > { %v4795_v25 = vpop.eup %4794  ;;  %v3155_v49 = vadd.f32 1.0, %v4793_v37 }
 0x6a9   : > { %v4797_v63 = vpop.eup %4796  ;;  %v3156_v17 = vadd.f32 1.0, %v4795_v25 }
 0x6aa   : > { %v4799_v2 = vpop.eup %4798  ;;  %v3162_v18 = vmul.f32 %v4797_v63, %v3153_v45  ;;  %4800 = vrcp.f32 %v3155_v49  ;;  %vm3167_vm14 = vweird.f32 %v4797_v63  ;;  %v3200_v59 = vand.u32 2147483647, %v3155_v49 }
 0x6ab   : > { %v3177_v0 = vmul.f32 %v4799_v2, %v3154_v61  ;;  %4802 = vrcp.f32 %v3156_v17  ;;  %vm3182_vm0 = vweird.f32 %v4799_v2  ;;  %vm6876_vm1 = vmor %vm3166_vm2, %vm3167_vm14  ;;  %v3202_v33 = vand.u32 2147483648, %v3155_v49 }
 0x6ac   : > { %v3163_v19 = vsub.f32 1.0, %v3162_v18  ;;  %vm6887_vm6 = vmor %vm3181_vm10, %vm3182_vm0  ;;  %vm3196_vm13 = vweird.f32 %v3155_v49  ;;  %v3215_v5 = vand.u32 2147483647, %v3156_v17  ;;  %v3217_v35 = vand.u32 2147483648, %v3156_v17 }
 0x6ad   : > { %v3178_v13 = vsub.f32 1.0, %v3177_v0  ;;  %v3203_v1 = vor.u32 1.1754944e-38, %v3202_v33  ;;  %vm3201_vm5 = vcmp.eq.f32.partialorder %v3200_v59, 8.507059e+37  ;;  %vm3211_vm7 = vweird.f32 %v3156_v17 }
 0x6ae   : > { %v3164_v15 = vmul.f32 %v4797_v63, %v3163_v19  ;;  %v3218_v42 = vor.u32 1.1754944e-38, %v3217_v35  ;;  %vm3216_vm14 = vcmp.eq.f32.partialorder %v3215_v5, 8.507059e+37 }
 0x6af   : > { %v3179_v31 = vmul.f32 %v4799_v2, %v3178_v13 }
 0x6b0   : > { %v4801_v23 = vpop.eup %4800  ;;  %v3165_v30 = vadd.f32 %v4797_v63, %v3164_v15  ;;  %v4659_v15 = vld [vmem:[%s6988_s6 + $0x20] sm:$0xff] }
 0x6b1   : > { %v3192_v44 = vmul.f32 %v4801_v23, %v3155_v49  ;;  %v4803_v55 = vpop.eup %4802  ;;  %v3180_v60 = vadd.f32 %v4799_v2, %v3179_v31  ;;  %vm3197_vm4 = vweird.f32 %v4801_v23 }
 0x6b2   : > { %v3207_v3 = vmul.f32 %v4803_v55, %v3156_v17  ;;  %v3169_v40 = vsel %vm6876_vm1, %v4797_v63, %v3165_v30  ;;  %vm3212_vm11 = vweird.f32 %v4803_v55  ;;  %vm3198_vm15 = vmor %vm3196_vm13, %vm3197_vm4 }
 0x6b3   : > { %v3193_v50 = vsub.f32 1.0, %v3192_v44  ;;  %v3184_v4 = vsel %vm6887_vm6, %v4799_v2, %v3180_v60  ;;  %v3174_v62 = vsel %vm6880_vm3, %v3173_v6, %v3169_v40  ;;  %vm3213_vm8 = vmor %vm3211_vm7, %vm3212_vm11 }
 0x6b4   : > { %v3208_v41 = vsub.f32 1.0, %v3207_v3  ;;  %v3189_v39 = vsel %vm3186_vm12, %v3188_v53, %v3184_v4  ;;  %v3281_v9 = vmul.f32 %v3174_v62, %v6859_v21 }
 0x6b5   : > { %v3194_v43 = vmul.f32 %v4801_v23, %v3193_v50  ;;  %v3282_v14 = vmul.f32 %v3189_v39, %v6862_v52 }
 0x6b6   : > { %v3209_v48 = vmul.f32 %v4803_v55, %v3208_v41 }
 0x6b7   : > { %v3195_v47 = vadd.f32 %v4801_v23, %v3194_v43 }
 0x6b8   : > { %v3210_v7 = vadd.f32 %v4803_v55, %v3209_v48 }
 0x6b9   : > { %v3199_v56 = vsel %vm3198_vm15, %v4801_v23, %v3195_v47 }
 0x6ba   : > { %v3204_v38 = vsel %vm3201_vm5, %v3203_v1, %v3199_v56  ;;  %v3214_v46 = vsel %vm3213_vm8, %v4803_v55, %v3210_v7 }
 0x6bb   : > { %v3283_v28 = vmul.f32 %v3204_v38, %v6867_v32  ;;  %v3219_v34 = vsel %vm3216_vm14, %v3218_v42, %v3214_v46 }
 0x6bc   : > { %v3284_v10 = vmul.f32 %v3219_v34, %v6870_v20 }
 0x6bd   : > { %v3833_v8 = vpack.c.bf16 %v3283_v28, %v3281_v9 }
 0x6be   : > { %v3834_v58 = vpack.c.bf16 %v3284_v10, %v3282_v14 }
 0x6bf   : > { %3919 = vmatpush.bf16.msrb.mxu2 %v3833_v8 }
 0x6c0   : > { %3938 = vmatpush.bf16.msrb.mxu3 %v3834_v58 }
 0x6c2   : > { %4590 = vmatmul.msk.bf16.vlgmr.msrb.gmra.mxu2 %vm1506_vm9, %v4659_v15 }
 0x6c3   : > { %4592 = vmatmul.msk.bf16.vlgmr.msrb.gmra.mxu3 %vm1506_vm9, %v4659_v15 }
 0x6d2   : > { %4591 = vmatmul.msk.bf16.gmra.mxu2 %vm1506_vm9, %v4660_v27 }
 0x6d3   : > { %4593 = vmatmul.msk.bf16.gmra.mxu3 %vm1506_vm9, %v4660_v27 }
 0x6da   : > { %v3348_v26 = vpop.f32.mrf.mxu0  ;;  %v3362_v36 = vpop.f32.mrf.mxu1 }
 0x6e1   : > { %v3441_v22 = vpop.f32.mrf.mxu2  ;;  %v3455_v12 = vpop.f32.mrf.mxu3 }
 0x6e2   : > { %v3350_v45 = vpop.f32.mrf.mxu0  ;;  %v3364_v61 = vpop.f32.mrf.mxu1 }
 0x6e9   : > { %v3443_v21 = vpop.f32.mrf.mxu2  ;;  %v3457_v37 = vpop.f32.mrf.mxu3 }
 0x6ea   : > { %v3384_v25 = vpop.f32.mrf.mxu0  ;;  %v3398_v49 = vpop.f32.mrf.mxu1 }
 0x6eb   : > { %v3385_v44 = vadd.f32 %v3384_v25, %v3348_v26  ;;  %v3399_v55 = vadd.f32 %v3398_v49, %v3362_v36  ;;  %v3822_v25 = vpop.permute.xlu0 %3821 }
 0x6ed   : > { %v3460_v57 = vadd.f32 %v3441_v22, %v3385_v44  ;;  %v3461_v60 = vadd.f32 %v3455_v12, %v3399_v55 }
 0x6f1   : > { %v3547_v17 = vpop.f32.mrf.mxu2  ;;  %v3561_v52 = vpop.f32.mrf.mxu3 }
 0x6f2   : > { %v3386_v32 = vpop.f32.mrf.mxu0  ;;  %v3400_v63 = vpop.f32.mrf.mxu1 }
 0x6f3   : > { %v3387_v50 = vadd.f32 %v3386_v32, %v3350_v45  ;;  %v3401_v3 = vadd.f32 %v3400_v63, %v3364_v61 }
 0x6f5   : > { %v3462_v43 = vadd.f32 %v3443_v21, %v3387_v50  ;;  %v3463_v41 = vadd.f32 %v3457_v37, %v3401_v3  ;;  %v3817_v37 = vpop.permute.xlu2 %3816  ;;  %v4814_v3 = vld [vmem:[%s5110_s29] sm:$0xff] }
 0x6f9   : > { %v3549_v18 = vpop.f32.mrf.mxu2  ;;  %v3563_v0 = vpop.f32.mrf.mxu3 }
 0x6fa   : > { %v3502_v2 = vpop.f32.mrf.mxu0  ;;  %v3516_v20 = vpop.f32.mrf.mxu1 }
 0x6fb   : > { %v3521_v33 = vadd.f32 %v3502_v2, %v3460_v57  ;;  %v3522_v40 = vadd.f32 %v3516_v20, %v3461_v60  ;;  %v4661_v20 = vld [vmem:[%s6988_s6 + $0x30] sm:$0xff] }
 0x6fc   : > { %v7147_v60 = vld [vmem:[#allocation11_spill] sm:$0xff] }
 0x6fd   : > { %v3566_v6 = vadd.f32 %v3547_v17, %v3521_v33  ;;  %v3567_v24 = vadd.f32 %v3561_v52, %v3522_v40 }
 0x701   : > { %v3669_v31 = vpop.f32.mrf.mxu2  ;;  %v3683_v23 = vpop.f32.mrf.mxu3 }
 0x702   : > { %v3504_v19 = vpop.f32.mrf.mxu0  ;;  %v3518_v13 = vpop.f32.mrf.mxu1 }
 0x703   : > { %v3523_v5 = vadd.f32 %v3504_v19, %v3462_v43  ;;  %v3524_v35 = vadd.f32 %v3518_v13, %v3463_v41 }
 0x705   : > { %v3568_v56 = vadd.f32 %v3549_v18, %v3523_v5  ;;  %v3569_v7 = vadd.f32 %v3563_v0, %v3524_v35  ;;  %v4662_v18 = vld [vmem:[%s6988_s6 + $0x38] sm:$0xff]  ;;  %v7150_v35 = vld [vmem:[#allocation15_spill] sm:$0xff] }
 0x709   : > { %v3671_v11 = vpop.f32.mrf.mxu2  ;;  %v3685_v16 = vpop.f32.mrf.mxu3 }
 0x70a   : > { %v3608_v29 = vpop.f32.mrf.mxu0  ;;  %v3622_v30 = vpop.f32.mrf.mxu1 }
 0x70b   : > { %v3627_v4 = vadd.f32 %v3608_v29, %v3566_v6  ;;  %v3628_v47 = vadd.f32 %v3622_v30, %v3567_v24  ;;  %v3953_v29 = vpop.permute.xlu1 %3952  ;;  %v7149_v24 = vld [vmem:[#allocation14_spill] sm:$0xff] }
 0x70d   : > { %v3688_v39 = vadd.f32 %v3669_v31, %v3627_v4  ;;  %v3689_v38 = vadd.f32 %v3683_v23, %v3628_v47 }
 0x712   : > { %v3610_v51 = vpop.f32.mrf.mxu0  ;;  %v3624_v59 = vpop.f32.mrf.mxu1 }
 0x713   : > { %v3629_v42 = vadd.f32 %v3610_v51, %v3568_v56  ;;  %v3630_v9 = vadd.f32 %v3624_v59, %v3569_v7 }
 0x715   : > { %v3690_v34 = vadd.f32 %v3671_v11, %v3629_v42  ;;  %v3691_v14 = vadd.f32 %v3685_v16, %v3630_v9  ;;  %v4815_v16 = vld [vmem:[%s5110_s29 + $0x8] sm:$0xff]  ;;  %v3963_v9 = vpop.permute.xlu0 %3962 }
 0x718   : > { %v3791_v48 = vpop.f32.mrf.mxu2  ;;  %v3805_v62 = vpop.f32.mrf.mxu3 }
 0x71a   : > { %v3730_v53 = vpop.f32.mrf.mxu0  ;;  %v3744_v1 = vpop.f32.mrf.mxu1 }
 0x71b   : > { %v3749_v46 = vadd.f32 %v3730_v53, %v3688_v39  ;;  %v3750_v28 = vadd.f32 %v3744_v1, %v3689_v38  ;;  %v4817_v1 = vld [vmem:[%s5110_s29 + $0x18] sm:$0xff] }
 0x71d   : > { %v3810_v58 = vadd.f32 %v3791_v48, %v3749_v46  ;;  %v3811_v26 = vadd.f32 %v3805_v62, %v3750_v28  ;;  %v4816_v62 = vld [vmem:[%s5110_s29 + $0x10] sm:$0xff] }
 0x71f   : > { %v3824_v49 = vadd.f32 %v3817_v37, %v3810_v58  ;;  %v3825_v32 = vadd.f32 %v3817_v37, %v3811_v26  ;;  %v4818_v58 = vld [vmem:[%s5110_s29 + $0x20] sm:$0xff] }
 0x720   : > { %v3793_v12 = vpop.f32.mrf.mxu2  ;;  %v3807_v45 = vpop.f32.mrf.mxu3 }
 0x722   : > { %v3732_v10 = vpop.f32.mrf.mxu0  ;;  %v3746_v8 = vpop.f32.mrf.mxu1 }
 0x723   : > { %v3751_v36 = vadd.f32 %v3732_v10, %v3690_v34  ;;  %v3752_v22 = vadd.f32 %v3746_v8, %v3691_v14  ;;  %v7151_v34 = vld [vmem:[#allocation16_spill] sm:$0xff]  ;;  %v7152_v10 = vld [vmem:[#allocation17_spill] sm:$0xff] }
 0x725   : > { %v3812_v61 = vadd.f32 %v3793_v12, %v3751_v36  ;;  %v3813_v21 = vadd.f32 %v3807_v45, %v3752_v22  ;;  %v4819_v36 = vld [vmem:[%s5110_s29 + $0x28] sm:$0xff] }
 0x727   : > { %v3826_v63 = vadd.f32 %v3822_v25, %v3812_v61  ;;  %v3827_v17 = vadd.f32 %v3822_v25, %v3813_v21 }
 0x729   : > { %v3840_v52 = vpack.c.bf16 %v3826_v63, %v3824_v49  ;;  %v3841_v2 = vpack.c.bf16 %v3827_v17, %v3825_v32  ;;  %v3968_v49 = vpop.permute.xlu1 %3967  ;;  %v7153_v17 = vld [vmem:[#allocation12_spill] sm:$0xff] }
 0x72b   : > { %3865 = vmatpush.bf16.msrb.mxu0 %v3840_v52  ;;  %3884 = vmatpush.bf16.msrb.mxu1 %v3841_v2  ;;  %v7154_v2 = vld [vmem:[#allocation13_spill] sm:$0xff] }
 0x72e   : > { %4578 = vmatmul.msk.bf16.vlgmr.msrb.gmra.mxu0 %vm1506_vm9, %v4661_v20  ;;  %4580 = vmatmul.msk.bf16.vlgmr.msrb.gmra.mxu1 %vm1506_vm9, %v4661_v20 }
 0x73e   : > { %4579 = vmatmul.msk.bf16.gmra.mxu0 %vm1506_vm9, %v4662_v18  ;;  %4581 = vmatmul.msk.bf16.gmra.mxu1 %vm1506_vm9, %v4662_v18  ;;  %v4820_v18 = vld [vmem:[%s5110_s29 + $0x30] sm:$0xff] }
 0x745   : > { %v3921_v0 = vpop.f32.mrf.mxu2 }
 0x746   : > { %v3940_v19 = vpop.f32.mrf.mxu3 }
 0x74d   : > { %v3923_v55 = vpop.f32.mrf.mxu2 }
 0x74e   : > { %v3942_v27 = vpop.f32.mrf.mxu3 }
 0x755   : > { %v3926_v47 = vpop.f32.mrf.mxu2 }
 0x756   : > { %v3945_v48 = vpop.f32.mrf.mxu3 }
 0x75d   : > { %v3928_v12 = vpop.f32.mrf.mxu2 }
 0x75e   : > { %v3947_v45 = vpop.f32.mrf.mxu3 }
 0x7ab   : > { %v3867_v13 = vpop.f32.mrf.mxu0  ;;  %v3886_v15 = vpop.f32.mrf.mxu1 }
 0x7ac   : > { %v3922_v31 = vadd.f32 %v3921_v0, %v3867_v13  ;;  %v3941_v23 = vadd.f32 %v3940_v19, %v3886_v15  ;;  %v4821_v19 = vld [vmem:[%s5110_s29 + $0x38] sm:$0xff] }
 0x7ae   : > { %v3970_v30 = vadd.f32 %v3953_v29, %v3922_v31  ;;  %v3971_v44 = vadd.f32 %v3953_v29, %v3941_v23 }
 0x7b0   : > { %v3978_v57 = vadd.f32 %v3970_v30, %v6041_v54  ;;  %v3979_v50 = vadd.f32 %v3971_v44, %v7147_v60  ;;  %v3958_v54 = vpop.permute.xlu2 %3957 }
 0x7b2   : > { %v3986_v11 = vadd.f32 %v4814_v3, %v3978_v57  ;;  %v3987_v51 = vadd.f32 %v4815_v16, %v3979_v50 }
 0x7b3   : > { %v3869_v59 = vpop.f32.mrf.mxu0  ;;  %v3888_v33 = vpop.f32.mrf.mxu1 }
 0x7b4   : > { %3994 = vst [vmem:[%s6925_s12] sm:$0xff] %v3986_v11  ;;  %v3924_v40 = vadd.f32 %v3923_v55, %v3869_v59  ;;  %v3943_v43 = vadd.f32 %v3942_v27, %v3888_v33 }
 0x7b5   : > { %3995 = vst [vmem:[%s6925_s12 + $0x8] sm:$0xff] %v3987_v51 }
 0x7b6   : > { %v3972_v41 = vadd.f32 %v3958_v54, %v3924_v40  ;;  %v3973_v6 = vadd.f32 %v3958_v54, %v3943_v43 }
 0x7b8   : > { %v3980_v5 = vadd.f32 %v3972_v41, %v7149_v24  ;;  %v3981_v4 = vadd.f32 %v3973_v6, %v7150_v35 }
 0x7ba   : > { %v3988_v53 = vadd.f32 %v4816_v62, %v3980_v5  ;;  %v3989_v56 = vadd.f32 %v4817_v1, %v3981_v4 }
 0x7bb   : > { %v3872_v7 = vpop.f32.mrf.mxu0  ;;  %v3891_v39 = vpop.f32.mrf.mxu1 }
 0x7bc   : > { %3996 = vst [vmem:[%s6925_s12 + $0x10] sm:$0xff] %v3988_v53  ;;  %v3927_v38 = vadd.f32 %v3926_v47, %v3872_v7  ;;  %v3946_v42 = vadd.f32 %v3945_v48, %v3891_v39 }
 0x7bd   : > { %3997 = vst [vmem:[%s6925_s12 + $0x18] sm:$0xff] %v3989_v56 }
 0x7be   : > { %v3974_v46 = vadd.f32 %v3963_v9, %v3927_v38  ;;  %v3975_v28 = vadd.f32 %v3963_v9, %v3946_v42 }
 0x7c0   : > { %v3982_v14 = vadd.f32 %v3974_v46, %v7151_v34  ;;  %v3983_v8 = vadd.f32 %v3975_v28, %v7152_v10 }
 0x7c2   : > { %v3990_v26 = vadd.f32 %v4818_v58, %v3982_v14  ;;  %v3991_v22 = vadd.f32 %v4819_v36, %v3983_v8 }
 0x7c3   : > { %v3874_v61 = vpop.f32.mrf.mxu0  ;;  %v3893_v21 = vpop.f32.mrf.mxu1 }
 0x7c4   : > { %3998 = vst [vmem:[%s6925_s12 + $0x20] sm:$0xff] %v3990_v26  ;;  %v3929_v37 = vadd.f32 %v3928_v12, %v3874_v61  ;;  %v3948_v25 = vadd.f32 %v3947_v45, %v3893_v21 }
 0x7c5   : > { %3999 = vst [vmem:[%s6925_s12 + $0x28] sm:$0xff] %v3991_v22 }
 0x7c6   : > { %v3976_v32 = vadd.f32 %v3968_v49, %v3929_v37  ;;  %v3977_v63 = vadd.f32 %v3968_v49, %v3948_v25 }
 0x7c8   : > { %v3984_v52 = vadd.f32 %v3976_v32, %v7153_v17  ;;  %v3985_v20 = vadd.f32 %v3977_v63, %v7154_v2 }
 0x7ca   : > { %v3992_v0 = vadd.f32 %v4820_v18, %v3984_v52  ;;  %v3993_v13 = vadd.f32 %v4821_v19, %v3985_v20 }
 0x7cc   : > { %4000 = vst [vmem:[%s6925_s12 + $0x30] sm:$0xff] %v3992_v0 }
 0x7cd   : > { %4001 = vst [vmem:[%s6925_s12 + $0x38] sm:$0xff] %v3993_v13 }
 0x7ce   : > { %4909 = shalt.err (!%p4906_p12)
}
 0x7cf   : > { %s4968_s23 = smov 256  }
 0x7d0   : > { %4670 = dma.vmem_to_hbm [thread:$0]  (%p5076_p7), %s4016_s14, 1024, %s4018_s28, %s4003_s10, %s4968_s23, %s4968_s23, %s4959_s30  }
 0x7d1 PF: > { %s4032_s29 = sand.u32 1, %s4940_s24   ;;  %p7155_p13 = scmp.ge.s32.totalorder %s4952_s27, 2 }
 0x7d2   : > { %s4033_s12 = scalar_lea.sflag [#allocation4], %s4032_s29 }
 0x7d3   : > { %p4681_p0 = pnand %p7155_p13, %p5044_p6 }
 0x7d5   : > { %p4682_p3 = pneg %p4681_p0 }
 0x7d7   : > { %4935 = dma.done.wait (%p4682_p3), %s4033_s12, 1024  }
 0x7d8   : > { %4937 = vsyncadd (%p4682_p3), %s4033_s12, 4294966272  ;;  %p21_p5 = scmp.ge.s32.totalorder %s5062_s15, 4   ;;  %s7156_s24 = smov %s4944_s25 }
 0x7d9   : > { %s7157_s25 = smov %s4948_s26  ;;  %s7158_s26 = smov %s5072_s20 }
 0x7da   : > { %s7159_s27 = smov %s5062_s15  ;;  %23 = sbr.rel (!%p21_p5) target bundleno = 8 (0x8), region = 137 }
 0x7df   :  { %4039 = vsyncpa [#allocation3], 1 }
 0x7e0   :  { %4041 = vsyncpa [#allocation3 + $0x1], 1 }
 0x7e1   :  { %4042 = vsyncpa [#allocation6], 1 }
 0x7e2   :  { %4043 = vsyncpa [#allocation4], 1 }
 0x7e3   :  { %4045 = vsyncpa [#allocation4 + $0x1], 1 }

</bundles_post_ra>
